<compile_context>
chip_gen: v7x
topology: tpu7x:2x2x1
jax: 0.10.0
libtpu: 0.0.40
codegen_flags: <defaults>
</compile_context>

<pallas_src>
import functools
import numpy as np
import jax
import jax.numpy as jnp
from jax.experimental import pallas as pl
from jax.experimental.pallas import tpu as pltpu


def _round_up(x, m):
    return ((x + m - 1) // m) * m


# ----------------------------------------------------------------------------
# Pallas kernels
# ----------------------------------------------------------------------------
def _mm_bias_act_kernel(x_ref, w_ref, b_ref, o_ref, *, activation):
    acc = jnp.dot(x_ref[...], w_ref[...], preferred_element_type=jnp.float32)
    acc = acc + b_ref[...]
    if activation == "relu":
        acc = jnp.maximum(acc, 0.0)
    elif activation == "sigmoid":
        acc = jax.nn.sigmoid(acc)
    o_ref[...] = acc.astype(o_ref.dtype)


def _dense_middle_kernel(h_ref, eps_ref,
                         w1_ref, b1_ref, wmu_ref, bmu_ref, wlv_ref, blv_ref,
                         w3_ref, b3_ref, w4_ref, b4_ref, out_ref):
    # e_fc (relu)
    h = jnp.dot(h_ref[...], w1_ref[...], preferred_element_type=jnp.float32) + b1_ref[...]
    h = jnp.maximum(h, 0.0).astype(jnp.bfloat16)
    # mu / logvar heads
    mu = jnp.dot(h, wmu_ref[...], preferred_element_type=jnp.float32) + bmu_ref[...]
    lv = jnp.dot(h, wlv_ref[...], preferred_element_type=jnp.float32) + blv_ref[...]
    # reparameterize: z = mu + eps * exp(0.5 * logvar)
    z = (mu + eps_ref[...] * jnp.exp(0.5 * lv)).astype(jnp.bfloat16)
    # decoder FCs (relu)
    d = jnp.dot(z, w3_ref[...], preferred_element_type=jnp.float32) + b3_ref[...]
    d = jnp.maximum(d, 0.0).astype(jnp.bfloat16)
    d = jnp.dot(d, w4_ref[...], preferred_element_type=jnp.float32) + b4_ref[...]
    d = jnp.maximum(d, 0.0)
    out_ref[...] = d.astype(out_ref.dtype)


# ----------------------------------------------------------------------------
# pallas_call wrappers
# ----------------------------------------------------------------------------
def matmul_bias_act(x, w, b, activation="none", tm=512, out_dtype=jnp.bfloat16):
    """x:(M,K) @ w:(K,N) + b:(1,N), activation fused.  Grid only over M.

    K and N blocks span the full dims (weights resident in VMEM, constant
    block index -> no re-DMA across grid steps); tm is clamped so small
    layers become a single grid step while big layers (M=2048) get multiple
    parallel steps for megacore pipelining.
    """
    M, K = x.shape
    Kw, N = w.shape
    assert Kw == K, (Kw, K)
    x = x.astype(jnp.bfloat16)
    tm = min(tm, _round_up(M, 8))
    Mp = _round_up(M, tm)
    if Mp > M:
        x = jnp.pad(x, ((0, Mp - M), (0, 0)))

    out = pl.pallas_call(
        functools.partial(_mm_bias_act_kernel, activation=activation),
        out_shape=jax.ShapeDtypeStruct((Mp, N), out_dtype),
        grid_spec=pltpu.PrefetchScalarGridSpec(
            num_scalar_prefetch=0,
            grid=(Mp // tm,),
            in_specs=[
                pl.BlockSpec((tm, K), lambda i: (i, 0)),
                pl.BlockSpec((K, N), lambda i: (0, 0)),
                pl.BlockSpec((1, N), lambda i: (0, 0)),
            ],
            out_specs=pl.BlockSpec((tm, N), lambda i: (i, 0)),
        ),
        compiler_params=pltpu.CompilerParams(
            dimension_semantics=("parallel",)),
    )(x, w, b)
    return out[:M] if Mp > M else out


def _full(shape):
    return pl.BlockSpec(shape, lambda: (0,) * len(shape))


def dense_middle(h, eps, pp):
    """Fused e_fc -> mu/logvar -> reparameterize -> d_fc1 -> d_fc2."""
    B = h.shape[0]
    Bp = _round_up(B, 8)
    hb = h.astype(jnp.bfloat16)
    ep = eps.astype(jnp.float32)
    if Bp > B:
        hb = jnp.pad(hb, ((0, Bp - B), (0, 0)))
        ep = jnp.pad(ep, ((0, Bp - B), (0, 0)))
    args = (hb, ep,
            pp["e_fc_w"], pp["e_fc_b"], pp["e_mu_w"], pp["e_mu_b"],
            pp["e_lv_w"], pp["e_lv_b"], pp["d_fc1_w"], pp["d_fc1_b"],
            pp["d_fc2_w"], pp["d_fc2_b"])
    Nout = pp["d_fc2_w"].shape[1]
    out = pl.pallas_call(
        _dense_middle_kernel,
        out_shape=jax.ShapeDtypeStruct((Bp, Nout), jnp.bfloat16),
        in_specs=[_full(a.shape) for a in args],
        out_specs=_full((Bp, Nout)),
    )(*args)
    return out[:B]


# ----------------------------------------------------------------------------
# Conv / ConvTranspose (NHWC, im2col outside, matmul in Pallas)
# ----------------------------------------------------------------------------
def conv2d_nhwc(x, w_packed, b_packed, activation, out_dtype=jnp.bfloat16):
    """4x4 stride-2 pad-1 conv.  x:(B,H,W,Cin) NHWC, w_packed:(16*Cin, Cout)."""
    B, H, W, Cin = x.shape
    kh = kw = 4
    stride, pad = 2, 1
    Ho = (H + 2 * pad - kh) // stride + 1
    Wo = (W + 2 * pad - kw) // stride + 1
    xp = jnp.pad(x, ((0, 0), (pad, pad), (pad, pad), (0, 0)))
    cols = []
    for r in range(kh):
        for c in range(kw):
            cols.append(xp[:, r:r + stride * Ho:stride, c:c + stride * Wo:stride, :])
    col = jnp.stack(cols, axis=3).reshape(B * Ho * Wo, kh * kw * Cin)
    out = matmul_bias_act(col, w_packed, b_packed, activation, out_dtype=out_dtype)
    return out.reshape(B, Ho, Wo, -1)


def deconv_s2_nhwc(x, w_packed, b_packed, activation, out_dtype=jnp.bfloat16):
    """4x4 stride-2 pad-1 ConvTranspose via sub-kernel (sub-pixel) decomposition.

    x:(B,H,W,Cin) NHWC -> (B,2H,2W,Cout).  w_packed:(9*Cin, 4*Cout) holds the
    four 2x2 parity sub-kernels embedded in a shared 3x3 window (structural
    zeros), so a single matmul produces all four output parities in lanes.
    """
    B, H, W, Cin = x.shape
    xp = jnp.pad(x, ((0, 0), (1, 1), (1, 1), (0, 0)))
    cols = []
    for r in range(3):
        for c in range(3):
            cols.append(xp[:, r:r + H, c:c + W, :])
    col = jnp.stack(cols, axis=3).reshape(B * H * W, 9 * Cin)
    out = matmul_bias_act(col, w_packed, b_packed, activation, out_dtype=out_dtype)
    Cout = out.shape[-1] // 4
    out = out.reshape(B, H, W, 2, 2, Cout)               # (b, m, n, py, px, c)
    out = out.transpose(0, 1, 3, 2, 4, 5).reshape(B, 2 * H, 2 * W, Cout)
    return out


# ----------------------------------------------------------------------------
# Parameters: deterministic init (PyTorch layouts) + one-time packing
# ----------------------------------------------------------------------------
def init_params(latent_dim=32, seed=0):
    keys = iter(jax.random.split(jax.random.PRNGKey(seed), 16))

    def kinit(shape, fan_in):
        std = float(np.sqrt(2.0 / fan_in))
        return std * jax.random.normal(next(keys), shape, jnp.float32)

    raw = {}
    # encoder convs: Conv2d layout (Cout, Cin, 4, 4)
    raw["e_conv1"] = (kinit((32, 3, 4, 4), 3 * 16), jnp.zeros((32,)))
    raw["e_conv2"] = (kinit((32, 32, 4, 4), 32 * 16), jnp.zeros((32,)))
    raw["e_conv3"] = (kinit((64, 32, 4, 4), 32 * 16), jnp.zeros((64,)))
    raw["e_conv4"] = (kinit((64, 64, 4, 4), 64 * 16), jnp.zeros((64,)))
    # encoder / decoder FCs stored as (in, out); flatten order is CHW (PyTorch)
    raw["e_fc"] = (kinit((1024, 256), 1024), jnp.zeros((256,)))
    raw["e_mu"] = (kinit((256, latent_dim), 256), jnp.zeros((latent_dim,)))
    raw["e_lv"] = (kinit((256, latent_dim), 256), jnp.zeros((latent_dim,)))
    raw["d_fc1"] = (kinit((latent_dim, 256), latent_dim), jnp.zeros((256,)))
    raw["d_fc2"] = (kinit((256, 1024), 256), jnp.zeros((1024,)))
    # decoder deconvs: ConvTranspose2d layout (Cin, Cout, 4, 4)
    raw["d_dc1"] = (kinit((64, 64, 4, 4), 64 * 16), jnp.zeros((64,)))
    raw["d_dc2"] = (kinit((64, 32, 4, 4), 64 * 16), jnp.zeros((32,)))
    raw["d_dc3"] = (kinit((32, 32, 4, 4), 32 * 16), jnp.zeros((32,)))
    raw["d_dc4"] = (kinit((32, 3, 4, 4), 32 * 16), jnp.zeros((3,)))
    return raw


def _pack_linear(w, b):
    return (jnp.asarray(np.asarray(w, np.float32), jnp.bfloat16),
            jnp.asarray(np.asarray(b, np.float32).reshape(1, -1)))


def _pack_conv(w, b):
    w = np.asarray(w, np.float32)                        # (Cout, Cin, kh, kw)
    Cout, Cin, kh, kw = w.shape
    wm = w.transpose(2, 3, 1, 0).reshape(kh * kw * Cin, Cout)   # K = (r, c, cin)
    return (jnp.asarray(wm, jnp.bfloat16),
            jnp.asarray(np.asarray(b, np.float32).reshape(1, -1)))


def _pack_deconv_s2(w, b):
    """Pack ConvTranspose2d (Cin,Cout,4,4), stride 2, pad 1, into (9*Cin, 4*Cout).

    Output column layout is (py, px, cout); K layout is (r, c, cin) over the
    3x3 window of the (pad-1) input starting at the output's base pixel.
    """
    w = np.asarray(w, np.float32)
    Cin, Cout = w.shape[0], w.shape[1]
    wp = np.zeros((3, 3, Cin, 2, 2, Cout), np.float32)
    for py in range(2):
        for px in range(2):
            for dy in range(2):
                for dx in range(2):
                    wp[py + dy, px + dx, :, py, px, :] = \
                        w[:, :, 3 - py - 2 * dy, 3 - px - 2 * dx]
    wm = wp.reshape(9 * Cin, 4 * Cout)
    bm = np.tile(np.asarray(b, np.float32), 4).reshape(1, -1)
    return jnp.asarray(wm, jnp.bfloat16), jnp.asarray(bm)


def pack_params(raw):
    pp = {}
    for name in ("e_conv1", "e_conv2", "e_conv3", "e_conv4"):
        pp[name + "_w"], pp[name + "_b"] = _pack_conv(*raw[name])

    # e_fc: permute rows (c,y,x)->(y,x,c) so the NHWC flatten feeds it directly
    # (absorbs the PyTorch CHW-flatten transpose into the packed weight).
    w, b = raw["e_fc"]
    w = (np.asarray(w, np.float32).reshape(64, 4, 4, -1)
         .transpose(1, 2, 0, 3).reshape(1024, -1))
    pp["e_fc_w"], pp["e_fc_b"] = _pack_linear(w, b)

    for name in ("e_mu", "e_lv", "d_fc1"):
        pp[name + "_w"], pp[name + "_b"] = _pack_linear(*raw[name])

    # d_fc2: permute cols (c,y,x)->(y,x,c) so the output reshapes straight to NHWC.
    w, b = raw["d_fc2"]
    w = (np.asarray(w, np.float32).reshape(-1, 64, 4, 4)
         .transpose(0, 2, 3, 1).reshape(-1, 1024))
    b = np.asarray(b, np.float32).reshape(64, 4, 4).transpose(1, 2, 0).reshape(-1)
    pp["d_fc2_w"], pp["d_fc2_b"] = _pack_linear(w, b)

    for name in ("d_dc1", "d_dc2", "d_dc3", "d_dc4"):
        pp[name + "_w"], pp[name + "_b"] = _pack_deconv_s2(*raw[name])
    return pp


# ----------------------------------------------------------------------------
# betaVAECelebA forward
# ----------------------------------------------------------------------------
def beta_vae_forward(pp, x, eps):
    B = x.shape[0]
    # NCHW -> NHWC once at entry; activations stay bf16 NHWC internally.
    h = x.transpose(0, 2, 3, 1).astype(jnp.bfloat16)
    # ---- variational encoder ----
    h = conv2d_nhwc(h, pp["e_conv1_w"], pp["e_conv1_b"], "relu")    # (B,32,32,32)
    h = conv2d_nhwc(h, pp["e_conv2_w"], pp["e_conv2_b"], "relu")    # (B,16,16,32)
    h = conv2d_nhwc(h, pp["e_conv3_w"], pp["e_conv3_b"], "relu")    # (B, 8, 8,64)
    h = conv2d_nhwc(h, pp["e_conv4_w"], pp["e_conv4_b"], "relu")    # (B, 4, 4,64)
    h = h.reshape(B, -1)          # HWC flatten; CHW permutation baked into e_fc_w
    # ---- fused FC / reparameterize / FC block ----
    d = dense_middle(h, eps, pp)                                    # (B,1024) in (y,x,c)
    d = d.reshape(B, 4, 4, 64)    # already NHWC; permutation baked into d_fc2_w
    # ---- decoder ----
    d = deconv_s2_nhwc(d, pp["d_dc1_w"], pp["d_dc1_b"], "relu")                            # (B, 8, 8,64)
    d = deconv_s2_nhwc(d, pp["d_dc2_w"], pp["d_dc2_b"], "relu")                            # (B,16,16,32)
    d = deconv_s2_nhwc(d, pp["d_dc3_w"], pp["d_dc3_b"], "relu")                            # (B,32,32,32)
    d = deconv_s2_nhwc(d, pp["d_dc4_w"], pp["d_dc4_b"], "sigmoid", out_dtype=jnp.float32)  # (B,64,64, 3)
    return d.transpose(0, 3, 1, 2)                                  # back to NCHW


# ----------------------------------------------------------------------------
if __name__ == "__main__":
    LATENT = 32
    B = 2
    key = jax.random.PRNGKey(0)
    kx, keps = jax.random.split(key)
    x = jax.random.uniform(kx, (B, 3, 64, 64), jnp.float32)     # NCHW, [0,1)
    eps = jax.random.normal(keps, (B, LATENT), jnp.float32)     # reparam noise

    raw = init_params(LATENT, seed=0)
    packed = pack_params(raw)                                   # one-time weight packing

    fwd = jax.jit(beta_vae_forward)
    out = fwd(packed, x, eps)
    jax.block_until_ready(out)

    assert out.shape == (B, 3, 64, 64), out.shape
    assert out.dtype == jnp.float32
    assert bool(jnp.all(jnp.isfinite(out)))
    assert bool(jnp.all((out >= 0.0) & (out <= 1.0)))           # sigmoid range
    print("KERNEL_OK")
</pallas_src>

<mosaic_0001>
module attributes {stable_mosaic.version = 11 : i64} {
  func.func @_mm_bias_act_kernel(%arg0: i32, %arg1: memref<512x48xbf16, #tpu.memory_space<vmem>>, %arg2: memref<48x32xbf16, #tpu.memory_space<vmem>>, %arg3: memref<1x32xf32, #tpu.memory_space<vmem>>, %arg4: memref<512x32xbf16, #tpu.memory_space<vmem>>) attributes {dimension_semantics = [#tpu.dimension_semantics<parallel>], iteration_bounds = array<i64: 4>, scalar_prefetch = 0 : i64, scratch_operands = 0 : i64, tpu.core_type = #tpu.core_type<tc>, window_params = [{transform_indices = @transform_0, window_bounds = array<i64: 512, 48>}, {pipeline_mode = #tpu.pipeline_mode<synchronous>, transform_indices = @transform_1, window_bounds = array<i64: 48, 32>}, {pipeline_mode = #tpu.pipeline_mode<synchronous>, transform_indices = @transform_2, window_bounds = array<i64: 1, 32>}, {transform_indices = @transform_3, window_bounds = array<i64: 512, 32>}]} {
    %c0 = arith.constant 0 : index
    %c0_0 = arith.constant 0 : index
    %0 = vector.load %arg1[%c0, %c0_0] : memref<512x48xbf16, #tpu.memory_space<vmem>>, vector<512x48xbf16>
    %c0_1 = arith.constant 0 : index
    %c0_2 = arith.constant 0 : index
    %1 = vector.load %arg2[%c0_1, %c0_2] : memref<48x32xbf16, #tpu.memory_space<vmem>>, vector<48x32xbf16>
    %cst = arith.constant dense<0.000000e+00> : vector<512x32xf32>
    %2 = tpu.matmul %0, %1, %cst {dimension_numbers = #tpu.dot_dimension_numbers<[1], [0], [0], [1], [0, 0, 1, 1], [], []>} : vector<512x48xbf16>, vector<48x32xbf16>, vector<512x32xf32> -> vector<512x32xf32>
    %c0_3 = arith.constant 0 : index
    %c0_4 = arith.constant 0 : index
    %3 = vector.load %arg3[%c0_3, %c0_4] : memref<1x32xf32, #tpu.memory_space<vmem>>, vector<1x32xf32>
    %4 = vector.broadcast %3 : vector<1x32xf32> to vector<512x32xf32>
    %5 = arith.addf %2, %4 : vector<512x32xf32>
    %cst_5 = arith.constant 0.000000e+00 : f32
    %6 = vector.broadcast %cst_5 : f32 to vector<512x32xf32>
    %7 = arith.maximumf %5, %6 : vector<512x32xf32>
    %8 = arith.truncf %7 : vector<512x32xf32> to vector<512x32xbf16>
    %c0_6 = arith.constant 0 : index
    %c0_7 = arith.constant 0 : index
    %9 = vector.load %arg4[%c0_6, %c0_7] : memref<512x32xbf16, #tpu.memory_space<vmem>>, vector<512x32xbf16>
    tpu.vector_store %arg4[%c0_6, %c0_7], %8 {strides = array<i32>} : memref<512x32xbf16, #tpu.memory_space<vmem>>, vector<512x32xbf16>,
    return
  }
  func.func @transform_0(%arg0: i32) -> (i32, i32) {
    %c0_i32 = arith.constant 0 : i32
    %c0_i32_0 = arith.constant 0 : i32
    return %arg0, %c0_i32 : i32, i32
  }
  func.func @transform_1(%arg0: i32) -> (i32, i32) {
    %c0_i32 = arith.constant 0 : i32
    %c0_i32_0 = arith.constant 0 : i32
    %c0_i32_1 = arith.constant 0 : i32
    return %c0_i32, %c0_i32_0 : i32, i32
  }
  func.func @transform_2(%arg0: i32) -> (i32, i32) {
    %c0_i32 = arith.constant 0 : i32
    %c0_i32_0 = arith.constant 0 : i32
    %c0_i32_1 = arith.constant 0 : i32
    return %c0_i32, %c0_i32_0 : i32, i32
  }
  func.func @transform_3(%arg0: i32) -> (i32, i32) {
    %c0_i32 = arith.constant 0 : i32
    %c0_i32_0 = arith.constant 0 : i32
    return %arg0, %c0_i32 : i32, i32
  }
}

module attributes {stable_mosaic.version = 11 : i64} {
  func.func @_mm_bias_act_kernel(%arg0: i32, %arg1: memref<512x512xbf16, #tpu.memory_space<vmem>>, %arg2: memref<512x32xbf16, #tpu.memory_space<vmem>>, %arg3: memref<1x32xf32, #tpu.memory_space<vmem>>, %arg4: memref<512x32xbf16, #tpu.memory_space<vmem>>) attributes {dimension_semantics = [#tpu.dimension_semantics<parallel>], iteration_bounds = array<i64: 1>, scalar_prefetch = 0 : i64, scratch_operands = 0 : i64, tpu.core_type = #tpu.core_type<tc>, window_params = [{transform_indices = @transform_0, window_bounds = array<i64: 512, 512>}, {pipeline_mode = #tpu.pipeline_mode<synchronous>, transform_indices = @transform_1, window_bounds = array<i64: 512, 32>}, {pipeline_mode = #tpu.pipeline_mode<synchronous>, transform_indices = @transform_2, window_bounds = array<i64: 1, 32>}, {transform_indices = @transform_3, window_bounds = array<i64: 512, 32>}]} {
    %c0 = arith.constant 0 : index
    %c0_0 = arith.constant 0 : index
    %0 = vector.load %arg1[%c0, %c0_0] : memref<512x512xbf16, #tpu.memory_space<vmem>>, vector<512x512xbf16>
    %c0_1 = arith.constant 0 : index
    %c0_2 = arith.constant 0 : index
    %1 = vector.load %arg2[%c0_1, %c0_2] : memref<512x32xbf16, #tpu.memory_space<vmem>>, vector<512x32xbf16>
    %cst = arith.constant dense<0.000000e+00> : vector<512x32xf32>
    %2 = tpu.matmul %0, %1, %cst {dimension_numbers = #tpu.dot_dimension_numbers<[1], [0], [0], [1], [0, 0, 1, 1], [], []>} : vector<512x512xbf16>, vector<512x32xbf16>, vector<512x32xf32> -> vector<512x32xf32>
    %c0_3 = arith.constant 0 : index
    %c0_4 = arith.constant 0 : index
    %3 = vector.load %arg3[%c0_3, %c0_4] : memref<1x32xf32, #tpu.memory_space<vmem>>, vector<1x32xf32>
    %4 = vector.broadcast %3 : vector<1x32xf32> to vector<512x32xf32>
    %5 = arith.addf %2, %4 : vector<512x32xf32>
    %cst_5 = arith.constant 0.000000e+00 : f32
    %6 = vector.broadcast %cst_5 : f32 to vector<512x32xf32>
    %7 = arith.maximumf %5, %6 : vector<512x32xf32>
    %8 = arith.truncf %7 : vector<512x32xf32> to vector<512x32xbf16>
    %c0_6 = arith.constant 0 : index
    %c0_7 = arith.constant 0 : index
    %9 = vector.load %arg4[%c0_6, %c0_7] : memref<512x32xbf16, #tpu.memory_space<vmem>>, vector<512x32xbf16>
    tpu.vector_store %arg4[%c0_6, %c0_7], %8 {strides = array<i32>} : memref<512x32xbf16, #tpu.memory_space<vmem>>, vector<512x32xbf16>,
    return
  }
  func.func @transform_0(%arg0: i32) -> (i32, i32) {
    %c0_i32 = arith.constant 0 : i32
    %c0_i32_0 = arith.constant 0 : i32
    return %arg0, %c0_i32 : i32, i32
  }
  func.func @transform_1(%arg0: i32) -> (i32, i32) {
    %c0_i32 = arith.constant 0 : i32
    %c0_i32_0 = arith.constant 0 : i32
    %c0_i32_1 = arith.constant 0 : i32
    return %c0_i32, %c0_i32_0 : i32, i32
  }
  func.func @transform_2(%arg0: i32) -> (i32, i32) {
    %c0_i32 = arith.constant 0 : i32
    %c0_i32_0 = arith.constant 0 : i32
    %c0_i32_1 = arith.constant 0 : i32
    return %c0_i32, %c0_i32_0 : i32, i32
  }
  func.func @transform_3(%arg0: i32) -> (i32, i32) {
    %c0_i32 = arith.constant 0 : i32
    %c0_i32_0 = arith.constant 0 : i32
    return %arg0, %c0_i32 : i32, i32
  }
}

module attributes {stable_mosaic.version = 11 : i64} {
  func.func @_mm_bias_act_kernel(%arg0: i32, %arg1: memref<128x512xbf16, #tpu.memory_space<vmem>>, %arg2: memref<512x64xbf16, #tpu.memory_space<vmem>>, %arg3: memref<1x64xf32, #tpu.memory_space<vmem>>, %arg4: memref<128x64xbf16, #tpu.memory_space<vmem>>) attributes {dimension_semantics = [#tpu.dimension_semantics<parallel>], iteration_bounds = array<i64: 1>, scalar_prefetch = 0 : i64, scratch_operands = 0 : i64, tpu.core_type = #tpu.core_type<tc>, window_params = [{transform_indices = @transform_0, window_bounds = array<i64: 128, 512>}, {pipeline_mode = #tpu.pipeline_mode<synchronous>, transform_indices = @transform_1, window_bounds = array<i64: 512, 64>}, {pipeline_mode = #tpu.pipeline_mode<synchronous>, transform_indices = @transform_2, window_bounds = array<i64: 1, 64>}, {transform_indices = @transform_3, window_bounds = array<i64: 128, 64>}]} {
    %c0 = arith.constant 0 : index
    %c0_0 = arith.constant 0 : index
    %0 = vector.load %arg1[%c0, %c0_0] : memref<128x512xbf16, #tpu.memory_space<vmem>>, vector<128x512xbf16>
    %c0_1 = arith.constant 0 : index
    %c0_2 = arith.constant 0 : index
    %1 = vector.load %arg2[%c0_1, %c0_2] : memref<512x64xbf16, #tpu.memory_space<vmem>>, vector<512x64xbf16>
    %cst = arith.constant dense<0.000000e+00> : vector<128x64xf32>
    %2 = tpu.matmul %0, %1, %cst {dimension_numbers = #tpu.dot_dimension_numbers<[1], [0], [0], [1], [0, 0, 1, 1], [], []>} : vector<128x512xbf16>, vector<512x64xbf16>, vector<128x64xf32> -> vector<128x64xf32>
    %c0_3 = arith.constant 0 : index
    %c0_4 = arith.constant 0 : index
    %3 = vector.load %arg3[%c0_3, %c0_4] : memref<1x64xf32, #tpu.memory_space<vmem>>, vector<1x64xf32>
    %4 = vector.broadcast %3 : vector<1x64xf32> to vector<128x64xf32>
    %5 = arith.addf %2, %4 : vector<128x64xf32>
    %cst_5 = arith.constant 0.000000e+00 : f32
    %6 = vector.broadcast %cst_5 : f32 to vector<128x64xf32>
    %7 = arith.maximumf %5, %6 : vector<128x64xf32>
    %8 = arith.truncf %7 : vector<128x64xf32> to vector<128x64xbf16>
    %c0_6 = arith.constant 0 : index
    %c0_7 = arith.constant 0 : index
    %9 = vector.load %arg4[%c0_6, %c0_7] : memref<128x64xbf16, #tpu.memory_space<vmem>>, vector<128x64xbf16>
    tpu.vector_store %arg4[%c0_6, %c0_7], %8 {strides = array<i32>} : memref<128x64xbf16, #tpu.memory_space<vmem>>, vector<128x64xbf16>,
    return
  }
  func.func @transform_0(%arg0: i32) -> (i32, i32) {
    %c0_i32 = arith.constant 0 : i32
    %c0_i32_0 = arith.constant 0 : i32
    return %arg0, %c0_i32 : i32, i32
  }
  func.func @transform_1(%arg0: i32) -> (i32, i32) {
    %c0_i32 = arith.constant 0 : i32
    %c0_i32_0 = arith.constant 0 : i32
    %c0_i32_1 = arith.constant 0 : i32
    return %c0_i32, %c0_i32_0 : i32, i32
  }
  func.func @transform_2(%arg0: i32) -> (i32, i32) {
    %c0_i32 = arith.constant 0 : i32
    %c0_i32_0 = arith.constant 0 : i32
    %c0_i32_1 = arith.constant 0 : i32
    return %c0_i32, %c0_i32_0 : i32, i32
  }
  func.func @transform_3(%arg0: i32) -> (i32, i32) {
    %c0_i32 = arith.constant 0 : i32
    %c0_i32_0 = arith.constant 0 : i32
    return %arg0, %c0_i32 : i32, i32
  }
}

module attributes {stable_mosaic.version = 11 : i64} {
  func.func @_mm_bias_act_kernel(%arg0: i32, %arg1: memref<32x1024xbf16, #tpu.memory_space<vmem>>, %arg2: memref<1024x64xbf16, #tpu.memory_space<vmem>>, %arg3: memref<1x64xf32, #tpu.memory_space<vmem>>, %arg4: memref<32x64xbf16, #tpu.memory_space<vmem>>) attributes {dimension_semantics = [#tpu.dimension_semantics<parallel>], iteration_bounds = array<i64: 1>, scalar_prefetch = 0 : i64, scratch_operands = 0 : i64, tpu.core_type = #tpu.core_type<tc>, window_params = [{transform_indices = @transform_0, window_bounds = array<i64: 32, 1024>}, {pipeline_mode = #tpu.pipeline_mode<synchronous>, transform_indices = @transform_1, window_bounds = array<i64: 1024, 64>}, {pipeline_mode = #tpu.pipeline_mode<synchronous>, transform_indices = @transform_2, window_bounds = array<i64: 1, 64>}, {transform_indices = @transform_3, window_bounds = array<i64: 32, 64>}]} {
    %c0 = arith.constant 0 : index
    %c0_0 = arith.constant 0 : index
    %0 = vector.load %arg1[%c0, %c0_0] : memref<32x1024xbf16, #tpu.memory_space<vmem>>, vector<32x1024xbf16>
    %c0_1 = arith.constant 0 : index
    %c0_2 = arith.constant 0 : index
    %1 = vector.load %arg2[%c0_1, %c0_2] : memref<1024x64xbf16, #tpu.memory_space<vmem>>, vector<1024x64xbf16>
    %cst = arith.constant dense<0.000000e+00> : vector<32x64xf32>
    %2 = tpu.matmul %0, %1, %cst {dimension_numbers = #tpu.dot_dimension_numbers<[1], [0], [0], [1], [0, 0, 1, 1], [], []>} : vector<32x1024xbf16>, vector<1024x64xbf16>, vector<32x64xf32> -> vector<32x64xf32>
    %c0_3 = arith.constant 0 : index
    %c0_4 = arith.constant 0 : index
    %3 = vector.load %arg3[%c0_3, %c0_4] : memref<1x64xf32, #tpu.memory_space<vmem>>, vector<1x64xf32>
    %4 = vector.broadcast %3 : vector<1x64xf32> to vector<32x64xf32>
    %5 = arith.addf %2, %4 : vector<32x64xf32>
    %cst_5 = arith.constant 0.000000e+00 : f32
    %6 = vector.broadcast %cst_5 : f32 to vector<32x64xf32>
    %7 = arith.maximumf %5, %6 : vector<32x64xf32>
    %8 = arith.truncf %7 : vector<32x64xf32> to vector<32x64xbf16>
    %c0_6 = arith.constant 0 : index
    %c0_7 = arith.constant 0 : index
    %9 = vector.load %arg4[%c0_6, %c0_7] : memref<32x64xbf16, #tpu.memory_space<vmem>>, vector<32x64xbf16>
    tpu.vector_store %arg4[%c0_6, %c0_7], %8 {strides = array<i32>} : memref<32x64xbf16, #tpu.memory_space<vmem>>, vector<32x64xbf16>,
    return
  }
  func.func @transform_0(%arg0: i32) -> (i32, i32) {
    %c0_i32 = arith.constant 0 : i32
    %c0_i32_0 = arith.constant 0 : i32
    return %arg0, %c0_i32 : i32, i32
  }
  func.func @transform_1(%arg0: i32) -> (i32, i32) {
    %c0_i32 = arith.constant 0 : i32
    %c0_i32_0 = arith.constant 0 : i32
    %c0_i32_1 = arith.constant 0 : i32
    return %c0_i32, %c0_i32_0 : i32, i32
  }
  func.func @transform_2(%arg0: i32) -> (i32, i32) {
    %c0_i32 = arith.constant 0 : i32
    %c0_i32_0 = arith.constant 0 : i32
    %c0_i32_1 = arith.constant 0 : i32
    return %c0_i32, %c0_i32_0 : i32, i32
  }
  func.func @transform_3(%arg0: i32) -> (i32, i32) {
    %c0_i32 = arith.constant 0 : i32
    %c0_i32_0 = arith.constant 0 : i32
    return %arg0, %c0_i32 : i32, i32
  }
}

module attributes {stable_mosaic.version = 11 : i64} {
  func.func @_dense_middle_kernel(%arg0: memref<8x1024xbf16, #tpu.memory_space<vmem>>, %arg1: memref<8x32xf32, #tpu.memory_space<vmem>>, %arg2: memref<1024x256xbf16, #tpu.memory_space<vmem>>, %arg3: memref<1x256xf32, #tpu.memory_space<vmem>>, %arg4: memref<256x32xbf16, #tpu.memory_space<vmem>>, %arg5: memref<1x32xf32, #tpu.memory_space<vmem>>, %arg6: memref<256x32xbf16, #tpu.memory_space<vmem>>, %arg7: memref<1x32xf32, #tpu.memory_space<vmem>>, %arg8: memref<32x256xbf16, #tpu.memory_space<vmem>>, %arg9: memref<1x256xf32, #tpu.memory_space<vmem>>, %arg10: memref<256x1024xbf16, #tpu.memory_space<vmem>>, %arg11: memref<1x1024xf32, #tpu.memory_space<vmem>>, %arg12: memref<8x1024xbf16, #tpu.memory_space<vmem>>) attributes {dimension_semantics = [], scalar_prefetch = 0 : i64, scratch_operands = 0 : i64, tpu.core_type = #tpu.core_type<tc>} {
    %c0 = arith.constant 0 : index
    %c0_0 = arith.constant 0 : index
    %0 = vector.load %arg0[%c0, %c0_0] : memref<8x1024xbf16, #tpu.memory_space<vmem>>, vector<8x1024xbf16>
    %c0_1 = arith.constant 0 : index
    %c0_2 = arith.constant 0 : index
    %1 = vector.load %arg2[%c0_1, %c0_2] : memref<1024x256xbf16, #tpu.memory_space<vmem>>, vector<1024x256xbf16>
    %cst = arith.constant dense<0.000000e+00> : vector<8x256xf32>
    %2 = tpu.matmul %0, %1, %cst {dimension_numbers = #tpu.dot_dimension_numbers<[1], [0], [0], [1], [0, 0, 1, 1], [], []>} : vector<8x1024xbf16>, vector<1024x256xbf16>, vector<8x256xf32> -> vector<8x256xf32>
    %c0_3 = arith.constant 0 : index
    %c0_4 = arith.constant 0 : index
    %3 = vector.load %arg3[%c0_3, %c0_4] : memref<1x256xf32, #tpu.memory_space<vmem>>, vector<1x256xf32>
    %4 = vector.broadcast %3 : vector<1x256xf32> to vector<8x256xf32>
    %5 = arith.addf %2, %4 : vector<8x256xf32>
    %cst_5 = arith.constant 0.000000e+00 : f32
    %6 = vector.broadcast %cst_5 : f32 to vector<8x256xf32>
    %7 = arith.maximumf %5, %6 : vector<8x256xf32>
    %8 = arith.truncf %7 : vector<8x256xf32> to vector<8x256xbf16>
    %c0_6 = arith.constant 0 : index
    %c0_7 = arith.constant 0 : index
    %9 = vector.load %arg4[%c0_6, %c0_7] : memref<256x32xbf16, #tpu.memory_space<vmem>>, vector<256x32xbf16>
    %cst_8 = arith.constant dense<0.000000e+00> : vector<8x32xf32>
    %10 = tpu.matmul %8, %9, %cst_8 {dimension_numbers = #tpu.dot_dimension_numbers<[1], [0], [0], [1], [0, 0, 1, 1], [], []>} : vector<8x256xbf16>, vector<256x32xbf16>, vector<8x32xf32> -> vector<8x32xf32>
    %c0_9 = arith.constant 0 : index
    %c0_10 = arith.constant 0 : index
    %11 = vector.load %arg5[%c0_9, %c0_10] : memref<1x32xf32, #tpu.memory_space<vmem>>, vector<1x32xf32>
    %12 = vector.broadcast %11 : vector<1x32xf32> to vector<8x32xf32>
    %13 = arith.addf %10, %12 : vector<8x32xf32>
    %c0_11 = arith.constant 0 : index
    %c0_12 = arith.constant 0 : index
    %14 = vector.load %arg6[%c0_11, %c0_12] : memref<256x32xbf16, #tpu.memory_space<vmem>>, vector<256x32xbf16>
    %cst_13 = arith.constant dense<0.000000e+00> : vector<8x32xf32>
    %15 = tpu.matmul %8, %14, %cst_13 {dimension_numbers = #tpu.dot_dimension_numbers<[1], [0], [0], [1], [0, 0, 1, 1], [], []>} : vector<8x256xbf16>, vector<256x32xbf16>, vector<8x32xf32> -> vector<8x32xf32>
    %c0_14 = arith.constant 0 : index
    %c0_15 = arith.constant 0 : index
    %16 = vector.load %arg7[%c0_14, %c0_15] : memref<1x32xf32, #tpu.memory_space<vmem>>, vector<1x32xf32>
    %17 = vector.broadcast %16 : vector<1x32xf32> to vector<8x32xf32>
    %18 = arith.addf %15, %17 : vector<8x32xf32>
    %c0_16 = arith.constant 0 : index
    %c0_17 = arith.constant 0 : index
    %19 = vector.load %arg1[%c0_16, %c0_17] : memref<8x32xf32, #tpu.memory_space<vmem>>, vector<8x32xf32>
    %cst_18 = arith.constant 5.000000e-01 : f32
    %20 = vector.broadcast %cst_18 : f32 to vector<8x32xf32>
    %21 = arith.mulf %20, %18 : vector<8x32xf32>
    %22 = math.exp %21 : vector<8x32xf32>
    %23 = arith.mulf %19, %22 : vector<8x32xf32>
    %24 = arith.addf %13, %23 : vector<8x32xf32>
    %25 = arith.truncf %24 : vector<8x32xf32> to vector<8x32xbf16>
    %c0_19 = arith.constant 0 : index
    %c0_20 = arith.constant 0 : index
    %26 = vector.load %arg8[%c0_19, %c0_20] : memref<32x256xbf16, #tpu.memory_space<vmem>>, vector<32x256xbf16>
    %cst_21 = arith.constant dense<0.000000e+00> : vector<8x256xf32>
    %27 = tpu.matmul %25, %26, %cst_21 {dimension_numbers = #tpu.dot_dimension_numbers<[1], [0], [0], [1], [0, 0, 1, 1], [], []>} : vector<8x32xbf16>, vector<32x256xbf16>, vector<8x256xf32> -> vector<8x256xf32>
    %c0_22 = arith.constant 0 : index
    %c0_23 = arith.constant 0 : index
    %28 = vector.load %arg9[%c0_22, %c0_23] : memref<1x256xf32, #tpu.memory_space<vmem>>, vector<1x256xf32>
    %29 = vector.broadcast %28 : vector<1x256xf32> to vector<8x256xf32>
    %30 = arith.addf %27, %29 : vector<8x256xf32>
    %cst_24 = arith.constant 0.000000e+00 : f32
    %31 = vector.broadcast %cst_24 : f32 to vector<8x256xf32>
    %32 = arith.maximumf %30, %31 : vector<8x256xf32>
    %33 = arith.truncf %32 : vector<8x256xf32> to vector<8x256xbf16>
    %c0_25 = arith.constant 0 : index
    %c0_26 = arith.constant 0 : index
    %34 = vector.load %arg10[%c0_25, %c0_26] : memref<256x1024xbf16, #tpu.memory_space<vmem>>, vector<256x1024xbf16>
    %cst_27 = arith.constant dense<0.000000e+00> : vector<8x1024xf32>
    %35 = tpu.matmul %33, %34, %cst_27 {dimension_numbers = #tpu.dot_dimension_numbers<[1], [0], [0], [1], [0, 0, 1, 1], [], []>} : vector<8x256xbf16>, vector<256x1024xbf16>, vector<8x1024xf32> -> vector<8x1024xf32>
    %c0_28 = arith.constant 0 : index
    %c0_29 = arith.constant 0 : index
    %36 = vector.load %arg11[%c0_28, %c0_29] : memref<1x1024xf32, #tpu.memory_space<vmem>>, vector<1x1024xf32>
    %37 = vector.broadcast %36 : vector<1x1024xf32> to vector<8x1024xf32>
    %38 = arith.addf %35, %37 : vector<8x1024xf32>
    %cst_30 = arith.constant 0.000000e+00 : f32
    %39 = vector.broadcast %cst_30 : f32 to vector<8x1024xf32>
    %40 = arith.maximumf %38, %39 : vector<8x1024xf32>
    %41 = arith.truncf %40 : vector<8x1024xf32> to vector<8x1024xbf16>
    %c0_31 = arith.constant 0 : index
    %c0_32 = arith.constant 0 : index
    %42 = vector.load %arg12[%c0_31, %c0_32] : memref<8x1024xbf16, #tpu.memory_space<vmem>>, vector<8x1024xbf16>
    tpu.vector_store %arg12[%c0_31, %c0_32], %41 {strides = array<i32>} : memref<8x1024xbf16, #tpu.memory_space<vmem>>, vector<8x1024xbf16>,
    return
  }
}

module attributes {stable_mosaic.version = 11 : i64} {
  func.func @_mm_bias_act_kernel(%arg0: i32, %arg1: memref<32x576xbf16, #tpu.memory_space<vmem>>, %arg2: memref<576x256xbf16, #tpu.memory_space<vmem>>, %arg3: memref<1x256xf32, #tpu.memory_space<vmem>>, %arg4: memref<32x256xbf16, #tpu.memory_space<vmem>>) attributes {dimension_semantics = [#tpu.dimension_semantics<parallel>], iteration_bounds = array<i64: 1>, scalar_prefetch = 0 : i64, scratch_operands = 0 : i64, tpu.core_type = #tpu.core_type<tc>, window_params = [{transform_indices = @transform_0, window_bounds = array<i64: 32, 576>}, {pipeline_mode = #tpu.pipeline_mode<synchronous>, transform_indices = @transform_1, window_bounds = array<i64: 576, 256>}, {pipeline_mode = #tpu.pipeline_mode<synchronous>, transform_indices = @transform_2, window_bounds = array<i64: 1, 256>}, {transform_indices = @transform_3, window_bounds = array<i64: 32, 256>}]} {
    %c0 = arith.constant 0 : index
    %c0_0 = arith.constant 0 : index
    %0 = vector.load %arg1[%c0, %c0_0] : memref<32x576xbf16, #tpu.memory_space<vmem>>, vector<32x576xbf16>
    %c0_1 = arith.constant 0 : index
    %c0_2 = arith.constant 0 : index
    %1 = vector.load %arg2[%c0_1, %c0_2] : memref<576x256xbf16, #tpu.memory_space<vmem>>, vector<576x256xbf16>
    %cst = arith.constant dense<0.000000e+00> : vector<32x256xf32>
    %2 = tpu.matmul %0, %1, %cst {dimension_numbers = #tpu.dot_dimension_numbers<[1], [0], [0], [1], [0, 0, 1, 1], [], []>} : vector<32x576xbf16>, vector<576x256xbf16>, vector<32x256xf32> -> vector<32x256xf32>
    %c0_3 = arith.constant 0 : index
    %c0_4 = arith.constant 0 : index
    %3 = vector.load %arg3[%c0_3, %c0_4] : memref<1x256xf32, #tpu.memory_space<vmem>>, vector<1x256xf32>
    %4 = vector.broadcast %3 : vector<1x256xf32> to vector<32x256xf32>
    %5 = arith.addf %2, %4 : vector<32x256xf32>
    %cst_5 = arith.constant 0.000000e+00 : f32
    %6 = vector.broadcast %cst_5 : f32 to vector<32x256xf32>
    %7 = arith.maximumf %5, %6 : vector<32x256xf32>
    %8 = arith.truncf %7 : vector<32x256xf32> to vector<32x256xbf16>
    %c0_6 = arith.constant 0 : index
    %c0_7 = arith.constant 0 : index
    %9 = vector.load %arg4[%c0_6, %c0_7] : memref<32x256xbf16, #tpu.memory_space<vmem>>, vector<32x256xbf16>
    tpu.vector_store %arg4[%c0_6, %c0_7], %8 {strides = array<i32>} : memref<32x256xbf16, #tpu.memory_space<vmem>>, vector<32x256xbf16>,
    return
  }
  func.func @transform_0(%arg0: i32) -> (i32, i32) {
    %c0_i32 = arith.constant 0 : i32
    %c0_i32_0 = arith.constant 0 : i32
    return %arg0, %c0_i32 : i32, i32
  }
  func.func @transform_1(%arg0: i32) -> (i32, i32) {
    %c0_i32 = arith.constant 0 : i32
    %c0_i32_0 = arith.constant 0 : i32
    %c0_i32_1 = arith.constant 0 : i32
    return %c0_i32, %c0_i32_0 : i32, i32
  }
  func.func @transform_2(%arg0: i32) -> (i32, i32) {
    %c0_i32 = arith.constant 0 : i32
    %c0_i32_0 = arith.constant 0 : i32
    %c0_i32_1 = arith.constant 0 : i32
    return %c0_i32, %c0_i32_0 : i32, i32
  }
  func.func @transform_3(%arg0: i32) -> (i32, i32) {
    %c0_i32 = arith.constant 0 : i32
    %c0_i32_0 = arith.constant 0 : i32
    return %arg0, %c0_i32 : i32, i32
  }
}

module attributes {stable_mosaic.version = 11 : i64} {
  func.func @_mm_bias_act_kernel(%arg0: i32, %arg1: memref<128x576xbf16, #tpu.memory_space<vmem>>, %arg2: memref<576x128xbf16, #tpu.memory_space<vmem>>, %arg3: memref<1x128xf32, #tpu.memory_space<vmem>>, %arg4: memref<128x128xbf16, #tpu.memory_space<vmem>>) attributes {dimension_semantics = [#tpu.dimension_semantics<parallel>], iteration_bounds = array<i64: 1>, scalar_prefetch = 0 : i64, scratch_operands = 0 : i64, tpu.core_type = #tpu.core_type<tc>, window_params = [{transform_indices = @transform_0, window_bounds = array<i64: 128, 576>}, {pipeline_mode = #tpu.pipeline_mode<synchronous>, transform_indices = @transform_1, window_bounds = array<i64: 576, 128>}, {pipeline_mode = #tpu.pipeline_mode<synchronous>, transform_indices = @transform_2, window_bounds = array<i64: 1, 128>}, {transform_indices = @transform_3, window_bounds = array<i64: 128, 128>}]} {
    %c0 = arith.constant 0 : index
    %c0_0 = arith.constant 0 : index
    %0 = vector.load %arg1[%c0, %c0_0] : memref<128x576xbf16, #tpu.memory_space<vmem>>, vector<128x576xbf16>
    %c0_1 = arith.constant 0 : index
    %c0_2 = arith.constant 0 : index
    %1 = vector.load %arg2[%c0_1, %c0_2] : memref<576x128xbf16, #tpu.memory_space<vmem>>, vector<576x128xbf16>
    %cst = arith.constant dense<0.000000e+00> : vector<128x128xf32>
    %2 = tpu.matmul %0, %1, %cst {dimension_numbers = #tpu.dot_dimension_numbers<[1], [0], [0], [1], [0, 0, 1, 1], [], []>} : vector<128x576xbf16>, vector<576x128xbf16>, vector<128x128xf32> -> vector<128x128xf32>
    %c0_3 = arith.constant 0 : index
    %c0_4 = arith.constant 0 : index
    %3 = vector.load %arg3[%c0_3, %c0_4] : memref<1x128xf32, #tpu.memory_space<vmem>>, vector<1x128xf32>
    %4 = vector.broadcast %3 : vector<1x128xf32> to vector<128x128xf32>
    %5 = arith.addf %2, %4 : vector<128x128xf32>
    %cst_5 = arith.constant 0.000000e+00 : f32
    %6 = vector.broadcast %cst_5 : f32 to vector<128x128xf32>
    %7 = arith.maximumf %5, %6 : vector<128x128xf32>
    %8 = arith.truncf %7 : vector<128x128xf32> to vector<128x128xbf16>
    %c0_6 = arith.constant 0 : index
    %c0_7 = arith.constant 0 : index
    %9 = vector.load %arg4[%c0_6, %c0_7] : memref<128x128xbf16, #tpu.memory_space<vmem>>, vector<128x128xbf16>
    tpu.vector_store %arg4[%c0_6, %c0_7], %8 {strides = array<i32>} : memref<128x128xbf16, #tpu.memory_space<vmem>>, vector<128x128xbf16>,
    return
  }
  func.func @transform_0(%arg0: i32) -> (i32, i32) {
    %c0_i32 = arith.constant 0 : i32
    %c0_i32_0 = arith.constant 0 : i32
    return %arg0, %c0_i32 : i32, i32
  }
  func.func @transform_1(%arg0: i32) -> (i32, i32) {
    %c0_i32 = arith.constant 0 : i32
    %c0_i32_0 = arith.constant 0 : i32
    %c0_i32_1 = arith.constant 0 : i32
    return %c0_i32, %c0_i32_0 : i32, i32
  }
  func.func @transform_2(%arg0: i32) -> (i32, i32) {
    %c0_i32 = arith.constant 0 : i32
    %c0_i32_0 = arith.constant 0 : i32
    %c0_i32_1 = arith.constant 0 : i32
    return %c0_i32, %c0_i32_0 : i32, i32
  }
  func.func @transform_3(%arg0: i32) -> (i32, i32) {
    %c0_i32 = arith.constant 0 : i32
    %c0_i32_0 = arith.constant 0 : i32
    return %arg0, %c0_i32 : i32, i32
  }
}

module attributes {stable_mosaic.version = 11 : i64} {
  func.func @_mm_bias_act_kernel(%arg0: i32, %arg1: memref<512x288xbf16, #tpu.memory_space<vmem>>, %arg2: memref<288x128xbf16, #tpu.memory_space<vmem>>, %arg3: memref<1x128xf32, #tpu.memory_space<vmem>>, %arg4: memref<512x128xbf16, #tpu.memory_space<vmem>>) attributes {dimension_semantics = [#tpu.dimension_semantics<parallel>], iteration_bounds = array<i64: 1>, scalar_prefetch = 0 : i64, scratch_operands = 0 : i64, tpu.core_type = #tpu.core_type<tc>, window_params = [{transform_indices = @transform_0, window_bounds = array<i64: 512, 288>}, {pipeline_mode = #tpu.pipeline_mode<synchronous>, transform_indices = @transform_1, window_bounds = array<i64: 288, 128>}, {pipeline_mode = #tpu.pipeline_mode<synchronous>, transform_indices = @transform_2, window_bounds = array<i64: 1, 128>}, {transform_indices = @transform_3, window_bounds = array<i64: 512, 128>}]} {
    %c0 = arith.constant 0 : index
    %c0_0 = arith.constant 0 : index
    %0 = vector.load %arg1[%c0, %c0_0] : memref<512x288xbf16, #tpu.memory_space<vmem>>, vector<512x288xbf16>
    %c0_1 = arith.constant 0 : index
    %c0_2 = arith.constant 0 : index
    %1 = vector.load %arg2[%c0_1, %c0_2] : memref<288x128xbf16, #tpu.memory_space<vmem>>, vector<288x128xbf16>
    %cst = arith.constant dense<0.000000e+00> : vector<512x128xf32>
    %2 = tpu.matmul %0, %1, %cst {dimension_numbers = #tpu.dot_dimension_numbers<[1], [0], [0], [1], [0, 0, 1, 1], [], []>} : vector<512x288xbf16>, vector<288x128xbf16>, vector<512x128xf32> -> vector<512x128xf32>
    %c0_3 = arith.constant 0 : index
    %c0_4 = arith.constant 0 : index
    %3 = vector.load %arg3[%c0_3, %c0_4] : memref<1x128xf32, #tpu.memory_space<vmem>>, vector<1x128xf32>
    %4 = vector.broadcast %3 : vector<1x128xf32> to vector<512x128xf32>
    %5 = arith.addf %2, %4 : vector<512x128xf32>
    %cst_5 = arith.constant 0.000000e+00 : f32
    %6 = vector.broadcast %cst_5 : f32 to vector<512x128xf32>
    %7 = arith.maximumf %5, %6 : vector<512x128xf32>
    %8 = arith.truncf %7 : vector<512x128xf32> to vector<512x128xbf16>
    %c0_6 = arith.constant 0 : index
    %c0_7 = arith.constant 0 : index
    %9 = vector.load %arg4[%c0_6, %c0_7] : memref<512x128xbf16, #tpu.memory_space<vmem>>, vector<512x128xbf16>
    tpu.vector_store %arg4[%c0_6, %c0_7], %8 {strides = array<i32>} : memref<512x128xbf16, #tpu.memory_space<vmem>>, vector<512x128xbf16>,
    return
  }
  func.func @transform_0(%arg0: i32) -> (i32, i32) {
    %c0_i32 = arith.constant 0 : i32
    %c0_i32_0 = arith.constant 0 : i32
    return %arg0, %c0_i32 : i32, i32
  }
  func.func @transform_1(%arg0: i32) -> (i32, i32) {
    %c0_i32 = arith.constant 0 : i32
    %c0_i32_0 = arith.constant 0 : i32
    %c0_i32_1 = arith.constant 0 : i32
    return %c0_i32, %c0_i32_0 : i32, i32
  }
  func.func @transform_2(%arg0: i32) -> (i32, i32) {
    %c0_i32 = arith.constant 0 : i32
    %c0_i32_0 = arith.constant 0 : i32
    %c0_i32_1 = arith.constant 0 : i32
    return %c0_i32, %c0_i32_0 : i32, i32
  }
  func.func @transform_3(%arg0: i32) -> (i32, i32) {
    %c0_i32 = arith.constant 0 : i32
    %c0_i32_0 = arith.constant 0 : i32
    return %arg0, %c0_i32 : i32, i32
  }
}

module attributes {stable_mosaic.version = 11 : i64} {
  func.func @_mm_bias_act_kernel(%arg0: i32, %arg1: memref<512x288xbf16, #tpu.memory_space<vmem>>, %arg2: memref<288x12xbf16, #tpu.memory_space<vmem>>, %arg3: memref<1x12xf32, #tpu.memory_space<vmem>>, %arg4: memref<512x12xf32, #tpu.memory_space<vmem>>) attributes {dimension_semantics = [#tpu.dimension_semantics<parallel>], iteration_bounds = array<i64: 4>, scalar_prefetch = 0 : i64, scratch_operands = 0 : i64, tpu.core_type = #tpu.core_type<tc>, window_params = [{transform_indices = @transform_0, window_bounds = array<i64: 512, 288>}, {pipeline_mode = #tpu.pipeline_mode<synchronous>, transform_indices = @transform_1, window_bounds = array<i64: 288, 12>}, {pipeline_mode = #tpu.pipeline_mode<synchronous>, transform_indices = @transform_2, window_bounds = array<i64: 1, 12>}, {transform_indices = @transform_3, window_bounds = array<i64: 512, 12>}]} {
    %c0 = arith.constant 0 : index
    %c0_0 = arith.constant 0 : index
    %0 = vector.load %arg1[%c0, %c0_0] : memref<512x288xbf16, #tpu.memory_space<vmem>>, vector<512x288xbf16>
    %c0_1 = arith.constant 0 : index
    %c0_2 = arith.constant 0 : index
    %1 = vector.load %arg2[%c0_1, %c0_2] : memref<288x12xbf16, #tpu.memory_space<vmem>>, vector<288x12xbf16>
    %cst = arith.constant dense<0.000000e+00> : vector<512x12xf32>
    %2 = tpu.matmul %0, %1, %cst {dimension_numbers = #tpu.dot_dimension_numbers<[1], [0], [0], [1], [0, 0, 1, 1], [], []>} : vector<512x288xbf16>, vector<288x12xbf16>, vector<512x12xf32> -> vector<512x12xf32>
    %c0_3 = arith.constant 0 : index
    %c0_4 = arith.constant 0 : index
    %3 = vector.load %arg3[%c0_3, %c0_4] : memref<1x12xf32, #tpu.memory_space<vmem>>, vector<1x12xf32>
    %4 = vector.broadcast %3 : vector<1x12xf32> to vector<512x12xf32>
    %5 = arith.addf %2, %4 : vector<512x12xf32>
    %6 = arith.negf %5 : vector<512x12xf32>
    %7 = math.exp %6 : vector<512x12xf32>
    %cst_5 = arith.constant 1.000000e+00 : f32
    %8 = vector.broadcast %cst_5 : f32 to vector<512x12xf32>
    %9 = arith.addf %8, %7 : vector<512x12xf32>
    %10 = arith.divf %8, %9 : vector<512x12xf32>
    %c0_6 = arith.constant 0 : index
    %c0_7 = arith.constant 0 : index
    %11 = vector.load %arg4[%c0_6, %c0_7] : memref<512x12xf32, #tpu.memory_space<vmem>>, vector<512x12xf32>
    tpu.vector_store %arg4[%c0_6, %c0_7], %10 {strides = array<i32>} : memref<512x12xf32, #tpu.memory_space<vmem>>, vector<512x12xf32>,
    return
  }
  func.func @transform_0(%arg0: i32) -> (i32, i32) {
    %c0_i32 = arith.constant 0 : i32
    %c0_i32_0 = arith.constant 0 : i32
    return %arg0, %c0_i32 : i32, i32
  }
  func.func @transform_1(%arg0: i32) -> (i32, i32) {
    %c0_i32 = arith.constant 0 : i32
    %c0_i32_0 = arith.constant 0 : i32
    %c0_i32_1 = arith.constant 0 : i32
    return %c0_i32, %c0_i32_0 : i32, i32
  }
  func.func @transform_2(%arg0: i32) -> (i32, i32) {
    %c0_i32 = arith.constant 0 : i32
    %c0_i32_0 = arith.constant 0 : i32
    %c0_i32_1 = arith.constant 0 : i32
    return %c0_i32, %c0_i32_0 : i32, i32
  }
  func.func @transform_3(%arg0: i32) -> (i32, i32) {
    %c0_i32 = arith.constant 0 : i32
    %c0_i32_0 = arith.constant 0 : i32
    return %arg0, %c0_i32 : i32, i32
  }
}

</mosaic_0001>

<bundles_post_ra>
// kernel: beta_vae_forward.9
= control target key start
LH: loop header
LB: loop body
LE: loop exit
PB: predicated region body
PF: predicated region fallthrough
CT: control target
= control target key end

     0   :  { %s1646_s12 = smov 0   ;;  %s1944_s0 = inlined_call_operand.vmem [shape: bf16[2048,48], index: 0, kind: input, shape index: {}]   ;;  %s1945_s1 = inlined_call_operand.vmem [shape: bf16[48,32], index: 1, kind: input, shape index: {}]   ;;  %s1946_s2 = inlined_call_operand.vmem [shape: f32[1,32], index: 2, kind: input, shape index: {}]   ;;  %s1947_s3 = inlined_call_operand.vmem [shape: bf16[2048,32], index: 3, kind: output, shape index: {}]  }
   0x1 LB: > { %s1257_s13 = sadd.s32 4294967295, %s1624_s12   ;;  %p1261_p0 = scmp.ge.s32.totalorder %s1624_s12, 1  ;;  %s1624_s12 = sphi %s1646_s12, %s13_s12  }
   0x2   : > { %p138_p1 = scmp.lt.s32.totalorder %s1624_s12, 5 }
   0x4   : > { %p139_p2 = pnand %p1261_p0, %p138_p1 }
   0x5   : > { %v1583_v0 = vld [vmem:[%s1945_s1] sm:$0xff] (!%p139_p2)   ;;  %s1262_s16 = sshll.u32 (!%p139_p2), %s1257_s13, 6  ;;  %v1584_v1 = vld [vmem:[%s1945_s1 + $0x8] sm:$0xff] (!%p139_p2)   ;;  %v1585_v2 = vld [vmem:[%s1945_s1 + $0x10] sm:$0xff] (!%p139_p2)   ;;  %vm430_vm0 = vcmask (!%p139_p2), 392192   ;;  %vm1136_vm1 = vcmask (!%p139_p2), 257024  }
   0x6   : > { %142 = sbr.rel (%p139_p2) target bundleno = 297 (0x129), region = 32  ;;  %p163_p3 = scmp.lt.s32.totalorder (!%p139_p2), %s1262_s16, 255  ;;  %1499 = vmatprep.subr.bf16.mxu0 (!%p139_p2), %v1583_v0  ;;  %1569 = vmatprep.subr.bf16.mxu1 (!%p139_p2), %v1583_v0  ;;  %v1740_v35 = vld [vmem:[%s1946_s2] ss:$0 sm:$0xff] (!%p139_p2) }
   0x7   : > { %1500 = vmatpush3.bf16.msra.mxu0 (!%p139_p2), %v1583_v0  ;;  %1572 = vmatpush3.bf16.msra.mxu1 (!%p139_p2), %v1583_v0 }
   0x8   : > { %1501 = vmatprep.subr.bf16.mxu0 (!%p139_p2), %v1584_v1  ;;  %1570 = vmatprep.subr.bf16.mxu1 (!%p139_p2), %v1584_v1 }
   0xb   : > { %1502 = vmatpush3.bf16.msra.mxu0 (!%p139_p2), %v1584_v1  ;;  %1573 = vmatpush3.bf16.msra.mxu1 (!%p139_p2), %v1584_v1 }
   0xc   : > { %1503 = vmatprep.subr.bf16.mxu0 (!%p139_p2), %v1585_v2  ;;  %1571 = vmatprep.subr.bf16.mxu1 (!%p139_p2), %v1585_v2 }
   0xd   : > { %s1949_s16 = smov (!%p163_p3, %s1262_s16), 255 }
   0xe   : > { %s1263_s21 = sshll.u32 %s1949_s16, 2 }
   0xf   : > { %s1671_s24 = scalar_lea.vmem %s1944_s0, %s1263_s21  ;;  %1504 = vmatpush3.bf16.msra.mxu0 %v1585_v2  ;;  %1574 = vmatpush3.bf16.msra.mxu1 %v1585_v2  ;;  %s1753_s29 = scalar_lea.vmem %s1947_s3, %s1263_s21 }
  0x10   : > { %v1586_v3 = vld [vmem:[%s1671_s24] sm:$0xff]   ;;  %v1588_v5 = vld [vmem:[%s1671_s24 + $0x8] sm:$0xff]   ;;  %v1590_v7 = vld [vmem:[%s1671_s24 + $0x10] sm:$0xff]  }
  0x11   : > { %v1587_v4 = vld [vmem:[%s1671_s24 + $0x80] sm:$0xff]   ;;  %1505 = vmatprep.mubr.msk.bf16.mxu0 %vm430_vm0, %v1586_v3  ;;  %v1589_v6 = vld [vmem:[%s1671_s24 + $0x88] sm:$0xff]   ;;  %v1591_v8 = vld [vmem:[%s1671_s24 + $0x90] sm:$0xff]  }
  0x12   : > { %1537 = vmatprep.mubr.msk.bf16.mxu1 %vm430_vm0, %v1587_v4  ;;  %1506 = vmatmul.mubr.msk.bf16.vlgmr.msra.gmra.mrb[0].mxu0 %vm430_vm0, %v1588_v5  ;;  %v1592_v9 = vld [vmem:[%s1671_s24 + $0x18] sm:$0xff]   ;;  %v1594_v11 = vld [vmem:[%s1671_s24 + $0x20] sm:$0xff]   ;;  %v1596_v13 = vld [vmem:[%s1671_s24 + $0x28] sm:$0xff]  }
  0x13   : > { %1538 = vmatmul.mubr.msk.bf16.vlgmr.msra.gmra.mrb[0].mxu1 %vm430_vm0, %v1589_v6  ;;  %1509 = vmatprep.mubr.msk.bf16.mxu0 %vm430_vm0, %v1590_v7  ;;  %v1593_v10 = vld [vmem:[%s1671_s24 + $0x98] sm:$0xff]   ;;  %v1595_v12 = vld [vmem:[%s1671_s24 + $0xa0] sm:$0xff]   ;;  %v1597_v14 = vld [vmem:[%s1671_s24 + $0xa8] sm:$0xff]  }
  0x14   : > { %1541 = vmatprep.mubr.msk.bf16.mxu1 %vm430_vm0, %v1591_v8  ;;  %v1598_v15 = vld [vmem:[%s1671_s24 + $0x30] sm:$0xff]   ;;  %v1600_v17 = vld [vmem:[%s1671_s24 + $0x38] sm:$0xff]   ;;  %v1602_v19 = vld [vmem:[%s1671_s24 + $0x40] sm:$0xff]  }
  0x15   : > { %v1599_v16 = vld [vmem:[%s1671_s24 + $0xb0] sm:$0xff]   ;;  %v1601_v18 = vld [vmem:[%s1671_s24 + $0xb8] sm:$0xff]   ;;  %v1603_v20 = vld [vmem:[%s1671_s24 + $0xc0] sm:$0xff]  }
  0x16   : > { %v1604_v21 = vld [vmem:[%s1671_s24 + $0x48] sm:$0xff]   ;;  %v1606_v23 = vld [vmem:[%s1671_s24 + $0x50] sm:$0xff]   ;;  %v1608_v25 = vld [vmem:[%s1671_s24 + $0x58] sm:$0xff]  }
  0x17   : > { %v1605_v22 = vld [vmem:[%s1671_s24 + $0xc8] sm:$0xff]   ;;  %v1607_v24 = vld [vmem:[%s1671_s24 + $0xd0] sm:$0xff]   ;;  %v1609_v26 = vld [vmem:[%s1671_s24 + $0xd8] sm:$0xff]  }
  0x18   : > { %v1610_v27 = vld [vmem:[%s1671_s24 + $0x60] sm:$0xff]   ;;  %v1612_v29 = vld [vmem:[%s1671_s24 + $0x68] sm:$0xff]   ;;  %v1614_v31 = vld [vmem:[%s1671_s24 + $0x70] sm:$0xff]  }
  0x19   : > { %v1611_v28 = vld [vmem:[%s1671_s24 + $0xe0] sm:$0xff]   ;;  %v1613_v30 = vld [vmem:[%s1671_s24 + $0xe8] sm:$0xff]   ;;  %v1615_v32 = vld [vmem:[%s1671_s24 + $0xf0] sm:$0xff]  }
  0x1a   : > { %1510 = vmatmul.mubr.msk.bf16.gmra.mrb[4].mxu0 %vm430_vm0, %v1592_v9  ;;  %v1616_v33 = vld [vmem:[%s1671_s24 + $0x78] sm:$0xff]  }
  0x1b   : > { %1542 = vmatmul.mubr.msk.bf16.gmra.mrb[4].mxu1 %vm430_vm0, %v1593_v10  ;;  %1513 = vmatprep.mubr.msk.bf16.mxu0 %vm430_vm0, %v1594_v11  ;;  %v1617_v34 = vld [vmem:[%s1671_s24 + $0xf8] sm:$0xff]  }
  0x1c   : > { %1545 = vmatprep.mubr.msk.bf16.mxu1 %vm430_vm0, %v1595_v12 }
  0x22   : > { %1514 = vmatmul.mubr.msk.bf16.gmra.mrb[8].mxu0 %vm430_vm0, %v1596_v13 }
  0x23   : > { %1546 = vmatmul.mubr.msk.bf16.gmra.mrb[8].mxu1 %vm430_vm0, %v1597_v14  ;;  %1517 = vmatprep.mubr.msk.bf16.mxu0 %vm430_vm0, %v1598_v15 }
  0x24   : > { %1549 = vmatprep.mubr.msk.bf16.mxu1 %vm430_vm0, %v1599_v16 }
  0x2a   : > { %1518 = vmatmul.mubr.msk.bf16.gmra.mrb[12].mxu0 %vm430_vm0, %v1600_v17 }
  0x2b   : > { %1550 = vmatmul.mubr.msk.bf16.gmra.mrb[12].mxu1 %vm430_vm0, %v1601_v18  ;;  %1521 = vmatprep.mubr.msk.bf16.mxu0 %vm430_vm0, %v1602_v19 }
  0x2c   : > { %1553 = vmatprep.mubr.msk.bf16.mxu1 %vm430_vm0, %v1603_v20 }
  0x32   : > { %1522 = vmatmul.mubr.msk.bf16.gmra.mrb[16].mxu0 %vm430_vm0, %v1604_v21 }
  0x33   : > { %1554 = vmatmul.mubr.msk.bf16.gmra.mrb[16].mxu1 %vm430_vm0, %v1605_v22  ;;  %1525 = vmatprep.mubr.msk.bf16.mxu0 %vm430_vm0, %v1606_v23 }
  0x34   : > { %1557 = vmatprep.mubr.msk.bf16.mxu1 %vm430_vm0, %v1607_v24 }
  0x3a   : > { %1526 = vmatmul.mubr.msk.bf16.gmra.mrb[20].mxu0 %vm430_vm0, %v1608_v25 }
  0x3b   : > { %1558 = vmatmul.mubr.msk.bf16.gmra.mrb[20].mxu1 %vm430_vm0, %v1609_v26  ;;  %1529 = vmatprep.mubr.msk.bf16.mxu0 %vm430_vm0, %v1610_v27 }
  0x3c   : > { %1561 = vmatprep.mubr.msk.bf16.mxu1 %vm430_vm0, %v1611_v28 }
  0x42   : > { %1530 = vmatmul.mubr.msk.bf16.gmra.mrb[24].mxu0 %vm430_vm0, %v1612_v29 }
  0x43   : > { %1562 = vmatmul.mubr.msk.bf16.gmra.mrb[24].mxu1 %vm430_vm0, %v1613_v30  ;;  %1533 = vmatprep.mubr.msk.bf16.mxu0 %vm430_vm0, %v1614_v31 }
  0x44   : > { %1565 = vmatprep.mubr.msk.bf16.mxu1 %vm430_vm0, %v1615_v32 }
  0x4a   : > { %1534 = vmatmul.mubr.msk.bf16.gmra.mrb[28].mxu0 %vm430_vm0, %v1616_v33 }
  0x4b   : > { %1566 = vmatmul.mubr.msk.bf16.gmra.mrb[28].mxu1 %vm430_vm0, %v1617_v34 }
  0xe5   : > { %v1507_v36 = vpop.f32.mrb[0].mxu0 }
  0xe6   : > { %v1539_v37 = vpop.f32.mrb[0].mxu1  ;;  %v570_v38 = vadd.f32 %v1507_v36, %v1740_v35  ;;  %v561_v40 = vpop.f32.mrb[1].mxu0 }
  0xe7   : > { %v698_v39 = vadd.f32 %v1539_v37, %v1740_v35  ;;  %v689_v41 = vpop.f32.mrb[1].mxu1  ;;  %v562_v42 = vadd.f32 %v1740_v35, %v561_v40  ;;  %v1508_v44 = vpop.f32.mrb[2].mxu0 }
  0xe8   : > { %v690_v43 = vadd.f32 %v1740_v35, %v689_v41  ;;  %v1540_v45 = vpop.f32.mrb[2].mxu1  ;;  %v818_v46 = vmax.f32 %v570_v38, 0.0  ;;  %v573_v48 = vadd.f32 %v1508_v44, %v1740_v35  ;;  %v564_v50 = vpop.f32.mrb[3].mxu0 }
  0xe9   : > { %v850_v47 = vmax.f32 %v698_v39, 0.0  ;;  %v701_v49 = vadd.f32 %v1540_v45, %v1740_v35  ;;  %v692_v51 = vpop.f32.mrb[3].mxu1  ;;  %v816_v52 = vmax.f32 %v562_v42, 0.0  ;;  %v565_v54 = vadd.f32 %v1740_v35, %v564_v50 }
  0xea   : > { %v848_v53 = vmax.f32 %v690_v43, 0.0  ;;  %v693_v55 = vadd.f32 %v1740_v35, %v692_v51  ;;  %v1402_v56 = vpack.c.bf16 %v818_v46, %v818_v46  ;;  %v819_v58 = vmax.f32 %v573_v48, 0.0 }
  0xeb   : > { %v1434_v57 = vpack.c.bf16 %v850_v47, %v850_v47  ;;  %v851_v59 = vmax.f32 %v701_v49, 0.0  ;;  %v1400_v60 = vpack.c.bf16 %v816_v52, %v816_v52  ;;  %v817_v62 = vmax.f32 %v565_v54, 0.0 }
  0xec   : > { %v1432_v61 = vpack.c.bf16 %v848_v53, %v848_v53  ;;  %v849_v63 = vmax.f32 %v693_v55, 0.0  ;;  %1139 = vst.msk [vmem:[%s1753_s29 + $0x8] sm:$0xf] %vm1136_vm1, %v1402_v56  ;;  %v1403_v0 = vpack.c.bf16 %v819_v58, %v819_v58 }
  0xed   : > { %1171 = vst.msk [vmem:[%s1753_s29 + $0x88] sm:$0xf] %vm1136_vm1, %v1434_v57  ;;  %v1435_v1 = vpack.c.bf16 %v851_v59, %v851_v59  ;;  %1137 = vst.msk [vmem:[%s1753_s29] sm:$0xf] %vm1136_vm1, %v1400_v60  ;;  %v1401_v2 = vpack.c.bf16 %v817_v62, %v817_v62  ;;  %v1511_v4 = vpop.f32.mrb[4].mxu0 }
  0xee   : > { %1169 = vst.msk [vmem:[%s1753_s29 + $0x80] sm:$0xf] %vm1136_vm1, %v1432_v61  ;;  %v1433_v3 = vpack.c.bf16 %v849_v63, %v849_v63  ;;  %v1543_v5 = vpop.f32.mrb[4].mxu1  ;;  %1140 = vst.msk [vmem:[%s1753_s29 + $0xc] sm:$0xf] %vm1136_vm1, %v1403_v0  ;;  %v586_v6 = vadd.f32 %v1511_v4, %v1740_v35  ;;  %v577_v8 = vpop.f32.mrb[5].mxu0 }
  0xef   : > { %1172 = vst.msk [vmem:[%s1753_s29 + $0x8c] sm:$0xf] %vm1136_vm1, %v1435_v1  ;;  %v714_v7 = vadd.f32 %v1543_v5, %v1740_v35  ;;  %v705_v9 = vpop.f32.mrb[5].mxu1  ;;  %1138 = vst.msk [vmem:[%s1753_s29 + $0x4] sm:$0xf] %vm1136_vm1, %v1401_v2  ;;  %v578_v10 = vadd.f32 %v1740_v35, %v577_v8  ;;  %v1512_v12 = vpop.f32.mrb[6].mxu0 }
  0xf0   : > { %1170 = vst.msk [vmem:[%s1753_s29 + $0x84] sm:$0xf] %vm1136_vm1, %v1433_v3  ;;  %v706_v11 = vadd.f32 %v1740_v35, %v705_v9  ;;  %v1544_v13 = vpop.f32.mrb[6].mxu1  ;;  %v822_v14 = vmax.f32 %v586_v6, 0.0  ;;  %v589_v16 = vadd.f32 %v1512_v12, %v1740_v35  ;;  %v580_v18 = vpop.f32.mrb[7].mxu0 }
  0xf1   : > { %v854_v15 = vmax.f32 %v714_v7, 0.0  ;;  %v717_v17 = vadd.f32 %v1544_v13, %v1740_v35  ;;  %v708_v19 = vpop.f32.mrb[7].mxu1  ;;  %v820_v20 = vmax.f32 %v578_v10, 0.0  ;;  %v581_v22 = vadd.f32 %v1740_v35, %v580_v18 }
  0xf2   : > { %v852_v21 = vmax.f32 %v706_v11, 0.0  ;;  %v709_v23 = vadd.f32 %v1740_v35, %v708_v19  ;;  %v1406_v24 = vpack.c.bf16 %v822_v14, %v822_v14  ;;  %v823_v26 = vmax.f32 %v589_v16, 0.0 }
  0xf3   : > { %v1438_v25 = vpack.c.bf16 %v854_v15, %v854_v15  ;;  %v855_v27 = vmax.f32 %v717_v17, 0.0  ;;  %v1404_v28 = vpack.c.bf16 %v820_v20, %v820_v20  ;;  %v821_v30 = vmax.f32 %v581_v22, 0.0 }
  0xf4   : > { %v1436_v29 = vpack.c.bf16 %v852_v21, %v852_v21  ;;  %v853_v31 = vmax.f32 %v709_v23, 0.0  ;;  %1143 = vst.msk [vmem:[%s1753_s29 + $0x18] sm:$0xf] %vm1136_vm1, %v1406_v24  ;;  %v1407_v32 = vpack.c.bf16 %v823_v26, %v823_v26 }
  0xf5   : > { %1175 = vst.msk [vmem:[%s1753_s29 + $0x98] sm:$0xf] %vm1136_vm1, %v1438_v25  ;;  %v1439_v33 = vpack.c.bf16 %v855_v27, %v855_v27  ;;  %1141 = vst.msk [vmem:[%s1753_s29 + $0x10] sm:$0xf] %vm1136_vm1, %v1404_v28  ;;  %v1405_v34 = vpack.c.bf16 %v821_v30, %v821_v30  ;;  %v1515_v37 = vpop.f32.mrb[8].mxu0 }
  0xf6   : > { %1173 = vst.msk [vmem:[%s1753_s29 + $0x90] sm:$0xf] %vm1136_vm1, %v1436_v29  ;;  %v1437_v36 = vpack.c.bf16 %v853_v31, %v853_v31  ;;  %v1547_v38 = vpop.f32.mrb[8].mxu1  ;;  %1144 = vst.msk [vmem:[%s1753_s29 + $0x1c] sm:$0xf] %vm1136_vm1, %v1407_v32  ;;  %v602_v39 = vadd.f32 %v1515_v37, %v1740_v35  ;;  %v593_v41 = vpop.f32.mrb[9].mxu0 }
  0xf7   : > { %1176 = vst.msk [vmem:[%s1753_s29 + $0x9c] sm:$0xf] %vm1136_vm1, %v1439_v33  ;;  %v730_v40 = vadd.f32 %v1547_v38, %v1740_v35  ;;  %v721_v42 = vpop.f32.mrb[9].mxu1  ;;  %1142 = vst.msk [vmem:[%s1753_s29 + $0x14] sm:$0xf] %vm1136_vm1, %v1405_v34  ;;  %v594_v43 = vadd.f32 %v1740_v35, %v593_v41  ;;  %v1516_v45 = vpop.f32.mrb[10].mxu0 }
  0xf8   : > { %1174 = vst.msk [vmem:[%s1753_s29 + $0x94] sm:$0xf] %vm1136_vm1, %v1437_v36  ;;  %v722_v44 = vadd.f32 %v1740_v35, %v721_v42  ;;  %v1548_v46 = vpop.f32.mrb[10].mxu1  ;;  %v826_v47 = vmax.f32 %v602_v39, 0.0  ;;  %v605_v49 = vadd.f32 %v1516_v45, %v1740_v35  ;;  %v596_v51 = vpop.f32.mrb[11].mxu0 }
  0xf9   : > { %v858_v48 = vmax.f32 %v730_v40, 0.0  ;;  %v733_v50 = vadd.f32 %v1548_v46, %v1740_v35  ;;  %v724_v52 = vpop.f32.mrb[11].mxu1  ;;  %v824_v53 = vmax.f32 %v594_v43, 0.0  ;;  %v597_v55 = vadd.f32 %v1740_v35, %v596_v51 }
  0xfa   : > { %v856_v54 = vmax.f32 %v722_v44, 0.0  ;;  %v725_v56 = vadd.f32 %v1740_v35, %v724_v52  ;;  %v1410_v57 = vpack.c.bf16 %v826_v47, %v826_v47  ;;  %v827_v59 = vmax.f32 %v605_v49, 0.0 }
  0xfb   : > { %v1442_v58 = vpack.c.bf16 %v858_v48, %v858_v48  ;;  %v859_v60 = vmax.f32 %v733_v50, 0.0  ;;  %v1408_v61 = vpack.c.bf16 %v824_v53, %v824_v53  ;;  %v825_v63 = vmax.f32 %v597_v55, 0.0 }
  0xfc   : > { %v1440_v62 = vpack.c.bf16 %v856_v54, %v856_v54  ;;  %v857_v0 = vmax.f32 %v725_v56, 0.0  ;;  %1147 = vst.msk [vmem:[%s1753_s29 + $0x28] sm:$0xf] %vm1136_vm1, %v1410_v57  ;;  %v1411_v1 = vpack.c.bf16 %v827_v59, %v827_v59 }
  0xfd   : > { %1179 = vst.msk [vmem:[%s1753_s29 + $0xa8] sm:$0xf] %vm1136_vm1, %v1442_v58  ;;  %v1443_v2 = vpack.c.bf16 %v859_v60, %v859_v60  ;;  %1145 = vst.msk [vmem:[%s1753_s29 + $0x20] sm:$0xf] %vm1136_vm1, %v1408_v61  ;;  %v1409_v3 = vpack.c.bf16 %v825_v63, %v825_v63  ;;  %v1519_v5 = vpop.f32.mrb[12].mxu0 }
  0xfe   : > { %1177 = vst.msk [vmem:[%s1753_s29 + $0xa0] sm:$0xf] %vm1136_vm1, %v1440_v62  ;;  %v1441_v4 = vpack.c.bf16 %v857_v0, %v857_v0  ;;  %v1551_v6 = vpop.f32.mrb[12].mxu1  ;;  %1148 = vst.msk [vmem:[%s1753_s29 + $0x2c] sm:$0xf] %vm1136_vm1, %v1411_v1  ;;  %v618_v7 = vadd.f32 %v1519_v5, %v1740_v35  ;;  %v609_v9 = vpop.f32.mrb[13].mxu0 }
  0xff   : > { %1180 = vst.msk [vmem:[%s1753_s29 + $0xac] sm:$0xf] %vm1136_vm1, %v1443_v2  ;;  %v746_v8 = vadd.f32 %v1551_v6, %v1740_v35  ;;  %v737_v10 = vpop.f32.mrb[13].mxu1  ;;  %1146 = vst.msk [vmem:[%s1753_s29 + $0x24] sm:$0xf] %vm1136_vm1, %v1409_v3  ;;  %v610_v11 = vadd.f32 %v1740_v35, %v609_v9  ;;  %v1520_v13 = vpop.f32.mrb[14].mxu0 }
 0x100   : > { %1178 = vst.msk [vmem:[%s1753_s29 + $0xa4] sm:$0xf] %vm1136_vm1, %v1441_v4  ;;  %v738_v12 = vadd.f32 %v1740_v35, %v737_v10  ;;  %v1552_v14 = vpop.f32.mrb[14].mxu1  ;;  %v830_v15 = vmax.f32 %v618_v7, 0.0  ;;  %v621_v17 = vadd.f32 %v1520_v13, %v1740_v35  ;;  %v612_v19 = vpop.f32.mrb[15].mxu0 }
 0x101   : > { %v862_v16 = vmax.f32 %v746_v8, 0.0  ;;  %v749_v18 = vadd.f32 %v1552_v14, %v1740_v35  ;;  %v740_v20 = vpop.f32.mrb[15].mxu1  ;;  %v828_v21 = vmax.f32 %v610_v11, 0.0  ;;  %v613_v23 = vadd.f32 %v1740_v35, %v612_v19 }
 0x102   : > { %v860_v22 = vmax.f32 %v738_v12, 0.0  ;;  %v741_v24 = vadd.f32 %v1740_v35, %v740_v20  ;;  %v1414_v25 = vpack.c.bf16 %v830_v15, %v830_v15  ;;  %v831_v27 = vmax.f32 %v621_v17, 0.0 }
 0x103   : > { %v1446_v26 = vpack.c.bf16 %v862_v16, %v862_v16  ;;  %v863_v28 = vmax.f32 %v749_v18, 0.0  ;;  %v1412_v29 = vpack.c.bf16 %v828_v21, %v828_v21  ;;  %v829_v31 = vmax.f32 %v613_v23, 0.0 }
 0x104   : > { %v1444_v30 = vpack.c.bf16 %v860_v22, %v860_v22  ;;  %v861_v32 = vmax.f32 %v741_v24, 0.0  ;;  %1151 = vst.msk [vmem:[%s1753_s29 + $0x38] sm:$0xf] %vm1136_vm1, %v1414_v25  ;;  %v1415_v33 = vpack.c.bf16 %v831_v27, %v831_v27 }
 0x105   : > { %1183 = vst.msk [vmem:[%s1753_s29 + $0xb8] sm:$0xf] %vm1136_vm1, %v1446_v26  ;;  %v1447_v34 = vpack.c.bf16 %v863_v28, %v863_v28  ;;  %1149 = vst.msk [vmem:[%s1753_s29 + $0x30] sm:$0xf] %vm1136_vm1, %v1412_v29  ;;  %v1413_v36 = vpack.c.bf16 %v829_v31, %v829_v31  ;;  %v1523_v38 = vpop.f32.mrb[16].mxu0 }
 0x106   : > { %1181 = vst.msk [vmem:[%s1753_s29 + $0xb0] sm:$0xf] %vm1136_vm1, %v1444_v30  ;;  %v1445_v37 = vpack.c.bf16 %v861_v32, %v861_v32  ;;  %v1555_v39 = vpop.f32.mrb[16].mxu1  ;;  %1152 = vst.msk [vmem:[%s1753_s29 + $0x3c] sm:$0xf] %vm1136_vm1, %v1415_v33  ;;  %v634_v40 = vadd.f32 %v1523_v38, %v1740_v35  ;;  %v625_v42 = vpop.f32.mrb[17].mxu0 }
 0x107   : > { %1184 = vst.msk [vmem:[%s1753_s29 + $0xbc] sm:$0xf] %vm1136_vm1, %v1447_v34  ;;  %v762_v41 = vadd.f32 %v1555_v39, %v1740_v35  ;;  %v753_v43 = vpop.f32.mrb[17].mxu1  ;;  %1150 = vst.msk [vmem:[%s1753_s29 + $0x34] sm:$0xf] %vm1136_vm1, %v1413_v36  ;;  %v626_v44 = vadd.f32 %v1740_v35, %v625_v42  ;;  %v1524_v46 = vpop.f32.mrb[18].mxu0 }
 0x108   : > { %1182 = vst.msk [vmem:[%s1753_s29 + $0xb4] sm:$0xf] %vm1136_vm1, %v1445_v37  ;;  %v754_v45 = vadd.f32 %v1740_v35, %v753_v43  ;;  %v1556_v47 = vpop.f32.mrb[18].mxu1  ;;  %v834_v48 = vmax.f32 %v634_v40, 0.0  ;;  %v637_v50 = vadd.f32 %v1524_v46, %v1740_v35  ;;  %v628_v52 = vpop.f32.mrb[19].mxu0 }
 0x109   : > { %v866_v49 = vmax.f32 %v762_v41, 0.0  ;;  %v765_v51 = vadd.f32 %v1556_v47, %v1740_v35  ;;  %v756_v53 = vpop.f32.mrb[19].mxu1  ;;  %v832_v54 = vmax.f32 %v626_v44, 0.0  ;;  %v629_v56 = vadd.f32 %v1740_v35, %v628_v52 }
 0x10a   : > { %v864_v55 = vmax.f32 %v754_v45, 0.0  ;;  %v757_v57 = vadd.f32 %v1740_v35, %v756_v53  ;;  %v1418_v58 = vpack.c.bf16 %v834_v48, %v834_v48  ;;  %v835_v60 = vmax.f32 %v637_v50, 0.0 }
 0x10b   : > { %v1450_v59 = vpack.c.bf16 %v866_v49, %v866_v49  ;;  %v867_v61 = vmax.f32 %v765_v51, 0.0  ;;  %v1416_v62 = vpack.c.bf16 %v832_v54, %v832_v54  ;;  %v833_v0 = vmax.f32 %v629_v56, 0.0 }
 0x10c   : > { %v1448_v63 = vpack.c.bf16 %v864_v55, %v864_v55  ;;  %v865_v1 = vmax.f32 %v757_v57, 0.0  ;;  %1155 = vst.msk [vmem:[%s1753_s29 + $0x48] sm:$0xf] %vm1136_vm1, %v1418_v58  ;;  %v1419_v2 = vpack.c.bf16 %v835_v60, %v835_v60 }
 0x10d   : > { %1187 = vst.msk [vmem:[%s1753_s29 + $0xc8] sm:$0xf] %vm1136_vm1, %v1450_v59  ;;  %v1451_v3 = vpack.c.bf16 %v867_v61, %v867_v61  ;;  %1153 = vst.msk [vmem:[%s1753_s29 + $0x40] sm:$0xf] %vm1136_vm1, %v1416_v62  ;;  %v1417_v4 = vpack.c.bf16 %v833_v0, %v833_v0  ;;  %v1527_v6 = vpop.f32.mrb[20].mxu0 }
 0x10e   : > { %1185 = vst.msk [vmem:[%s1753_s29 + $0xc0] sm:$0xf] %vm1136_vm1, %v1448_v63  ;;  %v1449_v5 = vpack.c.bf16 %v865_v1, %v865_v1  ;;  %v1559_v7 = vpop.f32.mrb[20].mxu1  ;;  %1156 = vst.msk [vmem:[%s1753_s29 + $0x4c] sm:$0xf] %vm1136_vm1, %v1419_v2  ;;  %v650_v8 = vadd.f32 %v1527_v6, %v1740_v35  ;;  %v641_v10 = vpop.f32.mrb[21].mxu0 }
 0x10f   : > { %1188 = vst.msk [vmem:[%s1753_s29 + $0xcc] sm:$0xf] %vm1136_vm1, %v1451_v3  ;;  %v778_v9 = vadd.f32 %v1559_v7, %v1740_v35  ;;  %v769_v11 = vpop.f32.mrb[21].mxu1  ;;  %1154 = vst.msk [vmem:[%s1753_s29 + $0x44] sm:$0xf] %vm1136_vm1, %v1417_v4  ;;  %v642_v12 = vadd.f32 %v1740_v35, %v641_v10  ;;  %v1528_v14 = vpop.f32.mrb[22].mxu0 }
 0x110   : > { %1186 = vst.msk [vmem:[%s1753_s29 + $0xc4] sm:$0xf] %vm1136_vm1, %v1449_v5  ;;  %v770_v13 = vadd.f32 %v1740_v35, %v769_v11  ;;  %v1560_v15 = vpop.f32.mrb[22].mxu1  ;;  %v838_v16 = vmax.f32 %v650_v8, 0.0  ;;  %v653_v18 = vadd.f32 %v1528_v14, %v1740_v35  ;;  %v644_v20 = vpop.f32.mrb[23].mxu0 }
 0x111   : > { %v870_v17 = vmax.f32 %v778_v9, 0.0  ;;  %v781_v19 = vadd.f32 %v1560_v15, %v1740_v35  ;;  %v772_v21 = vpop.f32.mrb[23].mxu1  ;;  %v836_v22 = vmax.f32 %v642_v12, 0.0  ;;  %v645_v24 = vadd.f32 %v1740_v35, %v644_v20 }
 0x112   : > { %v868_v23 = vmax.f32 %v770_v13, 0.0  ;;  %v773_v25 = vadd.f32 %v1740_v35, %v772_v21  ;;  %v1422_v26 = vpack.c.bf16 %v838_v16, %v838_v16  ;;  %v839_v28 = vmax.f32 %v653_v18, 0.0 }
 0x113   : > { %v1454_v27 = vpack.c.bf16 %v870_v17, %v870_v17  ;;  %v871_v29 = vmax.f32 %v781_v19, 0.0  ;;  %v1420_v30 = vpack.c.bf16 %v836_v22, %v836_v22  ;;  %v837_v32 = vmax.f32 %v645_v24, 0.0 }
 0x114   : > { %v1452_v31 = vpack.c.bf16 %v868_v23, %v868_v23  ;;  %v869_v33 = vmax.f32 %v773_v25, 0.0  ;;  %1159 = vst.msk [vmem:[%s1753_s29 + $0x58] sm:$0xf] %vm1136_vm1, %v1422_v26  ;;  %v1423_v34 = vpack.c.bf16 %v839_v28, %v839_v28 }
 0x115   : > { %1191 = vst.msk [vmem:[%s1753_s29 + $0xd8] sm:$0xf] %vm1136_vm1, %v1454_v27  ;;  %v1455_v36 = vpack.c.bf16 %v871_v29, %v871_v29  ;;  %1157 = vst.msk [vmem:[%s1753_s29 + $0x50] sm:$0xf] %vm1136_vm1, %v1420_v30  ;;  %v1421_v37 = vpack.c.bf16 %v837_v32, %v837_v32  ;;  %v1531_v39 = vpop.f32.mrb[24].mxu0 }
 0x116   : > { %1189 = vst.msk [vmem:[%s1753_s29 + $0xd0] sm:$0xf] %vm1136_vm1, %v1452_v31  ;;  %v1453_v38 = vpack.c.bf16 %v869_v33, %v869_v33  ;;  %v1563_v40 = vpop.f32.mrb[24].mxu1  ;;  %1160 = vst.msk [vmem:[%s1753_s29 + $0x5c] sm:$0xf] %vm1136_vm1, %v1423_v34  ;;  %v666_v41 = vadd.f32 %v1531_v39, %v1740_v35  ;;  %v657_v43 = vpop.f32.mrb[25].mxu0 }
 0x117   : > { %1192 = vst.msk [vmem:[%s1753_s29 + $0xdc] sm:$0xf] %vm1136_vm1, %v1455_v36  ;;  %v794_v42 = vadd.f32 %v1563_v40, %v1740_v35  ;;  %v785_v44 = vpop.f32.mrb[25].mxu1  ;;  %1158 = vst.msk [vmem:[%s1753_s29 + $0x54] sm:$0xf] %vm1136_vm1, %v1421_v37  ;;  %v658_v45 = vadd.f32 %v1740_v35, %v657_v43  ;;  %v1532_v47 = vpop.f32.mrb[26].mxu0 }
 0x118   : > { %1190 = vst.msk [vmem:[%s1753_s29 + $0xd4] sm:$0xf] %vm1136_vm1, %v1453_v38  ;;  %v786_v46 = vadd.f32 %v1740_v35, %v785_v44  ;;  %v1564_v48 = vpop.f32.mrb[26].mxu1  ;;  %v842_v49 = vmax.f32 %v666_v41, 0.0  ;;  %v669_v51 = vadd.f32 %v1532_v47, %v1740_v35  ;;  %v660_v53 = vpop.f32.mrb[27].mxu0 }
 0x119   : > { %v874_v50 = vmax.f32 %v794_v42, 0.0  ;;  %v797_v52 = vadd.f32 %v1564_v48, %v1740_v35  ;;  %v788_v54 = vpop.f32.mrb[27].mxu1  ;;  %v840_v55 = vmax.f32 %v658_v45, 0.0  ;;  %v661_v57 = vadd.f32 %v1740_v35, %v660_v53 }
 0x11a   : > { %v872_v56 = vmax.f32 %v786_v46, 0.0  ;;  %v789_v58 = vadd.f32 %v1740_v35, %v788_v54  ;;  %v1426_v59 = vpack.c.bf16 %v842_v49, %v842_v49  ;;  %v843_v61 = vmax.f32 %v669_v51, 0.0 }
 0x11b   : > { %v1458_v60 = vpack.c.bf16 %v874_v50, %v874_v50  ;;  %v875_v62 = vmax.f32 %v797_v52, 0.0  ;;  %v1424_v63 = vpack.c.bf16 %v840_v55, %v840_v55  ;;  %v841_v1 = vmax.f32 %v661_v57, 0.0 }
 0x11c   : > { %v1456_v0 = vpack.c.bf16 %v872_v56, %v872_v56  ;;  %v873_v2 = vmax.f32 %v789_v58, 0.0  ;;  %1163 = vst.msk [vmem:[%s1753_s29 + $0x68] sm:$0xf] %vm1136_vm1, %v1426_v59  ;;  %v1427_v3 = vpack.c.bf16 %v843_v61, %v843_v61 }
 0x11d   : > { %1195 = vst.msk [vmem:[%s1753_s29 + $0xe8] sm:$0xf] %vm1136_vm1, %v1458_v60  ;;  %v1459_v4 = vpack.c.bf16 %v875_v62, %v875_v62  ;;  %1161 = vst.msk [vmem:[%s1753_s29 + $0x60] sm:$0xf] %vm1136_vm1, %v1424_v63  ;;  %v1425_v5 = vpack.c.bf16 %v841_v1, %v841_v1  ;;  %v1535_v7 = vpop.f32.mrb[28].mxu0 }
 0x11e   : > { %1193 = vst.msk [vmem:[%s1753_s29 + $0xe0] sm:$0xf] %vm1136_vm1, %v1456_v0  ;;  %v1457_v6 = vpack.c.bf16 %v873_v2, %v873_v2  ;;  %v1567_v8 = vpop.f32.mrb[28].mxu1  ;;  %1164 = vst.msk [vmem:[%s1753_s29 + $0x6c] sm:$0xf] %vm1136_vm1, %v1427_v3  ;;  %v682_v9 = vadd.f32 %v1535_v7, %v1740_v35  ;;  %v673_v11 = vpop.f32.mrb[29].mxu0 }
 0x11f   : > { %1196 = vst.msk [vmem:[%s1753_s29 + $0xec] sm:$0xf] %vm1136_vm1, %v1459_v4  ;;  %v810_v10 = vadd.f32 %v1567_v8, %v1740_v35  ;;  %v801_v12 = vpop.f32.mrb[29].mxu1  ;;  %1162 = vst.msk [vmem:[%s1753_s29 + $0x64] sm:$0xf] %vm1136_vm1, %v1425_v5  ;;  %v674_v13 = vadd.f32 %v1740_v35, %v673_v11  ;;  %v1536_v15 = vpop.f32.mrb[30].mxu0 }
 0x120   : > { %1194 = vst.msk [vmem:[%s1753_s29 + $0xe4] sm:$0xf] %vm1136_vm1, %v1457_v6  ;;  %v802_v14 = vadd.f32 %v1740_v35, %v801_v12  ;;  %v1568_v16 = vpop.f32.mrb[30].mxu1  ;;  %v846_v17 = vmax.f32 %v682_v9, 0.0  ;;  %v685_v19 = vadd.f32 %v1536_v15, %v1740_v35  ;;  %v676_v21 = vpop.f32.mrb[31].mxu0 }
 0x121   : > { %v878_v18 = vmax.f32 %v810_v10, 0.0  ;;  %v813_v20 = vadd.f32 %v1568_v16, %v1740_v35  ;;  %v804_v22 = vpop.f32.mrb[31].mxu1  ;;  %v844_v23 = vmax.f32 %v674_v13, 0.0  ;;  %v677_v25 = vadd.f32 %v1740_v35, %v676_v21 }
 0x122   : > { %v876_v24 = vmax.f32 %v802_v14, 0.0  ;;  %v805_v26 = vadd.f32 %v1740_v35, %v804_v22  ;;  %v1430_v27 = vpack.c.bf16 %v846_v17, %v846_v17  ;;  %v847_v29 = vmax.f32 %v685_v19, 0.0 }
 0x123   : > { %v1462_v28 = vpack.c.bf16 %v878_v18, %v878_v18  ;;  %v879_v30 = vmax.f32 %v813_v20, 0.0  ;;  %v1428_v31 = vpack.c.bf16 %v844_v23, %v844_v23  ;;  %v845_v33 = vmax.f32 %v677_v25, 0.0 }
 0x124   : > { %v1460_v32 = vpack.c.bf16 %v876_v24, %v876_v24  ;;  %v877_v34 = vmax.f32 %v805_v26, 0.0  ;;  %1167 = vst.msk [vmem:[%s1753_s29 + $0x78] sm:$0xf] %vm1136_vm1, %v1430_v27  ;;  %v1431_v36 = vpack.c.bf16 %v847_v29, %v847_v29 }
 0x125   : > { %1199 = vst.msk [vmem:[%s1753_s29 + $0xf8] sm:$0xf] %vm1136_vm1, %v1462_v28  ;;  %v1463_v37 = vpack.c.bf16 %v879_v30, %v879_v30  ;;  %1165 = vst.msk [vmem:[%s1753_s29 + $0x70] sm:$0xf] %vm1136_vm1, %v1428_v31  ;;  %v1429_v35 = vpack.c.bf16 %v845_v33, %v845_v33 }
 0x126   : > { %1197 = vst.msk [vmem:[%s1753_s29 + $0xf0] sm:$0xf] %vm1136_vm1, %v1460_v32  ;;  %v1461_v38 = vpack.c.bf16 %v877_v34, %v877_v34  ;;  %1168 = vst.msk [vmem:[%s1753_s29 + $0x7c] sm:$0xf] %vm1136_vm1, %v1431_v36 }
 0x127   : > { %1200 = vst.msk [vmem:[%s1753_s29 + $0xfc] sm:$0xf] %vm1136_vm1, %v1463_v37  ;;  %1166 = vst.msk [vmem:[%s1753_s29 + $0x74] sm:$0xf] %vm1136_vm1, %v1429_v35 }
 0x128   : > { %1198 = vst.msk [vmem:[%s1753_s29 + $0xf4] sm:$0xf] %vm1136_vm1, %v1461_v38 }
 0x129 PF: > { %s13_s12 = sadd.s32 1, %s1624_s12  }
 0x12a   : > { %p10_p4 = scmp.ge.s32.totalorder %s13_s12, 6  }
 0x12c   :  { %12 = sbr.rel (!%p10_p4) target bundleno = 1 (0x1), region = 62 }

// kernel: beta_vae_forward.10
= control target key start
LH: loop header
LB: loop body
LE: loop exit
PB: predicated region body
PF: predicated region fallthrough
CT: control target
= control target key end

     0   :  { %v2656_v0 = vmov 0   ;;  %vm1944_vm0 = vcmask 257024   ;;  %s3519_s1 = inlined_call_operand.vmem [shape: bf16[512,32], index: 1, kind: input, shape index: {}]   ;;  %s3520_s0 = inlined_call_operand.vmem [shape: bf16[512,512], index: 0, kind: input, shape index: {}]   ;;  %s3521_s2 = inlined_call_operand.vmem [shape: f32[1,32], index: 2, kind: input, shape index: {}]   ;;  %s3522_s3 = inlined_call_operand.vmem [shape: bf16[512,32], index: 3, kind: output, shape index: {}]  }
   0x1   :  { %1046 = vmatprep.subr.bf16.mxu1 %v2656_v0  ;;  %1335 = vmatprep.subr.bf16.mxu0 %v2656_v0  ;;  %v2431_v1 = vld [vmem:[%s3519_s1] sm:$0xff]   ;;  %v2433_v3 = vld [vmem:[%s3519_s1 + $0x8] sm:$0xff]   ;;  %v2435_v5 = vld [vmem:[%s3519_s1 + $0x10] sm:$0xff]  }
   0x2   :  { %v2432_v2 = vld [vmem:[%s3519_s1 + $0x80] sm:$0xff]   ;;  %1047 = vmatpush1.bf16.msra.mxu1 %v2431_v1  ;;  %v2434_v4 = vld [vmem:[%s3519_s1 + $0x88] sm:$0xff]   ;;  %v2436_v6 = vld [vmem:[%s3519_s1 + $0x90] sm:$0xff]  }
   0x3   :  { %1336 = vmatpush1.bf16.msra.mxu0 %v2432_v2  ;;  %1048 = vmatprep.subr.bf16.mxu1 %v2656_v0  ;;  %v2437_v7 = vld [vmem:[%s3519_s1 + $0x18] sm:$0xff]   ;;  %v2439_v9 = vld [vmem:[%s3519_s1 + $0x20] sm:$0xff]   ;;  %v2441_v11 = vld [vmem:[%s3519_s1 + $0x28] sm:$0xff]  }
   0x4   :  { %1337 = vmatprep.subr.bf16.mxu0 %v2656_v0  ;;  %v2438_v8 = vld [vmem:[%s3519_s1 + $0x98] sm:$0xff]   ;;  %v2440_v10 = vld [vmem:[%s3519_s1 + $0xa0] sm:$0xff]   ;;  %v2442_v12 = vld [vmem:[%s3519_s1 + $0xa8] sm:$0xff]  }
   0x5   :  { %v2443_v13 = vld [vmem:[%s3519_s1 + $0x30] sm:$0xff]   ;;  %v2445_v15 = vld [vmem:[%s3519_s1 + $0x38] sm:$0xff]   ;;  %v2447_v17 = vld [vmem:[%s3519_s1 + $0x40] sm:$0xff]  }
   0x6   :  { %1049 = vmatpush1.bf16.msra.mxu1 %v2433_v3  ;;  %v2444_v14 = vld [vmem:[%s3519_s1 + $0xb0] sm:$0xff]   ;;  %v2446_v16 = vld [vmem:[%s3519_s1 + $0xb8] sm:$0xff]   ;;  %v2448_v18 = vld [vmem:[%s3519_s1 + $0xc0] sm:$0xff]  }
   0x7   :  { %1338 = vmatpush1.bf16.msra.mxu0 %v2434_v4  ;;  %1050 = vmatprep.subr.bf16.mxu1 %v2656_v0  ;;  %v2465_v19 = vld [vmem:[%s3520_s0 + $0x4] ss:$16 sps:$4 sm:$0xff]   ;;  %v2449_v20 = vld [vmem:[%s3519_s1 + $0x48] sm:$0xff]   ;;  %v2453_v25 = vld [vmem:[%s3519_s1 + $0x58] sm:$0xff]  }
   0x8   :  { %1339 = vmatprep.subr.bf16.mxu0 %v2656_v0  ;;  %v2468_v21 = vld [vmem:[%s3520_s0 + $0xc] ss:$16 sps:$4 sm:$0xff]   ;;  %1078 = vmatprep.mubr.bf16.mxu1 %v2465_v19  ;;  %v2451_v23 = vld [vmem:[%s3519_s1 + $0x50] sm:$0xff]   ;;  %v2455_v27 = vld [vmem:[%s3519_s1 + $0x60] sm:$0xff]  }
   0x9   :  { %v2450_v22 = vld [vmem:[%s3519_s1 + $0xc8] sm:$0xff]   ;;  %1367 = vmatprep.mubr.bf16.mxu0 %v2468_v21  ;;  %v2452_v24 = vld [vmem:[%s3519_s1 + $0xd0] sm:$0xff]   ;;  %v2454_v26 = vld [vmem:[%s3519_s1 + $0xd8] sm:$0xff]  }
   0xa   :  { %1051 = vmatpush1.bf16.msra.mxu1 %v2435_v5  ;;  %v2456_v28 = vld [vmem:[%s3519_s1 + $0xe0] sm:$0xff]   ;;  %v2457_v29 = vld [vmem:[%s3519_s1 + $0x68] sm:$0xff]   ;;  %v2459_v31 = vld [vmem:[%s3519_s1 + $0x70] sm:$0xff]  }
   0xb   :  { %1340 = vmatpush1.bf16.msra.mxu0 %v2436_v6  ;;  %1052 = vmatprep.subr.bf16.mxu1 %v2656_v0  ;;  %v2458_v30 = vld [vmem:[%s3519_s1 + $0xe8] sm:$0xff]   ;;  %v2460_v32 = vld [vmem:[%s3519_s1 + $0xf0] sm:$0xff]   ;;  %v2461_v33 = vld [vmem:[%s3519_s1 + $0x78] sm:$0xff]  }
   0xc   :  { %1341 = vmatprep.subr.bf16.mxu0 %v2656_v0  ;;  %v2462_v34 = vld [vmem:[%s3519_s1 + $0xf8] sm:$0xff]   ;;  %v2463_v35 = vld [vmem:[%s3520_s0] ss:$16 sps:$4 sm:$0xff]   ;;  %v2469_v37 = vld [vmem:[%s3520_s0 + $0x24] ss:$16 sps:$4 sm:$0xff]  }
   0xd   :  { %v2466_v36 = vld [vmem:[%s3520_s0 + $0x8] ss:$16 sps:$4 sm:$0xff]   ;;  %v2471_v38 = vld [vmem:[%s3520_s0 + $0x2c] ss:$16 sps:$4 sm:$0xff]   ;;  %v2473_v39 = vld [vmem:[%s3520_s0 + $0x20] ss:$16 sps:$4 sm:$0xff]  }
   0xe   :  { %1053 = vmatpush1.bf16.msra.mxu1 %v2437_v7  ;;  %v2474_v40 = vld [vmem:[%s3520_s0 + $0x28] ss:$16 sps:$4 sm:$0xff]   ;;  %v2475_v41 = vld [vmem:[%s3520_s0 + $0x44] ss:$16 sps:$4 sm:$0xff]   ;;  %v2477_v42 = vld [vmem:[%s3520_s0 + $0x4c] ss:$16 sps:$4 sm:$0xff]  }
   0xf   :  { %1342 = vmatpush1.bf16.msra.mxu0 %v2438_v8  ;;  %1054 = vmatprep.subr.bf16.mxu1 %v2656_v0  ;;  %v2479_v43 = vld [vmem:[%s3520_s0 + $0x40] ss:$16 sps:$4 sm:$0xff]   ;;  %v2480_v44 = vld [vmem:[%s3520_s0 + $0x48] ss:$16 sps:$4 sm:$0xff]   ;;  %v2481_v45 = vld [vmem:[%s3520_s0 + $0x64] ss:$16 sps:$4 sm:$0xff]  }
  0x10   :  { %1343 = vmatprep.subr.bf16.mxu0 %v2656_v0  ;;  %v2483_v46 = vld [vmem:[%s3520_s0 + $0x6c] ss:$16 sps:$4 sm:$0xff]   ;;  %v2485_v47 = vld [vmem:[%s3520_s0 + $0x60] ss:$16 sps:$4 sm:$0xff]   ;;  %v2486_v48 = vld [vmem:[%s3520_s0 + $0x68] ss:$16 sps:$4 sm:$0xff]  }
  0x11   :  { %v2487_v49 = vld [vmem:[%s3520_s0 + $0x84] ss:$16 sps:$4 sm:$0xff]   ;;  %v2489_v50 = vld [vmem:[%s3520_s0 + $0x8c] ss:$16 sps:$4 sm:$0xff]   ;;  %v2491_v51 = vld [vmem:[%s3520_s0 + $0x80] ss:$16 sps:$4 sm:$0xff]  }
  0x12   :  { %1055 = vmatpush1.bf16.msra.mxu1 %v2439_v9  ;;  %v2492_v52 = vld [vmem:[%s3520_s0 + $0x88] ss:$16 sps:$4 sm:$0xff]   ;;  %v2493_v53 = vld [vmem:[%s3520_s0 + $0xa4] ss:$16 sps:$4 sm:$0xff]   ;;  %v2495_v54 = vld [vmem:[%s3520_s0 + $0xac] ss:$16 sps:$4 sm:$0xff]  }
  0x13   :  { %1344 = vmatpush1.bf16.msra.mxu0 %v2440_v10  ;;  %1056 = vmatprep.subr.bf16.mxu1 %v2656_v0  ;;  %v2497_v55 = vld [vmem:[%s3520_s0 + $0xa0] ss:$16 sps:$4 sm:$0xff]   ;;  %v2498_v56 = vld [vmem:[%s3520_s0 + $0xa8] ss:$16 sps:$4 sm:$0xff]   ;;  %v2499_v57 = vld [vmem:[%s3520_s0 + $0xc4] ss:$16 sps:$4 sm:$0xff]  }
  0x14   :  { %1345 = vmatprep.subr.bf16.mxu0 %v2656_v0  ;;  %v2501_v58 = vld [vmem:[%s3520_s0 + $0xcc] ss:$16 sps:$4 sm:$0xff]   ;;  %v2503_v59 = vld [vmem:[%s3520_s0 + $0xc0] ss:$16 sps:$4 sm:$0xff]   ;;  %v2504_v60 = vld [vmem:[%s3520_s0 + $0xc8] ss:$16 sps:$4 sm:$0xff]  }
  0x15   :  { %v2505_v61 = vld [vmem:[%s3520_s0 + $0xe4] ss:$16 sps:$4 sm:$0xff]   ;;  %v2507_v62 = vld [vmem:[%s3520_s0 + $0xec] ss:$16 sps:$4 sm:$0xff]   ;;  %v2509_v63 = vld [vmem:[%s3520_s0 + $0xe0] ss:$16 sps:$4 sm:$0xff]  }
  0x16   :  { %1057 = vmatpush1.bf16.msra.mxu1 %v2441_v11  ;;  %v2511_v1 = vld [vmem:[%s3520_s0 + $0x104] ss:$16 sps:$4 sm:$0xff]   ;;  %v2513_v2 = vld [vmem:[%s3520_s0 + $0x10c] ss:$16 sps:$4 sm:$0xff]   ;;  %v2515_v3 = vld [vmem:[%s3520_s0 + $0x100] ss:$16 sps:$4 sm:$0xff]  }
  0x17   :  { %1346 = vmatpush1.bf16.msra.mxu0 %v2442_v12  ;;  %1058 = vmatprep.subr.bf16.mxu1 %v2656_v0  ;;  %v2516_v4 = vld [vmem:[%s3520_s0 + $0x108] ss:$16 sps:$4 sm:$0xff]   ;;  %v2517_v5 = vld [vmem:[%s3520_s0 + $0x124] ss:$16 sps:$4 sm:$0xff]   ;;  %v2519_v6 = vld [vmem:[%s3520_s0 + $0x12c] ss:$16 sps:$4 sm:$0xff]  }
  0x18   :  { %1347 = vmatprep.subr.bf16.mxu0 %v2656_v0  ;;  %v2521_v7 = vld [vmem:[%s3520_s0 + $0x120] ss:$16 sps:$4 sm:$0xff]   ;;  %v2522_v8 = vld [vmem:[%s3520_s0 + $0x128] ss:$16 sps:$4 sm:$0xff]   ;;  %v2523_v9 = vld [vmem:[%s3520_s0 + $0x144] ss:$16 sps:$4 sm:$0xff]  }
  0x19   :  { %v2525_v10 = vld [vmem:[%s3520_s0 + $0x14c] ss:$16 sps:$4 sm:$0xff]   ;;  %v2527_v11 = vld [vmem:[%s3520_s0 + $0x140] ss:$16 sps:$4 sm:$0xff]   ;;  %v2528_v12 = vld [vmem:[%s3520_s0 + $0x148] ss:$16 sps:$4 sm:$0xff]  }
  0x1a   :  { %1059 = vmatpush1.bf16.msra.mxu1 %v2443_v13  ;;  %v2529_v13 = vld [vmem:[%s3520_s0 + $0x164] ss:$16 sps:$4 sm:$0xff]   ;;  %v2539_v19 = vld [vmem:[%s3520_s0 + $0x180] ss:$16 sps:$4 sm:$0xff]  }
  0x1b   :  { %1348 = vmatpush1.bf16.msra.mxu0 %v2444_v14  ;;  %1060 = vmatprep.subr.bf16.mxu1 %v2656_v0  ;;  %v2531_v14 = vld [vmem:[%s3520_s0 + $0x16c] ss:$16 sps:$4 sm:$0xff]   ;;  %v2541_v21 = vld [vmem:[%s3520_s0 + $0x1a4] ss:$16 sps:$4 sm:$0xff]  }
  0x1c   :  { %1349 = vmatprep.subr.bf16.mxu0 %v2656_v0 }
  0x1e   :  { %1061 = vmatpush1.bf16.msra.mxu1 %v2445_v15  ;;  %v2533_v15 = vld [vmem:[%s3520_s0 + $0x160] ss:$16 sps:$4 sm:$0xff]  }
  0x1f   :  { %1350 = vmatpush1.bf16.msra.mxu0 %v2446_v16  ;;  %1062 = vmatprep.subr.bf16.mxu1 %v2656_v0  ;;  %v2534_v16 = vld [vmem:[%s3520_s0 + $0x168] ss:$16 sps:$4 sm:$0xff]  }
  0x20   :  { %1351 = vmatprep.subr.bf16.mxu0 %v2656_v0 }
  0x22   :  { %1063 = vmatpush1.bf16.msra.mxu1 %v2447_v17  ;;  %v2535_v17 = vld [vmem:[%s3520_s0 + $0x184] ss:$16 sps:$4 sm:$0xff]  }
  0x23   :  { %1352 = vmatpush1.bf16.msra.mxu0 %v2448_v18  ;;  %1064 = vmatprep.subr.bf16.mxu1 %v2656_v0  ;;  %v2537_v18 = vld [vmem:[%s3520_s0 + $0x18c] ss:$16 sps:$4 sm:$0xff]  }
  0x24   :  { %1353 = vmatprep.subr.bf16.mxu0 %v2656_v0 }
  0x26   :  { %1065 = vmatpush1.bf16.msra.mxu1 %v2449_v20  ;;  %v2540_v20 = vld [vmem:[%s3520_s0 + $0x188] ss:$16 sps:$4 sm:$0xff]  }
  0x27   :  { %1354 = vmatpush1.bf16.msra.mxu0 %v2450_v22  ;;  %1066 = vmatprep.subr.bf16.mxu1 %v2656_v0  ;;  %v2543_v22 = vld [vmem:[%s3520_s0 + $0x1ac] ss:$16 sps:$4 sm:$0xff]  }
  0x28   :  { %1355 = vmatprep.subr.bf16.mxu0 %v2656_v0 }
  0x2a   :  { %1067 = vmatpush1.bf16.msra.mxu1 %v2451_v23  ;;  %v2545_v23 = vld [vmem:[%s3520_s0 + $0x1a0] ss:$16 sps:$4 sm:$0xff]  }
  0x2b   :  { %1356 = vmatpush1.bf16.msra.mxu0 %v2452_v24  ;;  %1068 = vmatprep.subr.bf16.mxu1 %v2656_v0  ;;  %v2546_v24 = vld [vmem:[%s3520_s0 + $0x1a8] ss:$16 sps:$4 sm:$0xff]  }
  0x2c   :  { %1357 = vmatprep.subr.bf16.mxu0 %v2656_v0 }
  0x2e   :  { %1069 = vmatpush1.bf16.msra.mxu1 %v2453_v25  ;;  %v2547_v25 = vld [vmem:[%s3520_s0 + $0x1c4] ss:$16 sps:$4 sm:$0xff]  }
  0x2f   :  { %1358 = vmatpush1.bf16.msra.mxu0 %v2454_v26  ;;  %1070 = vmatprep.subr.bf16.mxu1 %v2656_v0  ;;  %v2549_v26 = vld [vmem:[%s3520_s0 + $0x1cc] ss:$16 sps:$4 sm:$0xff]  }
  0x30   :  { %1359 = vmatprep.subr.bf16.mxu0 %v2656_v0 }
  0x32   :  { %1071 = vmatpush1.bf16.msra.mxu1 %v2455_v27  ;;  %v2551_v27 = vld [vmem:[%s3520_s0 + $0x1c0] ss:$16 sps:$4 sm:$0xff]  }
  0x33   :  { %1360 = vmatpush1.bf16.msra.mxu0 %v2456_v28  ;;  %1072 = vmatprep.subr.bf16.mxu1 %v2656_v0  ;;  %v2552_v28 = vld [vmem:[%s3520_s0 + $0x1c8] ss:$16 sps:$4 sm:$0xff]  }
  0x34   :  { %1361 = vmatprep.subr.bf16.mxu0 %v2656_v0 }
  0x36   :  { %1073 = vmatpush1.bf16.msra.mxu1 %v2457_v29  ;;  %v2553_v29 = vld [vmem:[%s3520_s0 + $0x1e4] ss:$16 sps:$4 sm:$0xff]  }
  0x37   :  { %1362 = vmatpush1.bf16.msra.mxu0 %v2458_v30  ;;  %1074 = vmatprep.subr.bf16.mxu1 %v2656_v0  ;;  %v2555_v30 = vld [vmem:[%s3520_s0 + $0x1ec] ss:$16 sps:$4 sm:$0xff]  }
  0x38   :  { %1363 = vmatprep.subr.bf16.mxu0 %v2656_v0 }
  0x3a   :  { %1075 = vmatpush1.bf16.msra.mxu1 %v2459_v31  ;;  %v2557_v31 = vld [vmem:[%s3520_s0 + $0x1e0] ss:$16 sps:$4 sm:$0xff]  }
  0x3b   :  { %1364 = vmatpush1.bf16.msra.mxu0 %v2460_v32  ;;  %1076 = vmatprep.subr.bf16.mxu1 %v2656_v0  ;;  %v2558_v32 = vld [vmem:[%s3520_s0 + $0x1e8] ss:$16 sps:$4 sm:$0xff]  }
  0x3c   :  { %1365 = vmatprep.subr.bf16.mxu0 %v2656_v0  ;;  %v2510_v0 = vld [vmem:[%s3520_s0 + $0xe8] ss:$16 sps:$4 sm:$0xff]  }
  0x3e   :  { %1077 = vmatpush1.bf16.msra.mxu1 %v2461_v33  ;;  %v2559_v33 = vld [vmem:[%s3520_s0 + $0x204] ss:$16 sps:$4 sm:$0xff]  }
  0x3f   :  { %1366 = vmatpush1.bf16.msra.mxu0 %v2462_v34  ;;  %v2561_v34 = vld [vmem:[%s3520_s0 + $0x20c] ss:$16 sps:$4 sm:$0xff]  }
  0x41   :  { %1079 = vmatmul.mubr.bf16.vlgmr.msra.gmra.mrb[0].mxu1 %v2463_v35  ;;  %v2563_v35 = vld [vmem:[%s3520_s0 + $0x200] ss:$16 sps:$4 sm:$0xff]  }
  0x42   :  { %1368 = vmatmul.mubr.bf16.vlgmr.msra.gmra.mrb[0].mxu0 %v2466_v36  ;;  %1086 = vmatprep.mubr.bf16.mxu1 %v2469_v37  ;;  %v2564_v36 = vld [vmem:[%s3520_s0 + $0x208] ss:$16 sps:$4 sm:$0xff]   ;;  %v2565_v37 = vld [vmem:[%s3520_s0 + $0x224] ss:$16 sps:$4 sm:$0xff]  }
  0x43   :  { %1375 = vmatprep.mubr.bf16.mxu0 %v2471_v38  ;;  %v2567_v38 = vld [vmem:[%s3520_s0 + $0x22c] ss:$16 sps:$4 sm:$0xff]  }
  0x49   :  { %1087 = vmatmul.mubr.bf16.gmra.mrb[4].mxu1 %v2473_v39  ;;  %v2569_v39 = vld [vmem:[%s3520_s0 + $0x220] ss:$16 sps:$4 sm:$0xff]  }
  0x4a   :  { %1376 = vmatmul.mubr.bf16.gmra.mrb[4].mxu0 %v2474_v40  ;;  %1094 = vmatprep.mubr.bf16.mxu1 %v2475_v41  ;;  %v2570_v40 = vld [vmem:[%s3520_s0 + $0x228] ss:$16 sps:$4 sm:$0xff]   ;;  %v2571_v41 = vld [vmem:[%s3520_s0 + $0x244] ss:$16 sps:$4 sm:$0xff]  }
  0x4b   :  { %1383 = vmatprep.mubr.bf16.mxu0 %v2477_v42  ;;  %v2573_v42 = vld [vmem:[%s3520_s0 + $0x24c] ss:$16 sps:$4 sm:$0xff]  }
  0x51   :  { %1095 = vmatmul.mubr.bf16.gmra.mrb[8].mxu1 %v2479_v43  ;;  %v2575_v43 = vld [vmem:[%s3520_s0 + $0x240] ss:$16 sps:$4 sm:$0xff]  }
  0x52   :  { %1384 = vmatmul.mubr.bf16.gmra.mrb[8].mxu0 %v2480_v44  ;;  %1102 = vmatprep.mubr.bf16.mxu1 %v2481_v45  ;;  %v2576_v44 = vld [vmem:[%s3520_s0 + $0x248] ss:$16 sps:$4 sm:$0xff]   ;;  %v2577_v45 = vld [vmem:[%s3520_s0 + $0x264] ss:$16 sps:$4 sm:$0xff]  }
  0x53   :  { %1391 = vmatprep.mubr.bf16.mxu0 %v2483_v46  ;;  %v2579_v46 = vld [vmem:[%s3520_s0 + $0x26c] ss:$16 sps:$4 sm:$0xff]  }
  0x59   :  { %1103 = vmatmul.mubr.bf16.gmra.mrb[12].mxu1 %v2485_v47  ;;  %v2581_v47 = vld [vmem:[%s3520_s0 + $0x260] ss:$16 sps:$4 sm:$0xff]  }
  0x5a   :  { %1392 = vmatmul.mubr.bf16.gmra.mrb[12].mxu0 %v2486_v48  ;;  %1110 = vmatprep.mubr.bf16.mxu1 %v2487_v49  ;;  %v2582_v48 = vld [vmem:[%s3520_s0 + $0x268] ss:$16 sps:$4 sm:$0xff]   ;;  %v2583_v49 = vld [vmem:[%s3520_s0 + $0x284] ss:$16 sps:$4 sm:$0xff]  }
  0x5b   :  { %1399 = vmatprep.mubr.bf16.mxu0 %v2489_v50  ;;  %v2585_v50 = vld [vmem:[%s3520_s0 + $0x28c] ss:$16 sps:$4 sm:$0xff]  }
  0x61   :  { %1111 = vmatmul.mubr.bf16.gmra.mrb[16].mxu1 %v2491_v51  ;;  %v2587_v51 = vld [vmem:[%s3520_s0 + $0x280] ss:$16 sps:$4 sm:$0xff]  }
  0x62   :  { %1400 = vmatmul.mubr.bf16.gmra.mrb[16].mxu0 %v2492_v52  ;;  %1118 = vmatprep.mubr.bf16.mxu1 %v2493_v53  ;;  %v2588_v52 = vld [vmem:[%s3520_s0 + $0x288] ss:$16 sps:$4 sm:$0xff]   ;;  %v2589_v53 = vld [vmem:[%s3520_s0 + $0x2a4] ss:$16 sps:$4 sm:$0xff]  }
  0x63   :  { %1407 = vmatprep.mubr.bf16.mxu0 %v2495_v54  ;;  %v2591_v54 = vld [vmem:[%s3520_s0 + $0x2ac] ss:$16 sps:$4 sm:$0xff]  }
  0x69   :  { %1119 = vmatmul.mubr.bf16.gmra.mrb[20].mxu1 %v2497_v55  ;;  %v2593_v55 = vld [vmem:[%s3520_s0 + $0x2a0] ss:$16 sps:$4 sm:$0xff]  }
  0x6a   :  { %1408 = vmatmul.mubr.bf16.gmra.mrb[20].mxu0 %v2498_v56  ;;  %1126 = vmatprep.mubr.bf16.mxu1 %v2499_v57  ;;  %v2594_v56 = vld [vmem:[%s3520_s0 + $0x2a8] ss:$16 sps:$4 sm:$0xff]   ;;  %v2595_v57 = vld [vmem:[%s3520_s0 + $0x2c4] ss:$16 sps:$4 sm:$0xff]  }
  0x6b   :  { %1415 = vmatprep.mubr.bf16.mxu0 %v2501_v58  ;;  %v2597_v58 = vld [vmem:[%s3520_s0 + $0x2cc] ss:$16 sps:$4 sm:$0xff]  }
  0x71   :  { %1127 = vmatmul.mubr.bf16.gmra.mrb[24].mxu1 %v2503_v59  ;;  %v2599_v59 = vld [vmem:[%s3520_s0 + $0x2c0] ss:$16 sps:$4 sm:$0xff]  }
  0x72   :  { %1416 = vmatmul.mubr.bf16.gmra.mrb[24].mxu0 %v2504_v60  ;;  %1134 = vmatprep.mubr.bf16.mxu1 %v2505_v61  ;;  %v2600_v60 = vld [vmem:[%s3520_s0 + $0x2c8] ss:$16 sps:$4 sm:$0xff]   ;;  %v2601_v61 = vld [vmem:[%s3520_s0 + $0x2e4] ss:$16 sps:$4 sm:$0xff]  }
  0x73   :  { %1423 = vmatprep.mubr.bf16.mxu0 %v2507_v62  ;;  %v2603_v62 = vld [vmem:[%s3520_s0 + $0x2ec] ss:$16 sps:$4 sm:$0xff]  }
  0x79   :  { %1135 = vmatmul.mubr.bf16.gmra.mrb[28].mxu1 %v2509_v63  ;;  %v2605_v63 = vld [vmem:[%s3520_s0 + $0x2e0] ss:$16 sps:$4 sm:$0xff]  }
  0x7a   :  { %1424 = vmatmul.mubr.bf16.gmra.mrb[28].mxu0 %v2510_v0  ;;  %1142 = vmatprep.mubr.bf16.mxu1 %v2511_v1  ;;  %v2606_v0 = vld [vmem:[%s3520_s0 + $0x2e8] ss:$16 sps:$4 sm:$0xff]   ;;  %v2607_v1 = vld [vmem:[%s3520_s0 + $0x304] ss:$16 sps:$4 sm:$0xff]  }
  0x7b   :  { %1431 = vmatprep.mubr.bf16.mxu0 %v2513_v2  ;;  %v2609_v2 = vld [vmem:[%s3520_s0 + $0x30c] ss:$16 sps:$4 sm:$0xff]  }
  0x81   :  { %1143 = vmatmul.mubr.bf16.gmra.mrb[32].mxu1 %v2515_v3  ;;  %v2611_v3 = vld [vmem:[%s3520_s0 + $0x300] ss:$16 sps:$4 sm:$0xff]  }
  0x82   :  { %1432 = vmatmul.mubr.bf16.gmra.mrb[32].mxu0 %v2516_v4  ;;  %1150 = vmatprep.mubr.bf16.mxu1 %v2517_v5  ;;  %v2612_v4 = vld [vmem:[%s3520_s0 + $0x308] ss:$16 sps:$4 sm:$0xff]   ;;  %v2613_v5 = vld [vmem:[%s3520_s0 + $0x324] ss:$16 sps:$4 sm:$0xff]  }
  0x83   :  { %1439 = vmatprep.mubr.bf16.mxu0 %v2519_v6  ;;  %v2615_v6 = vld [vmem:[%s3520_s0 + $0x32c] ss:$16 sps:$4 sm:$0xff]  }
  0x89   :  { %1151 = vmatmul.mubr.bf16.gmra.mrb[36].mxu1 %v2521_v7  ;;  %v2617_v7 = vld [vmem:[%s3520_s0 + $0x320] ss:$16 sps:$4 sm:$0xff]  }
  0x8a   :  { %1440 = vmatmul.mubr.bf16.gmra.mrb[36].mxu0 %v2522_v8  ;;  %1158 = vmatprep.mubr.bf16.mxu1 %v2523_v9  ;;  %v2618_v8 = vld [vmem:[%s3520_s0 + $0x328] ss:$16 sps:$4 sm:$0xff]   ;;  %v2619_v9 = vld [vmem:[%s3520_s0 + $0x344] ss:$16 sps:$4 sm:$0xff]  }
  0x8b   :  { %1447 = vmatprep.mubr.bf16.mxu0 %v2525_v10  ;;  %v2621_v10 = vld [vmem:[%s3520_s0 + $0x34c] ss:$16 sps:$4 sm:$0xff]  }
  0x91   :  { %1159 = vmatmul.mubr.bf16.gmra.mrb[40].mxu1 %v2527_v11  ;;  %v2623_v11 = vld [vmem:[%s3520_s0 + $0x340] ss:$16 sps:$4 sm:$0xff]  }
  0x92   :  { %1448 = vmatmul.mubr.bf16.gmra.mrb[40].mxu0 %v2528_v12  ;;  %1166 = vmatprep.mubr.bf16.mxu1 %v2529_v13  ;;  %v2624_v12 = vld [vmem:[%s3520_s0 + $0x348] ss:$16 sps:$4 sm:$0xff]   ;;  %v2625_v13 = vld [vmem:[%s3520_s0 + $0x364] ss:$16 sps:$4 sm:$0xff]  }
  0x93   :  { %1455 = vmatprep.mubr.bf16.mxu0 %v2531_v14  ;;  %v2627_v14 = vld [vmem:[%s3520_s0 + $0x36c] ss:$16 sps:$4 sm:$0xff]  }
  0x99   :  { %1167 = vmatmul.mubr.bf16.gmra.mrb[44].mxu1 %v2533_v15  ;;  %v3138_v15 = vld [vmem:[%s3521_s2] ss:$0 sm:$0xff] }
  0x9a   :  { %1456 = vmatmul.mubr.bf16.gmra.mrb[44].mxu0 %v2534_v16  ;;  %1174 = vmatprep.mubr.bf16.mxu1 %v2535_v17 }
  0x9b   :  { %1463 = vmatprep.mubr.bf16.mxu0 %v2537_v18 }
  0xa1   :  { %1175 = vmatmul.mubr.bf16.gmra.mrb[48].mxu1 %v2539_v19 }
  0xa2   :  { %1464 = vmatmul.mubr.bf16.gmra.mrb[48].mxu0 %v2540_v20  ;;  %1182 = vmatprep.mubr.bf16.mxu1 %v2541_v21  ;;  %v2629_v20 = vld [vmem:[%s3520_s0 + $0x360] ss:$16 sps:$4 sm:$0xff]  }
  0xa3   :  { %1471 = vmatprep.mubr.bf16.mxu0 %v2543_v22 }
  0xa9   :  { %1183 = vmatmul.mubr.bf16.gmra.mrb[52].mxu1 %v2545_v23  ;;  %v2630_v23 = vld [vmem:[%s3520_s0 + $0x368] ss:$16 sps:$4 sm:$0xff]  }
  0xaa   :  { %1472 = vmatmul.mubr.bf16.gmra.mrb[52].mxu0 %v2546_v24  ;;  %1190 = vmatprep.mubr.bf16.mxu1 %v2547_v25  ;;  %v2631_v24 = vld [vmem:[%s3520_s0 + $0x384] ss:$16 sps:$4 sm:$0xff]  }
  0xab   :  { %1479 = vmatprep.mubr.bf16.mxu0 %v2549_v26 }
  0xb1   :  { %1191 = vmatmul.mubr.bf16.gmra.mrb[56].mxu1 %v2551_v27 }
  0xb2   :  { %1480 = vmatmul.mubr.bf16.gmra.mrb[56].mxu0 %v2552_v28  ;;  %1198 = vmatprep.mubr.bf16.mxu1 %v2553_v29  ;;  %v2633_v29 = vld [vmem:[%s3520_s0 + $0x38c] ss:$16 sps:$4 sm:$0xff]  }
  0xb3   :  { %1487 = vmatprep.mubr.bf16.mxu0 %v2555_v30 }
  0xb9   :  { %1199 = vmatmul.mubr.bf16.gmra.mrb[60].mxu1 %v2557_v31 }
  0xba   :  { %1488 = vmatmul.mubr.bf16.gmra.mrb[60].mxu0 %v2558_v32  ;;  %1206 = vmatprep.mubr.bf16.mxu1 %v2559_v33 }
  0xbb   :  { %1495 = vmatprep.mubr.bf16.mxu0 %v2561_v34 }
  0xc1   :  { %1207 = vmatmul.mubr.bf16.gmra.mrb[64].mxu1 %v2563_v35 }
  0xc2   :  { %1496 = vmatmul.mubr.bf16.gmra.mrb[64].mxu0 %v2564_v36  ;;  %1214 = vmatprep.mubr.bf16.mxu1 %v2565_v37 }
  0xc3   :  { %1503 = vmatprep.mubr.bf16.mxu0 %v2567_v38 }
  0xc9   :  { %1215 = vmatmul.mubr.bf16.gmra.mrb[68].mxu1 %v2569_v39 }
  0xca   :  { %1504 = vmatmul.mubr.bf16.gmra.mrb[68].mxu0 %v2570_v40  ;;  %1222 = vmatprep.mubr.bf16.mxu1 %v2571_v41  ;;  %v2635_v40 = vld [vmem:[%s3520_s0 + $0x380] ss:$16 sps:$4 sm:$0xff]  }
  0xcb   :  { %1511 = vmatprep.mubr.bf16.mxu0 %v2573_v42 }
  0xd1   :  { %1223 = vmatmul.mubr.bf16.gmra.mrb[72].mxu1 %v2575_v43  ;;  %v2636_v43 = vld [vmem:[%s3520_s0 + $0x388] ss:$16 sps:$4 sm:$0xff]  }
  0xd2   :  { %1512 = vmatmul.mubr.bf16.gmra.mrb[72].mxu0 %v2576_v44  ;;  %1230 = vmatprep.mubr.bf16.mxu1 %v2577_v45  ;;  %v2637_v44 = vld [vmem:[%s3520_s0 + $0x3a4] ss:$16 sps:$4 sm:$0xff]  }
  0xd3   :  { %1519 = vmatprep.mubr.bf16.mxu0 %v2579_v46 }
  0xd9   :  { %1231 = vmatmul.mubr.bf16.gmra.mrb[76].mxu1 %v2581_v47 }
  0xda   :  { %1520 = vmatmul.mubr.bf16.gmra.mrb[76].mxu0 %v2582_v48  ;;  %1238 = vmatprep.mubr.bf16.mxu1 %v2583_v49  ;;  %v2639_v49 = vld [vmem:[%s3520_s0 + $0x3ac] ss:$16 sps:$4 sm:$0xff]  }
  0xdb   :  { %1527 = vmatprep.mubr.bf16.mxu0 %v2585_v50 }
  0xe1   :  { %1239 = vmatmul.mubr.bf16.gmra.mrb[80].mxu1 %v2587_v51 }
  0xe2   :  { %1528 = vmatmul.mubr.bf16.gmra.mrb[80].mxu0 %v2588_v52  ;;  %1246 = vmatprep.mubr.bf16.mxu1 %v2589_v53 }
  0xe3   :  { %1535 = vmatprep.mubr.bf16.mxu0 %v2591_v54 }
  0xe9   :  { %1247 = vmatmul.mubr.bf16.gmra.mrb[84].mxu1 %v2593_v55 }
  0xea   :  { %1536 = vmatmul.mubr.bf16.gmra.mrb[84].mxu0 %v2594_v56  ;;  %1254 = vmatprep.mubr.bf16.mxu1 %v2595_v57 }
  0xeb   :  { %1543 = vmatprep.mubr.bf16.mxu0 %v2597_v58 }
  0xf1   :  { %1255 = vmatmul.mubr.bf16.gmra.mrb[88].mxu1 %v2599_v59 }
  0xf2   :  { %1544 = vmatmul.mubr.bf16.gmra.mrb[88].mxu0 %v2600_v60  ;;  %1262 = vmatprep.mubr.bf16.mxu1 %v2601_v61  ;;  %v2641_v60 = vld [vmem:[%s3520_s0 + $0x3a0] ss:$16 sps:$4 sm:$0xff]  }
  0xf3   :  { %1551 = vmatprep.mubr.bf16.mxu0 %v2603_v62 }
  0xf9   :  { %1263 = vmatmul.mubr.bf16.gmra.mrb[92].mxu1 %v2605_v63  ;;  %v2642_v63 = vld [vmem:[%s3520_s0 + $0x3a8] ss:$16 sps:$4 sm:$0xff]  }
  0xfa   :  { %1552 = vmatmul.mubr.bf16.gmra.mrb[92].mxu0 %v2606_v0  ;;  %1270 = vmatprep.mubr.bf16.mxu1 %v2607_v1  ;;  %v2643_v0 = vld [vmem:[%s3520_s0 + $0x3c4] ss:$16 sps:$4 sm:$0xff]  }
  0xfb   :  { %1559 = vmatprep.mubr.bf16.mxu0 %v2609_v2 }
 0x101   :  { %1271 = vmatmul.mubr.bf16.gmra.mrb[96].mxu1 %v2611_v3 }
 0x102   :  { %1560 = vmatmul.mubr.bf16.gmra.mrb[96].mxu0 %v2612_v4  ;;  %1278 = vmatprep.mubr.bf16.mxu1 %v2613_v5  ;;  %v2645_v5 = vld [vmem:[%s3520_s0 + $0x3cc] ss:$16 sps:$4 sm:$0xff]  }
 0x103   :  { %1567 = vmatprep.mubr.bf16.mxu0 %v2615_v6 }
 0x109   :  { %1279 = vmatmul.mubr.bf16.gmra.mrb[100].mxu1 %v2617_v7 }
 0x10a   :  { %1568 = vmatmul.mubr.bf16.gmra.mrb[100].mxu0 %v2618_v8  ;;  %1286 = vmatprep.mubr.bf16.mxu1 %v2619_v9 }
 0x10b   :  { %1575 = vmatprep.mubr.bf16.mxu0 %v2621_v10 }
 0x111   :  { %1287 = vmatmul.mubr.bf16.gmra.mrb[104].mxu1 %v2623_v11 }
 0x112   :  { %1576 = vmatmul.mubr.bf16.gmra.mrb[104].mxu0 %v2624_v12  ;;  %1294 = vmatprep.mubr.bf16.mxu1 %v2625_v13 }
 0x113   :  { %1583 = vmatprep.mubr.bf16.mxu0 %v2627_v14 }
 0x114   :  { %v1080_v16 = vpop.f32.mrb[0].mxu1 }
 0x115   :  { %v1081_v17 = vadd.f32 %v3138_v15, %v1080_v16  ;;  %v1369_v18 = vpop.f32.mrb[0].mxu0  ;;  %v1082_v19 = vpop.f32.mrb[1].mxu1 }
 0x116   :  { %v1371_v21 = vpop.f32.mrb[1].mxu0  ;;  %v1083_v22 = vpop.f32.mrb[2].mxu1 }
 0x117   :  { %v1370_v25 = vadd.f32 %v1369_v18, %v1081_v17  ;;  %v1084_v26 = vadd.f32 %v3138_v15, %v1083_v22  ;;  %v1372_v27 = vpop.f32.mrb[2].mxu0  ;;  %v1085_v28 = vpop.f32.mrb[3].mxu1  ;;  %v2647_v17 = vld [vmem:[%s3520_s0 + $0x3c0] ss:$16 sps:$4 sm:$0xff]   ;;  %v2649_v21 = vld [vmem:[%s3520_s0 + $0x3e4] ss:$16 sps:$4 sm:$0xff]  }
 0x118   :  { %v1374_v30 = vpop.f32.mrb[3].mxu0 }
 0x119   :  { %v1624_v31 = vmax.f32 %v1370_v25, 0.0  ;;  %v1373_v32 = vadd.f32 %v1372_v27, %v1084_v26  ;;  %1295 = vmatmul.mubr.bf16.gmra.mrb[108].mxu1 %v2629_v20  ;;  %v2648_v20 = vld [vmem:[%s3520_s0 + $0x3c8] ss:$16 sps:$4 sm:$0xff]   ;;  %v2651_v26 = vld [vmem:[%s3520_s0 + $0x3ec] ss:$16 sps:$4 sm:$0xff]  }
 0x11a   :  { %1584 = vmatmul.mubr.bf16.gmra.mrb[108].mxu0 %v2630_v23  ;;  %1302 = vmatprep.mubr.bf16.mxu1 %v2631_v24 }
 0x11b   :  { %v2238_v33 = vpack.c.bf16 %v1624_v31, %v1624_v31  ;;  %v1625_v34 = vmax.f32 %v1373_v32, 0.0  ;;  %1591 = vmatprep.mubr.bf16.mxu0 %v2633_v29 }
 0x11c   :  { %v1088_v35 = vpop.f32.mrb[4].mxu1 }
 0x11d   :  { %1945 = vst.msk [vmem:[%s3522_s3] sm:$0xf] %vm1944_vm0, %v2238_v33  ;;  %v2239_v36 = vpack.c.bf16 %v1625_v34, %v1625_v34  ;;  %v1089_v37 = vadd.f32 %v3138_v15, %v1088_v35  ;;  %v1377_v38 = vpop.f32.mrb[4].mxu0  ;;  %v1090_v39 = vpop.f32.mrb[5].mxu1 }
 0x11e   :  { %v1379_v41 = vpop.f32.mrb[5].mxu0  ;;  %v1091_v42 = vpop.f32.mrb[6].mxu1 }
 0x11f   :  { %1946 = vst.msk [vmem:[%s3522_s3 + $0x4] sm:$0xf] %vm1944_vm0, %v2239_v36  ;;  %v1378_v45 = vadd.f32 %v1377_v38, %v1089_v37  ;;  %v1092_v46 = vadd.f32 %v3138_v15, %v1091_v42  ;;  %v1380_v47 = vpop.f32.mrb[6].mxu0  ;;  %v1093_v48 = vpop.f32.mrb[7].mxu1  ;;  %v2653_v37 = vld [vmem:[%s3520_s0 + $0x3e0] ss:$16 sps:$4 sm:$0xff]  }
 0x120   :  { %v1382_v50 = vpop.f32.mrb[7].mxu0 }
 0x121   :  { %v1626_v51 = vmax.f32 %v1378_v45, 0.0  ;;  %v1381_v52 = vadd.f32 %v1380_v47, %v1092_v46  ;;  %1303 = vmatmul.mubr.bf16.gmra.mrb[112].mxu1 %v2635_v40  ;;  %v2654_v40 = vld [vmem:[%s3520_s0 + $0x3e8] ss:$16 sps:$4 sm:$0xff]  }
 0x122   :  { %1592 = vmatmul.mubr.bf16.gmra.mrb[112].mxu0 %v2636_v43  ;;  %1310 = vmatprep.mubr.bf16.mxu1 %v2637_v44 }
 0x123   :  { %v2240_v53 = vpack.c.bf16 %v1626_v51, %v1626_v51  ;;  %v1627_v54 = vmax.f32 %v1381_v52, 0.0  ;;  %1599 = vmatprep.mubr.bf16.mxu0 %v2639_v49 }
 0x124   :  { %v1096_v55 = vpop.f32.mrb[8].mxu1 }
 0x125   :  { %1947 = vst.msk [vmem:[%s3522_s3 + $0x8] sm:$0xf] %vm1944_vm0, %v2240_v53  ;;  %v2241_v56 = vpack.c.bf16 %v1627_v54, %v1627_v54  ;;  %v1097_v57 = vadd.f32 %v3138_v15, %v1096_v55  ;;  %v1385_v58 = vpop.f32.mrb[8].mxu0  ;;  %v1098_v59 = vpop.f32.mrb[9].mxu1 }
 0x126   :  { %v1387_v61 = vpop.f32.mrb[9].mxu0  ;;  %v1099_v62 = vpop.f32.mrb[10].mxu1 }
 0x127   :  { %1948 = vst.msk [vmem:[%s3522_s3 + $0xc] sm:$0xf] %vm1944_vm0, %v2241_v56  ;;  %v1386_v1 = vadd.f32 %v1385_v58, %v1097_v57  ;;  %v1100_v2 = vadd.f32 %v3138_v15, %v1099_v62  ;;  %v1388_v3 = vpop.f32.mrb[10].mxu0  ;;  %v1101_v4 = vpop.f32.mrb[11].mxu1 }
 0x128   :  { %v1390_v6 = vpop.f32.mrb[11].mxu0 }
 0x129   :  { %v1628_v7 = vmax.f32 %v1386_v1, 0.0  ;;  %v1389_v8 = vadd.f32 %v1388_v3, %v1100_v2  ;;  %1311 = vmatmul.mubr.bf16.gmra.mrb[116].mxu1 %v2641_v60 }
 0x12a   :  { %1600 = vmatmul.mubr.bf16.gmra.mrb[116].mxu0 %v2642_v63  ;;  %1318 = vmatprep.mubr.bf16.mxu1 %v2643_v0 }
 0x12b   :  { %v2242_v9 = vpack.c.bf16 %v1628_v7, %v1628_v7  ;;  %v1629_v10 = vmax.f32 %v1389_v8, 0.0  ;;  %1607 = vmatprep.mubr.bf16.mxu0 %v2645_v5 }
 0x12c   :  { %v1104_v11 = vpop.f32.mrb[12].mxu1 }
 0x12d   :  { %1949 = vst.msk [vmem:[%s3522_s3 + $0x10] sm:$0xf] %vm1944_vm0, %v2242_v9  ;;  %v2243_v12 = vpack.c.bf16 %v1629_v10, %v1629_v10  ;;  %v1105_v13 = vadd.f32 %v3138_v15, %v1104_v11  ;;  %v1393_v14 = vpop.f32.mrb[12].mxu0  ;;  %v1106_v16 = vpop.f32.mrb[13].mxu1 }
 0x12e   :  { %v1395_v18 = vpop.f32.mrb[13].mxu0  ;;  %v1107_v19 = vpop.f32.mrb[14].mxu1 }
 0x12f   :  { %1950 = vst.msk [vmem:[%s3522_s3 + $0x14] sm:$0xf] %vm1944_vm0, %v2243_v12  ;;  %v1394_v22 = vadd.f32 %v1393_v14, %v1105_v13  ;;  %v1108_v23 = vadd.f32 %v3138_v15, %v1107_v19  ;;  %v1396_v24 = vpop.f32.mrb[14].mxu0  ;;  %v1109_v25 = vpop.f32.mrb[15].mxu1 }
 0x130   :  { %v1398_v27 = vpop.f32.mrb[15].mxu0 }
 0x131   :  { %v1630_v28 = vmax.f32 %v1394_v22, 0.0  ;;  %v1397_v29 = vadd.f32 %v1396_v24, %v1108_v23  ;;  %1319 = vmatmul.mubr.bf16.gmra.mrb[120].mxu1 %v2647_v17 }
 0x132   :  { %1608 = vmatmul.mubr.bf16.gmra.mrb[120].mxu0 %v2648_v20  ;;  %1326 = vmatprep.mubr.bf16.mxu1 %v2649_v21 }
 0x133   :  { %v2244_v30 = vpack.c.bf16 %v1630_v28, %v1630_v28  ;;  %v1631_v31 = vmax.f32 %v1397_v29, 0.0  ;;  %1615 = vmatprep.mubr.bf16.mxu0 %v2651_v26 }
 0x134   :  { %v1112_v32 = vpop.f32.mrb[16].mxu1 }
 0x135   :  { %1951 = vst.msk [vmem:[%s3522_s3 + $0x18] sm:$0xf] %vm1944_vm0, %v2244_v30  ;;  %v2245_v33 = vpack.c.bf16 %v1631_v31, %v1631_v31  ;;  %v1113_v34 = vadd.f32 %v3138_v15, %v1112_v32  ;;  %v1401_v35 = vpop.f32.mrb[16].mxu0  ;;  %v1114_v36 = vpop.f32.mrb[17].mxu1 }
 0x136   :  { %v1403_v38 = vpop.f32.mrb[17].mxu0  ;;  %v1115_v39 = vpop.f32.mrb[18].mxu1 }
 0x137   :  { %1952 = vst.msk [vmem:[%s3522_s3 + $0x1c] sm:$0xf] %vm1944_vm0, %v2245_v33  ;;  %v1402_v41 = vadd.f32 %v1401_v35, %v1113_v34  ;;  %v1116_v42 = vadd.f32 %v3138_v15, %v1115_v39  ;;  %v1404_v43 = vpop.f32.mrb[18].mxu0  ;;  %v1117_v44 = vpop.f32.mrb[19].mxu1 }
 0x138   :  { %v1406_v45 = vpop.f32.mrb[19].mxu0 }
 0x139   :  { %v1632_v46 = vmax.f32 %v1402_v41, 0.0  ;;  %v1405_v47 = vadd.f32 %v1404_v43, %v1116_v42  ;;  %1327 = vmatmul.mubr.bf16.gmra.mrb[124].mxu1 %v2653_v37 }
 0x13a   :  { %1616 = vmatmul.mubr.bf16.gmra.mrb[124].mxu0 %v2654_v40 }
 0x13b   :  { %v2246_v48 = vpack.c.bf16 %v1632_v46, %v1632_v46  ;;  %v1633_v49 = vmax.f32 %v1405_v47, 0.0 }
 0x13c   :  { %v1120_v50 = vpop.f32.mrb[20].mxu1 }
 0x13d   :  { %1953 = vst.msk [vmem:[%s3522_s3 + $0x20] sm:$0xf] %vm1944_vm0, %v2246_v48  ;;  %v2247_v51 = vpack.c.bf16 %v1633_v49, %v1633_v49  ;;  %v1121_v52 = vadd.f32 %v3138_v15, %v1120_v50  ;;  %v1409_v53 = vpop.f32.mrb[20].mxu0  ;;  %v1122_v54 = vpop.f32.mrb[21].mxu1 }
 0x13e   :  { %v1411_v55 = vpop.f32.mrb[21].mxu0  ;;  %v1123_v56 = vpop.f32.mrb[22].mxu1 }
 0x13f   :  { %1954 = vst.msk [vmem:[%s3522_s3 + $0x24] sm:$0xf] %vm1944_vm0, %v2247_v51  ;;  %v1410_v57 = vadd.f32 %v1409_v53, %v1121_v52  ;;  %v1124_v58 = vadd.f32 %v3138_v15, %v1123_v56  ;;  %v1412_v59 = vpop.f32.mrb[22].mxu0  ;;  %v1125_v60 = vpop.f32.mrb[23].mxu1 }
 0x140   :  { %v1414_v61 = vpop.f32.mrb[23].mxu0 }
 0x141   :  { %v1634_v62 = vmax.f32 %v1410_v57, 0.0  ;;  %v1413_v63 = vadd.f32 %v1412_v59, %v1124_v58 }
 0x143   :  { %v2248_v0 = vpack.c.bf16 %v1634_v62, %v1634_v62  ;;  %v1635_v1 = vmax.f32 %v1413_v63, 0.0 }
 0x144   :  { %v1128_v2 = vpop.f32.mrb[24].mxu1 }
 0x145   :  { %1955 = vst.msk [vmem:[%s3522_s3 + $0x28] sm:$0xf] %vm1944_vm0, %v2248_v0  ;;  %v2249_v3 = vpack.c.bf16 %v1635_v1, %v1635_v1  ;;  %v1129_v4 = vadd.f32 %v3138_v15, %v1128_v2  ;;  %v1417_v5 = vpop.f32.mrb[24].mxu0  ;;  %v1130_v6 = vpop.f32.mrb[25].mxu1 }
 0x146   :  { %v1419_v7 = vpop.f32.mrb[25].mxu0  ;;  %v1131_v8 = vpop.f32.mrb[26].mxu1 }
 0x147   :  { %1956 = vst.msk [vmem:[%s3522_s3 + $0x2c] sm:$0xf] %vm1944_vm0, %v2249_v3  ;;  %v1418_v9 = vadd.f32 %v1417_v5, %v1129_v4  ;;  %v1132_v10 = vadd.f32 %v3138_v15, %v1131_v8  ;;  %v1420_v11 = vpop.f32.mrb[26].mxu0  ;;  %v1133_v12 = vpop.f32.mrb[27].mxu1 }
 0x148   :  { %v1422_v13 = vpop.f32.mrb[27].mxu0 }
 0x149   :  { %v1636_v14 = vmax.f32 %v1418_v9, 0.0  ;;  %v1421_v16 = vadd.f32 %v1420_v11, %v1132_v10 }
 0x14b   :  { %v2250_v17 = vpack.c.bf16 %v1636_v14, %v1636_v14  ;;  %v1637_v18 = vmax.f32 %v1421_v16, 0.0 }
 0x14c   :  { %v1136_v19 = vpop.f32.mrb[28].mxu1 }
 0x14d   :  { %1957 = vst.msk [vmem:[%s3522_s3 + $0x30] sm:$0xf] %vm1944_vm0, %v2250_v17  ;;  %v2251_v20 = vpack.c.bf16 %v1637_v18, %v1637_v18  ;;  %v1137_v21 = vadd.f32 %v3138_v15, %v1136_v19  ;;  %v1425_v22 = vpop.f32.mrb[28].mxu0  ;;  %v1138_v23 = vpop.f32.mrb[29].mxu1 }
 0x14e   :  { %v1427_v24 = vpop.f32.mrb[29].mxu0  ;;  %v1139_v25 = vpop.f32.mrb[30].mxu1 }
 0x14f   :  { %1958 = vst.msk [vmem:[%s3522_s3 + $0x34] sm:$0xf] %vm1944_vm0, %v2251_v20  ;;  %v1426_v26 = vadd.f32 %v1425_v22, %v1137_v21  ;;  %v1140_v27 = vadd.f32 %v3138_v15, %v1139_v25  ;;  %v1428_v28 = vpop.f32.mrb[30].mxu0  ;;  %v1141_v29 = vpop.f32.mrb[31].mxu1 }
 0x150   :  { %v1430_v30 = vpop.f32.mrb[31].mxu0 }
 0x151   :  { %v1638_v31 = vmax.f32 %v1426_v26, 0.0  ;;  %v1429_v32 = vadd.f32 %v1428_v28, %v1140_v27 }
 0x153   :  { %v2252_v33 = vpack.c.bf16 %v1638_v31, %v1638_v31  ;;  %v1639_v34 = vmax.f32 %v1429_v32, 0.0 }
 0x154   :  { %v1144_v35 = vpop.f32.mrb[32].mxu1 }
 0x155   :  { %1959 = vst.msk [vmem:[%s3522_s3 + $0x38] sm:$0xf] %vm1944_vm0, %v2252_v33  ;;  %v2253_v36 = vpack.c.bf16 %v1639_v34, %v1639_v34  ;;  %v1145_v37 = vadd.f32 %v3138_v15, %v1144_v35  ;;  %v1433_v38 = vpop.f32.mrb[32].mxu0  ;;  %v1146_v39 = vpop.f32.mrb[33].mxu1 }
 0x156   :  { %v1435_v40 = vpop.f32.mrb[33].mxu0  ;;  %v1147_v41 = vpop.f32.mrb[34].mxu1 }
 0x157   :  { %1960 = vst.msk [vmem:[%s3522_s3 + $0x3c] sm:$0xf] %vm1944_vm0, %v2253_v36  ;;  %v1434_v42 = vadd.f32 %v1433_v38, %v1145_v37  ;;  %v1148_v43 = vadd.f32 %v3138_v15, %v1147_v41  ;;  %v1436_v44 = vpop.f32.mrb[34].mxu0  ;;  %v1149_v45 = vpop.f32.mrb[35].mxu1 }
 0x158   :  { %v1438_v46 = vpop.f32.mrb[35].mxu0 }
 0x159   :  { %v1640_v47 = vmax.f32 %v1434_v42, 0.0  ;;  %v1437_v48 = vadd.f32 %v1436_v44, %v1148_v43 }
 0x15b   :  { %v2254_v49 = vpack.c.bf16 %v1640_v47, %v1640_v47  ;;  %v1641_v50 = vmax.f32 %v1437_v48, 0.0 }
 0x15c   :  { %v1152_v51 = vpop.f32.mrb[36].mxu1 }
 0x15d   :  { %1961 = vst.msk [vmem:[%s3522_s3 + $0x40] sm:$0xf] %vm1944_vm0, %v2254_v49  ;;  %v2255_v52 = vpack.c.bf16 %v1641_v50, %v1641_v50  ;;  %v1153_v53 = vadd.f32 %v3138_v15, %v1152_v51  ;;  %v1441_v54 = vpop.f32.mrb[36].mxu0  ;;  %v1154_v55 = vpop.f32.mrb[37].mxu1 }
 0x15e   :  { %v1443_v56 = vpop.f32.mrb[37].mxu0  ;;  %v1155_v57 = vpop.f32.mrb[38].mxu1 }
 0x15f   :  { %1962 = vst.msk [vmem:[%s3522_s3 + $0x44] sm:$0xf] %vm1944_vm0, %v2255_v52  ;;  %v1442_v58 = vadd.f32 %v1441_v54, %v1153_v53  ;;  %v1156_v59 = vadd.f32 %v3138_v15, %v1155_v57  ;;  %v1444_v60 = vpop.f32.mrb[38].mxu0  ;;  %v1157_v61 = vpop.f32.mrb[39].mxu1 }
 0x160   :  { %v1446_v62 = vpop.f32.mrb[39].mxu0 }
 0x161   :  { %v1642_v63 = vmax.f32 %v1442_v58, 0.0  ;;  %v1445_v0 = vadd.f32 %v1444_v60, %v1156_v59 }
 0x163   :  { %v2256_v1 = vpack.c.bf16 %v1642_v63, %v1642_v63  ;;  %v1643_v2 = vmax.f32 %v1445_v0, 0.0 }
 0x164   :  { %v1160_v3 = vpop.f32.mrb[40].mxu1 }
 0x165   :  { %1963 = vst.msk [vmem:[%s3522_s3 + $0x48] sm:$0xf] %vm1944_vm0, %v2256_v1  ;;  %v2257_v4 = vpack.c.bf16 %v1643_v2, %v1643_v2  ;;  %v1161_v5 = vadd.f32 %v3138_v15, %v1160_v3  ;;  %v1449_v6 = vpop.f32.mrb[40].mxu0  ;;  %v1162_v7 = vpop.f32.mrb[41].mxu1 }
 0x166   :  { %v1451_v8 = vpop.f32.mrb[41].mxu0  ;;  %v1163_v9 = vpop.f32.mrb[42].mxu1 }
 0x167   :  { %1964 = vst.msk [vmem:[%s3522_s3 + $0x4c] sm:$0xf] %vm1944_vm0, %v2257_v4  ;;  %v1450_v10 = vadd.f32 %v1449_v6, %v1161_v5  ;;  %v1164_v11 = vadd.f32 %v3138_v15, %v1163_v9  ;;  %v1452_v12 = vpop.f32.mrb[42].mxu0  ;;  %v1165_v13 = vpop.f32.mrb[43].mxu1 }
 0x168   :  { %v1454_v14 = vpop.f32.mrb[43].mxu0 }
 0x169   :  { %v1644_v16 = vmax.f32 %v1450_v10, 0.0  ;;  %v1453_v17 = vadd.f32 %v1452_v12, %v1164_v11 }
 0x16b   :  { %v2258_v18 = vpack.c.bf16 %v1644_v16, %v1644_v16  ;;  %v1645_v19 = vmax.f32 %v1453_v17, 0.0 }
 0x16c   :  { %v1168_v20 = vpop.f32.mrb[44].mxu1 }
 0x16d   :  { %1965 = vst.msk [vmem:[%s3522_s3 + $0x50] sm:$0xf] %vm1944_vm0, %v2258_v18  ;;  %v2259_v21 = vpack.c.bf16 %v1645_v19, %v1645_v19  ;;  %v1169_v22 = vadd.f32 %v3138_v15, %v1168_v20  ;;  %v1457_v23 = vpop.f32.mrb[44].mxu0  ;;  %v1170_v24 = vpop.f32.mrb[45].mxu1 }
 0x16e   :  { %v1459_v25 = vpop.f32.mrb[45].mxu0  ;;  %v1171_v26 = vpop.f32.mrb[46].mxu1 }
 0x16f   :  { %1966 = vst.msk [vmem:[%s3522_s3 + $0x54] sm:$0xf] %vm1944_vm0, %v2259_v21  ;;  %v1458_v27 = vadd.f32 %v1457_v23, %v1169_v22  ;;  %v1172_v28 = vadd.f32 %v3138_v15, %v1171_v26  ;;  %v1460_v29 = vpop.f32.mrb[46].mxu0  ;;  %v1173_v30 = vpop.f32.mrb[47].mxu1 }
 0x170   :  { %v1462_v31 = vpop.f32.mrb[47].mxu0 }
 0x171   :  { %v1646_v32 = vmax.f32 %v1458_v27, 0.0  ;;  %v1461_v33 = vadd.f32 %v1460_v29, %v1172_v28 }
 0x173   :  { %v2260_v34 = vpack.c.bf16 %v1646_v32, %v1646_v32  ;;  %v1647_v35 = vmax.f32 %v1461_v33, 0.0 }
 0x174   :  { %v1176_v36 = vpop.f32.mrb[48].mxu1 }
 0x175   :  { %1967 = vst.msk [vmem:[%s3522_s3 + $0x58] sm:$0xf] %vm1944_vm0, %v2260_v34  ;;  %v2261_v37 = vpack.c.bf16 %v1647_v35, %v1647_v35  ;;  %v1177_v38 = vadd.f32 %v3138_v15, %v1176_v36  ;;  %v1465_v39 = vpop.f32.mrb[48].mxu0  ;;  %v1178_v40 = vpop.f32.mrb[49].mxu1 }
 0x176   :  { %v1467_v41 = vpop.f32.mrb[49].mxu0  ;;  %v1179_v42 = vpop.f32.mrb[50].mxu1 }
 0x177   :  { %1968 = vst.msk [vmem:[%s3522_s3 + $0x5c] sm:$0xf] %vm1944_vm0, %v2261_v37  ;;  %v1466_v43 = vadd.f32 %v1465_v39, %v1177_v38  ;;  %v1180_v44 = vadd.f32 %v3138_v15, %v1179_v42  ;;  %v1468_v45 = vpop.f32.mrb[50].mxu0  ;;  %v1181_v46 = vpop.f32.mrb[51].mxu1 }
 0x178   :  { %v1470_v47 = vpop.f32.mrb[51].mxu0 }
 0x179   :  { %v1648_v48 = vmax.f32 %v1466_v43, 0.0  ;;  %v1469_v49 = vadd.f32 %v1468_v45, %v1180_v44 }
 0x17b   :  { %v2262_v50 = vpack.c.bf16 %v1648_v48, %v1648_v48  ;;  %v1649_v51 = vmax.f32 %v1469_v49, 0.0 }
 0x17c   :  { %v1184_v52 = vpop.f32.mrb[52].mxu1 }
 0x17d   :  { %1969 = vst.msk [vmem:[%s3522_s3 + $0x60] sm:$0xf] %vm1944_vm0, %v2262_v50  ;;  %v2263_v53 = vpack.c.bf16 %v1649_v51, %v1649_v51  ;;  %v1185_v54 = vadd.f32 %v3138_v15, %v1184_v52  ;;  %v1473_v55 = vpop.f32.mrb[52].mxu0  ;;  %v1186_v56 = vpop.f32.mrb[53].mxu1 }
 0x17e   :  { %v1475_v57 = vpop.f32.mrb[53].mxu0  ;;  %v1187_v58 = vpop.f32.mrb[54].mxu1 }
 0x17f   :  { %1970 = vst.msk [vmem:[%s3522_s3 + $0x64] sm:$0xf] %vm1944_vm0, %v2263_v53  ;;  %v1474_v59 = vadd.f32 %v1473_v55, %v1185_v54  ;;  %v1188_v60 = vadd.f32 %v3138_v15, %v1187_v58  ;;  %v1476_v61 = vpop.f32.mrb[54].mxu0  ;;  %v1189_v62 = vpop.f32.mrb[55].mxu1 }
 0x180   :  { %v1478_v63 = vpop.f32.mrb[55].mxu0 }
 0x181   :  { %v1650_v0 = vmax.f32 %v1474_v59, 0.0  ;;  %v1477_v1 = vadd.f32 %v1476_v61, %v1188_v60 }
 0x183   :  { %v2264_v2 = vpack.c.bf16 %v1650_v0, %v1650_v0  ;;  %v1651_v3 = vmax.f32 %v1477_v1, 0.0 }
 0x184   :  { %v1192_v4 = vpop.f32.mrb[56].mxu1 }
 0x185   :  { %1971 = vst.msk [vmem:[%s3522_s3 + $0x68] sm:$0xf] %vm1944_vm0, %v2264_v2  ;;  %v2265_v5 = vpack.c.bf16 %v1651_v3, %v1651_v3  ;;  %v1193_v6 = vadd.f32 %v3138_v15, %v1192_v4  ;;  %v1481_v7 = vpop.f32.mrb[56].mxu0  ;;  %v1194_v8 = vpop.f32.mrb[57].mxu1 }
 0x186   :  { %v1483_v9 = vpop.f32.mrb[57].mxu0  ;;  %v1195_v10 = vpop.f32.mrb[58].mxu1 }
 0x187   :  { %1972 = vst.msk [vmem:[%s3522_s3 + $0x6c] sm:$0xf] %vm1944_vm0, %v2265_v5  ;;  %v1482_v11 = vadd.f32 %v1481_v7, %v1193_v6  ;;  %v1196_v12 = vadd.f32 %v3138_v15, %v1195_v10  ;;  %v1484_v13 = vpop.f32.mrb[58].mxu0  ;;  %v1197_v14 = vpop.f32.mrb[59].mxu1 }
 0x188   :  { %v1486_v16 = vpop.f32.mrb[59].mxu0 }
 0x189   :  { %v1652_v17 = vmax.f32 %v1482_v11, 0.0  ;;  %v1485_v18 = vadd.f32 %v1484_v13, %v1196_v12 }
 0x18b   :  { %v2266_v19 = vpack.c.bf16 %v1652_v17, %v1652_v17  ;;  %v1653_v20 = vmax.f32 %v1485_v18, 0.0 }
 0x18c   :  { %v1200_v21 = vpop.f32.mrb[60].mxu1 }
 0x18d   :  { %1973 = vst.msk [vmem:[%s3522_s3 + $0x70] sm:$0xf] %vm1944_vm0, %v2266_v19  ;;  %v2267_v22 = vpack.c.bf16 %v1653_v20, %v1653_v20  ;;  %v1201_v23 = vadd.f32 %v3138_v15, %v1200_v21  ;;  %v1489_v24 = vpop.f32.mrb[60].mxu0  ;;  %v1202_v25 = vpop.f32.mrb[61].mxu1 }
 0x18e   :  { %v1491_v26 = vpop.f32.mrb[61].mxu0  ;;  %v1203_v27 = vpop.f32.mrb[62].mxu1 }
 0x18f   :  { %1974 = vst.msk [vmem:[%s3522_s3 + $0x74] sm:$0xf] %vm1944_vm0, %v2267_v22  ;;  %v1490_v28 = vadd.f32 %v1489_v24, %v1201_v23  ;;  %v1204_v29 = vadd.f32 %v3138_v15, %v1203_v27  ;;  %v1492_v30 = vpop.f32.mrb[62].mxu0  ;;  %v1205_v31 = vpop.f32.mrb[63].mxu1 }
 0x190   :  { %v1494_v32 = vpop.f32.mrb[63].mxu0 }
 0x191   :  { %v1654_v33 = vmax.f32 %v1490_v28, 0.0  ;;  %v1493_v34 = vadd.f32 %v1492_v30, %v1204_v29 }
 0x193   :  { %v2268_v35 = vpack.c.bf16 %v1654_v33, %v1654_v33  ;;  %v1655_v36 = vmax.f32 %v1493_v34, 0.0 }
 0x194   :  { %v1208_v37 = vpop.f32.mrb[64].mxu1 }
 0x195   :  { %1975 = vst.msk [vmem:[%s3522_s3 + $0x78] sm:$0xf] %vm1944_vm0, %v2268_v35  ;;  %v2269_v38 = vpack.c.bf16 %v1655_v36, %v1655_v36  ;;  %v1209_v39 = vadd.f32 %v3138_v15, %v1208_v37  ;;  %v1497_v40 = vpop.f32.mrb[64].mxu0  ;;  %v1210_v41 = vpop.f32.mrb[65].mxu1 }
 0x196   :  { %v1499_v42 = vpop.f32.mrb[65].mxu0  ;;  %v1211_v43 = vpop.f32.mrb[66].mxu1 }
 0x197   :  { %1976 = vst.msk [vmem:[%s3522_s3 + $0x7c] sm:$0xf] %vm1944_vm0, %v2269_v38  ;;  %v1498_v44 = vadd.f32 %v1497_v40, %v1209_v39  ;;  %v1212_v45 = vadd.f32 %v3138_v15, %v1211_v43  ;;  %v1500_v46 = vpop.f32.mrb[66].mxu0  ;;  %v1213_v47 = vpop.f32.mrb[67].mxu1 }
 0x198   :  { %v1502_v48 = vpop.f32.mrb[67].mxu0 }
 0x199   :  { %v1656_v49 = vmax.f32 %v1498_v44, 0.0  ;;  %v1501_v50 = vadd.f32 %v1500_v46, %v1212_v45 }
 0x19b   :  { %v2270_v51 = vpack.c.bf16 %v1656_v49, %v1656_v49  ;;  %v1657_v52 = vmax.f32 %v1501_v50, 0.0 }
 0x19c   :  { %v1216_v53 = vpop.f32.mrb[68].mxu1 }
 0x19d   :  { %1977 = vst.msk [vmem:[%s3522_s3 + $0x80] sm:$0xf] %vm1944_vm0, %v2270_v51  ;;  %v2271_v54 = vpack.c.bf16 %v1657_v52, %v1657_v52  ;;  %v1217_v55 = vadd.f32 %v3138_v15, %v1216_v53  ;;  %v1505_v56 = vpop.f32.mrb[68].mxu0  ;;  %v1218_v57 = vpop.f32.mrb[69].mxu1 }
 0x19e   :  { %v1507_v58 = vpop.f32.mrb[69].mxu0  ;;  %v1219_v59 = vpop.f32.mrb[70].mxu1 }
 0x19f   :  { %1978 = vst.msk [vmem:[%s3522_s3 + $0x84] sm:$0xf] %vm1944_vm0, %v2271_v54  ;;  %v1506_v60 = vadd.f32 %v1505_v56, %v1217_v55  ;;  %v1220_v61 = vadd.f32 %v3138_v15, %v1219_v59  ;;  %v1508_v62 = vpop.f32.mrb[70].mxu0  ;;  %v1221_v63 = vpop.f32.mrb[71].mxu1 }
 0x1a0   :  { %v1510_v0 = vpop.f32.mrb[71].mxu0 }
 0x1a1   :  { %v1658_v1 = vmax.f32 %v1506_v60, 0.0  ;;  %v1509_v2 = vadd.f32 %v1508_v62, %v1220_v61 }
 0x1a3   :  { %v2272_v3 = vpack.c.bf16 %v1658_v1, %v1658_v1  ;;  %v1659_v4 = vmax.f32 %v1509_v2, 0.0 }
 0x1a4   :  { %v1224_v5 = vpop.f32.mrb[72].mxu1 }
 0x1a5   :  { %1979 = vst.msk [vmem:[%s3522_s3 + $0x88] sm:$0xf] %vm1944_vm0, %v2272_v3  ;;  %v2273_v6 = vpack.c.bf16 %v1659_v4, %v1659_v4  ;;  %v1225_v7 = vadd.f32 %v3138_v15, %v1224_v5  ;;  %v1513_v8 = vpop.f32.mrb[72].mxu0  ;;  %v1226_v9 = vpop.f32.mrb[73].mxu1 }
 0x1a6   :  { %v1515_v10 = vpop.f32.mrb[73].mxu0  ;;  %v1227_v11 = vpop.f32.mrb[74].mxu1 }
 0x1a7   :  { %1980 = vst.msk [vmem:[%s3522_s3 + $0x8c] sm:$0xf] %vm1944_vm0, %v2273_v6  ;;  %v1514_v12 = vadd.f32 %v1513_v8, %v1225_v7  ;;  %v1228_v13 = vadd.f32 %v3138_v15, %v1227_v11  ;;  %v1516_v14 = vpop.f32.mrb[74].mxu0  ;;  %v1229_v16 = vpop.f32.mrb[75].mxu1 }
 0x1a8   :  { %v1518_v17 = vpop.f32.mrb[75].mxu0 }
 0x1a9   :  { %v1660_v18 = vmax.f32 %v1514_v12, 0.0  ;;  %v1517_v19 = vadd.f32 %v1516_v14, %v1228_v13 }
 0x1ab   :  { %v2274_v20 = vpack.c.bf16 %v1660_v18, %v1660_v18  ;;  %v1661_v21 = vmax.f32 %v1517_v19, 0.0 }
 0x1ac   :  { %v1232_v22 = vpop.f32.mrb[76].mxu1 }
 0x1ad   :  { %1981 = vst.msk [vmem:[%s3522_s3 + $0x90] sm:$0xf] %vm1944_vm0, %v2274_v20  ;;  %v2275_v23 = vpack.c.bf16 %v1661_v21, %v1661_v21  ;;  %v1233_v24 = vadd.f32 %v3138_v15, %v1232_v22  ;;  %v1521_v25 = vpop.f32.mrb[76].mxu0  ;;  %v1234_v26 = vpop.f32.mrb[77].mxu1 }
 0x1ae   :  { %v1523_v27 = vpop.f32.mrb[77].mxu0  ;;  %v1235_v28 = vpop.f32.mrb[78].mxu1 }
 0x1af   :  { %1982 = vst.msk [vmem:[%s3522_s3 + $0x94] sm:$0xf] %vm1944_vm0, %v2275_v23  ;;  %v1522_v29 = vadd.f32 %v1521_v25, %v1233_v24  ;;  %v1236_v30 = vadd.f32 %v3138_v15, %v1235_v28  ;;  %v1524_v31 = vpop.f32.mrb[78].mxu0  ;;  %v1237_v32 = vpop.f32.mrb[79].mxu1 }
 0x1b0   :  { %v1526_v33 = vpop.f32.mrb[79].mxu0 }
 0x1b1   :  { %v1662_v34 = vmax.f32 %v1522_v29, 0.0  ;;  %v1525_v35 = vadd.f32 %v1524_v31, %v1236_v30 }
 0x1b3   :  { %v2276_v36 = vpack.c.bf16 %v1662_v34, %v1662_v34  ;;  %v1663_v37 = vmax.f32 %v1525_v35, 0.0 }
 0x1b4   :  { %v1240_v38 = vpop.f32.mrb[80].mxu1 }
 0x1b5   :  { %1983 = vst.msk [vmem:[%s3522_s3 + $0x98] sm:$0xf] %vm1944_vm0, %v2276_v36  ;;  %v2277_v39 = vpack.c.bf16 %v1663_v37, %v1663_v37  ;;  %v1241_v40 = vadd.f32 %v3138_v15, %v1240_v38  ;;  %v1529_v41 = vpop.f32.mrb[80].mxu0  ;;  %v1242_v42 = vpop.f32.mrb[81].mxu1 }
 0x1b6   :  { %v1531_v43 = vpop.f32.mrb[81].mxu0  ;;  %v1243_v44 = vpop.f32.mrb[82].mxu1 }
 0x1b7   :  { %1984 = vst.msk [vmem:[%s3522_s3 + $0x9c] sm:$0xf] %vm1944_vm0, %v2277_v39  ;;  %v1530_v45 = vadd.f32 %v1529_v41, %v1241_v40  ;;  %v1244_v46 = vadd.f32 %v3138_v15, %v1243_v44  ;;  %v1532_v47 = vpop.f32.mrb[82].mxu0  ;;  %v1245_v48 = vpop.f32.mrb[83].mxu1 }
 0x1b8   :  { %v1534_v49 = vpop.f32.mrb[83].mxu0 }
 0x1b9   :  { %v1664_v50 = vmax.f32 %v1530_v45, 0.0  ;;  %v1533_v51 = vadd.f32 %v1532_v47, %v1244_v46 }
 0x1bb   :  { %v2278_v52 = vpack.c.bf16 %v1664_v50, %v1664_v50  ;;  %v1665_v53 = vmax.f32 %v1533_v51, 0.0 }
 0x1bc   :  { %v1248_v54 = vpop.f32.mrb[84].mxu1 }
 0x1bd   :  { %1985 = vst.msk [vmem:[%s3522_s3 + $0xa0] sm:$0xf] %vm1944_vm0, %v2278_v52  ;;  %v2279_v55 = vpack.c.bf16 %v1665_v53, %v1665_v53  ;;  %v1249_v56 = vadd.f32 %v3138_v15, %v1248_v54  ;;  %v1537_v57 = vpop.f32.mrb[84].mxu0  ;;  %v1250_v58 = vpop.f32.mrb[85].mxu1 }
 0x1be   :  { %v1539_v59 = vpop.f32.mrb[85].mxu0  ;;  %v1251_v60 = vpop.f32.mrb[86].mxu1 }
 0x1bf   :  { %1986 = vst.msk [vmem:[%s3522_s3 + $0xa4] sm:$0xf] %vm1944_vm0, %v2279_v55  ;;  %v1538_v61 = vadd.f32 %v1537_v57, %v1249_v56  ;;  %v1252_v62 = vadd.f32 %v3138_v15, %v1251_v60  ;;  %v1540_v63 = vpop.f32.mrb[86].mxu0  ;;  %v1253_v0 = vpop.f32.mrb[87].mxu1 }
 0x1c0   :  { %v1542_v1 = vpop.f32.mrb[87].mxu0 }
 0x1c1   :  { %v1666_v2 = vmax.f32 %v1538_v61, 0.0  ;;  %v1541_v3 = vadd.f32 %v1540_v63, %v1252_v62 }
 0x1c3   :  { %v2280_v4 = vpack.c.bf16 %v1666_v2, %v1666_v2  ;;  %v1667_v5 = vmax.f32 %v1541_v3, 0.0 }
 0x1c4   :  { %v1256_v6 = vpop.f32.mrb[88].mxu1 }
 0x1c5   :  { %1987 = vst.msk [vmem:[%s3522_s3 + $0xa8] sm:$0xf] %vm1944_vm0, %v2280_v4  ;;  %v2281_v7 = vpack.c.bf16 %v1667_v5, %v1667_v5  ;;  %v1257_v8 = vadd.f32 %v3138_v15, %v1256_v6  ;;  %v1545_v9 = vpop.f32.mrb[88].mxu0  ;;  %v1258_v10 = vpop.f32.mrb[89].mxu1 }
 0x1c6   :  { %v1547_v11 = vpop.f32.mrb[89].mxu0  ;;  %v1259_v12 = vpop.f32.mrb[90].mxu1 }
 0x1c7   :  { %1988 = vst.msk [vmem:[%s3522_s3 + $0xac] sm:$0xf] %vm1944_vm0, %v2281_v7  ;;  %v1546_v13 = vadd.f32 %v1545_v9, %v1257_v8  ;;  %v1260_v14 = vadd.f32 %v3138_v15, %v1259_v12  ;;  %v1548_v16 = vpop.f32.mrb[90].mxu0  ;;  %v1261_v17 = vpop.f32.mrb[91].mxu1 }
 0x1c8   :  { %v1550_v18 = vpop.f32.mrb[91].mxu0 }
 0x1c9   :  { %v1668_v19 = vmax.f32 %v1546_v13, 0.0  ;;  %v1549_v20 = vadd.f32 %v1548_v16, %v1260_v14  ;;  %v3458_v16 = vld [vmem:[%s3521_s2] ss:$0 sm:$0xff] }
 0x1cb   :  { %v2282_v21 = vpack.c.bf16 %v1668_v19, %v1668_v19  ;;  %v1669_v22 = vmax.f32 %v1549_v20, 0.0 }
 0x1cc   :  { %v1264_v23 = vpop.f32.mrb[92].mxu1 }
 0x1cd   :  { %1989 = vst.msk [vmem:[%s3522_s3 + $0xb0] sm:$0xf] %vm1944_vm0, %v2282_v21  ;;  %v2283_v24 = vpack.c.bf16 %v1669_v22, %v1669_v22  ;;  %v1265_v25 = vadd.f32 %v3138_v15, %v1264_v23  ;;  %v1553_v26 = vpop.f32.mrb[92].mxu0  ;;  %v1266_v27 = vpop.f32.mrb[93].mxu1 }
 0x1ce   :  { %v1555_v28 = vpop.f32.mrb[93].mxu0  ;;  %v1267_v29 = vpop.f32.mrb[94].mxu1 }
 0x1cf   :  { %1990 = vst.msk [vmem:[%s3522_s3 + $0xb4] sm:$0xf] %vm1944_vm0, %v2283_v24  ;;  %v1554_v30 = vadd.f32 %v1553_v26, %v1265_v25  ;;  %v1268_v31 = vadd.f32 %v3138_v15, %v1267_v29  ;;  %v1556_v32 = vpop.f32.mrb[94].mxu0  ;;  %v1269_v33 = vpop.f32.mrb[95].mxu1 }
 0x1d0   :  { %v1558_v34 = vpop.f32.mrb[95].mxu0 }
 0x1d1   :  { %v1670_v35 = vmax.f32 %v1554_v30, 0.0  ;;  %v1557_v36 = vadd.f32 %v1556_v32, %v1268_v31 }
 0x1d3   :  { %v2284_v37 = vpack.c.bf16 %v1670_v35, %v1670_v35  ;;  %v1671_v38 = vmax.f32 %v1557_v36, 0.0 }
 0x1d4   :  { %v1272_v39 = vpop.f32.mrb[96].mxu1 }
 0x1d5   :  { %1991 = vst.msk [vmem:[%s3522_s3 + $0xb8] sm:$0xf] %vm1944_vm0, %v2284_v37  ;;  %v2285_v40 = vpack.c.bf16 %v1671_v38, %v1671_v38  ;;  %v1273_v41 = vadd.f32 %v3138_v15, %v1272_v39  ;;  %v1561_v42 = vpop.f32.mrb[96].mxu0  ;;  %v1274_v43 = vpop.f32.mrb[97].mxu1 }
 0x1d6   :  { %v1563_v44 = vpop.f32.mrb[97].mxu0  ;;  %v1275_v45 = vpop.f32.mrb[98].mxu1 }
 0x1d7   :  { %1992 = vst.msk [vmem:[%s3522_s3 + $0xbc] sm:$0xf] %vm1944_vm0, %v2285_v40  ;;  %v1562_v46 = vadd.f32 %v1561_v42, %v1273_v41  ;;  %v1276_v47 = vadd.f32 %v3138_v15, %v1275_v45  ;;  %v1564_v48 = vpop.f32.mrb[98].mxu0  ;;  %v1277_v49 = vpop.f32.mrb[99].mxu1 }
 0x1d8   :  { %v1566_v50 = vpop.f32.mrb[99].mxu0 }
 0x1d9   :  { %v1672_v51 = vmax.f32 %v1562_v46, 0.0  ;;  %v1565_v52 = vadd.f32 %v1564_v48, %v1276_v47 }
 0x1db   :  { %v2286_v53 = vpack.c.bf16 %v1672_v51, %v1672_v51  ;;  %v1673_v54 = vmax.f32 %v1565_v52, 0.0 }
 0x1dc   :  { %v1280_v55 = vpop.f32.mrb[100].mxu1 }
 0x1dd   :  { %1993 = vst.msk [vmem:[%s3522_s3 + $0xc0] sm:$0xf] %vm1944_vm0, %v2286_v53  ;;  %v2287_v56 = vpack.c.bf16 %v1673_v54, %v1673_v54  ;;  %v1281_v57 = vadd.f32 %v3138_v15, %v1280_v55  ;;  %v1569_v58 = vpop.f32.mrb[100].mxu0  ;;  %v1282_v59 = vpop.f32.mrb[101].mxu1 }
 0x1de   :  { %v1571_v60 = vpop.f32.mrb[101].mxu0  ;;  %v1283_v61 = vpop.f32.mrb[102].mxu1 }
 0x1df   :  { %1994 = vst.msk [vmem:[%s3522_s3 + $0xc4] sm:$0xf] %vm1944_vm0, %v2287_v56  ;;  %v1570_v62 = vadd.f32 %v1569_v58, %v1281_v57  ;;  %v1284_v63 = vadd.f32 %v3138_v15, %v1283_v61  ;;  %v1572_v0 = vpop.f32.mrb[102].mxu0  ;;  %v1285_v1 = vpop.f32.mrb[103].mxu1 }
 0x1e0   :  { %v1574_v2 = vpop.f32.mrb[103].mxu0 }
 0x1e1   :  { %v1674_v3 = vmax.f32 %v1570_v62, 0.0  ;;  %v1573_v4 = vadd.f32 %v1572_v0, %v1284_v63 }
 0x1e3   :  { %v2288_v5 = vpack.c.bf16 %v1674_v3, %v1674_v3  ;;  %v1675_v6 = vmax.f32 %v1573_v4, 0.0 }
 0x1e4   :  { %v1288_v7 = vpop.f32.mrb[104].mxu1 }
 0x1e5   :  { %1995 = vst.msk [vmem:[%s3522_s3 + $0xc8] sm:$0xf] %vm1944_vm0, %v2288_v5  ;;  %v2289_v8 = vpack.c.bf16 %v1675_v6, %v1675_v6  ;;  %v1289_v9 = vadd.f32 %v3138_v15, %v1288_v7  ;;  %v1577_v10 = vpop.f32.mrb[104].mxu0  ;;  %v1290_v11 = vpop.f32.mrb[105].mxu1 }
 0x1e6   :  { %v1579_v12 = vpop.f32.mrb[105].mxu0  ;;  %v1291_v13 = vpop.f32.mrb[106].mxu1 }
 0x1e7   :  { %1996 = vst.msk [vmem:[%s3522_s3 + $0xcc] sm:$0xf] %vm1944_vm0, %v2289_v8  ;;  %v1578_v14 = vadd.f32 %v1577_v10, %v1289_v9  ;;  %v1292_v17 = vadd.f32 %v3458_v16, %v1291_v13  ;;  %v1580_v18 = vpop.f32.mrb[106].mxu0  ;;  %v1293_v19 = vpop.f32.mrb[107].mxu1 }
 0x1e8   :  { %v1582_v15 = vpop.f32.mrb[107].mxu0 }
 0x1e9   :  { %v1676_v20 = vmax.f32 %v1578_v14, 0.0  ;;  %v1581_v21 = vadd.f32 %v1580_v18, %v1292_v17 }
 0x1eb   :  { %v2290_v22 = vpack.c.bf16 %v1676_v20, %v1676_v20  ;;  %v1677_v23 = vmax.f32 %v1581_v21, 0.0 }
 0x1ec   :  { %v1296_v24 = vpop.f32.mrb[108].mxu1 }
 0x1ed   :  { %1997 = vst.msk [vmem:[%s3522_s3 + $0xd0] sm:$0xf] %vm1944_vm0, %v2290_v22  ;;  %v2291_v25 = vpack.c.bf16 %v1677_v23, %v1677_v23  ;;  %v1297_v26 = vadd.f32 %v3458_v16, %v1296_v24  ;;  %v1585_v27 = vpop.f32.mrb[108].mxu0  ;;  %v1298_v28 = vpop.f32.mrb[109].mxu1 }
 0x1ee   :  { %v1587_v29 = vpop.f32.mrb[109].mxu0  ;;  %v1299_v30 = vpop.f32.mrb[110].mxu1 }
 0x1ef   :  { %1998 = vst.msk [vmem:[%s3522_s3 + $0xd4] sm:$0xf] %vm1944_vm0, %v2291_v25  ;;  %v1586_v31 = vadd.f32 %v1585_v27, %v1297_v26  ;;  %v1300_v32 = vadd.f32 %v3458_v16, %v1299_v30  ;;  %v1588_v33 = vpop.f32.mrb[110].mxu0  ;;  %v1301_v34 = vpop.f32.mrb[111].mxu1 }
 0x1f0   :  { %v1590_v35 = vpop.f32.mrb[111].mxu0 }
 0x1f1   :  { %v1678_v36 = vmax.f32 %v1586_v31, 0.0  ;;  %v1589_v37 = vadd.f32 %v1588_v33, %v1300_v32 }
 0x1f3   :  { %v2292_v38 = vpack.c.bf16 %v1678_v36, %v1678_v36  ;;  %v1679_v39 = vmax.f32 %v1589_v37, 0.0 }
 0x1f4   :  { %v1304_v40 = vpop.f32.mrb[112].mxu1 }
 0x1f5   :  { %1999 = vst.msk [vmem:[%s3522_s3 + $0xd8] sm:$0xf] %vm1944_vm0, %v2292_v38  ;;  %v2293_v41 = vpack.c.bf16 %v1679_v39, %v1679_v39  ;;  %v1305_v42 = vadd.f32 %v3458_v16, %v1304_v40  ;;  %v1593_v43 = vpop.f32.mrb[112].mxu0  ;;  %v1306_v44 = vpop.f32.mrb[113].mxu1 }
 0x1f6   :  { %v1595_v45 = vpop.f32.mrb[113].mxu0  ;;  %v1307_v46 = vpop.f32.mrb[114].mxu1 }
 0x1f7   :  { %2000 = vst.msk [vmem:[%s3522_s3 + $0xdc] sm:$0xf] %vm1944_vm0, %v2293_v41  ;;  %v1594_v47 = vadd.f32 %v1593_v43, %v1305_v42  ;;  %v1308_v48 = vadd.f32 %v3458_v16, %v1307_v46  ;;  %v1596_v49 = vpop.f32.mrb[114].mxu0  ;;  %v1309_v50 = vpop.f32.mrb[115].mxu1 }
 0x1f8   :  { %v1598_v51 = vpop.f32.mrb[115].mxu0 }
 0x1f9   :  { %v1680_v52 = vmax.f32 %v1594_v47, 0.0  ;;  %v1597_v53 = vadd.f32 %v1596_v49, %v1308_v48 }
 0x1fb   :  { %v2294_v54 = vpack.c.bf16 %v1680_v52, %v1680_v52  ;;  %v1681_v55 = vmax.f32 %v1597_v53, 0.0 }
 0x1fc   :  { %v1312_v56 = vpop.f32.mrb[116].mxu1 }
 0x1fd   :  { %2001 = vst.msk [vmem:[%s3522_s3 + $0xe0] sm:$0xf] %vm1944_vm0, %v2294_v54  ;;  %v2295_v57 = vpack.c.bf16 %v1681_v55, %v1681_v55  ;;  %v1313_v58 = vadd.f32 %v3458_v16, %v1312_v56  ;;  %v1601_v59 = vpop.f32.mrb[116].mxu0  ;;  %v1314_v60 = vpop.f32.mrb[117].mxu1 }
 0x1fe   :  { %v1603_v61 = vpop.f32.mrb[117].mxu0  ;;  %v1315_v62 = vpop.f32.mrb[118].mxu1 }
 0x1ff   :  { %2002 = vst.msk [vmem:[%s3522_s3 + $0xe4] sm:$0xf] %vm1944_vm0, %v2295_v57  ;;  %v1602_v63 = vadd.f32 %v1601_v59, %v1313_v58  ;;  %v1316_v0 = vadd.f32 %v3458_v16, %v1315_v62  ;;  %v1604_v1 = vpop.f32.mrb[118].mxu0  ;;  %v1317_v2 = vpop.f32.mrb[119].mxu1 }
 0x200   :  { %v1606_v3 = vpop.f32.mrb[119].mxu0 }
 0x201   :  { %v1682_v4 = vmax.f32 %v1602_v63, 0.0  ;;  %v1605_v5 = vadd.f32 %v1604_v1, %v1316_v0 }
 0x203   :  { %v2296_v6 = vpack.c.bf16 %v1682_v4, %v1682_v4  ;;  %v1683_v7 = vmax.f32 %v1605_v5, 0.0 }
 0x204   :  { %v1320_v8 = vpop.f32.mrb[120].mxu1 }
 0x205   :  { %2003 = vst.msk [vmem:[%s3522_s3 + $0xe8] sm:$0xf] %vm1944_vm0, %v2296_v6  ;;  %v2297_v9 = vpack.c.bf16 %v1683_v7, %v1683_v7  ;;  %v1321_v10 = vadd.f32 %v3458_v16, %v1320_v8  ;;  %v1609_v11 = vpop.f32.mrb[120].mxu0  ;;  %v1322_v12 = vpop.f32.mrb[121].mxu1 }
 0x206   :  { %v1611_v13 = vpop.f32.mrb[121].mxu0  ;;  %v1323_v14 = vpop.f32.mrb[122].mxu1 }
 0x207   :  { %2004 = vst.msk [vmem:[%s3522_s3 + $0xec] sm:$0xf] %vm1944_vm0, %v2297_v9  ;;  %v1610_v17 = vadd.f32 %v1609_v11, %v1321_v10  ;;  %v1324_v18 = vadd.f32 %v3458_v16, %v1323_v14  ;;  %v1612_v19 = vpop.f32.mrb[122].mxu0  ;;  %v1325_v15 = vpop.f32.mrb[123].mxu1 }
 0x208   :  { %v1614_v20 = vpop.f32.mrb[123].mxu0 }
 0x209   :  { %v1684_v21 = vmax.f32 %v1610_v17, 0.0  ;;  %v1613_v22 = vadd.f32 %v1612_v19, %v1324_v18 }
 0x20b   :  { %v2298_v23 = vpack.c.bf16 %v1684_v21, %v1684_v21  ;;  %v1685_v24 = vmax.f32 %v1613_v22, 0.0 }
 0x20c   :  { %v1328_v25 = vpop.f32.mrb[124].mxu1 }
 0x20d   :  { %2005 = vst.msk [vmem:[%s3522_s3 + $0xf0] sm:$0xf] %vm1944_vm0, %v2298_v23  ;;  %v2299_v26 = vpack.c.bf16 %v1685_v24, %v1685_v24  ;;  %v1329_v27 = vadd.f32 %v3458_v16, %v1328_v25  ;;  %v1617_v28 = vpop.f32.mrb[124].mxu0  ;;  %v1330_v29 = vpop.f32.mrb[125].mxu1 }
 0x20e   :  { %v1619_v30 = vpop.f32.mrb[125].mxu0  ;;  %v1331_v31 = vpop.f32.mrb[126].mxu1 }
 0x20f   :  { %2006 = vst.msk [vmem:[%s3522_s3 + $0xf4] sm:$0xf] %vm1944_vm0, %v2299_v26  ;;  %v1618_v32 = vadd.f32 %v1617_v28, %v1329_v27  ;;  %v1332_v33 = vadd.f32 %v3458_v16, %v1331_v31  ;;  %v1620_v34 = vpop.f32.mrb[126].mxu0  ;;  %v1333_v35 = vpop.f32.mrb[127].mxu1 }
 0x210   :  { %v1622_v36 = vpop.f32.mrb[127].mxu0 }
 0x211   :  { %v1686_v37 = vmax.f32 %v1618_v32, 0.0  ;;  %v1621_v38 = vadd.f32 %v1620_v34, %v1332_v33 }
 0x213   :  { %v2300_v39 = vpack.c.bf16 %v1686_v37, %v1686_v37  ;;  %v1687_v40 = vmax.f32 %v1621_v38, 0.0 }
 0x215   :  { %2007 = vst.msk [vmem:[%s3522_s3 + $0xf8] sm:$0xf] %vm1944_vm0, %v2300_v39  ;;  %v2301_v41 = vpack.c.bf16 %v1687_v40, %v1687_v40 }
 0x217   :  { %2008 = vst.msk [vmem:[%s3522_s3 + $0xfc] sm:$0xf] %vm1944_vm0, %v2301_v41 }

// kernel: beta_vae_forward.11
= control target key start
LH: loop header
LB: loop body
LE: loop exit
PB: predicated region body
PF: predicated region fallthrough
CT: control target
= control target key end

     0   :  { %vm744_vm0 = vcmask 519168   ;;  %s1367_s1 = inlined_call_operand.vmem [shape: bf16[512,64], index: 1, kind: input, shape index: {}]   ;;  %s1368_s0 = inlined_call_operand.vmem [shape: bf16[128,512], index: 0, kind: input, shape index: {}]   ;;  %s1369_s2 = inlined_call_operand.vmem [shape: f32[1,64], index: 2, kind: input, shape index: {}]   ;;  %s1370_s3 = inlined_call_operand.vmem [shape: bf16[128,64], index: 3, kind: output, shape index: {}]  }
   0x1   :  { %v990_v0 = vld [vmem:[%s1367_s1 + $0x40] sm:$0xff]   ;;  %v994_v4 = vld [vmem:[%s1367_s1 + $0x48] sm:$0xff]   ;;  %v998_v8 = vld [vmem:[%s1367_s1 + $0x50] sm:$0xff]  }
   0x2   :  { %v991_v1 = vld [vmem:[%s1367_s1 + $0xc0] sm:$0xff]   ;;  %862 = vmatprep.subr.bf16.mxu0 %v990_v0  ;;  %v995_v5 = vld [vmem:[%s1367_s1 + $0xc8] sm:$0xff]   ;;  %v999_v9 = vld [vmem:[%s1367_s1 + $0xd0] sm:$0xff]  }
   0x3   :  { %v992_v2 = vld [vmem:[%s1367_s1] sm:$0xff]   ;;  %926 = vmatprep.subr.bf16.mxu1 %v991_v1  ;;  %v996_v6 = vld [vmem:[%s1367_s1 + $0x8] sm:$0xff]   ;;  %v1000_v10 = vld [vmem:[%s1367_s1 + $0x10] sm:$0xff]  }
   0x4   :  { %v993_v3 = vld [vmem:[%s1367_s1 + $0x80] sm:$0xff]   ;;  %863 = vmatpush3.bf16.msra.mxu0 %v992_v2  ;;  %v997_v7 = vld [vmem:[%s1367_s1 + $0x88] sm:$0xff]   ;;  %v1001_v11 = vld [vmem:[%s1367_s1 + $0x90] sm:$0xff]  }
   0x5   :  { %927 = vmatpush3.bf16.msra.mxu1 %v993_v3  ;;  %864 = vmatprep.subr.bf16.mxu0 %v994_v4  ;;  %v1002_v12 = vld [vmem:[%s1367_s1 + $0x58] sm:$0xff]   ;;  %v1006_v16 = vld [vmem:[%s1367_s1 + $0x60] sm:$0xff]   ;;  %v1010_v20 = vld [vmem:[%s1367_s1 + $0x68] sm:$0xff]  }
   0x6   :  { %928 = vmatprep.subr.bf16.mxu1 %v995_v5  ;;  %v1003_v13 = vld [vmem:[%s1367_s1 + $0xd8] sm:$0xff]   ;;  %v1007_v17 = vld [vmem:[%s1367_s1 + $0xe0] sm:$0xff]   ;;  %v1011_v21 = vld [vmem:[%s1367_s1 + $0xe8] sm:$0xff]  }
   0x7   :  { %v1004_v14 = vld [vmem:[%s1367_s1 + $0x18] sm:$0xff]   ;;  %v1008_v18 = vld [vmem:[%s1367_s1 + $0x20] sm:$0xff]   ;;  %v1012_v22 = vld [vmem:[%s1367_s1 + $0x28] sm:$0xff]  }
   0x8   :  { %865 = vmatpush3.bf16.msra.mxu0 %v996_v6  ;;  %v1005_v15 = vld [vmem:[%s1367_s1 + $0x98] sm:$0xff]   ;;  %v1009_v19 = vld [vmem:[%s1367_s1 + $0xa0] sm:$0xff]   ;;  %v1013_v23 = vld [vmem:[%s1367_s1 + $0xa8] sm:$0xff]  }
   0x9   :  { %929 = vmatpush3.bf16.msra.mxu1 %v997_v7  ;;  %866 = vmatprep.subr.bf16.mxu0 %v998_v8  ;;  %v1014_v24 = vld [vmem:[%s1367_s1 + $0x70] sm:$0xff]   ;;  %v1018_v28 = vld [vmem:[%s1367_s1 + $0x78] sm:$0xff]   ;;  %v1285_v2 = vld [vmem:[%s1369_s2] ss:$0 sm:$0xff] }
   0xa   :  { %930 = vmatprep.subr.bf16.mxu1 %v999_v9  ;;  %v1015_v25 = vld [vmem:[%s1367_s1 + $0xf0] sm:$0xff]   ;;  %v1019_v29 = vld [vmem:[%s1367_s1 + $0xf8] sm:$0xff]  }
   0xb   :  { %v1016_v26 = vld [vmem:[%s1367_s1 + $0x30] sm:$0xff]   ;;  %v1020_v30 = vld [vmem:[%s1367_s1 + $0x38] sm:$0xff]  }
   0xc   :  { %867 = vmatpush3.bf16.msra.mxu0 %v1000_v10  ;;  %v1017_v27 = vld [vmem:[%s1367_s1 + $0xb0] sm:$0xff]   ;;  %v1021_v31 = vld [vmem:[%s1367_s1 + $0xb8] sm:$0xff]  }
   0xd   :  { %931 = vmatpush3.bf16.msra.mxu1 %v1001_v11  ;;  %868 = vmatprep.subr.bf16.mxu0 %v1002_v12  ;;  %v1022_v32 = vld [vmem:[%s1368_s0] ss:$16 sps:$4 sm:$0xff]   ;;  %v1024_v33 = vld [vmem:[%s1368_s0 + $0x4] ss:$16 sps:$4 sm:$0xff]   ;;  %v1025_v34 = vld [vmem:[%s1368_s0 + $0x8] ss:$16 sps:$4 sm:$0xff]  }
   0xe   :  { %932 = vmatprep.subr.bf16.mxu1 %v1003_v13  ;;  %v1027_v35 = vld [vmem:[%s1368_s0 + $0xc] ss:$16 sps:$4 sm:$0xff]   ;;  %502 = vmatprep.mubr.bf16.mxu0 %v1024_v33  ;;  %v1028_v36 = vld [vmem:[%s1368_s0 + $0x24] ss:$16 sps:$4 sm:$0xff]   ;;  %v1032_v38 = vld [vmem:[%s1368_s0 + $0x20] ss:$16 sps:$4 sm:$0xff]  }
   0xf   :  { %599 = vmatprep.mubr.bf16.mxu1 %v1027_v35  ;;  %v1030_v37 = vld [vmem:[%s1368_s0 + $0x2c] ss:$16 sps:$4 sm:$0xff]   ;;  %v1033_v39 = vld [vmem:[%s1368_s0 + $0x28] ss:$16 sps:$4 sm:$0xff]   ;;  %v1034_v40 = vld [vmem:[%s1368_s0 + $0x44] ss:$16 sps:$4 sm:$0xff]  }
  0x10   :  { %869 = vmatpush3.bf16.msra.mxu0 %v1004_v14  ;;  %v1036_v41 = vld [vmem:[%s1368_s0 + $0x4c] ss:$16 sps:$4 sm:$0xff]   ;;  %v1038_v42 = vld [vmem:[%s1368_s0 + $0x40] ss:$16 sps:$4 sm:$0xff]   ;;  %v1039_v43 = vld [vmem:[%s1368_s0 + $0x48] ss:$16 sps:$4 sm:$0xff]  }
  0x11   :  { %933 = vmatpush3.bf16.msra.mxu1 %v1005_v15  ;;  %870 = vmatprep.subr.bf16.mxu0 %v1006_v16  ;;  %v1040_v44 = vld [vmem:[%s1368_s0 + $0x64] ss:$16 sps:$4 sm:$0xff]   ;;  %v1042_v45 = vld [vmem:[%s1368_s0 + $0x6c] ss:$16 sps:$4 sm:$0xff]   ;;  %v1044_v46 = vld [vmem:[%s1368_s0 + $0x60] ss:$16 sps:$4 sm:$0xff]  }
  0x12   :  { %934 = vmatprep.subr.bf16.mxu1 %v1007_v17  ;;  %v1045_v47 = vld [vmem:[%s1368_s0 + $0x68] ss:$16 sps:$4 sm:$0xff]   ;;  %v1046_v48 = vld [vmem:[%s1368_s0 + $0x84] ss:$16 sps:$4 sm:$0xff]   ;;  %v1048_v49 = vld [vmem:[%s1368_s0 + $0x8c] ss:$16 sps:$4 sm:$0xff]  }
  0x13   :  { %v1050_v50 = vld [vmem:[%s1368_s0 + $0x80] ss:$16 sps:$4 sm:$0xff]   ;;  %v1051_v51 = vld [vmem:[%s1368_s0 + $0x88] ss:$16 sps:$4 sm:$0xff]   ;;  %v1052_v52 = vld [vmem:[%s1368_s0 + $0xa4] ss:$16 sps:$4 sm:$0xff]  }
  0x14   :  { %871 = vmatpush3.bf16.msra.mxu0 %v1008_v18  ;;  %v1054_v53 = vld [vmem:[%s1368_s0 + $0xac] ss:$16 sps:$4 sm:$0xff]   ;;  %v1056_v54 = vld [vmem:[%s1368_s0 + $0xa0] ss:$16 sps:$4 sm:$0xff]   ;;  %v1057_v55 = vld [vmem:[%s1368_s0 + $0xa8] ss:$16 sps:$4 sm:$0xff]  }
  0x15   :  { %935 = vmatpush3.bf16.msra.mxu1 %v1009_v19  ;;  %872 = vmatprep.subr.bf16.mxu0 %v1010_v20  ;;  %v1058_v56 = vld [vmem:[%s1368_s0 + $0xc4] ss:$16 sps:$4 sm:$0xff]   ;;  %v1060_v57 = vld [vmem:[%s1368_s0 + $0xcc] ss:$16 sps:$4 sm:$0xff]   ;;  %v1062_v58 = vld [vmem:[%s1368_s0 + $0xc0] ss:$16 sps:$4 sm:$0xff]  }
  0x16   :  { %936 = vmatprep.subr.bf16.mxu1 %v1011_v21  ;;  %v1063_v59 = vld [vmem:[%s1368_s0 + $0xc8] ss:$16 sps:$4 sm:$0xff]   ;;  %v1064_v60 = vld [vmem:[%s1368_s0 + $0xe4] ss:$16 sps:$4 sm:$0xff]   ;;  %v1066_v61 = vld [vmem:[%s1368_s0 + $0xec] ss:$16 sps:$4 sm:$0xff]  }
  0x17   :  { %v1068_v62 = vld [vmem:[%s1368_s0 + $0xe0] ss:$16 sps:$4 sm:$0xff]   ;;  %v1069_v63 = vld [vmem:[%s1368_s0 + $0xe8] ss:$16 sps:$4 sm:$0xff]  }
  0x18   :  { %873 = vmatpush3.bf16.msra.mxu0 %v1012_v22 }
  0x19   :  { %937 = vmatpush3.bf16.msra.mxu1 %v1013_v23  ;;  %874 = vmatprep.subr.bf16.mxu0 %v1014_v24 }
  0x1a   :  { %938 = vmatprep.subr.bf16.mxu1 %v1015_v25 }
  0x1c   :  { %875 = vmatpush3.bf16.msra.mxu0 %v1016_v26 }
  0x1d   :  { %939 = vmatpush3.bf16.msra.mxu1 %v1017_v27  ;;  %876 = vmatprep.subr.bf16.mxu0 %v1018_v28 }
  0x1e   :  { %940 = vmatprep.subr.bf16.mxu1 %v1019_v29 }
  0x20   :  { %877 = vmatpush3.bf16.msra.mxu0 %v1020_v30 }
  0x21   :  { %941 = vmatpush3.bf16.msra.mxu1 %v1021_v31 }
  0x23   :  { %503 = vmatmul.mubr.bf16.vlgmr.msra.gmra.mrb[0].mxu0 %v1022_v32 }
  0x24   :  { %600 = vmatmul.mubr.bf16.vlgmr.msra.gmra.mrb[0].mxu1 %v1025_v34  ;;  %510 = vmatprep.mubr.bf16.mxu0 %v1028_v36 }
  0x25   :  { %607 = vmatprep.mubr.bf16.mxu1 %v1030_v37 }
  0x2b   :  { %511 = vmatmul.mubr.bf16.gmra.mrb[4].mxu0 %v1032_v38 }
  0x2c   :  { %608 = vmatmul.mubr.bf16.gmra.mrb[4].mxu1 %v1033_v39  ;;  %518 = vmatprep.mubr.bf16.mxu0 %v1034_v40 }
  0x2d   :  { %615 = vmatprep.mubr.bf16.mxu1 %v1036_v41 }
  0x33   :  { %519 = vmatmul.mubr.bf16.gmra.mrb[8].mxu0 %v1038_v42 }
  0x34   :  { %616 = vmatmul.mubr.bf16.gmra.mrb[8].mxu1 %v1039_v43  ;;  %526 = vmatprep.mubr.bf16.mxu0 %v1040_v44 }
  0x35   :  { %623 = vmatprep.mubr.bf16.mxu1 %v1042_v45 }
  0x3b   :  { %527 = vmatmul.mubr.bf16.gmra.mrb[12].mxu0 %v1044_v46 }
  0x3c   :  { %624 = vmatmul.mubr.bf16.gmra.mrb[12].mxu1 %v1045_v47  ;;  %534 = vmatprep.mubr.bf16.mxu0 %v1046_v48 }
  0x3d   :  { %631 = vmatprep.mubr.bf16.mxu1 %v1048_v49 }
  0x43   :  { %535 = vmatmul.mubr.bf16.gmra.mrb[16].mxu0 %v1050_v50 }
  0x44   :  { %632 = vmatmul.mubr.bf16.gmra.mrb[16].mxu1 %v1051_v51  ;;  %542 = vmatprep.mubr.bf16.mxu0 %v1052_v52 }
  0x45   :  { %639 = vmatprep.mubr.bf16.mxu1 %v1054_v53 }
  0x4b   :  { %543 = vmatmul.mubr.bf16.gmra.mrb[20].mxu0 %v1056_v54 }
  0x4c   :  { %640 = vmatmul.mubr.bf16.gmra.mrb[20].mxu1 %v1057_v55  ;;  %550 = vmatprep.mubr.bf16.mxu0 %v1058_v56 }
  0x4d   :  { %647 = vmatprep.mubr.bf16.mxu1 %v1060_v57 }
  0x53   :  { %551 = vmatmul.mubr.bf16.gmra.mrb[24].mxu0 %v1062_v58 }
  0x54   :  { %648 = vmatmul.mubr.bf16.gmra.mrb[24].mxu1 %v1063_v59  ;;  %558 = vmatprep.mubr.bf16.mxu0 %v1064_v60 }
  0x55   :  { %655 = vmatprep.mubr.bf16.mxu1 %v1066_v61 }
  0x5b   :  { %559 = vmatmul.mubr.bf16.gmra.mrb[28].mxu0 %v1068_v62 }
  0x5c   :  { %656 = vmatmul.mubr.bf16.gmra.mrb[28].mxu1 %v1069_v63 }
  0xf6   :  { %v878_v0 = vpop.f32.mrb[0].mxu0 }
  0xf7   :  { %v942_v1 = vpop.f32.mrb[0].mxu1  ;;  %v879_v3 = vpop.f32.mrb[1].mxu0 }
  0xf8   :  { %v880_v4 = vadd.f32 %v879_v3, %v878_v0  ;;  %v943_v5 = vpop.f32.mrb[1].mxu1  ;;  %v881_v6 = vpop.f32.mrb[2].mxu0 }
  0xf9   :  { %v944_v7 = vadd.f32 %v943_v5, %v942_v1  ;;  %v945_v8 = vpop.f32.mrb[2].mxu1  ;;  %v882_v9 = vpop.f32.mrb[3].mxu0 }
  0xfa   :  { %v505_v10 = vadd.f32 %v880_v4, %v1285_v2  ;;  %v883_v11 = vadd.f32 %v882_v9, %v881_v6  ;;  %v946_v12 = vpop.f32.mrb[3].mxu1 }
  0xfb   :  { %v947_v13 = vadd.f32 %v946_v12, %v945_v8 }
  0xfc   :  { %v602_v14 = vadd.f32 %v944_v7, %v505_v10  ;;  %v508_v15 = vadd.f32 %v883_v11, %v1285_v2 }
  0xfe   :  { %v664_v16 = vmax.f32 %v602_v14, 0.0  ;;  %v605_v17 = vadd.f32 %v947_v13, %v508_v15  ;;  %v884_v18 = vpop.f32.mrb[4].mxu0 }
  0xff   :  { %v948_v19 = vpop.f32.mrb[4].mxu1  ;;  %v885_v20 = vpop.f32.mrb[5].mxu0 }
 0x100   :  { %v846_v21 = vpack.c.bf16 %v664_v16, %v664_v16  ;;  %v665_v22 = vmax.f32 %v605_v17, 0.0  ;;  %v886_v23 = vadd.f32 %v885_v20, %v884_v18  ;;  %v949_v24 = vpop.f32.mrb[5].mxu1  ;;  %v887_v25 = vpop.f32.mrb[6].mxu0 }
 0x101   :  { %v950_v26 = vadd.f32 %v949_v24, %v948_v19  ;;  %v951_v27 = vpop.f32.mrb[6].mxu1  ;;  %v888_v28 = vpop.f32.mrb[7].mxu0 }
 0x102   :  { %745 = vst.msk [vmem:[%s1370_s3] sm:$0xf] %vm744_vm0, %v846_v21  ;;  %v847_v29 = vpack.c.bf16 %v665_v22, %v665_v22  ;;  %v513_v30 = vadd.f32 %v886_v23, %v1285_v2  ;;  %v889_v31 = vadd.f32 %v888_v28, %v887_v25  ;;  %v952_v32 = vpop.f32.mrb[7].mxu1 }
 0x103   :  { %v953_v33 = vadd.f32 %v952_v32, %v951_v27 }
 0x104   :  { %746 = vst.msk [vmem:[%s1370_s3 + $0x4] sm:$0xf] %vm744_vm0, %v847_v29  ;;  %v610_v34 = vadd.f32 %v950_v26, %v513_v30  ;;  %v516_v35 = vadd.f32 %v889_v31, %v1285_v2 }
 0x106   :  { %v666_v36 = vmax.f32 %v610_v34, 0.0  ;;  %v613_v37 = vadd.f32 %v953_v33, %v516_v35  ;;  %v890_v38 = vpop.f32.mrb[8].mxu0 }
 0x107   :  { %v954_v39 = vpop.f32.mrb[8].mxu1  ;;  %v891_v40 = vpop.f32.mrb[9].mxu0 }
 0x108   :  { %v848_v41 = vpack.c.bf16 %v666_v36, %v666_v36  ;;  %v667_v42 = vmax.f32 %v613_v37, 0.0  ;;  %v892_v43 = vadd.f32 %v891_v40, %v890_v38  ;;  %v955_v44 = vpop.f32.mrb[9].mxu1  ;;  %v893_v45 = vpop.f32.mrb[10].mxu0 }
 0x109   :  { %v956_v46 = vadd.f32 %v955_v44, %v954_v39  ;;  %v957_v47 = vpop.f32.mrb[10].mxu1  ;;  %v894_v48 = vpop.f32.mrb[11].mxu0 }
 0x10a   :  { %747 = vst.msk [vmem:[%s1370_s3 + $0x8] sm:$0xf] %vm744_vm0, %v848_v41  ;;  %v849_v49 = vpack.c.bf16 %v667_v42, %v667_v42  ;;  %v521_v50 = vadd.f32 %v892_v43, %v1285_v2  ;;  %v895_v51 = vadd.f32 %v894_v48, %v893_v45  ;;  %v958_v52 = vpop.f32.mrb[11].mxu1 }
 0x10b   :  { %v959_v53 = vadd.f32 %v958_v52, %v957_v47 }
 0x10c   :  { %748 = vst.msk [vmem:[%s1370_s3 + $0xc] sm:$0xf] %vm744_vm0, %v849_v49  ;;  %v618_v54 = vadd.f32 %v956_v46, %v521_v50  ;;  %v524_v55 = vadd.f32 %v895_v51, %v1285_v2 }
 0x10e   :  { %v668_v56 = vmax.f32 %v618_v54, 0.0  ;;  %v621_v57 = vadd.f32 %v959_v53, %v524_v55  ;;  %v896_v58 = vpop.f32.mrb[12].mxu0 }
 0x10f   :  { %v960_v59 = vpop.f32.mrb[12].mxu1  ;;  %v897_v60 = vpop.f32.mrb[13].mxu0 }
 0x110   :  { %v850_v61 = vpack.c.bf16 %v668_v56, %v668_v56  ;;  %v669_v62 = vmax.f32 %v621_v57, 0.0  ;;  %v898_v63 = vadd.f32 %v897_v60, %v896_v58  ;;  %v961_v0 = vpop.f32.mrb[13].mxu1  ;;  %v899_v1 = vpop.f32.mrb[14].mxu0 }
 0x111   :  { %v962_v3 = vadd.f32 %v961_v0, %v960_v59  ;;  %v963_v4 = vpop.f32.mrb[14].mxu1  ;;  %v900_v5 = vpop.f32.mrb[15].mxu0 }
 0x112   :  { %749 = vst.msk [vmem:[%s1370_s3 + $0x10] sm:$0xf] %vm744_vm0, %v850_v61  ;;  %v851_v6 = vpack.c.bf16 %v669_v62, %v669_v62  ;;  %v529_v7 = vadd.f32 %v898_v63, %v1285_v2  ;;  %v901_v8 = vadd.f32 %v900_v5, %v899_v1  ;;  %v964_v9 = vpop.f32.mrb[15].mxu1 }
 0x113   :  { %v965_v10 = vadd.f32 %v964_v9, %v963_v4 }
 0x114   :  { %750 = vst.msk [vmem:[%s1370_s3 + $0x14] sm:$0xf] %vm744_vm0, %v851_v6  ;;  %v626_v11 = vadd.f32 %v962_v3, %v529_v7  ;;  %v532_v12 = vadd.f32 %v901_v8, %v1285_v2 }
 0x116   :  { %v670_v13 = vmax.f32 %v626_v11, 0.0  ;;  %v629_v14 = vadd.f32 %v965_v10, %v532_v12  ;;  %v902_v15 = vpop.f32.mrb[16].mxu0 }
 0x117   :  { %v966_v16 = vpop.f32.mrb[16].mxu1  ;;  %v903_v17 = vpop.f32.mrb[17].mxu0 }
 0x118   :  { %v852_v18 = vpack.c.bf16 %v670_v13, %v670_v13  ;;  %v671_v19 = vmax.f32 %v629_v14, 0.0  ;;  %v904_v20 = vadd.f32 %v903_v17, %v902_v15  ;;  %v967_v21 = vpop.f32.mrb[17].mxu1  ;;  %v905_v22 = vpop.f32.mrb[18].mxu0 }
 0x119   :  { %v968_v23 = vadd.f32 %v967_v21, %v966_v16  ;;  %v969_v24 = vpop.f32.mrb[18].mxu1  ;;  %v906_v25 = vpop.f32.mrb[19].mxu0 }
 0x11a   :  { %751 = vst.msk [vmem:[%s1370_s3 + $0x18] sm:$0xf] %vm744_vm0, %v852_v18  ;;  %v853_v26 = vpack.c.bf16 %v671_v19, %v671_v19  ;;  %v537_v27 = vadd.f32 %v904_v20, %v1285_v2  ;;  %v907_v28 = vadd.f32 %v906_v25, %v905_v22  ;;  %v970_v29 = vpop.f32.mrb[19].mxu1 }
 0x11b   :  { %v971_v30 = vadd.f32 %v970_v29, %v969_v24 }
 0x11c   :  { %752 = vst.msk [vmem:[%s1370_s3 + $0x1c] sm:$0xf] %vm744_vm0, %v853_v26  ;;  %v634_v31 = vadd.f32 %v968_v23, %v537_v27  ;;  %v540_v32 = vadd.f32 %v907_v28, %v1285_v2 }
 0x11e   :  { %v672_v33 = vmax.f32 %v634_v31, 0.0  ;;  %v637_v34 = vadd.f32 %v971_v30, %v540_v32  ;;  %v908_v35 = vpop.f32.mrb[20].mxu0 }
 0x11f   :  { %v972_v36 = vpop.f32.mrb[20].mxu1  ;;  %v909_v37 = vpop.f32.mrb[21].mxu0 }
 0x120   :  { %v854_v38 = vpack.c.bf16 %v672_v33, %v672_v33  ;;  %v673_v39 = vmax.f32 %v637_v34, 0.0  ;;  %v910_v40 = vadd.f32 %v909_v37, %v908_v35  ;;  %v973_v41 = vpop.f32.mrb[21].mxu1  ;;  %v911_v42 = vpop.f32.mrb[22].mxu0 }
 0x121   :  { %v974_v43 = vadd.f32 %v973_v41, %v972_v36  ;;  %v975_v44 = vpop.f32.mrb[22].mxu1  ;;  %v912_v45 = vpop.f32.mrb[23].mxu0 }
 0x122   :  { %753 = vst.msk [vmem:[%s1370_s3 + $0x20] sm:$0xf] %vm744_vm0, %v854_v38  ;;  %v855_v46 = vpack.c.bf16 %v673_v39, %v673_v39  ;;  %v545_v47 = vadd.f32 %v910_v40, %v1285_v2  ;;  %v913_v48 = vadd.f32 %v912_v45, %v911_v42  ;;  %v976_v49 = vpop.f32.mrb[23].mxu1 }
 0x123   :  { %v977_v50 = vadd.f32 %v976_v49, %v975_v44 }
 0x124   :  { %754 = vst.msk [vmem:[%s1370_s3 + $0x24] sm:$0xf] %vm744_vm0, %v855_v46  ;;  %v642_v51 = vadd.f32 %v974_v43, %v545_v47  ;;  %v548_v52 = vadd.f32 %v913_v48, %v1285_v2 }
 0x126   :  { %v674_v53 = vmax.f32 %v642_v51, 0.0  ;;  %v645_v54 = vadd.f32 %v977_v50, %v548_v52  ;;  %v914_v55 = vpop.f32.mrb[24].mxu0 }
 0x127   :  { %v978_v56 = vpop.f32.mrb[24].mxu1  ;;  %v915_v57 = vpop.f32.mrb[25].mxu0 }
 0x128   :  { %v856_v58 = vpack.c.bf16 %v674_v53, %v674_v53  ;;  %v675_v59 = vmax.f32 %v645_v54, 0.0  ;;  %v916_v60 = vadd.f32 %v915_v57, %v914_v55  ;;  %v979_v61 = vpop.f32.mrb[25].mxu1  ;;  %v917_v62 = vpop.f32.mrb[26].mxu0 }
 0x129   :  { %v980_v63 = vadd.f32 %v979_v61, %v978_v56  ;;  %v981_v0 = vpop.f32.mrb[26].mxu1  ;;  %v918_v1 = vpop.f32.mrb[27].mxu0 }
 0x12a   :  { %755 = vst.msk [vmem:[%s1370_s3 + $0x28] sm:$0xf] %vm744_vm0, %v856_v58  ;;  %v857_v3 = vpack.c.bf16 %v675_v59, %v675_v59  ;;  %v553_v4 = vadd.f32 %v916_v60, %v1285_v2  ;;  %v919_v5 = vadd.f32 %v918_v1, %v917_v62  ;;  %v982_v6 = vpop.f32.mrb[27].mxu1 }
 0x12b   :  { %v983_v7 = vadd.f32 %v982_v6, %v981_v0 }
 0x12c   :  { %756 = vst.msk [vmem:[%s1370_s3 + $0x2c] sm:$0xf] %vm744_vm0, %v857_v3  ;;  %v650_v8 = vadd.f32 %v980_v63, %v553_v4  ;;  %v556_v9 = vadd.f32 %v919_v5, %v1285_v2 }
 0x12e   :  { %v676_v10 = vmax.f32 %v650_v8, 0.0  ;;  %v653_v11 = vadd.f32 %v983_v7, %v556_v9  ;;  %v920_v12 = vpop.f32.mrb[28].mxu0 }
 0x12f   :  { %v984_v13 = vpop.f32.mrb[28].mxu1  ;;  %v921_v14 = vpop.f32.mrb[29].mxu0 }
 0x130   :  { %v858_v15 = vpack.c.bf16 %v676_v10, %v676_v10  ;;  %v677_v16 = vmax.f32 %v653_v11, 0.0  ;;  %v922_v17 = vadd.f32 %v921_v14, %v920_v12  ;;  %v985_v18 = vpop.f32.mrb[29].mxu1  ;;  %v923_v19 = vpop.f32.mrb[30].mxu0 }
 0x131   :  { %v986_v20 = vadd.f32 %v985_v18, %v984_v13  ;;  %v987_v21 = vpop.f32.mrb[30].mxu1  ;;  %v924_v22 = vpop.f32.mrb[31].mxu0 }
 0x132   :  { %757 = vst.msk [vmem:[%s1370_s3 + $0x30] sm:$0xf] %vm744_vm0, %v858_v15  ;;  %v859_v23 = vpack.c.bf16 %v677_v16, %v677_v16  ;;  %v561_v24 = vadd.f32 %v922_v17, %v1285_v2  ;;  %v925_v25 = vadd.f32 %v924_v22, %v923_v19  ;;  %v988_v26 = vpop.f32.mrb[31].mxu1 }
 0x133   :  { %v989_v27 = vadd.f32 %v988_v26, %v987_v21 }
 0x134   :  { %758 = vst.msk [vmem:[%s1370_s3 + $0x34] sm:$0xf] %vm744_vm0, %v859_v23  ;;  %v658_v28 = vadd.f32 %v986_v20, %v561_v24  ;;  %v564_v29 = vadd.f32 %v925_v25, %v1285_v2 }
 0x136   :  { %v678_v30 = vmax.f32 %v658_v28, 0.0  ;;  %v661_v31 = vadd.f32 %v989_v27, %v564_v29 }
 0x138   :  { %v860_v32 = vpack.c.bf16 %v678_v30, %v678_v30  ;;  %v679_v33 = vmax.f32 %v661_v31, 0.0 }
 0x13a   :  { %759 = vst.msk [vmem:[%s1370_s3 + $0x38] sm:$0xf] %vm744_vm0, %v860_v32  ;;  %v861_v34 = vpack.c.bf16 %v679_v33, %v679_v33 }
 0x13c   :  { %760 = vst.msk [vmem:[%s1370_s3 + $0x3c] sm:$0xf] %vm744_vm0, %v861_v34 }

// kernel: beta_vae_forward.12
= control target key start
LH: loop header
LB: loop body
LE: loop exit
PB: predicated region body
PF: predicated region fallthrough
CT: control target
= control target key end

     0   :  { %vm846_vm0 = vcmask 519168   ;;  %s1399_s1 = inlined_call_operand.vmem [shape: bf16[1024,64], index: 1, kind: input, shape index: {}]   ;;  %s1400_s0 = inlined_call_operand.vmem [shape: bf16[32,1024], index: 0, kind: input, shape index: {}]   ;;  %s1401_s2 = inlined_call_operand.vmem [shape: f32[1,64], index: 2, kind: input, shape index: {}]   ;;  %s1402_s3 = inlined_call_operand.vmem [shape: bf16[32,64], index: 3, kind: output, shape index: {}]  }
   0x1   :  { %v1056_v0 = vld [vmem:[%s1399_s1 + $0x40] sm:$0xff]   ;;  %v1060_v4 = vld [vmem:[%s1399_s1 + $0x48] sm:$0xff]   ;;  %v1064_v8 = vld [vmem:[%s1399_s1 + $0x50] sm:$0xff]  }
   0x2   :  { %v1057_v1 = vld [vmem:[%s1399_s1 + $0xc0] sm:$0xff]   ;;  %944 = vmatprep.subr.bf16.mxu0 %v1056_v0  ;;  %v1061_v5 = vld [vmem:[%s1399_s1 + $0xc8] sm:$0xff]   ;;  %v1065_v9 = vld [vmem:[%s1399_s1 + $0xd0] sm:$0xff]  }
   0x3   :  { %v1058_v2 = vld [vmem:[%s1399_s1] sm:$0xff]   ;;  %972 = vmatprep.subr.bf16.mxu1 %v1057_v1  ;;  %v1062_v6 = vld [vmem:[%s1399_s1 + $0x8] sm:$0xff]   ;;  %v1066_v10 = vld [vmem:[%s1399_s1 + $0x10] sm:$0xff]  }
   0x4   :  { %v1059_v3 = vld [vmem:[%s1399_s1 + $0x80] sm:$0xff]   ;;  %945 = vmatpush3.bf16.msra.mxu0 %v1058_v2  ;;  %v1063_v7 = vld [vmem:[%s1399_s1 + $0x88] sm:$0xff]   ;;  %v1067_v11 = vld [vmem:[%s1399_s1 + $0x90] sm:$0xff]  }
   0x5   :  { %973 = vmatpush3.bf16.msra.mxu1 %v1059_v3  ;;  %946 = vmatprep.subr.bf16.mxu0 %v1060_v4  ;;  %v1068_v12 = vld [vmem:[%s1399_s1 + $0x58] sm:$0xff]   ;;  %v1072_v16 = vld [vmem:[%s1399_s1 + $0x60] sm:$0xff]   ;;  %v1076_v20 = vld [vmem:[%s1399_s1 + $0x68] sm:$0xff]  }
   0x6   :  { %974 = vmatprep.subr.bf16.mxu1 %v1061_v5  ;;  %v1069_v13 = vld [vmem:[%s1399_s1 + $0xd8] sm:$0xff]   ;;  %v1073_v17 = vld [vmem:[%s1399_s1 + $0xe0] sm:$0xff]   ;;  %v1077_v21 = vld [vmem:[%s1399_s1 + $0xe8] sm:$0xff]  }
   0x7   :  { %v1070_v14 = vld [vmem:[%s1399_s1 + $0x18] sm:$0xff]   ;;  %v1074_v18 = vld [vmem:[%s1399_s1 + $0x20] sm:$0xff]   ;;  %v1078_v22 = vld [vmem:[%s1399_s1 + $0x28] sm:$0xff]  }
   0x8   :  { %947 = vmatpush3.bf16.msra.mxu0 %v1062_v6  ;;  %v1071_v15 = vld [vmem:[%s1399_s1 + $0x98] sm:$0xff]   ;;  %v1075_v19 = vld [vmem:[%s1399_s1 + $0xa0] sm:$0xff]   ;;  %v1079_v23 = vld [vmem:[%s1399_s1 + $0xa8] sm:$0xff]  }
   0x9   :  { %975 = vmatpush3.bf16.msra.mxu1 %v1063_v7  ;;  %948 = vmatprep.subr.bf16.mxu0 %v1064_v8  ;;  %v1080_v24 = vld [vmem:[%s1399_s1 + $0x70] sm:$0xff]   ;;  %v1084_v28 = vld [vmem:[%s1399_s1 + $0x78] sm:$0xff]   ;;  %v15_v32 = vld [vmem:[%s1400_s0] sm:$0xff] }
   0xa   :  { %976 = vmatprep.subr.bf16.mxu1 %v1065_v9  ;;  %v1081_v25 = vld [vmem:[%s1399_s1 + $0xf0] sm:$0xff]   ;;  %v1085_v29 = vld [vmem:[%s1399_s1 + $0xf8] sm:$0xff]   ;;  %v19_v33 = vld [vmem:[%s1400_s0 + $0x20] sm:$0xff] }
   0xb   :  { %v1082_v26 = vld [vmem:[%s1399_s1 + $0x30] sm:$0xff]   ;;  %v1086_v30 = vld [vmem:[%s1399_s1 + $0x38] sm:$0xff]   ;;  %v16_v34 = vld [vmem:[%s1400_s0 + $0x8] sm:$0xff]  ;;  %v856_v35 = vcombine.low %v15_v32, %v19_v33  ;;  %v857_v36 = vcombine.high %v15_v32, %v19_v33 }
   0xc   :  { %949 = vmatpush3.bf16.msra.mxu0 %v1066_v10  ;;  %v1083_v27 = vld [vmem:[%s1399_s1 + $0xb0] sm:$0xff]   ;;  %v1087_v31 = vld [vmem:[%s1399_s1 + $0xb8] sm:$0xff]   ;;  %v20_v37 = vld [vmem:[%s1400_s0 + $0x28] sm:$0xff] }
   0xd   :  { %977 = vmatpush3.bf16.msra.mxu1 %v1067_v11  ;;  %950 = vmatprep.subr.bf16.mxu0 %v1068_v12  ;;  %v858_v38 = vcombine.low %v16_v34, %v20_v37  ;;  %v859_v39 = vcombine.high %v16_v34, %v20_v37  ;;  %v1088_v40 = vld [vmem:[%s1399_s1 + $0x140] sm:$0xff]   ;;  %v1092_v44 = vld [vmem:[%s1399_s1 + $0x148] sm:$0xff]   ;;  %v1096_v48 = vld [vmem:[%s1399_s1 + $0x150] sm:$0xff]  }
   0xe   :  { %978 = vmatprep.subr.bf16.mxu1 %v1069_v13  ;;  %662 = vmatprep.mubr.bf16.mxu0 %v857_v36  ;;  %v1089_v41 = vld [vmem:[%s1399_s1 + $0x1c0] sm:$0xff]   ;;  %v1093_v45 = vld [vmem:[%s1399_s1 + $0x1c8] sm:$0xff]   ;;  %v1097_v49 = vld [vmem:[%s1399_s1 + $0x1d0] sm:$0xff]  }
   0xf   :  { %711 = vmatprep.mubr.bf16.mxu1 %v859_v39  ;;  %v1090_v42 = vld [vmem:[%s1399_s1 + $0x100] sm:$0xff]   ;;  %v1094_v46 = vld [vmem:[%s1399_s1 + $0x108] sm:$0xff]   ;;  %v1098_v50 = vld [vmem:[%s1399_s1 + $0x110] sm:$0xff]  }
  0x10   :  { %951 = vmatpush3.bf16.msra.mxu0 %v1070_v14  ;;  %v1091_v43 = vld [vmem:[%s1399_s1 + $0x180] sm:$0xff]   ;;  %v1095_v47 = vld [vmem:[%s1399_s1 + $0x188] sm:$0xff]   ;;  %v1099_v51 = vld [vmem:[%s1399_s1 + $0x190] sm:$0xff]  }
  0x11   :  { %979 = vmatpush3.bf16.msra.mxu1 %v1071_v15  ;;  %952 = vmatprep.subr.bf16.mxu0 %v1072_v16  ;;  %v1100_v52 = vld [vmem:[%s1399_s1 + $0x158] sm:$0xff]   ;;  %v1104_v56 = vld [vmem:[%s1399_s1 + $0x160] sm:$0xff]   ;;  %v1108_v63 = vld [vmem:[%s1399_s1 + $0x168] sm:$0xff]  }
  0x12   :  { %980 = vmatprep.subr.bf16.mxu1 %v1073_v17  ;;  %v1101_v53 = vld [vmem:[%s1399_s1 + $0x1d8] sm:$0xff]   ;;  %v1105_v57 = vld [vmem:[%s1399_s1 + $0x1e0] sm:$0xff]   ;;  %v1109_v1 = vld [vmem:[%s1399_s1 + $0x1e8] sm:$0xff]  }
  0x13   :  { %v1102_v54 = vld [vmem:[%s1399_s1 + $0x118] sm:$0xff]   ;;  %v1106_v58 = vld [vmem:[%s1399_s1 + $0x120] sm:$0xff]   ;;  %v1110_v2 = vld [vmem:[%s1399_s1 + $0x128] sm:$0xff]  }
  0x14   :  { %953 = vmatpush3.bf16.msra.mxu0 %v1074_v18  ;;  %v1103_v55 = vld [vmem:[%s1399_s1 + $0x198] sm:$0xff]   ;;  %v1107_v59 = vld [vmem:[%s1399_s1 + $0x1a0] sm:$0xff]   ;;  %v1111_v3 = vld [vmem:[%s1399_s1 + $0x1a8] sm:$0xff]  }
  0x15   :  { %981 = vmatpush3.bf16.msra.mxu1 %v1075_v19  ;;  %954 = vmatprep.subr.bf16.mxu0 %v1076_v20  ;;  %v23_v60 = vld [vmem:[%s1400_s0 + $0x40] sm:$0xff]  ;;  %v24_v4 = vld [vmem:[%s1400_s0 + $0x48] sm:$0xff]  ;;  %v1112_v8 = vld [vmem:[%s1399_s1 + $0x170] sm:$0xff]  }
  0x16   :  { %982 = vmatprep.subr.bf16.mxu1 %v1077_v21  ;;  %v27_v61 = vld [vmem:[%s1400_s0 + $0x60] sm:$0xff]  ;;  %v28_v5 = vld [vmem:[%s1400_s0 + $0x68] sm:$0xff]  ;;  %v1113_v9 = vld [vmem:[%s1399_s1 + $0x1f0] sm:$0xff]  }
  0x17   :  { %v865_v62 = vcombine.high %v23_v60, %v27_v61  ;;  %v864_v0 = vcombine.low %v23_v60, %v27_v61  ;;  %v867_v6 = vcombine.high %v24_v4, %v28_v5  ;;  %v866_v7 = vcombine.low %v24_v4, %v28_v5  ;;  %v1114_v10 = vld [vmem:[%s1399_s1 + $0x130] sm:$0xff]   ;;  %v1116_v12 = vld [vmem:[%s1399_s1 + $0x178] sm:$0xff]   ;;  %v855_v34 = vld [vmem:[%s1401_s2] ss:$0 sm:$0xff] }
  0x18   :  { %955 = vmatpush3.bf16.msra.mxu0 %v1078_v22  ;;  %v1115_v11 = vld [vmem:[%s1399_s1 + $0x1b0] sm:$0xff]   ;;  %v1117_v13 = vld [vmem:[%s1399_s1 + $0x1f8] sm:$0xff]  }
  0x19   :  { %983 = vmatpush3.bf16.msra.mxu1 %v1079_v23  ;;  %956 = vmatprep.subr.bf16.mxu0 %v1080_v24  ;;  %v1118_v14 = vld [vmem:[%s1399_s1 + $0x138] sm:$0xff]   ;;  %v17_v16 = vld [vmem:[%s1400_s0 + $0x10] sm:$0xff] }
  0x1a   :  { %984 = vmatprep.subr.bf16.mxu1 %v1081_v25  ;;  %v1119_v15 = vld [vmem:[%s1399_s1 + $0x1b8] sm:$0xff]   ;;  %v21_v17 = vld [vmem:[%s1400_s0 + $0x30] sm:$0xff] }
  0x1b   :  { %v18_v18 = vld [vmem:[%s1400_s0 + $0x18] sm:$0xff]  ;;  %v860_v20 = vcombine.low %v17_v16, %v21_v17  ;;  %v861_v21 = vcombine.high %v17_v16, %v21_v17  ;;  %v25_v24 = vld [vmem:[%s1400_s0 + $0x50] sm:$0xff] }
  0x1c   :  { %957 = vmatpush3.bf16.msra.mxu0 %v1082_v26  ;;  %v22_v19 = vld [vmem:[%s1400_s0 + $0x38] sm:$0xff]  ;;  %v29_v25 = vld [vmem:[%s1400_s0 + $0x70] sm:$0xff] }
  0x1d   :  { %985 = vmatpush3.bf16.msra.mxu1 %v1083_v27  ;;  %958 = vmatprep.subr.bf16.mxu0 %v1084_v28  ;;  %v862_v22 = vcombine.low %v18_v18, %v22_v19  ;;  %v863_v23 = vcombine.high %v18_v18, %v22_v19  ;;  %v26_v26 = vld [vmem:[%s1400_s0 + $0x58] sm:$0xff]  ;;  %v869_v27 = vcombine.high %v25_v24, %v29_v25 }
  0x1e   :  { %986 = vmatprep.subr.bf16.mxu1 %v1085_v29  ;;  %v30_v28 = vld [vmem:[%s1400_s0 + $0x78] sm:$0xff] }
  0x1f   :  { %v871_v29 = vcombine.high %v26_v26, %v30_v28 }
  0x20   :  { %959 = vmatpush3.bf16.msra.mxu0 %v1086_v30  ;;  %v868_v30 = vcombine.low %v25_v24, %v29_v25 }
  0x21   :  { %987 = vmatpush3.bf16.msra.mxu1 %v1087_v31  ;;  %1000 = vmatprep.subr.bf16.mxu0 %v1088_v40  ;;  %v870_v31 = vcombine.low %v26_v26, %v30_v28 }
  0x22   :  { %1028 = vmatprep.subr.bf16.mxu1 %v1089_v41 }
  0x23   :  { %663 = vmatmul.mubr.bf16.vlgmr.msra.gmra.mrb[0].mxu0 %v856_v35 }
  0x24   :  { %712 = vmatmul.mubr.bf16.vlgmr.msra.gmra.mrb[0].mxu1 %v858_v38  ;;  %1001 = vmatpush3.bf16.msra.mxu0 %v1090_v42 }
  0x25   :  { %1029 = vmatpush3.bf16.msra.mxu1 %v1091_v43  ;;  %1002 = vmatprep.subr.bf16.mxu0 %v1092_v44 }
  0x26   :  { %1030 = vmatprep.subr.bf16.mxu1 %v1093_v45  ;;  %670 = vmatprep.mubr.bf16.mxu0 %v865_v62 }
  0x27   :  { %719 = vmatprep.mubr.bf16.mxu1 %v867_v6 }
  0x28   :  { %1003 = vmatpush3.bf16.msra.mxu0 %v1094_v46 }
  0x29   :  { %1031 = vmatpush3.bf16.msra.mxu1 %v1095_v47  ;;  %1004 = vmatprep.subr.bf16.mxu0 %v1096_v48 }
  0x2a   :  { %1032 = vmatprep.subr.bf16.mxu1 %v1097_v49 }
  0x2b   :  { %671 = vmatmul.mubr.bf16.gmra.mrb[4].mxu0 %v864_v0 }
  0x2c   :  { %1005 = vmatpush3.bf16.msra.mxu0 %v1098_v50  ;;  %720 = vmatmul.mubr.bf16.gmra.mrb[4].mxu1 %v866_v7 }
  0x2d   :  { %1033 = vmatpush3.bf16.msra.mxu1 %v1099_v51  ;;  %1006 = vmatprep.subr.bf16.mxu0 %v1100_v52 }
  0x2e   :  { %1034 = vmatprep.subr.bf16.mxu1 %v1101_v53  ;;  %760 = vmatprep.mubr.bf16.mxu0 %v861_v21 }
  0x2f   :  { %809 = vmatprep.mubr.bf16.mxu1 %v863_v23 }
  0x30   :  { %1007 = vmatpush3.bf16.msra.mxu0 %v1102_v54 }
  0x31   :  { %1035 = vmatpush3.bf16.msra.mxu1 %v1103_v55  ;;  %1008 = vmatprep.subr.bf16.mxu0 %v1104_v56 }
  0x32   :  { %1036 = vmatprep.subr.bf16.mxu1 %v1105_v57 }
  0x34   :  { %1009 = vmatpush3.bf16.msra.mxu0 %v1106_v58 }
  0x35   :  { %1037 = vmatpush3.bf16.msra.mxu1 %v1107_v59  ;;  %1010 = vmatprep.subr.bf16.mxu0 %v1108_v63 }
  0x36   :  { %1038 = vmatprep.subr.bf16.mxu1 %v1109_v1 }
  0x38   :  { %1011 = vmatpush3.bf16.msra.mxu0 %v1110_v2 }
  0x39   :  { %1039 = vmatpush3.bf16.msra.mxu1 %v1111_v3  ;;  %1012 = vmatprep.subr.bf16.mxu0 %v1112_v8 }
  0x3a   :  { %1040 = vmatprep.subr.bf16.mxu1 %v1113_v9 }
  0x3c   :  { %1013 = vmatpush3.bf16.msra.mxu0 %v1114_v10 }
  0x3d   :  { %1041 = vmatpush3.bf16.msra.mxu1 %v1115_v11  ;;  %1014 = vmatprep.subr.bf16.mxu0 %v1116_v12 }
  0x3e   :  { %1042 = vmatprep.subr.bf16.mxu1 %v1117_v13 }
  0x40   :  { %1015 = vmatpush3.bf16.msra.mxu0 %v1118_v14 }
  0x41   :  { %1043 = vmatpush3.bf16.msra.mxu1 %v1119_v15 }
  0x43   :  { %761 = vmatmul.mubr.bf16.vlgmr.msra.gmra.mrb[8].mxu0 %v860_v20 }
  0x44   :  { %810 = vmatmul.mubr.bf16.vlgmr.msra.gmra.mrb[8].mxu1 %v862_v22  ;;  %768 = vmatprep.mubr.bf16.mxu0 %v869_v27 }
  0x45   :  { %817 = vmatprep.mubr.bf16.mxu1 %v871_v29 }
  0x4b   :  { %769 = vmatmul.mubr.bf16.gmra.mrb[12].mxu0 %v868_v30 }
  0x4c   :  { %818 = vmatmul.mubr.bf16.gmra.mrb[12].mxu1 %v870_v31 }
  0xf6   :  { %v960_v32 = vpop.f32.mrb[0].mxu0 }
  0xf7   :  { %v988_v33 = vpop.f32.mrb[0].mxu1  ;;  %v961_v35 = vpop.f32.mrb[1].mxu0 }
  0xf8   :  { %v962_v36 = vadd.f32 %v961_v35, %v960_v32  ;;  %v989_v37 = vpop.f32.mrb[1].mxu1  ;;  %v963_v38 = vpop.f32.mrb[2].mxu0 }
  0xf9   :  { %v990_v39 = vadd.f32 %v989_v37, %v988_v33  ;;  %v991_v40 = vpop.f32.mrb[2].mxu1  ;;  %v964_v41 = vpop.f32.mrb[3].mxu0 }
  0xfa   :  { %v665_v42 = vadd.f32 %v962_v36, %v855_v34  ;;  %v965_v43 = vadd.f32 %v964_v41, %v963_v38  ;;  %v992_v44 = vpop.f32.mrb[3].mxu1 }
  0xfb   :  { %v993_v45 = vadd.f32 %v992_v44, %v991_v40 }
  0xfc   :  { %v714_v46 = vadd.f32 %v990_v39, %v665_v42  ;;  %v668_v47 = vadd.f32 %v965_v43, %v855_v34 }
  0xfe   :  { %v717_v48 = vadd.f32 %v993_v45, %v668_v47  ;;  %v966_v49 = vpop.f32.mrb[4].mxu0 }
  0xff   :  { %v967_v50 = vpop.f32.mrb[5].mxu0  ;;  %v994_v56 = vpop.f32.mrb[4].mxu1 }
 0x100   :  { %v968_v51 = vadd.f32 %v967_v50, %v966_v49  ;;  %v969_v52 = vpop.f32.mrb[6].mxu0  ;;  %v995_v57 = vpop.f32.mrb[5].mxu1 }
 0x101   :  { %v970_v53 = vpop.f32.mrb[7].mxu0  ;;  %v996_v59 = vadd.f32 %v995_v57, %v994_v56  ;;  %v997_v60 = vpop.f32.mrb[6].mxu1 }
 0x102   :  { %v971_v54 = vadd.f32 %v970_v53, %v969_v52  ;;  %v673_v55 = vadd.f32 %v968_v51, %v855_v34  ;;  %v998_v61 = vpop.f32.mrb[7].mxu1 }
 0x103   :  { %v999_v63 = vadd.f32 %v998_v61, %v997_v60 }
 0x104   :  { %v676_v58 = vadd.f32 %v971_v54, %v855_v34  ;;  %v722_v62 = vadd.f32 %v996_v59, %v673_v55 }
 0x106   :  { %v725_v0 = vadd.f32 %v999_v63, %v676_v58 }
 0x116   :  { %v1016_v1 = vpop.f32.mrb[8].mxu0 }
 0x117   :  { %v1044_v2 = vpop.f32.mrb[8].mxu1  ;;  %v1017_v3 = vpop.f32.mrb[9].mxu0 }
 0x118   :  { %v1045_v4 = vpop.f32.mrb[9].mxu1  ;;  %v1018_v5 = vadd.f32 %v1017_v3, %v1016_v1  ;;  %v1019_v7 = vpop.f32.mrb[10].mxu0 }
 0x119   :  { %v1046_v6 = vadd.f32 %v1045_v4, %v1044_v2  ;;  %v1047_v8 = vpop.f32.mrb[10].mxu1  ;;  %v1020_v9 = vpop.f32.mrb[11].mxu0 }
 0x11a   :  { %v1048_v10 = vpop.f32.mrb[11].mxu1  ;;  %v763_v11 = vadd.f32 %v1018_v5, %v714_v46  ;;  %v1021_v12 = vadd.f32 %v1020_v9, %v1019_v7 }
 0x11b   :  { %v1049_v13 = vadd.f32 %v1048_v10, %v1047_v8 }
 0x11c   :  { %v812_v14 = vadd.f32 %v1046_v6, %v763_v11  ;;  %v766_v15 = vadd.f32 %v1021_v12, %v717_v48 }
 0x11e   :  { %v826_v16 = vmax.f32 %v812_v14, 0.0  ;;  %v815_v17 = vadd.f32 %v1049_v13, %v766_v15  ;;  %v1022_v18 = vpop.f32.mrb[12].mxu0 }
 0x11f   :  { %v1050_v19 = vpop.f32.mrb[12].mxu1  ;;  %v1023_v20 = vpop.f32.mrb[13].mxu0 }
 0x120   :  { %v1051_v21 = vpop.f32.mrb[13].mxu1  ;;  %v940_v22 = vpack.c.bf16 %v826_v16, %v826_v16  ;;  %v827_v23 = vmax.f32 %v815_v17, 0.0  ;;  %v1024_v24 = vadd.f32 %v1023_v20, %v1022_v18  ;;  %v1025_v26 = vpop.f32.mrb[14].mxu0 }
 0x121   :  { %v1052_v25 = vadd.f32 %v1051_v21, %v1050_v19  ;;  %v1053_v27 = vpop.f32.mrb[14].mxu1  ;;  %v1026_v28 = vpop.f32.mrb[15].mxu0 }
 0x122   :  { %v1054_v29 = vpop.f32.mrb[15].mxu1  ;;  %847 = vst.msk [vmem:[%s1402_s3] sm:$0xf] %vm846_vm0, %v940_v22  ;;  %v941_v30 = vpack.c.bf16 %v827_v23, %v827_v23  ;;  %v771_v31 = vadd.f32 %v1024_v24, %v722_v62  ;;  %v1027_v32 = vadd.f32 %v1026_v28, %v1025_v26 }
 0x123   :  { %v1055_v33 = vadd.f32 %v1054_v29, %v1053_v27 }
 0x124   :  { %848 = vst.msk [vmem:[%s1402_s3 + $0x4] sm:$0xf] %vm846_vm0, %v941_v30  ;;  %v820_v34 = vadd.f32 %v1052_v25, %v771_v31  ;;  %v774_v35 = vadd.f32 %v1027_v32, %v725_v0 }
 0x126   :  { %v828_v36 = vmax.f32 %v820_v34, 0.0  ;;  %v823_v37 = vadd.f32 %v1055_v33, %v774_v35 }
 0x128   :  { %v942_v38 = vpack.c.bf16 %v828_v36, %v828_v36  ;;  %v829_v39 = vmax.f32 %v823_v37, 0.0 }
 0x12a   :  { %849 = vst.msk [vmem:[%s1402_s3 + $0x8] sm:$0xf] %vm846_vm0, %v942_v38  ;;  %v943_v40 = vpack.c.bf16 %v829_v39, %v829_v39 }
 0x12c   :  { %850 = vst.msk [vmem:[%s1402_s3 + $0xc] sm:$0xf] %vm846_vm0, %v943_v40 }

// kernel: beta_vae_forward.14
= control target key start
LH: loop header
LB: loop body
LE: loop exit
PB: predicated region body
PF: predicated region fallthrough
CT: control target
= control target key end

     0   :  { %vm521_vm0 = vcmask 523264   ;;  %s1256_s1 = inlined_call_operand.vmem [shape: bf16[576,256], index: 1, kind: input, shape index: {}]   ;;  %s1257_s0 = inlined_call_operand.vmem [shape: bf16[32,576], index: 0, kind: input, shape index: {}]   ;;  %s1258_s2 = inlined_call_operand.vmem [shape: f32[1,256], index: 2, kind: input, shape index: {}]   ;;  %s1259_s3 = inlined_call_operand.vmem [shape: bf16[32,256], index: 3, kind: output, shape index: {}]  }
   0x1   :  { %v852_v0 = vld [vmem:[%s1256_s1 + $0x4] ss:$8 sps:$4 sm:$0xff]   ;;  %v856_v2 = vld [vmem:[%s1256_s1] ss:$8 sps:$4 sm:$0xff]   ;;  %v858_v4 = vld [vmem:[%s1256_s1 + $0x14] ss:$8 sps:$4 sm:$0xff]  }
   0x2   :  { %v854_v1 = vld [vmem:[%s1256_s1 + $0x104] ss:$8 sps:$4 sm:$0xff]   ;;  %528 = vmatprep.subr.bf16.mxu1 %v852_v0  ;;  %v857_v3 = vld [vmem:[%s1256_s1 + $0x100] ss:$8 sps:$4 sm:$0xff]   ;;  %v860_v5 = vld [vmem:[%s1256_s1 + $0x114] ss:$8 sps:$4 sm:$0xff]  }
   0x3   :  { %581 = vmatprep.subr.bf16.mxu0 %v854_v1  ;;  %529 = vmatpush1.bf16.msra.mxu1 %v856_v2  ;;  %v862_v6 = vld [vmem:[%s1256_s1 + $0x10] ss:$8 sps:$4 sm:$0xff]   ;;  %v864_v8 = vld [vmem:[%s1256_s1 + $0x24] ss:$8 sps:$4 sm:$0xff]   ;;  %v868_v10 = vld [vmem:[%s1256_s1 + $0x20] ss:$8 sps:$4 sm:$0xff]  }
   0x4   :  { %582 = vmatpush1.bf16.msra.mxu0 %v857_v3  ;;  %530 = vmatprep.subr.bf16.mxu1 %v858_v4  ;;  %v863_v7 = vld [vmem:[%s1256_s1 + $0x110] ss:$8 sps:$4 sm:$0xff]   ;;  %v866_v9 = vld [vmem:[%s1256_s1 + $0x124] ss:$8 sps:$4 sm:$0xff]   ;;  %v869_v11 = vld [vmem:[%s1256_s1 + $0x120] ss:$8 sps:$4 sm:$0xff]  }
   0x5   :  { %583 = vmatprep.subr.bf16.mxu0 %v860_v5  ;;  %v870_v12 = vld [vmem:[%s1256_s1 + $0x34] ss:$8 sps:$4 sm:$0xff]   ;;  %v874_v14 = vld [vmem:[%s1256_s1 + $0x30] ss:$8 sps:$4 sm:$0xff]   ;;  %v876_v16 = vld [vmem:[%s1256_s1 + $0x44] ss:$8 sps:$4 sm:$0xff]  }
   0x6   :  { %v872_v13 = vld [vmem:[%s1256_s1 + $0x134] ss:$8 sps:$4 sm:$0xff]   ;;  %v875_v15 = vld [vmem:[%s1256_s1 + $0x130] ss:$8 sps:$4 sm:$0xff]   ;;  %v878_v17 = vld [vmem:[%s1256_s1 + $0x144] ss:$8 sps:$4 sm:$0xff]  }
   0x7   :  { %531 = vmatpush1.bf16.msra.mxu1 %v862_v6  ;;  %v880_v18 = vld [vmem:[%s1256_s1 + $0x40] ss:$8 sps:$4 sm:$0xff]   ;;  %v882_v20 = vld [vmem:[%s1256_s1 + $0x54] ss:$8 sps:$4 sm:$0xff]   ;;  %v886_v22 = vld [vmem:[%s1256_s1 + $0x50] ss:$8 sps:$4 sm:$0xff]  }
   0x8   :  { %584 = vmatpush1.bf16.msra.mxu0 %v863_v7  ;;  %532 = vmatprep.subr.bf16.mxu1 %v864_v8  ;;  %v881_v19 = vld [vmem:[%s1256_s1 + $0x140] ss:$8 sps:$4 sm:$0xff]   ;;  %v884_v21 = vld [vmem:[%s1256_s1 + $0x154] ss:$8 sps:$4 sm:$0xff]   ;;  %v887_v23 = vld [vmem:[%s1256_s1 + $0x150] ss:$8 sps:$4 sm:$0xff]  }
   0x9   :  { %585 = vmatprep.subr.bf16.mxu0 %v866_v9  ;;  %v888_v24 = vld [vmem:[%s1256_s1 + $0x64] ss:$8 sps:$4 sm:$0xff]   ;;  %v892_v26 = vld [vmem:[%s1256_s1 + $0x60] ss:$8 sps:$4 sm:$0xff]   ;;  %v894_v28 = vld [vmem:[%s1256_s1 + $0x74] ss:$8 sps:$4 sm:$0xff]  }
   0xa   :  { %v890_v25 = vld [vmem:[%s1256_s1 + $0x164] ss:$8 sps:$4 sm:$0xff]   ;;  %v893_v27 = vld [vmem:[%s1256_s1 + $0x160] ss:$8 sps:$4 sm:$0xff]   ;;  %v896_v29 = vld [vmem:[%s1256_s1 + $0x174] ss:$8 sps:$4 sm:$0xff]  }
   0xb   :  { %533 = vmatpush1.bf16.msra.mxu1 %v868_v10  ;;  %v898_v30 = vld [vmem:[%s1256_s1 + $0x70] ss:$8 sps:$4 sm:$0xff]   ;;  %v900_v32 = vld [vmem:[%s1256_s1 + $0x84] ss:$8 sps:$4 sm:$0xff]   ;;  %v904_v34 = vld [vmem:[%s1256_s1 + $0x80] ss:$8 sps:$4 sm:$0xff]  }
   0xc   :  { %586 = vmatpush1.bf16.msra.mxu0 %v869_v11  ;;  %534 = vmatprep.subr.bf16.mxu1 %v870_v12  ;;  %v899_v31 = vld [vmem:[%s1256_s1 + $0x170] ss:$8 sps:$4 sm:$0xff]   ;;  %v902_v33 = vld [vmem:[%s1256_s1 + $0x184] ss:$8 sps:$4 sm:$0xff]   ;;  %v905_v35 = vld [vmem:[%s1256_s1 + $0x180] ss:$8 sps:$4 sm:$0xff]  }
   0xd   :  { %587 = vmatprep.subr.bf16.mxu0 %v872_v13  ;;  %v906_v36 = vld [vmem:[%s1256_s1 + $0x94] ss:$8 sps:$4 sm:$0xff]   ;;  %v910_v38 = vld [vmem:[%s1256_s1 + $0x90] ss:$8 sps:$4 sm:$0xff]   ;;  %v912_v40 = vld [vmem:[%s1256_s1 + $0xa4] ss:$8 sps:$4 sm:$0xff]  }
   0xe   :  { %v908_v37 = vld [vmem:[%s1256_s1 + $0x194] ss:$8 sps:$4 sm:$0xff]   ;;  %v911_v39 = vld [vmem:[%s1256_s1 + $0x190] ss:$8 sps:$4 sm:$0xff]   ;;  %v914_v41 = vld [vmem:[%s1256_s1 + $0x1a4] ss:$8 sps:$4 sm:$0xff]  }
   0xf   :  { %535 = vmatpush1.bf16.msra.mxu1 %v874_v14  ;;  %v916_v42 = vld [vmem:[%s1256_s1 + $0xa0] ss:$8 sps:$4 sm:$0xff]   ;;  %v918_v44 = vld [vmem:[%s1256_s1 + $0xb4] ss:$8 sps:$4 sm:$0xff]   ;;  %v922_v46 = vld [vmem:[%s1256_s1 + $0xb0] ss:$8 sps:$4 sm:$0xff]  }
  0x10   :  { %588 = vmatpush1.bf16.msra.mxu0 %v875_v15  ;;  %536 = vmatprep.subr.bf16.mxu1 %v876_v16  ;;  %v917_v43 = vld [vmem:[%s1256_s1 + $0x1a0] ss:$8 sps:$4 sm:$0xff]   ;;  %v920_v45 = vld [vmem:[%s1256_s1 + $0x1b4] ss:$8 sps:$4 sm:$0xff]   ;;  %v923_v47 = vld [vmem:[%s1256_s1 + $0x1b0] ss:$8 sps:$4 sm:$0xff]  }
  0x11   :  { %589 = vmatprep.subr.bf16.mxu0 %v878_v17  ;;  %v924_v48 = vld [vmem:[%s1256_s1 + $0xc4] ss:$8 sps:$4 sm:$0xff]   ;;  %v928_v52 = vld [vmem:[%s1256_s1 + $0xc0] ss:$8 sps:$4 sm:$0xff]   ;;  %v930_v54 = vld [vmem:[%s1256_s1 + $0xd4] ss:$8 sps:$4 sm:$0xff]  }
  0x12   :  { %v950_v49 = vld [vmem:[%s1257_s0 + $0x4] ss:$20 sps:$4 sm:$0xff]   ;;  %v953_v51 = vld [vmem:[%s1257_s0 + $0xc] ss:$20 sps:$4 sm:$0xff]   ;;  %v932_v55 = vld [vmem:[%s1256_s1 + $0x1d4] ss:$8 sps:$4 sm:$0xff]  }
  0x13   :  { %537 = vmatpush1.bf16.msra.mxu1 %v880_v18  ;;  %v926_v50 = vld [vmem:[%s1256_s1 + $0x1c4] ss:$8 sps:$4 sm:$0xff]   ;;  %560 = vmatprep.mubr.bf16.mxu1 %v950_v49  ;;  %v929_v53 = vld [vmem:[%s1256_s1 + $0x1c0] ss:$8 sps:$4 sm:$0xff]   ;;  %v934_v56 = vld [vmem:[%s1256_s1 + $0xd0] ss:$8 sps:$4 sm:$0xff]  }
  0x14   :  { %590 = vmatpush1.bf16.msra.mxu0 %v881_v19  ;;  %538 = vmatprep.subr.bf16.mxu1 %v882_v20  ;;  %v935_v57 = vld [vmem:[%s1256_s1 + $0x1d0] ss:$8 sps:$4 sm:$0xff]   ;;  %v936_v58 = vld [vmem:[%s1256_s1 + $0xe4] ss:$8 sps:$4 sm:$0xff]   ;;  %v940_v60 = vld [vmem:[%s1256_s1 + $0xe0] ss:$8 sps:$4 sm:$0xff]   ;;  %v101_v19 = vlaneseq }
  0x15   :  { %591 = vmatprep.subr.bf16.mxu0 %v884_v21  ;;  %613 = vmatprep.mubr.bf16.mxu0 %v953_v51  ;;  %v938_v59 = vld [vmem:[%s1256_s1 + $0x1e4] ss:$8 sps:$4 sm:$0xff]   ;;  %v941_v61 = vld [vmem:[%s1256_s1 + $0x1e0] ss:$8 sps:$4 sm:$0xff]   ;;  %v942_v62 = vld [vmem:[%s1256_s1 + $0xf4] ss:$8 sps:$4 sm:$0xff]  }
  0x16   :  { %v944_v63 = vld [vmem:[%s1256_s1 + $0x1f4] ss:$8 sps:$4 sm:$0xff]   ;;  %v946_v0 = vld [vmem:[%s1256_s1 + $0xf0] ss:$8 sps:$4 sm:$0xff]   ;;  %v956_v2 = vld [vmem:[%s1256_s1 + $0x204] ss:$8 sps:$4 sm:$0xff]  }
  0x17   :  { %539 = vmatpush1.bf16.msra.mxu1 %v886_v22  ;;  %v947_v1 = vld [vmem:[%s1256_s1 + $0x1f0] ss:$8 sps:$4 sm:$0xff]   ;;  %v948_v3 = vld [vmem:[%s1257_s0] ss:$20 sps:$4 sm:$0xff]   ;;  %v951_v4 = vld [vmem:[%s1257_s0 + $0x8] ss:$20 sps:$4 sm:$0xff]  }
  0x18   :  { %592 = vmatpush1.bf16.msra.mxu0 %v887_v23  ;;  %540 = vmatprep.subr.bf16.mxu1 %v888_v24  ;;  %v954_v5 = vld [vmem:[%s1256_s1 + $0x200] ss:$8 sps:$4 sm:$0xff]   ;;  %v959_v6 = vld [vmem:[%s1256_s1 + $0x214] ss:$8 sps:$4 sm:$0xff]   ;;  %v957_v9 = vld [vmem:[%s1256_s1 + $0x210] ss:$8 sps:$4 sm:$0xff]  }
  0x19   :  { %593 = vmatprep.subr.bf16.mxu0 %v890_v25  ;;  %v960_v7 = vld [vmem:[%s1257_s0 + $0x2c] ss:$20 sps:$4 sm:$0xff]   ;;  %v962_v8 = vld [vmem:[%s1257_s0 + $0x34] ss:$20 sps:$4 sm:$0xff]   ;;  %v965_v12 = vld [vmem:[%s1257_s0 + $0x30] ss:$20 sps:$4 sm:$0xff]  }
  0x1a   :  { %v968_v10 = vld [vmem:[%s1256_s1 + $0x224] ss:$8 sps:$4 sm:$0xff]   ;;  %v964_v11 = vld [vmem:[%s1257_s0 + $0x28] ss:$20 sps:$4 sm:$0xff]   ;;  %v969_v15 = vld [vmem:[%s1256_s1 + $0x230] ss:$8 sps:$4 sm:$0xff]  }
  0x1b   :  { %541 = vmatpush1.bf16.msra.mxu1 %v892_v26  ;;  %v966_v13 = vld [vmem:[%s1256_s1 + $0x220] ss:$8 sps:$4 sm:$0xff]   ;;  %v971_v14 = vld [vmem:[%s1256_s1 + $0x234] ss:$8 sps:$4 sm:$0xff]   ;;  %v974_v16 = vmov 0   ;;  %v102_v20 = vshrl.u32 %v101_v19, 7 }
  0x1c   :  { %594 = vmatpush1.bf16.msra.mxu0 %v893_v27  ;;  %542 = vmatprep.subr.bf16.mxu1 %v894_v28  ;;  %v972_v17 = vld [vmem:[%s1257_s0 + $0x10] ss:$20 sps:$4 sm:$0xff]   ;;  %v973_v18 = vld [vmem:[%s1257_s0 + $0x38] ss:$20 sps:$4 sm:$0xff]   ;;  %v99_v26 = vld [vmem:[%s1258_s2] sm:$0x3] }
  0x1d   :  { %595 = vmatprep.subr.bf16.mxu0 %v896_v29  ;;  %v103_v24 = vsub.s32 0, %v102_v20  ;;  %v107_v27 = vsub.s32 1, %v102_v20 }
  0x1f   :  { %543 = vmatpush1.bf16.msra.mxu1 %v898_v30  ;;  %v104_v28 = vrot.slane %v99_v26, %v103_v24  ;;  %v108_v29 = vrot.slane %v99_v26, %v107_v27 }
  0x20   :  { %596 = vmatpush1.bf16.msra.mxu0 %v899_v31  ;;  %544 = vmatprep.subr.bf16.mxu1 %v900_v32 }
  0x21   :  { %597 = vmatprep.subr.bf16.mxu0 %v902_v33 }
  0x23   :  { %545 = vmatpush1.bf16.msra.mxu1 %v904_v34 }
  0x24   :  { %598 = vmatpush1.bf16.msra.mxu0 %v905_v35  ;;  %546 = vmatprep.subr.bf16.mxu1 %v906_v36 }
  0x25   :  { %599 = vmatprep.subr.bf16.mxu0 %v908_v37 }
  0x27   :  { %547 = vmatpush1.bf16.msra.mxu1 %v910_v38 }
  0x28   :  { %600 = vmatpush1.bf16.msra.mxu0 %v911_v39  ;;  %548 = vmatprep.subr.bf16.mxu1 %v912_v40 }
  0x29   :  { %601 = vmatprep.subr.bf16.mxu0 %v914_v41 }
  0x2b   :  { %549 = vmatpush1.bf16.msra.mxu1 %v916_v42 }
  0x2c   :  { %602 = vmatpush1.bf16.msra.mxu0 %v917_v43  ;;  %550 = vmatprep.subr.bf16.mxu1 %v918_v44 }
  0x2d   :  { %603 = vmatprep.subr.bf16.mxu0 %v920_v45 }
  0x2f   :  { %551 = vmatpush1.bf16.msra.mxu1 %v922_v46 }
  0x30   :  { %604 = vmatpush1.bf16.msra.mxu0 %v923_v47  ;;  %552 = vmatprep.subr.bf16.mxu1 %v924_v48 }
  0x31   :  { %605 = vmatprep.subr.bf16.mxu0 %v926_v50 }
  0x33   :  { %553 = vmatpush1.bf16.msra.mxu1 %v928_v52 }
  0x34   :  { %606 = vmatpush1.bf16.msra.mxu0 %v929_v53  ;;  %554 = vmatprep.subr.bf16.mxu1 %v930_v54 }
  0x35   :  { %607 = vmatprep.subr.bf16.mxu0 %v932_v55 }
  0x37   :  { %555 = vmatpush1.bf16.msra.mxu1 %v934_v56 }
  0x38   :  { %608 = vmatpush1.bf16.msra.mxu0 %v935_v57  ;;  %556 = vmatprep.subr.bf16.mxu1 %v936_v58 }
  0x39   :  { %609 = vmatprep.subr.bf16.mxu0 %v938_v59 }
  0x3b   :  { %557 = vmatpush1.bf16.msra.mxu1 %v940_v60 }
  0x3c   :  { %610 = vmatpush1.bf16.msra.mxu0 %v941_v61  ;;  %558 = vmatprep.subr.bf16.mxu1 %v942_v62 }
  0x3d   :  { %611 = vmatprep.subr.bf16.mxu0 %v944_v63 }
  0x3f   :  { %559 = vmatpush1.bf16.msra.mxu1 %v946_v0 }
  0x40   :  { %612 = vmatpush1.bf16.msra.mxu0 %v947_v1  ;;  %819 = vmatprep.subr.bf16.mxu1 %v956_v2 }
  0x41   :  { %634 = vmatprep.subr.bf16.mxu0 %v956_v2 }
  0x42   :  { %561 = vmatmul.mubr.bf16.vlgmr.msra.gmra.mrb[0].mxu1 %v948_v3 }
  0x43   :  { %614 = vmatmul.mubr.bf16.vlgmr.msra.gmra.mrb[0].mxu0 %v951_v4  ;;  %823 = vmatpush1.bf16.msra.mxu1 %v954_v5 }
  0x44   :  { %635 = vmatpush1.bf16.msra.mxu0 %v954_v5  ;;  %820 = vmatprep.subr.bf16.mxu1 %v959_v6 }
  0x45   :  { %636 = vmatprep.subr.bf16.mxu0 %v959_v6  ;;  %570 = vmatprep.mubr.bf16.mxu1 %v960_v7 }
  0x46   :  { %623 = vmatprep.mubr.bf16.mxu0 %v962_v8 }
  0x47   :  { %824 = vmatpush1.bf16.msra.mxu1 %v957_v9 }
  0x48   :  { %637 = vmatpush1.bf16.msra.mxu0 %v957_v9  ;;  %821 = vmatprep.subr.bf16.mxu1 %v968_v10 }
  0x49   :  { %638 = vmatprep.subr.bf16.mxu0 %v968_v10 }
  0x4a   :  { %571 = vmatmul.mubr.bf16.gmra.mrb[4].mxu1 %v964_v11 }
  0x4b   :  { %624 = vmatmul.mubr.bf16.gmra.mrb[4].mxu0 %v965_v12  ;;  %825 = vmatpush1.bf16.msra.mxu1 %v966_v13 }
  0x4c   :  { %639 = vmatpush1.bf16.msra.mxu0 %v966_v13  ;;  %822 = vmatprep.subr.bf16.mxu1 %v971_v14 }
  0x4d   :  { %640 = vmatprep.subr.bf16.mxu0 %v971_v14  ;;  %666 = vmatprep.mubr.bf16.mxu0 %v974_v16 }
  0x4e   :  { %676 = vmatprep.mubr.bf16.mxu1 %v974_v16 }
  0x4f   :  { %826 = vmatpush1.bf16.msra.mxu1 %v969_v15 }
  0x50   :  { %641 = vmatpush1.bf16.msra.mxu0 %v969_v15 }
  0x52   :  { %810 = vmatmul.mubr.msk.bf16.vlgmr.msra.gmra.mrb[8].mxu1 %vm521_vm0, %v973_v18 }
  0x53   :  { %809 = vmatmul.mubr.msk.bf16.vlgmr.msra.gmra.mrb[0].mxu0 %vm521_vm0, %v972_v17 }
 0x115   :  { %v562_v21 = vpop.f32.mrb[0].mxu1 }
 0x116   :  { %v564_v22 = vpop.f32.mrb[1].mxu1  ;;  %v563_v46 = vadd.f32 %v562_v21, %v104_v28 }
 0x117   :  { %v566_v23 = vpop.f32.mrb[2].mxu1  ;;  %v565_v47 = vadd.f32 %v564_v22, %v108_v29 }
 0x118   :  { %v568_v25 = vpop.f32.mrb[3].mxu1  ;;  %v567_v50 = vadd.f32 %v566_v23, %v104_v28 }
 0x119   :  { %v569_v55 = vadd.f32 %v568_v25, %v108_v29 }
 0x11d   :  { %v572_v30 = vpop.f32.mrb[4].mxu1 }
 0x11e   :  { %v625_v31 = vpop.f32.mrb[4].mxu0  ;;  %v573_v32 = vadd.f32 %v572_v30, %v104_v28  ;;  %v574_v33 = vpop.f32.mrb[5].mxu1 }
 0x11f   :  { %v627_v34 = vpop.f32.mrb[5].mxu0  ;;  %v575_v35 = vadd.f32 %v574_v33, %v108_v29  ;;  %v576_v36 = vpop.f32.mrb[6].mxu1 }
 0x120   :  { %v629_v37 = vpop.f32.mrb[6].mxu0  ;;  %v626_v38 = vadd.f32 %v625_v31, %v573_v32  ;;  %v577_v39 = vadd.f32 %v576_v36, %v104_v28  ;;  %v578_v40 = vpop.f32.mrb[7].mxu1 }
 0x121   :  { %v631_v41 = vpop.f32.mrb[7].mxu0  ;;  %v628_v42 = vadd.f32 %v627_v34, %v575_v35  ;;  %v579_v43 = vadd.f32 %v578_v40, %v108_v29 }
 0x122   :  { %v630_v44 = vadd.f32 %v629_v37, %v577_v39 }
 0x123   :  { %v632_v45 = vadd.f32 %v631_v41, %v579_v43 }
 0x125   :  { %v678_v49 = vpop.f32.mrb[8].mxu1 }
 0x126   :  { %v668_v48 = vpop.f32.mrb[0].mxu0  ;;  %v679_v52 = vadd.f32 %v678_v49, %v626_v38  ;;  %v680_v54 = vpop.f32.mrb[9].mxu1 }
 0x127   :  { %v828_v51 = vadd.f32 %v668_v48, %v563_v46  ;;  %v670_v53 = vpop.f32.mrb[1].mxu0  ;;  %v681_v57 = vadd.f32 %v680_v54, %v628_v42  ;;  %v682_v59 = vpop.f32.mrb[10].mxu1 }
 0x128   :  { %v830_v56 = vadd.f32 %v670_v53, %v565_v47  ;;  %v672_v58 = vpop.f32.mrb[2].mxu0  ;;  %v691_v61 = vmax.f32 %v679_v52, 0.0  ;;  %v683_v63 = vadd.f32 %v682_v59, %v630_v44  ;;  %v684_v1 = vpop.f32.mrb[11].mxu1 }
 0x129   :  { %v687_v60 = vmax.f32 %v828_v51, 0.0  ;;  %v832_v62 = vadd.f32 %v672_v58, %v567_v50  ;;  %v674_v0 = vpop.f32.mrb[3].mxu0  ;;  %v692_v3 = vmax.f32 %v681_v57, 0.0  ;;  %v685_v5 = vadd.f32 %v684_v1, %v632_v45 }
 0x12a   :  { %v688_v2 = vmax.f32 %v830_v56, 0.0  ;;  %v834_v4 = vadd.f32 %v674_v0, %v569_v55  ;;  %v693_v7 = vmax.f32 %v683_v63, 0.0 }
 0x12b   :  { %v689_v6 = vmax.f32 %v832_v62, 0.0  ;;  %v817_v9 = vpack.c.bf16 %v692_v3, %v691_v61  ;;  %v694_v11 = vmax.f32 %v685_v5, 0.0 }
 0x12c   :  { %v815_v8 = vpack.c.bf16 %v688_v2, %v687_v60  ;;  %v690_v10 = vmax.f32 %v834_v4, 0.0 }
 0x12d   :  { %721 = vst [vmem:[%s1259_s3 + $0x10] sm:$0xff] %v817_v9  ;;  %v818_v13 = vpack.c.bf16 %v694_v11, %v693_v7 }
 0x12e   :  { %719 = vst [vmem:[%s1259_s3] sm:$0xff] %v815_v8  ;;  %v816_v12 = vpack.c.bf16 %v690_v10, %v689_v6 }
 0x12f   :  { %722 = vst [vmem:[%s1259_s3 + $0x18] sm:$0xff] %v818_v13 }
 0x130   :  { %720 = vst [vmem:[%s1259_s3 + $0x8] sm:$0xff] %v816_v12 }

// kernel: beta_vae_forward.13
= control target key start
LH: loop header
LB: loop body
LE: loop exit
PB: predicated region body
PF: predicated region fallthrough
CT: control target
= control target key end

     0   :  { %vm1415_vm0 = vcmask 261120   ;;  %s4141_s2 = inlined_call_operand.vmem [shape: bf16[1024,256], index: 2, kind: input, shape index: {}]   ;;  %s4142_s0 = inlined_call_operand.vmem [shape: bf16[8,1024], index: 0, kind: input, shape index: {}]   ;;  %s4143_s4 = inlined_call_operand.vmem [shape: bf16[256,32], index: 4, kind: input, shape index: {}]   ;;  %s4144_s6 = inlined_call_operand.vmem [shape: bf16[256,32], index: 6, kind: input, shape index: {}]   ;;  %s4145_s3 = inlined_call_operand.vmem [shape: f32[1,256], index: 3, kind: input, shape index: {}]   ;;  %s4146_s8 = inlined_call_operand.vmem [shape: bf16[32,256], index: 8, kind: input, shape index: {}]   ;;  %s4147_s10 = inlined_call_operand.vmem [shape: bf16[256,1024], index: 10, kind: input, shape index: {}]   ;;  %s4148_s7 = inlined_call_operand.vmem [shape: f32[1,32], index: 7, kind: input, shape index: {}]   ;;  %s4149_s5 = inlined_call_operand.vmem [shape: f32[1,32], index: 5, kind: input, shape index: {}]   ;;  %s4150_s1 = inlined_call_operand.vmem [shape: f32[8,32], index: 1, kind: input, shape index: {}]   ;;  %s4151_s9 = inlined_call_operand.vmem [shape: f32[1,256], index: 9, kind: input, shape index: {}]   ;;  %s4152_s11 = inlined_call_operand.vmem [shape: f32[1,1024], index: 11, kind: input, shape index: {}]   ;;  %s4153_s12 = inlined_call_operand.vmem [shape: bf16[8,1024], index: 12, kind: output, shape index: {}]  }
   0x1   :  { %v2856_v0 = vld [vmem:[%s4141_s2 + $0x4] ss:$8 sps:$4 sm:$0xff]   ;;  %v2858_v1 = vld [vmem:[%s4141_s2] ss:$8 sps:$4 sm:$0xff]   ;;  %v2859_v2 = vld [vmem:[%s4141_s2 + $0x14] ss:$8 sps:$4 sm:$0xff]  }
   0x2   :  { %854 = vmatprep.subr.bf16.mxu0 %v2856_v0  ;;  %v2861_v3 = vld [vmem:[%s4141_s2 + $0x10] ss:$8 sps:$4 sm:$0xff]   ;;  %v2862_v4 = vld [vmem:[%s4141_s2 + $0x24] ss:$8 sps:$4 sm:$0xff]   ;;  %v2864_v5 = vld [vmem:[%s4141_s2 + $0x20] ss:$8 sps:$4 sm:$0xff]  }
   0x3   :  { %855 = vmatpush1.bf16.msra.mxu0 %v2858_v1  ;;  %v2865_v6 = vld [vmem:[%s4141_s2 + $0x34] ss:$8 sps:$4 sm:$0xff]   ;;  %v2867_v7 = vld [vmem:[%s4141_s2 + $0x30] ss:$8 sps:$4 sm:$0xff]   ;;  %v2868_v8 = vld [vmem:[%s4141_s2 + $0x44] ss:$8 sps:$4 sm:$0xff]  }
   0x4   :  { %856 = vmatprep.subr.bf16.mxu0 %v2859_v2  ;;  %v2870_v9 = vld [vmem:[%s4141_s2 + $0x40] ss:$8 sps:$4 sm:$0xff]   ;;  %v2871_v10 = vld [vmem:[%s4141_s2 + $0x54] ss:$8 sps:$4 sm:$0xff]   ;;  %v2873_v11 = vld [vmem:[%s4141_s2 + $0x50] ss:$8 sps:$4 sm:$0xff]  }
   0x5   :  { %v2874_v12 = vld [vmem:[%s4141_s2 + $0x64] ss:$8 sps:$4 sm:$0xff]   ;;  %v2876_v15 = vld [vmem:[%s4141_s2 + $0x60] ss:$8 sps:$4 sm:$0xff]   ;;  %v2877_v16 = vld [vmem:[%s4141_s2 + $0x74] ss:$8 sps:$4 sm:$0xff]  }
   0x6   :  { %v42_v13 = vld [vmem:[%s4142_s0] sm:$0xff]  ;;  %v2879_v17 = vld [vmem:[%s4141_s2 + $0x70] ss:$8 sps:$4 sm:$0xff]   ;;  %v2883_v20 = vld [vmem:[%s4141_s2 + $0x94] ss:$8 sps:$4 sm:$0xff]  }
   0x7   :  { %857 = vmatpush1.bf16.msra.mxu0 %v2861_v3  ;;  %v2487_v14 = vcombine.high %v42_v13, %v42_v13  ;;  %v2880_v18 = vld [vmem:[%s4141_s2 + $0x84] ss:$8 sps:$4 sm:$0xff]   ;;  %v2882_v19 = vld [vmem:[%s4141_s2 + $0x80] ss:$8 sps:$4 sm:$0xff]   ;;  %v2885_v21 = vld [vmem:[%s4141_s2 + $0x90] ss:$8 sps:$4 sm:$0xff]   ;;  %v2486_v36 = vcombine.low %v42_v13, %v42_v13 }
   0x8   :  { %858 = vmatprep.subr.bf16.mxu0 %v2862_v4  ;;  %v2886_v22 = vld [vmem:[%s4141_s2 + $0xa4] ss:$8 sps:$4 sm:$0xff]   ;;  %v2888_v23 = vld [vmem:[%s4141_s2 + $0xa0] ss:$8 sps:$4 sm:$0xff]   ;;  %v2889_v24 = vld [vmem:[%s4141_s2 + $0xb4] ss:$8 sps:$4 sm:$0xff]  }
   0x9   :  { %886 = vmatprep.mubr.bf16.mxu0 %v2487_v14  ;;  %v2891_v25 = vld [vmem:[%s4141_s2 + $0xb0] ss:$8 sps:$4 sm:$0xff]   ;;  %v2892_v26 = vld [vmem:[%s4141_s2 + $0xc4] ss:$8 sps:$4 sm:$0xff]   ;;  %v2894_v27 = vld [vmem:[%s4141_s2 + $0xc0] ss:$8 sps:$4 sm:$0xff]  }
   0xa   :  { %v2895_v28 = vld [vmem:[%s4141_s2 + $0xd4] ss:$8 sps:$4 sm:$0xff]   ;;  %v2897_v29 = vld [vmem:[%s4141_s2 + $0xd0] ss:$8 sps:$4 sm:$0xff]   ;;  %v2898_v30 = vld [vmem:[%s4141_s2 + $0xe4] ss:$8 sps:$4 sm:$0xff]  }
   0xb   :  { %859 = vmatpush1.bf16.msra.mxu0 %v2864_v5  ;;  %v2900_v31 = vld [vmem:[%s4141_s2 + $0xe0] ss:$8 sps:$4 sm:$0xff]   ;;  %v2901_v32 = vld [vmem:[%s4141_s2 + $0xf4] ss:$8 sps:$4 sm:$0xff]   ;;  %v2903_v33 = vld [vmem:[%s4141_s2 + $0xf0] ss:$8 sps:$4 sm:$0xff]  }
   0xc   :  { %860 = vmatprep.subr.bf16.mxu0 %v2865_v6  ;;  %v2908_v34 = vld [vmem:[%s4141_s2 + $0x104] ss:$8 sps:$4 sm:$0xff]   ;;  %v2906_v37 = vld [vmem:[%s4141_s2 + $0x100] ss:$8 sps:$4 sm:$0xff]   ;;  %v2911_v39 = vld [vmem:[%s4141_s2 + $0x114] ss:$8 sps:$4 sm:$0xff]  }
   0xd   :  { %v3267_v35 = vld [vmem:[%s4142_s0 + $0x8] sm:$0xff]  ;;  %v2909_v40 = vld [vmem:[%s4141_s2 + $0x110] ss:$8 sps:$4 sm:$0xff]   ;;  %v2917_v43 = vld [vmem:[%s4141_s2 + $0x134] ss:$8 sps:$4 sm:$0xff]  }
   0xe   :  { %v2489_v38 = vcombine.high %v3267_v35, %v3267_v35  ;;  %v2914_v41 = vld [vmem:[%s4141_s2 + $0x124] ss:$8 sps:$4 sm:$0xff]   ;;  %v2912_v42 = vld [vmem:[%s4141_s2 + $0x120] ss:$8 sps:$4 sm:$0xff]   ;;  %v2915_v44 = vld [vmem:[%s4141_s2 + $0x130] ss:$8 sps:$4 sm:$0xff]  }
   0xf   :  { %861 = vmatpush1.bf16.msra.mxu0 %v2867_v7  ;;  %v2920_v45 = vld [vmem:[%s4141_s2 + $0x144] ss:$8 sps:$4 sm:$0xff]   ;;  %v2918_v46 = vld [vmem:[%s4141_s2 + $0x140] ss:$8 sps:$4 sm:$0xff]   ;;  %v2923_v47 = vld [vmem:[%s4141_s2 + $0x154] ss:$8 sps:$4 sm:$0xff]   ;;  %v2488_v7 = vcombine.low %v3267_v35, %v3267_v35 }
  0x10   :  { %862 = vmatprep.subr.bf16.mxu0 %v2868_v8  ;;  %v2921_v48 = vld [vmem:[%s4141_s2 + $0x150] ss:$8 sps:$4 sm:$0xff]   ;;  %v2926_v49 = vld [vmem:[%s4141_s2 + $0x164] ss:$8 sps:$4 sm:$0xff]   ;;  %v2924_v50 = vld [vmem:[%s4141_s2 + $0x160] ss:$8 sps:$4 sm:$0xff]  }
  0x11   :  { %v2929_v51 = vld [vmem:[%s4141_s2 + $0x174] ss:$8 sps:$4 sm:$0xff]   ;;  %v2927_v52 = vld [vmem:[%s4141_s2 + $0x170] ss:$8 sps:$4 sm:$0xff]   ;;  %v2932_v53 = vld [vmem:[%s4141_s2 + $0x184] ss:$8 sps:$4 sm:$0xff]  }
  0x12   :  { %v2930_v54 = vld [vmem:[%s4141_s2 + $0x180] ss:$8 sps:$4 sm:$0xff]   ;;  %v2935_v55 = vld [vmem:[%s4141_s2 + $0x194] ss:$8 sps:$4 sm:$0xff]   ;;  %v2933_v56 = vld [vmem:[%s4141_s2 + $0x190] ss:$8 sps:$4 sm:$0xff]  }
  0x13   :  { %863 = vmatpush1.bf16.msra.mxu0 %v2870_v9  ;;  %v2938_v57 = vld [vmem:[%s4141_s2 + $0x1a4] ss:$8 sps:$4 sm:$0xff]   ;;  %v2936_v58 = vld [vmem:[%s4141_s2 + $0x1a0] ss:$8 sps:$4 sm:$0xff]   ;;  %v2941_v59 = vld [vmem:[%s4141_s2 + $0x1b4] ss:$8 sps:$4 sm:$0xff]  }
  0x14   :  { %864 = vmatprep.subr.bf16.mxu0 %v2871_v10  ;;  %v2939_v60 = vld [vmem:[%s4141_s2 + $0x1b0] ss:$8 sps:$4 sm:$0xff]   ;;  %v2944_v61 = vld [vmem:[%s4141_s2 + $0x1c4] ss:$8 sps:$4 sm:$0xff]   ;;  %v2942_v62 = vld [vmem:[%s4141_s2 + $0x1c0] ss:$8 sps:$4 sm:$0xff]  }
  0x15   :  { %v2947_v63 = vld [vmem:[%s4141_s2 + $0x1d4] ss:$8 sps:$4 sm:$0xff]   ;;  %v2945_v0 = vld [vmem:[%s4141_s2 + $0x1d0] ss:$8 sps:$4 sm:$0xff]   ;;  %v2950_v1 = vld [vmem:[%s4141_s2 + $0x1e4] ss:$8 sps:$4 sm:$0xff]  }
  0x16   :  { %v2948_v2 = vld [vmem:[%s4141_s2 + $0x1e0] ss:$8 sps:$4 sm:$0xff]   ;;  %v2953_v3 = vld [vmem:[%s4141_s2 + $0x1f4] ss:$8 sps:$4 sm:$0xff]   ;;  %v2951_v4 = vld [vmem:[%s4141_s2 + $0x1f0] ss:$8 sps:$4 sm:$0xff]  }
  0x17   :  { %865 = vmatpush1.bf16.msra.mxu0 %v2873_v11  ;;  %v2958_v5 = vld [vmem:[%s4141_s2 + $0x204] ss:$8 sps:$4 sm:$0xff]   ;;  %v3370_v6 = vld [vmem:[%s4142_s0 + $0x10] sm:$0xff]  ;;  %v2956_v8 = vld [vmem:[%s4141_s2 + $0x200] ss:$8 sps:$4 sm:$0xff]  }
  0x18   :  { %866 = vmatprep.subr.bf16.mxu0 %v2874_v12  ;;  %v2491_v9 = vcombine.high %v3370_v6, %v3370_v6  ;;  %v2961_v10 = vld [vmem:[%s4141_s2 + $0x214] ss:$8 sps:$4 sm:$0xff]   ;;  %v2959_v11 = vld [vmem:[%s4141_s2 + $0x210] ss:$8 sps:$4 sm:$0xff]   ;;  %v2964_v12 = vld [vmem:[%s4141_s2 + $0x224] ss:$8 sps:$4 sm:$0xff]  }
  0x19   :  { %v3056_v13 = vld [vmem:[%s4143_s4 + $0x40] sm:$0xff]   ;;  %v2977_v35 = vld [vmem:[%s4141_s2 + $0x270] ss:$8 sps:$4 sm:$0xff]  }
  0x1a   :  { %v3057_v14 = vld [vmem:[%s4143_s4] sm:$0xff]   ;;  %2797 = vmatprep.subr.bf16.mxu1 %v3056_v13  ;;  %v3041_v13 = vld [vmem:[%s4141_s2 + $0x3b4] ss:$8 sps:$4 sm:$0xff]  }
  0x1b   :  { %867 = vmatpush1.bf16.msra.mxu0 %v2876_v15  ;;  %v2962_v15 = vld [vmem:[%s4141_s2 + $0x220] ss:$8 sps:$4 sm:$0xff]   ;;  %2798 = vmatpush3.bf16.msra.mxu1 %v3057_v14  ;;  %v3039_v14 = vld [vmem:[%s4141_s2 + $0x3b0] ss:$8 sps:$4 sm:$0xff]  }
  0x1c   :  { %868 = vmatprep.subr.bf16.mxu0 %v2877_v16  ;;  %v3058_v16 = vld [vmem:[%s4143_s4 + $0x48] sm:$0xff]  }
  0x1d   :  { %2799 = vmatprep.subr.bf16.mxu1 %v3058_v16  ;;  %v3042_v16 = vld [vmem:[%s4141_s2 + $0x3c0] ss:$8 sps:$4 sm:$0xff]  }
  0x1f   :  { %869 = vmatpush1.bf16.msra.mxu0 %v2879_v17  ;;  %v3059_v17 = vld [vmem:[%s4143_s4 + $0x8] sm:$0xff]  }
  0x20   :  { %870 = vmatprep.subr.bf16.mxu0 %v2880_v18  ;;  %v3060_v18 = vld [vmem:[%s4143_s4 + $0x50] sm:$0xff]   ;;  %2800 = vmatpush3.bf16.msra.mxu1 %v3059_v17 }
  0x21   :  { %2801 = vmatprep.subr.bf16.mxu1 %v3060_v18  ;;  %v3047_v17 = vld [vmem:[%s4141_s2 + $0x3d4] ss:$8 sps:$4 sm:$0xff]   ;;  %v3045_v18 = vld [vmem:[%s4141_s2 + $0x3d0] ss:$8 sps:$4 sm:$0xff]  }
  0x23   :  { %871 = vmatpush1.bf16.msra.mxu0 %v2882_v19  ;;  %v2967_v19 = vld [vmem:[%s4141_s2 + $0x234] ss:$8 sps:$4 sm:$0xff]  }
  0x24   :  { %872 = vmatprep.subr.bf16.mxu0 %v2883_v20  ;;  %v2965_v20 = vld [vmem:[%s4141_s2 + $0x230] ss:$8 sps:$4 sm:$0xff]  }
  0x27   :  { %873 = vmatpush1.bf16.msra.mxu0 %v2885_v21  ;;  %v3061_v21 = vld [vmem:[%s4143_s4 + $0x10] sm:$0xff]  }
  0x28   :  { %874 = vmatprep.subr.bf16.mxu0 %v2886_v22  ;;  %v3062_v22 = vld [vmem:[%s4143_s4 + $0x58] sm:$0xff]   ;;  %2802 = vmatpush3.bf16.msra.mxu1 %v3061_v21 }
  0x29   :  { %2803 = vmatprep.subr.bf16.mxu1 %v3062_v22  ;;  %v3053_v21 = vld [vmem:[%s4141_s2 + $0x3f4] ss:$8 sps:$4 sm:$0xff]   ;;  %v3051_v22 = vld [vmem:[%s4141_s2 + $0x3f0] ss:$8 sps:$4 sm:$0xff]  }
  0x2b   :  { %875 = vmatpush1.bf16.msra.mxu0 %v2888_v23  ;;  %v2970_v23 = vld [vmem:[%s4141_s2 + $0x244] ss:$8 sps:$4 sm:$0xff]  }
  0x2c   :  { %876 = vmatprep.subr.bf16.mxu0 %v2889_v24  ;;  %v2968_v24 = vld [vmem:[%s4141_s2 + $0x240] ss:$8 sps:$4 sm:$0xff]  }
  0x2f   :  { %877 = vmatpush1.bf16.msra.mxu0 %v2891_v25  ;;  %v2973_v25 = vld [vmem:[%s4141_s2 + $0x254] ss:$8 sps:$4 sm:$0xff]  }
  0x30   :  { %878 = vmatprep.subr.bf16.mxu0 %v2892_v26  ;;  %v3063_v26 = vld [vmem:[%s4143_s4 + $0x18] sm:$0xff]  }
  0x31   :  { %2804 = vmatpush3.bf16.msra.mxu1 %v3063_v26  ;;  %v3070_v26 = vld [vmem:[%s4143_s4 + $0x78] sm:$0xff]  }
  0x33   :  { %879 = vmatpush1.bf16.msra.mxu0 %v2894_v27  ;;  %v3064_v27 = vld [vmem:[%s4143_s4 + $0x60] sm:$0xff]  }
  0x34   :  { %880 = vmatprep.subr.bf16.mxu0 %v2895_v28  ;;  %v3065_v28 = vld [vmem:[%s4143_s4 + $0x20] sm:$0xff]   ;;  %2805 = vmatprep.subr.bf16.mxu1 %v3064_v27  ;;  %v3071_v27 = vld [vmem:[%s4143_s4 + $0x38] sm:$0xff]  }
  0x35   :  { %2806 = vmatpush3.bf16.msra.mxu1 %v3065_v28  ;;  %v3072_v28 = vld [vmem:[%s4144_s6 + $0x40] sm:$0xff]  }
  0x37   :  { %881 = vmatpush1.bf16.msra.mxu0 %v2897_v29  ;;  %v2971_v29 = vld [vmem:[%s4141_s2 + $0x250] ss:$8 sps:$4 sm:$0xff]  }
  0x38   :  { %882 = vmatprep.subr.bf16.mxu0 %v2898_v30  ;;  %v3066_v30 = vld [vmem:[%s4143_s4 + $0x68] sm:$0xff]  }
  0x39   :  { %2807 = vmatprep.subr.bf16.mxu1 %v3066_v30 }
  0x3b   :  { %883 = vmatpush1.bf16.msra.mxu0 %v2900_v31  ;;  %v2976_v31 = vld [vmem:[%s4141_s2 + $0x264] ss:$8 sps:$4 sm:$0xff]  }
  0x3c   :  { %884 = vmatprep.subr.bf16.mxu0 %v2901_v32  ;;  %v3067_v32 = vld [vmem:[%s4143_s4 + $0x28] sm:$0xff]  }
  0x3d   :  { %2808 = vmatpush3.bf16.msra.mxu1 %v3067_v32  ;;  %v174_v32 = vld [vmem:[%s4145_s3] sm:$0x3] }
  0x3f   :  { %885 = vmatpush1.bf16.msra.mxu0 %v2903_v33  ;;  %v2974_v33 = vld [vmem:[%s4141_s2 + $0x260] ss:$8 sps:$4 sm:$0xff]  }
  0x40   :  { %895 = vmatprep.subr.bf16.mxu0 %v2908_v34  ;;  %v2979_v34 = vld [vmem:[%s4141_s2 + $0x274] ss:$8 sps:$4 sm:$0xff]  }
  0x42   :  { %887 = vmatmul.mubr.bf16.vlgmr.msra.gmra.mrb[0].mxu0 %v2486_v36  ;;  %v2982_v36 = vld [vmem:[%s4141_s2 + $0x284] ss:$8 sps:$4 sm:$0xff]  }
  0x43   :  { %896 = vmatpush1.bf16.msra.mxu0 %v2906_v37  ;;  %927 = vmatprep.mubr.bf16.mxu0 %v2489_v38  ;;  %v2980_v37 = vld [vmem:[%s4141_s2 + $0x280] ss:$8 sps:$4 sm:$0xff]   ;;  %v2985_v38 = vld [vmem:[%s4141_s2 + $0x294] ss:$8 sps:$4 sm:$0xff]  }
  0x44   :  { %897 = vmatprep.subr.bf16.mxu0 %v2911_v39  ;;  %v2983_v39 = vld [vmem:[%s4141_s2 + $0x290] ss:$8 sps:$4 sm:$0xff]  }
  0x47   :  { %898 = vmatpush1.bf16.msra.mxu0 %v2909_v40  ;;  %v2988_v40 = vld [vmem:[%s4141_s2 + $0x2a4] ss:$8 sps:$4 sm:$0xff]  }
  0x48   :  { %899 = vmatprep.subr.bf16.mxu0 %v2914_v41  ;;  %v2986_v41 = vld [vmem:[%s4141_s2 + $0x2a0] ss:$8 sps:$4 sm:$0xff]  }
  0x4b   :  { %900 = vmatpush1.bf16.msra.mxu0 %v2912_v42  ;;  %v2991_v42 = vld [vmem:[%s4141_s2 + $0x2b4] ss:$8 sps:$4 sm:$0xff]  }
  0x4c   :  { %901 = vmatprep.subr.bf16.mxu0 %v2917_v43  ;;  %v2989_v43 = vld [vmem:[%s4141_s2 + $0x2b0] ss:$8 sps:$4 sm:$0xff]  }
  0x4f   :  { %902 = vmatpush1.bf16.msra.mxu0 %v2915_v44  ;;  %v2994_v44 = vld [vmem:[%s4141_s2 + $0x2c4] ss:$8 sps:$4 sm:$0xff]  }
  0x50   :  { %903 = vmatprep.subr.bf16.mxu0 %v2920_v45  ;;  %v2992_v45 = vld [vmem:[%s4141_s2 + $0x2c0] ss:$8 sps:$4 sm:$0xff]  }
  0x53   :  { %904 = vmatpush1.bf16.msra.mxu0 %v2918_v46  ;;  %v2997_v46 = vld [vmem:[%s4141_s2 + $0x2d4] ss:$8 sps:$4 sm:$0xff]  }
  0x54   :  { %905 = vmatprep.subr.bf16.mxu0 %v2923_v47  ;;  %v2995_v47 = vld [vmem:[%s4141_s2 + $0x2d0] ss:$8 sps:$4 sm:$0xff]  }
  0x57   :  { %906 = vmatpush1.bf16.msra.mxu0 %v2921_v48  ;;  %v3000_v48 = vld [vmem:[%s4141_s2 + $0x2e4] ss:$8 sps:$4 sm:$0xff]  }
  0x58   :  { %907 = vmatprep.subr.bf16.mxu0 %v2926_v49  ;;  %v2998_v49 = vld [vmem:[%s4141_s2 + $0x2e0] ss:$8 sps:$4 sm:$0xff]  }
  0x5b   :  { %908 = vmatpush1.bf16.msra.mxu0 %v2924_v50  ;;  %v3003_v50 = vld [vmem:[%s4141_s2 + $0x2f4] ss:$8 sps:$4 sm:$0xff]  }
  0x5c   :  { %909 = vmatprep.subr.bf16.mxu0 %v2929_v51  ;;  %v3001_v51 = vld [vmem:[%s4141_s2 + $0x2f0] ss:$8 sps:$4 sm:$0xff]  }
  0x5f   :  { %910 = vmatpush1.bf16.msra.mxu0 %v2927_v52  ;;  %v3008_v52 = vld [vmem:[%s4141_s2 + $0x304] ss:$8 sps:$4 sm:$0xff]  }
  0x60   :  { %911 = vmatprep.subr.bf16.mxu0 %v2932_v53  ;;  %v3511_v53 = vld [vmem:[%s4142_s0 + $0x18] sm:$0xff] }
  0x63   :  { %912 = vmatpush1.bf16.msra.mxu0 %v2930_v54  ;;  %v2490_v54 = vcombine.low %v3370_v6, %v3370_v6  ;;  %v3027_v6 = vld [vmem:[%s4141_s2 + $0x370] ss:$8 sps:$4 sm:$0xff]  }
  0x64   :  { %913 = vmatprep.subr.bf16.mxu0 %v2935_v55  ;;  %v3006_v55 = vld [vmem:[%s4141_s2 + $0x300] ss:$8 sps:$4 sm:$0xff]  }
  0x67   :  { %914 = vmatpush1.bf16.msra.mxu0 %v2933_v56  ;;  %v2493_v56 = vcombine.high %v3511_v53, %v3511_v53 }
  0x68   :  { %915 = vmatprep.subr.bf16.mxu0 %v2938_v57  ;;  %v3011_v57 = vld [vmem:[%s4141_s2 + $0x314] ss:$8 sps:$4 sm:$0xff]  }
  0x6b   :  { %916 = vmatpush1.bf16.msra.mxu0 %v2936_v58  ;;  %v3009_v58 = vld [vmem:[%s4141_s2 + $0x310] ss:$8 sps:$4 sm:$0xff]  }
  0x6c   :  { %917 = vmatprep.subr.bf16.mxu0 %v2941_v59  ;;  %v3014_v59 = vld [vmem:[%s4141_s2 + $0x324] ss:$8 sps:$4 sm:$0xff]  }
  0x6f   :  { %918 = vmatpush1.bf16.msra.mxu0 %v2939_v60  ;;  %v3012_v60 = vld [vmem:[%s4141_s2 + $0x320] ss:$8 sps:$4 sm:$0xff]  }
  0x70   :  { %919 = vmatprep.subr.bf16.mxu0 %v2944_v61  ;;  %v3017_v61 = vld [vmem:[%s4141_s2 + $0x334] ss:$8 sps:$4 sm:$0xff]  }
  0x73   :  { %920 = vmatpush1.bf16.msra.mxu0 %v2942_v62  ;;  %v3015_v62 = vld [vmem:[%s4141_s2 + $0x330] ss:$8 sps:$4 sm:$0xff]  }
  0x74   :  { %921 = vmatprep.subr.bf16.mxu0 %v2947_v63  ;;  %v3020_v63 = vld [vmem:[%s4141_s2 + $0x344] ss:$8 sps:$4 sm:$0xff]  }
  0x77   :  { %922 = vmatpush1.bf16.msra.mxu0 %v2945_v0  ;;  %v3018_v0 = vld [vmem:[%s4141_s2 + $0x340] ss:$8 sps:$4 sm:$0xff]  }
  0x78   :  { %923 = vmatprep.subr.bf16.mxu0 %v2950_v1  ;;  %v3023_v1 = vld [vmem:[%s4141_s2 + $0x354] ss:$8 sps:$4 sm:$0xff]  }
  0x7b   :  { %924 = vmatpush1.bf16.msra.mxu0 %v2948_v2  ;;  %v3021_v2 = vld [vmem:[%s4141_s2 + $0x350] ss:$8 sps:$4 sm:$0xff]  }
  0x7c   :  { %925 = vmatprep.subr.bf16.mxu0 %v2953_v3  ;;  %v3026_v3 = vld [vmem:[%s4141_s2 + $0x364] ss:$8 sps:$4 sm:$0xff]  }
  0x7f   :  { %926 = vmatpush1.bf16.msra.mxu0 %v2951_v4  ;;  %v3024_v4 = vld [vmem:[%s4141_s2 + $0x360] ss:$8 sps:$4 sm:$0xff]  }
  0x80   :  { %936 = vmatprep.subr.bf16.mxu0 %v2958_v5  ;;  %v3029_v5 = vld [vmem:[%s4141_s2 + $0x374] ss:$8 sps:$4 sm:$0xff]  }
  0x82   :  { %928 = vmatmul.mubr.bf16.vlgmr.msra.gmra.mrb[0].mxu0 %v2488_v7  ;;  %v3032_v7 = vld [vmem:[%s4141_s2 + $0x384] ss:$8 sps:$4 sm:$0xff]  }
  0x83   :  { %937 = vmatpush1.bf16.msra.mxu0 %v2956_v8  ;;  %968 = vmatprep.mubr.bf16.mxu0 %v2491_v9  ;;  %v3030_v8 = vld [vmem:[%s4141_s2 + $0x380] ss:$8 sps:$4 sm:$0xff]   ;;  %v3035_v9 = vld [vmem:[%s4141_s2 + $0x394] ss:$8 sps:$4 sm:$0xff]  }
  0x84   :  { %938 = vmatprep.subr.bf16.mxu0 %v2961_v10  ;;  %v3033_v10 = vld [vmem:[%s4141_s2 + $0x390] ss:$8 sps:$4 sm:$0xff]  }
  0x87   :  { %939 = vmatpush1.bf16.msra.mxu0 %v2959_v11  ;;  %v3038_v11 = vld [vmem:[%s4141_s2 + $0x3a4] ss:$8 sps:$4 sm:$0xff]  }
  0x88   :  { %940 = vmatprep.subr.bf16.mxu0 %v2964_v12  ;;  %v3036_v12 = vld [vmem:[%s4141_s2 + $0x3a0] ss:$8 sps:$4 sm:$0xff]  }
  0x8b   :  { %941 = vmatpush1.bf16.msra.mxu0 %v2962_v15  ;;  %v3044_v15 = vld [vmem:[%s4141_s2 + $0x3c4] ss:$8 sps:$4 sm:$0xff]  }
  0x8c   :  { %942 = vmatprep.subr.bf16.mxu0 %v2967_v19  ;;  %v3050_v19 = vld [vmem:[%s4141_s2 + $0x3e4] ss:$8 sps:$4 sm:$0xff]  }
  0x8f   :  { %943 = vmatpush1.bf16.msra.mxu0 %v2965_v20  ;;  %v3048_v20 = vld [vmem:[%s4141_s2 + $0x3e0] ss:$8 sps:$4 sm:$0xff]  }
  0x90   :  { %944 = vmatprep.subr.bf16.mxu0 %v2970_v23  ;;  %v2492_v23 = vcombine.low %v3511_v53, %v3511_v53  ;;  %v3080_v53 = vld [vmem:[%s4144_s6 + $0x60] sm:$0xff]  }
  0x93   :  { %945 = vmatpush1.bf16.msra.mxu0 %v2968_v24  ;;  %v3068_v24 = vld [vmem:[%s4143_s4 + $0x70] sm:$0xff]  }
  0x94   :  { %946 = vmatprep.subr.bf16.mxu0 %v2973_v25  ;;  %v3069_v25 = vld [vmem:[%s4143_s4 + $0x30] sm:$0xff]   ;;  %2809 = vmatprep.subr.bf16.mxu1 %v3068_v24 }
  0x95   :  { %2810 = vmatpush3.bf16.msra.mxu1 %v3069_v25 }
  0x96   :  { %2811 = vmatprep.subr.bf16.mxu1 %v3070_v26  ;;  %v1507_v26 = vld [vmem:[%s4147_s10 + $0x158] sm:$0xff] }
  0x97   :  { %947 = vmatpush1.bf16.msra.mxu0 %v2971_v29  ;;  %v176_v29 = vlaneseq }
  0x98   :  { %948 = vmatprep.subr.bf16.mxu0 %v2976_v31 }
  0x99   :  { %2812 = vmatpush3.bf16.msra.mxu1 %v3071_v27  ;;  %v3627_v30 = vshrl.u32 %v176_v29, 7  ;;  %v1511_v27 = vld [vmem:[%s4147_s10 + $0x178] sm:$0xff] }
  0x9a   :  { %2819 = vmatprep.subr.bf16.mxu1 %v3072_v28  ;;  %v2707_v28 = vcombine.low %v1507_v26, %v1511_v27  ;;  %v2708_v29 = vcombine.high %v1507_v26, %v1511_v27 }
  0x9b   :  { %949 = vmatpush1.bf16.msra.mxu0 %v2974_v33  ;;  %v3630_v31 = vsub.s32 0, %v3627_v30  ;;  %v3636_v33 = vsub.s32 1, %v3627_v30 }
  0x9c   :  { %950 = vmatprep.subr.bf16.mxu0 %v2979_v34 }
  0x9d   :  { %v179_v34 = vrot.slane %v174_v32, %v3630_v31 }
  0x9f   :  { %951 = vmatpush1.bf16.msra.mxu0 %v2977_v35  ;;  %v183_v35 = vrot.slane %v174_v32, %v3636_v33  ;;  %v1515_v32 = vld [vmem:[%s4147_s10 + $0x198] sm:$0xff] }
  0xa0   :  { %952 = vmatprep.subr.bf16.mxu0 %v2982_v36 }
  0xa3   :  { %953 = vmatpush1.bf16.msra.mxu0 %v2980_v37 }
  0xa4   :  { %954 = vmatprep.subr.bf16.mxu0 %v2985_v38 }
  0xa7   :  { %955 = vmatpush1.bf16.msra.mxu0 %v2983_v39 }
  0xa8   :  { %956 = vmatprep.subr.bf16.mxu0 %v2988_v40 }
  0xab   :  { %957 = vmatpush1.bf16.msra.mxu0 %v2986_v41 }
  0xac   :  { %958 = vmatprep.subr.bf16.mxu0 %v2991_v42 }
  0xaf   :  { %959 = vmatpush1.bf16.msra.mxu0 %v2989_v43 }
  0xb0   :  { %960 = vmatprep.subr.bf16.mxu0 %v2994_v44 }
  0xb3   :  { %961 = vmatpush1.bf16.msra.mxu0 %v2992_v45  ;;  %v3073_v45 = vld [vmem:[%s4144_s6] sm:$0xff]  }
  0xb4   :  { %962 = vmatprep.subr.bf16.mxu0 %v2997_v46 }
  0xb7   :  { %963 = vmatpush1.bf16.msra.mxu0 %v2995_v47  ;;  %v3074_v47 = vld [vmem:[%s4144_s6 + $0x48] sm:$0xff]  }
  0xb8   :  { %964 = vmatprep.subr.bf16.mxu0 %v3000_v48  ;;  %v3075_v48 = vld [vmem:[%s4144_s6 + $0x8] sm:$0xff]  }
  0xbb   :  { %965 = vmatpush1.bf16.msra.mxu0 %v2998_v49  ;;  %v3076_v49 = vld [vmem:[%s4144_s6 + $0x50] sm:$0xff]  }
  0xbc   :  { %966 = vmatprep.subr.bf16.mxu0 %v3003_v50  ;;  %v3077_v50 = vld [vmem:[%s4144_s6 + $0x10] sm:$0xff]  }
  0xbf   :  { %967 = vmatpush1.bf16.msra.mxu0 %v3001_v51  ;;  %v3078_v51 = vld [vmem:[%s4144_s6 + $0x58] sm:$0xff]  }
  0xc0   :  { %977 = vmatprep.subr.bf16.mxu0 %v3008_v52  ;;  %v3079_v52 = vld [vmem:[%s4144_s6 + $0x18] sm:$0xff]  }
  0xc2   :  { %969 = vmatmul.mubr.bf16.vlgmr.msra.gmra.mrb[0].mxu0 %v2490_v54  ;;  %v3081_v54 = vld [vmem:[%s4144_s6 + $0x20] sm:$0xff]  }
  0xc3   :  { %978 = vmatpush1.bf16.msra.mxu0 %v3006_v55  ;;  %1009 = vmatprep.mubr.bf16.mxu0 %v2493_v56  ;;  %v3082_v55 = vld [vmem:[%s4144_s6 + $0x68] sm:$0xff]  }
  0xc4   :  { %979 = vmatprep.subr.bf16.mxu0 %v3011_v57  ;;  %v3083_v56 = vld [vmem:[%s4144_s6 + $0x28] sm:$0xff]   ;;  %v3084_v57 = vld [vmem:[%s4144_s6 + $0x70] sm:$0xff]  }
  0xc7   :  { %980 = vmatpush1.bf16.msra.mxu0 %v3009_v58  ;;  %v3085_v58 = vld [vmem:[%s4144_s6 + $0x30] sm:$0xff]  }
  0xc8   :  { %981 = vmatprep.subr.bf16.mxu0 %v3014_v59  ;;  %v3086_v59 = vld [vmem:[%s4144_s6 + $0x78] sm:$0xff]  }
  0xcb   :  { %982 = vmatpush1.bf16.msra.mxu0 %v3012_v60  ;;  %v3087_v60 = vld [vmem:[%s4144_s6 + $0x38] sm:$0xff]  }
  0xcc   :  { %983 = vmatprep.subr.bf16.mxu0 %v3017_v61  ;;  %v3088_v61 = vld [vmem:[%s4146_s8] ss:$8 sps:$4 sm:$0xff]  }
  0xcf   :  { %984 = vmatpush1.bf16.msra.mxu0 %v3015_v62  ;;  %v3096_v62 = vmov 0  }
  0xd0   :  { %985 = vmatprep.subr.bf16.mxu0 %v3020_v63  ;;  %v3090_v63 = vld [vmem:[%s4146_s8 + $0x4] ss:$8 sps:$4 sm:$0xff]  }
  0xd3   :  { %986 = vmatpush1.bf16.msra.mxu0 %v3018_v0  ;;  %v3093_v0 = vld [vmem:[%s4146_s8 + $0x14] ss:$8 sps:$4 sm:$0xff]  }
  0xd4   :  { %987 = vmatprep.subr.bf16.mxu0 %v3023_v1  ;;  %v3091_v1 = vld [vmem:[%s4146_s8 + $0x10] ss:$8 sps:$4 sm:$0xff]  }
  0xd7   :  { %988 = vmatpush1.bf16.msra.mxu0 %v3021_v2  ;;  %v3700_v2 = vld [vmem:[%s4147_s10] sm:$0xff] }
  0xd8   :  { %989 = vmatprep.subr.bf16.mxu0 %v3026_v3  ;;  %v3705_v3 = vld [vmem:[%s4147_s10 + $0x20] sm:$0xff] }
  0xdb   :  { %990 = vmatpush1.bf16.msra.mxu0 %v3024_v4  ;;  %v1467_v4 = vld [vmem:[%s4147_s10 + $0x18] sm:$0xff] }
  0xdc   :  { %991 = vmatprep.subr.bf16.mxu0 %v3029_v5  ;;  %v2661_v5 = vcombine.low %v3700_v2, %v3705_v3 }
  0xdf   :  { %992 = vmatpush1.bf16.msra.mxu0 %v3027_v6  ;;  %v2662_v6 = vcombine.high %v3700_v2, %v3705_v3  ;;  %v1496_v2 = vld [vmem:[%s4147_s10 + $0x100] sm:$0xff] }
  0xe0   :  { %993 = vmatprep.subr.bf16.mxu0 %v3032_v7  ;;  %v1471_v7 = vld [vmem:[%s4147_s10 + $0x38] sm:$0xff]  ;;  %v1500_v3 = vld [vmem:[%s4147_s10 + $0x120] sm:$0xff] }
  0xe3   :  { %994 = vmatpush1.bf16.msra.mxu0 %v3030_v8  ;;  %v2667_v8 = vcombine.low %v1467_v4, %v1471_v7 }
  0xe4   :  { %995 = vmatprep.subr.bf16.mxu0 %v3035_v9  ;;  %v2668_v9 = vcombine.high %v1467_v4, %v1471_v7 }
  0xe7   :  { %996 = vmatpush1.bf16.msra.mxu0 %v3033_v10  ;;  %v1475_v10 = vld [vmem:[%s4147_s10 + $0x58] sm:$0xff] }
  0xe8   :  { %997 = vmatprep.subr.bf16.mxu0 %v3038_v11  ;;  %v1479_v11 = vld [vmem:[%s4147_s10 + $0x78] sm:$0xff] }
  0xeb   :  { %998 = vmatpush1.bf16.msra.mxu0 %v3036_v12  ;;  %v2675_v12 = vcombine.low %v1475_v10, %v1479_v11 }
  0xec   :  { %999 = vmatprep.subr.bf16.mxu0 %v3041_v13  ;;  %v2676_v13 = vcombine.high %v1475_v10, %v1479_v11  ;;  %v2639_v10 = vld [vmem:[%s4148_s7] ss:$0 sm:$0xff] }
  0xef   :  { %1000 = vmatpush1.bf16.msra.mxu0 %v3039_v14  ;;  %v1483_v14 = vld [vmem:[%s4147_s10 + $0x98] sm:$0xff] }
  0xf0   :  { %1001 = vmatprep.subr.bf16.mxu0 %v3044_v15  ;;  %v1487_v15 = vld [vmem:[%s4147_s10 + $0xb8] sm:$0xff] }
  0xf3   :  { %1002 = vmatpush1.bf16.msra.mxu0 %v3042_v16  ;;  %v2683_v16 = vcombine.low %v1483_v14, %v1487_v15 }
  0xf4   :  { %1003 = vmatprep.subr.bf16.mxu0 %v3047_v17  ;;  %v2684_v17 = vcombine.high %v1483_v14, %v1487_v15 }
  0xf7   :  { %1004 = vmatpush1.bf16.msra.mxu0 %v3045_v18  ;;  %v1491_v18 = vld [vmem:[%s4147_s10 + $0xd8] sm:$0xff] }
  0xf8   :  { %1005 = vmatprep.subr.bf16.mxu0 %v3050_v19  ;;  %v1495_v19 = vld [vmem:[%s4147_s10 + $0xf8] sm:$0xff] }
  0xfb   :  { %1006 = vmatpush1.bf16.msra.mxu0 %v3048_v20  ;;  %v2691_v20 = vcombine.low %v1491_v18, %v1495_v19 }
  0xfc   :  { %1007 = vmatprep.subr.bf16.mxu0 %v3053_v21  ;;  %v2692_v21 = vcombine.high %v1491_v18, %v1495_v19  ;;  %v2622_v18 = vld [vmem:[%s4149_s5] ss:$0 sm:$0xff] }
  0xfd   :  { %v1372_v19 = vld [vmem:[%s4150_s1] sm:$0xff] }
  0xff   :  { %1008 = vmatpush1.bf16.msra.mxu0 %v3051_v22  ;;  %v1499_v22 = vld [vmem:[%s4147_s10 + $0x118] sm:$0xff] }
 0x100   :  { %2397 = vmatprep.subr.bf16.mxu0 %v2668_v9 }
 0x102   :  { %1010 = vmatmul.mubr.bf16.vlgmr.msra.gmra.mrb[0].mxu0 %v2492_v23  ;;  %v1503_v23 = vld [vmem:[%s4147_s10 + $0x138] sm:$0xff] }
 0x103   :  { %2398 = vmatpush1.bf16.msra.mxu0 %v2667_v8  ;;  %v2699_v24 = vcombine.low %v1499_v22, %v1503_v23  ;;  %v2700_v25 = vcombine.high %v1499_v22, %v1503_v23  ;;  %v1472_v23 = vld [vmem:[%s4147_s10 + $0x40] sm:$0xff] }
 0x104   :  { %2399 = vmatprep.subr.bf16.mxu0 %v2676_v13 }
 0x107   :  { %2400 = vmatpush1.bf16.msra.mxu0 %v2675_v12 }
 0x108   :  { %2401 = vmatprep.subr.bf16.mxu0 %v2684_v17 }
 0x10b   :  { %2402 = vmatpush1.bf16.msra.mxu0 %v2683_v16 }
 0x10c   :  { %2403 = vmatprep.subr.bf16.mxu0 %v2692_v21 }
 0x10f   :  { %2404 = vmatpush1.bf16.msra.mxu0 %v2691_v20 }
 0x110   :  { %2405 = vmatprep.subr.bf16.mxu0 %v2700_v25 }
 0x113   :  { %2406 = vmatpush1.bf16.msra.mxu0 %v2699_v24  ;;  %v1476_v24 = vld [vmem:[%s4147_s10 + $0x60] sm:$0xff] }
 0x114   :  { %2407 = vmatprep.subr.bf16.mxu0 %v2708_v29  ;;  %v2670_v27 = vcombine.high %v1472_v23, %v1476_v24  ;;  %v1484_v29 = vld [vmem:[%s4147_s10 + $0xa0] sm:$0xff] }
 0x117   :  { %2408 = vmatpush1.bf16.msra.mxu0 %v2707_v28  ;;  %v1480_v28 = vld [vmem:[%s4147_s10 + $0x80] sm:$0xff] }
 0x1d5   :  { %v1011_v36 = vpop.f32.mrb[0].mxu0 }
 0x1d6   :  { %v2841_v37 = vadd.f32 %v1011_v36, %v179_v34  ;;  %v1013_v38 = vpop.f32.mrb[1].mxu0  ;;  %v1519_v34 = vld [vmem:[%s4147_s10 + $0x1b8] sm:$0xff] }
 0x1d7   :  { %v2842_v39 = vadd.f32 %v1013_v38, %v183_v35  ;;  %v1015_v40 = vpop.f32.mrb[2].mxu0  ;;  %v2715_v35 = vcombine.low %v1515_v32, %v1519_v34  ;;  %v2716_v36 = vcombine.high %v1515_v32, %v1519_v34  ;;  %v1527_v38 = vld [vmem:[%s4147_s10 + $0x1f8] sm:$0xff]  ;;  %v2669_v32 = vcombine.low %v1472_v23, %v1476_v24  ;;  %v1584_v24 = vld [vmem:[%s4147_s10 + $0x3c0] sm:$0xff] }
 0x1d8   :  { %v1018_v41 = vmax.f32 %v2841_v37, 0.0  ;;  %v1016_v42 = vpop.f32.mrb[3].mxu0  ;;  %v1523_v37 = vld [vmem:[%s4147_s10 + $0x1d8] sm:$0xff]  ;;  %v2678_v34 = vcombine.high %v1480_v28, %v1484_v29 }
 0x1d9   :  { %v1019_v43 = vmax.f32 %v2842_v39, 0.0  ;;  %2409 = vmatprep.subr.bf16.mxu0 %v2716_v36  ;;  %v2723_v39 = vcombine.low %v1523_v37, %v1527_v38  ;;  %v2724_v40 = vcombine.high %v1523_v37, %v1527_v38  ;;  %v1535_v42 = vld [vmem:[%s4147_s10 + $0x238] sm:$0xff]  ;;  %v1492_v36 = vld [vmem:[%s4147_s10 + $0xe0] sm:$0xff]  ;;  %v2677_v37 = vcombine.low %v1480_v28, %v1484_v29 }
 0x1da   :  { %v1020_v46 = vpack.c.bf16 %v1018_v41, %v1018_v41  ;;  %2410 = vmatpush1.bf16.msra.mxu0 %v2715_v35  ;;  %v1531_v41 = vld [vmem:[%s4147_s10 + $0x218] sm:$0xff]  ;;  %v1488_v35 = vld [vmem:[%s4147_s10 + $0xc0] sm:$0xff] }
 0x1db   :  { %v1021_v44 = vpack.c.bf16 %v1019_v43, %v1019_v43  ;;  %2411 = vmatprep.subr.bf16.mxu0 %v2724_v40  ;;  %v2731_v43 = vcombine.low %v1531_v41, %v1535_v42  ;;  %v2686_v38 = vcombine.high %v1488_v35, %v1492_v36  ;;  %v1504_v40 = vld [vmem:[%s4147_s10 + $0x140] sm:$0xff]  ;;  %v1591_v28 = vld [vmem:[%s4147_s10 + $0x3f8] sm:$0xff] }
 0x1dd   :  { %1189 = vmatprep.mubr.bf16.mxu1 %v1021_v44 }
 0x1de   :  { %1190 = vmatmul.mubr.bf16.vlgmr.msra.gmra.mrb[0].mxu1 %v1020_v46  ;;  %2412 = vmatpush1.bf16.msra.mxu0 %v2723_v39  ;;  %v2694_v39 = vcombine.high %v1496_v2, %v1500_v3 }
 0x1df   :  { %2820 = vmatpush3.bf16.msra.mxu1 %v3073_v45  ;;  %1364 = vmatprep.mubr.bf16.mxu1 %v1021_v44  ;;  %v2732_v44 = vcombine.high %v1531_v41, %v1535_v42  ;;  %v1539_v45 = vld [vmem:[%s4147_s10 + $0x258] sm:$0xff]  ;;  %v1508_v41 = vld [vmem:[%s4147_s10 + $0x160] sm:$0xff]  ;;  %v2693_v42 = vcombine.low %v1496_v2, %v1500_v3 }
 0x1e0   :  { %2821 = vmatprep.subr.bf16.mxu1 %v3074_v47  ;;  %v1383_v2 = vld [vmem:[%s4151_s9] sm:$0x3] }
 0x1e1   :  { %2413 = vmatprep.subr.bf16.mxu0 %v2732_v44  ;;  %v1512_v44 = vld [vmem:[%s4147_s10 + $0x180] sm:$0xff]  ;;  %v1388_v3 = vrot.slane %v1383_v2, %v3630_v31 }
 0x1e2   :  { %2414 = vmatpush1.bf16.msra.mxu0 %v2731_v43  ;;  %v2702_v43 = vcombine.high %v1504_v40, %v1508_v41 }
 0x1e3   :  { %2822 = vmatpush3.bf16.msra.mxu1 %v3075_v48 }
 0x1e4   :  { %2823 = vmatprep.subr.bf16.mxu1 %v3076_v49  ;;  %v1547_v49 = vld [vmem:[%s4147_s10 + $0x298] sm:$0xff] }
 0x1e7   :  { %2824 = vmatpush3.bf16.msra.mxu1 %v3077_v50  ;;  %v1551_v50 = vld [vmem:[%s4147_s10 + $0x2b8] sm:$0xff] }
 0x1e8   :  { %2825 = vmatprep.subr.bf16.mxu1 %v3078_v51  ;;  %v2747_v51 = vcombine.low %v1547_v49, %v1551_v50 }
 0x1eb   :  { %2826 = vmatpush3.bf16.msra.mxu1 %v3079_v52  ;;  %v2748_v52 = vcombine.high %v1547_v49, %v1551_v50  ;;  %v1524_v49 = vld [vmem:[%s4147_s10 + $0x1e0] sm:$0xff] }
 0x1ec   :  { %2827 = vmatprep.subr.bf16.mxu1 %v3080_v53  ;;  %v1555_v53 = vld [vmem:[%s4147_s10 + $0x2d8] sm:$0xff] }
 0x1ef   :  { %2828 = vmatpush3.bf16.msra.mxu1 %v3081_v54  ;;  %v1559_v54 = vld [vmem:[%s4147_s10 + $0x2f8] sm:$0xff] }
 0x1f0   :  { %2829 = vmatprep.subr.bf16.mxu1 %v3082_v55  ;;  %v2755_v55 = vcombine.low %v1555_v53, %v1559_v54 }
 0x1f3   :  { %2830 = vmatpush3.bf16.msra.mxu1 %v3083_v56  ;;  %v2756_v56 = vcombine.high %v1555_v53, %v1559_v54  ;;  %v1532_v53 = vld [vmem:[%s4147_s10 + $0x220] sm:$0xff] }
 0x1f4   :  { %2831 = vmatprep.subr.bf16.mxu1 %v3084_v57  ;;  %v1563_v57 = vld [vmem:[%s4147_s10 + $0x318] sm:$0xff] }
 0x1f7   :  { %2832 = vmatpush3.bf16.msra.mxu1 %v3085_v58  ;;  %v1567_v58 = vld [vmem:[%s4147_s10 + $0x338] sm:$0xff] }
 0x1f8   :  { %2833 = vmatprep.subr.bf16.mxu1 %v3086_v59  ;;  %v2763_v59 = vcombine.low %v1563_v57, %v1567_v58 }
 0x1fb   :  { %2834 = vmatpush3.bf16.msra.mxu1 %v3087_v60  ;;  %v2764_v60 = vcombine.high %v1563_v57, %v1567_v58  ;;  %v1540_v57 = vld [vmem:[%s4147_s10 + $0x260] sm:$0xff] }
 0x1fc   :  { %1419 = vmatprep.subr.bf16.mxu1 %v3090_v63 }
 0x1fe   :  { %1365 = vmatmul.mubr.bf16.vlgmr.msra.gmra.mrb[4].mxu1 %v1020_v46  ;;  %v1543_v46 = vld [vmem:[%s4147_s10 + $0x278] sm:$0xff] }
 0x1ff   :  { %1451 = vmatprep.mubr.bf16.mxu1 %v3096_v62  ;;  %1420 = vmatpush1.bf16.msra.mxu1 %v3088_v61  ;;  %v2739_v47 = vcombine.low %v1539_v45, %v1543_v46  ;;  %v2740_v48 = vcombine.high %v1539_v45, %v1543_v46  ;;  %v1571_v61 = vld [vmem:[%s4147_s10 + $0x358] sm:$0xff]  ;;  %v1516_v45 = vld [vmem:[%s4147_s10 + $0x1a0] sm:$0xff]  ;;  %v2701_v46 = vcombine.low %v1504_v40, %v1508_v41 }
 0x200   :  { %1421 = vmatprep.subr.bf16.mxu1 %v3093_v0  ;;  %v1575_v62 = vld [vmem:[%s4147_s10 + $0x378] sm:$0xff]  ;;  %v2709_v50 = vcombine.low %v1512_v44, %v1516_v45 }
 0x201   :  { %2415 = vmatprep.subr.bf16.mxu0 %v2740_v48  ;;  %v2771_v63 = vcombine.low %v1571_v61, %v1575_v62  ;;  %v2772_v0 = vcombine.high %v1571_v61, %v1575_v62  ;;  %v1520_v48 = vld [vmem:[%s4147_s10 + $0x1c0] sm:$0xff] }
 0x202   :  { %2416 = vmatpush1.bf16.msra.mxu0 %v2739_v47  ;;  %v2710_v47 = vcombine.high %v1512_v44, %v1516_v45  ;;  %v2717_v54 = vcombine.low %v1520_v48, %v1524_v49  ;;  %v1548_v61 = vld [vmem:[%s4147_s10 + $0x2a0] sm:$0xff] }
 0x203   :  { %1422 = vmatpush1.bf16.msra.mxu1 %v3091_v1  ;;  %2417 = vmatprep.subr.bf16.mxu0 %v2748_v52  ;;  %v1528_v52 = vld [vmem:[%s4147_s10 + $0x200] sm:$0xff] }
 0x204   :  { %2274 = vmatprep.subr.bf16.mxu1 %v2662_v6  ;;  %v2725_v58 = vcombine.low %v1528_v52, %v1532_v53 }
 0x206   :  { %2418 = vmatpush1.bf16.msra.mxu0 %v2747_v51  ;;  %v2718_v51 = vcombine.high %v1520_v48, %v1524_v49  ;;  %v1477_v48 = vld [vmem:[%s4147_s10 + $0x68] sm:$0xff] }
 0x207   :  { %2419 = vmatprep.subr.bf16.mxu0 %v2756_v56  ;;  %v1536_v56 = vld [vmem:[%s4147_s10 + $0x240] sm:$0xff] }
 0x208   :  { %v2733_v62 = vcombine.low %v1536_v56, %v1540_v57 }
 0x20a   :  { %2420 = vmatpush1.bf16.msra.mxu0 %v2755_v55  ;;  %v2726_v55 = vcombine.high %v1528_v52, %v1532_v53  ;;  %v1481_v52 = vld [vmem:[%s4147_s10 + $0x88] sm:$0xff] }
 0x20b   :  { %2421 = vmatprep.subr.bf16.mxu0 %v2764_v60  ;;  %v1544_v60 = vld [vmem:[%s4147_s10 + $0x280] sm:$0xff]  ;;  %v1485_v53 = vld [vmem:[%s4147_s10 + $0xa8] sm:$0xff] }
 0x20e   :  { %2422 = vmatpush1.bf16.msra.mxu0 %v2763_v59  ;;  %v2734_v59 = vcombine.high %v1536_v56, %v1540_v57  ;;  %v1489_v56 = vld [vmem:[%s4147_s10 + $0xc8] sm:$0xff] }
 0x20f   :  { %2423 = vmatprep.subr.bf16.mxu0 %v2772_v0  ;;  %v1552_v0 = vld [vmem:[%s4147_s10 + $0x2c0] sm:$0xff]  ;;  %v1493_v57 = vld [vmem:[%s4147_s10 + $0xe8] sm:$0xff] }
 0x212   :  { %2424 = vmatpush1.bf16.msra.mxu0 %v2771_v63  ;;  %v2742_v63 = vcombine.high %v1544_v60, %v1548_v61 }
 0x2b1   :  { %v2813_v1 = vpop.f32.mrb[0].mxu1 }
 0x2b2   :  { %v2814_v4 = vpop.f32.mrb[1].mxu1 }
 0x2b3   :  { %v2815_v6 = vadd.f32 %v2814_v4, %v2813_v1  ;;  %v2816_v7 = vpop.f32.mrb[2].mxu1  ;;  %v1556_v1 = vld [vmem:[%s4147_s10 + $0x2e0] sm:$0xff]  ;;  %v2741_v4 = vcombine.low %v1544_v60, %v1548_v61  ;;  %v1497_v60 = vld [vmem:[%s4147_s10 + $0x108] sm:$0xff] }
 0x2b4   :  { %v2817_v8 = vpop.f32.mrb[3].mxu1  ;;  %v1560_v7 = vld [vmem:[%s4147_s10 + $0x300] sm:$0xff]  ;;  %v1501_v61 = vld [vmem:[%s4147_s10 + $0x128] sm:$0xff] }
 0x2b5   :  { %v1192_v21 = vadd.f32 %v2815_v6, %v2622_v18  ;;  %v2750_v6 = vcombine.high %v1552_v0, %v1556_v1  ;;  %v1564_v8 = vld [vmem:[%s4147_s10 + $0x320] sm:$0xff] }
 0x2d1   :  { %v2835_v9 = vpop.f32.mrb[4].mxu1 }
 0x2d2   :  { %v2836_v11 = vpop.f32.mrb[5].mxu1 }
 0x2d3   :  { %v2837_v12 = vadd.f32 %v2836_v11, %v2835_v9  ;;  %v2838_v13 = vpop.f32.mrb[6].mxu1  ;;  %v2749_v9 = vcombine.low %v1552_v0, %v1556_v1  ;;  %v1568_v11 = vld [vmem:[%s4147_s10 + $0x340] sm:$0xff]  ;;  %v1505_v0 = vld [vmem:[%s4147_s10 + $0x148] sm:$0xff] }
 0x2d4   :  { %v2839_v14 = vpop.f32.mrb[7].mxu1  ;;  %v2757_v13 = vcombine.low %v1560_v7, %v1564_v8  ;;  %v1509_v1 = vld [vmem:[%s4147_s10 + $0x168] sm:$0xff] }
 0x2d5   :  { %v1367_v15 = vadd.f32 %v2837_v12, %v2639_v10  ;;  %v2758_v10 = vcombine.high %v1560_v7, %v1564_v8  ;;  %v1572_v12 = vld [vmem:[%s4147_s10 + $0x360] sm:$0xff]  ;;  %v1513_v7 = vld [vmem:[%s4147_s10 + $0x188] sm:$0xff] }
 0x2d6   :  { %v2766_v14 = vcombine.high %v1568_v11, %v1572_v12  ;;  %v1517_v8 = vld [vmem:[%s4147_s10 + $0x1a8] sm:$0xff] }
 0x2d7   :  { %v1373_v16 = vmul.f32 0.5, %v1367_v15  ;;  %v2765_v15 = vcombine.low %v1568_v11, %v1572_v12  ;;  %v1521_v11 = vld [vmem:[%s4147_s10 + $0x1c8] sm:$0xff] }
 0x2d8   :  { %v1525_v12 = vld [vmem:[%s4147_s10 + $0x1e8] sm:$0xff] }
 0x2d9   :  { %v1374_v17 = vmul.f32 1.442695, %v1373_v16  ;;  %v1576_v16 = vld [vmem:[%s4147_s10 + $0x380] sm:$0xff] }
 0x2db   :  { %3094 = vpow2.f32 %v1374_v17  ;;  %v1580_v17 = vld [vmem:[%s4147_s10 + $0x3a0] sm:$0xff] }
 0x2dc   :  { %v2774_v18 = vcombine.high %v1576_v16, %v1580_v17 }
 0x2e5   :  { %v3095_v20 = vpop.eup %3094 }
 0x2e6   :  { %v1376_v22 = vmul.f32 %v3095_v20, %v1372_v19  ;;  %v1579_v19 = vld [vmem:[%s4147_s10 + $0x398] sm:$0xff] }
 0x2e7   :  { %v1583_v20 = vld [vmem:[%s4147_s10 + $0x3b8] sm:$0xff] }
 0x2e8   :  { %v1377_v25 = vadd.f32 %v1376_v22, %v1192_v21  ;;  %v2773_v21 = vcombine.low %v1576_v16, %v1580_v17  ;;  %v2780_v22 = vcombine.high %v1579_v19, %v1583_v20  ;;  %v2779_v23 = vcombine.low %v1579_v19, %v1583_v20  ;;  %v1533_v16 = vld [vmem:[%s4147_s10 + $0x228] sm:$0xff] }
 0x2e9   :  { %v2719_v17 = vcombine.low %v1521_v11, %v1525_v12  ;;  %v1537_v19 = vld [vmem:[%s4147_s10 + $0x248] sm:$0xff] }
 0x2ea   :  { %v1378_v26 = vpack.c.bf16 %v1377_v25, %v1377_v25  ;;  %2425 = vmatprep.subr.bf16.mxu0 %v2780_v22  ;;  %v1588_v25 = vld [vmem:[%s4147_s10 + $0x3e0] sm:$0xff]  ;;  %v1541_v20 = vld [vmem:[%s4147_s10 + $0x268] sm:$0xff] }
 0x2eb   :  { %2426 = vmatpush1.bf16.msra.mxu0 %v2779_v23  ;;  %v2781_v29 = vcombine.low %v1584_v24, %v1588_v25  ;;  %v2736_v22 = vcombine.high %v1537_v19, %v1541_v20  ;;  %v1545_v23 = vld [vmem:[%s4147_s10 + $0x288] sm:$0xff] }
 0x2ec   :  { %2660 = vmatmul.mubr.msk.bf16.vlgmr.msra.gmra.mrb[8].mxu1 %vm1415_vm0, %v1378_v26  ;;  %v2782_v26 = vcombine.high %v1584_v24, %v1588_v25  ;;  %v1549_v24 = vld [vmem:[%s4147_s10 + $0x2a8] sm:$0xff]  ;;  %v2735_v25 = vcombine.low %v1537_v19, %v1541_v20  ;;  %v1530_v19 = vld [vmem:[%s4147_s10 + $0x210] sm:$0xff] }
 0x2ed   :  { %2275 = vmatpush1.bf16.msra.mxu1 %v2661_v5  ;;  %v2685_v5 = vcombine.low %v1488_v35, %v1492_v36  ;;  %v1465_v35 = vld [vmem:[%s4147_s10 + $0x8] sm:$0xff]  ;;  %v1534_v20 = vld [vmem:[%s4147_s10 + $0x230] sm:$0xff] }
 0x2ee   :  { %2276 = vmatprep.subr.bf16.mxu1 %v2670_v27  ;;  %v1587_v27 = vld [vmem:[%s4147_s10 + $0x3d8] sm:$0xff]  ;;  %v1469_v36 = vld [vmem:[%s4147_s10 + $0x28] sm:$0xff] }
 0x2f1   :  { %2277 = vmatpush1.bf16.msra.mxu1 %v2669_v32  ;;  %v2788_v32 = vcombine.high %v1587_v27, %v1591_v28 }
 0x2f2   :  { %2278 = vmatprep.subr.bf16.mxu1 %v2678_v34  ;;  %v2787_v34 = vcombine.low %v1587_v27, %v1591_v28  ;;  %v1553_v27 = vld [vmem:[%s4147_s10 + $0x2c8] sm:$0xff] }
 0x2f3   :  { %2427 = vmatprep.subr.bf16.mxu0 %v2788_v32  ;;  %v1557_v28 = vld [vmem:[%s4147_s10 + $0x2e8] sm:$0xff] }
 0x2f4   :  { %2428 = vmatpush1.bf16.msra.mxu0 %v2787_v34  ;;  %v2752_v32 = vcombine.high %v1553_v27, %v1557_v28  ;;  %v1561_v34 = vld [vmem:[%s4147_s10 + $0x308] sm:$0xff] }
 0x2f5   :  { %2279 = vmatpush1.bf16.msra.mxu1 %v2677_v37  ;;  %v2664_v37 = vcombine.high %v1465_v35, %v1469_v36 }
 0x2f6   :  { %2280 = vmatprep.subr.bf16.mxu1 %v2686_v38  ;;  %v2663_v38 = vcombine.low %v1465_v35, %v1469_v36  ;;  %v1565_v35 = vld [vmem:[%s4147_s10 + $0x328] sm:$0xff]  ;;  %v2751_v36 = vcombine.low %v1553_v27, %v1557_v28  ;;  %v1546_v27 = vld [vmem:[%s4147_s10 + $0x290] sm:$0xff] }
 0x2f7   :  { %v1550_v28 = vld [vmem:[%s4147_s10 + $0x2b0] sm:$0xff] }
 0x2f9   :  { %2281 = vmatpush1.bf16.msra.mxu1 %v2685_v5  ;;  %v1392_v5 = vrot.slane %v1383_v2, %v3636_v33  ;;  %v1573_v2 = vld [vmem:[%s4147_s10 + $0x368] sm:$0xff] }
 0x2fa   :  { %2282 = vmatprep.subr.bf16.mxu1 %v2694_v39 }
 0x2fd   :  { %2283 = vmatpush1.bf16.msra.mxu1 %v2693_v42 }
 0x2fe   :  { %2284 = vmatprep.subr.bf16.mxu1 %v2702_v43 }
 0x301   :  { %2285 = vmatpush1.bf16.msra.mxu1 %v2701_v46 }
 0x302   :  { %2286 = vmatprep.subr.bf16.mxu1 %v2710_v47  ;;  %v1473_v47 = vld [vmem:[%s4147_s10 + $0x48] sm:$0xff] }
 0x305   :  { %2287 = vmatpush1.bf16.msra.mxu1 %v2709_v50 }
 0x306   :  { %2288 = vmatprep.subr.bf16.mxu1 %v2718_v51  ;;  %v2672_v51 = vcombine.high %v1473_v47, %v1477_v48 }
 0x309   :  { %2289 = vmatpush1.bf16.msra.mxu1 %v2717_v54  ;;  %v2671_v54 = vcombine.low %v1473_v47, %v1477_v48  ;;  %v1466_v47 = vld [vmem:[%s4147_s10 + $0x10] sm:$0xff] }
 0x30a   :  { %2290 = vmatprep.subr.bf16.mxu1 %v2726_v55  ;;  %v2680_v55 = vcombine.high %v1481_v52, %v1485_v53  ;;  %v1470_v48 = vld [vmem:[%s4147_s10 + $0x30] sm:$0xff] }
 0x30d   :  { %2291 = vmatpush1.bf16.msra.mxu1 %v2725_v58  ;;  %v2679_v58 = vcombine.low %v1481_v52, %v1485_v53  ;;  %v2666_v52 = vcombine.high %v1466_v47, %v1470_v48  ;;  %v1474_v53 = vld [vmem:[%s4147_s10 + $0x50] sm:$0xff] }
 0x30e   :  { %2292 = vmatprep.subr.bf16.mxu1 %v2734_v59  ;;  %v2688_v59 = vcombine.high %v1489_v56, %v1493_v57 }
 0x311   :  { %2293 = vmatpush1.bf16.msra.mxu1 %v2733_v62  ;;  %v2687_v62 = vcombine.low %v1489_v56, %v1493_v57  ;;  %v1482_v57 = vld [vmem:[%s4147_s10 + $0x90] sm:$0xff] }
 0x312   :  { %2294 = vmatprep.subr.bf16.mxu1 %v2742_v63  ;;  %v2696_v63 = vcombine.high %v1497_v60, %v1501_v61 }
 0x315   :  { %2295 = vmatpush1.bf16.msra.mxu1 %v2741_v4  ;;  %v2695_v4 = vcombine.low %v1497_v60, %v1501_v61  ;;  %v1490_v61 = vld [vmem:[%s4147_s10 + $0xd0] sm:$0xff] }
 0x316   :  { %2296 = vmatprep.subr.bf16.mxu1 %v2750_v6  ;;  %v2704_v6 = vcombine.high %v1505_v0, %v1509_v1 }
 0x319   :  { %2297 = vmatpush1.bf16.msra.mxu1 %v2749_v9  ;;  %v2703_v9 = vcombine.low %v1505_v0, %v1509_v1  ;;  %v1498_v1 = vld [vmem:[%s4147_s10 + $0x110] sm:$0xff] }
 0x31a   :  { %2298 = vmatprep.subr.bf16.mxu1 %v2758_v10  ;;  %v2712_v10 = vcombine.high %v1513_v7, %v1517_v8 }
 0x31d   :  { %2299 = vmatpush1.bf16.msra.mxu1 %v2757_v13  ;;  %v2711_v13 = vcombine.low %v1513_v7, %v1517_v8  ;;  %v1506_v7 = vld [vmem:[%s4147_s10 + $0x150] sm:$0xff] }
 0x31e   :  { %2300 = vmatprep.subr.bf16.mxu1 %v2766_v14  ;;  %v2720_v14 = vcombine.high %v1521_v11, %v1525_v12  ;;  %v1510_v8 = vld [vmem:[%s4147_s10 + $0x170] sm:$0xff] }
 0x31f   :  { %v1514_v11 = vld [vmem:[%s4147_s10 + $0x190] sm:$0xff] }
 0x320   :  { %v1518_v12 = vld [vmem:[%s4147_s10 + $0x1b0] sm:$0xff] }
 0x321   :  { %2301 = vmatpush1.bf16.msra.mxu1 %v2765_v15  ;;  %v1529_v15 = vld [vmem:[%s4147_s10 + $0x208] sm:$0xff] }
 0x322   :  { %2302 = vmatprep.subr.bf16.mxu1 %v2774_v18  ;;  %v2728_v18 = vcombine.high %v1529_v15, %v1533_v16 }
 0x325   :  { %2303 = vmatpush1.bf16.msra.mxu1 %v2773_v21  ;;  %v2727_v21 = vcombine.low %v1529_v15, %v1533_v16  ;;  %v1522_v15 = vld [vmem:[%s4147_s10 + $0x1d0] sm:$0xff] }
 0x326   :  { %2304 = vmatprep.subr.bf16.mxu1 %v2782_v26  ;;  %v2744_v26 = vcombine.high %v1545_v23, %v1549_v24  ;;  %v1526_v16 = vld [vmem:[%s4147_s10 + $0x1f0] sm:$0xff] }
 0x329   :  { %2305 = vmatpush1.bf16.msra.mxu1 %v2781_v29  ;;  %v2743_v29 = vcombine.low %v1545_v23, %v1549_v24  ;;  %v1538_v23 = vld [vmem:[%s4147_s10 + $0x250] sm:$0xff] }
 0x32a   :  { %2315 = vmatprep.subr.bf16.mxu1 %v2664_v37  ;;  %v2760_v37 = vcombine.high %v1561_v34, %v1565_v35  ;;  %v1542_v24 = vld [vmem:[%s4147_s10 + $0x270] sm:$0xff] }
 0x3bf   :  { %v1453_v39 = vpop.f32.mrb[8].mxu1 }
 0x3c0   :  { %v1454_v40 = vadd.f32 %v1453_v39, %v1388_v3  ;;  %v1455_v41 = vpop.f32.mrb[9].mxu1  ;;  %v2759_v3 = vcombine.low %v1561_v34, %v1565_v35  ;;  %v1577_v39 = vld [vmem:[%s4147_s10 + $0x388] sm:$0xff]  ;;  %v1554_v34 = vld [vmem:[%s4147_s10 + $0x2d0] sm:$0xff] }
 0x3c1   :  { %v1456_v42 = vadd.f32 %v1455_v41, %v1392_v5  ;;  %v1457_v43 = vpop.f32.mrb[10].mxu1  ;;  %v1558_v35 = vld [vmem:[%s4147_s10 + $0x2f0] sm:$0xff] }
 0x3c2   :  { %v1460_v44 = vmax.f32 %v1454_v40, 0.0  ;;  %v1458_v45 = vpop.f32.mrb[11].mxu1  ;;  %v1581_v40 = vld [vmem:[%s4147_s10 + $0x3a8] sm:$0xff] }
 0x3c3   :  { %v1461_v46 = vmax.f32 %v1456_v42, 0.0  ;;  %v2776_v42 = vcombine.high %v1577_v39, %v1581_v40  ;;  %v1585_v43 = vld [vmem:[%s4147_s10 + $0x3c8] sm:$0xff]  ;;  %v2775_v45 = vcombine.low %v1577_v39, %v1581_v40  ;;  %v1570_v39 = vld [vmem:[%s4147_s10 + $0x350] sm:$0xff] }
 0x3c4   :  { %v3928_v50 = vpack.c.bf16 %v1460_v44, %v1460_v44  ;;  %v1589_v44 = vld [vmem:[%s4147_s10 + $0x3e8] sm:$0xff]  ;;  %v1574_v40 = vld [vmem:[%s4147_s10 + $0x370] sm:$0xff] }
 0x3c5   :  { %v3926_v49 = vpack.c.bf16 %v1461_v46, %v1461_v46  ;;  %v2784_v46 = vcombine.high %v1585_v43, %v1589_v44 }
 0x3c7   :  { %2306 = vmatprep.mubr.bf16.mxu1 %v3926_v49  ;;  %2429 = vmatprep.mubr.bf16.mxu0 %v3926_v49 }
 0x3c8   :  { %2307 = vmatmul.mubr.bf16.vlgmr.msra.gmra.mrb[12].mxu1 %v3928_v50  ;;  %2430 = vmatmul.mubr.bf16.vlgmr.msra.gmra.mrb[4].mxu0 %v3928_v50 }
 0x3c9   :  { %2316 = vmatpush1.bf16.msra.mxu1 %v2663_v38  ;;  %2347 = vmatprep.mubr.bf16.mxu1 %v3926_v49  ;;  %v1569_v38 = vld [vmem:[%s4147_s10 + $0x348] sm:$0xff] }
 0x3ca   :  { %2317 = vmatprep.subr.bf16.mxu1 %v2672_v51  ;;  %v2768_v5 = vcombine.high %v1569_v38, %v1573_v2  ;;  %v2767_v41 = vcombine.low %v1569_v38, %v1573_v2  ;;  %v2783_v51 = vcombine.low %v1585_v43, %v1589_v44  ;;  %v1562_v38 = vld [vmem:[%s4147_s10 + $0x310] sm:$0xff] }
 0x3cb   :  { %v1566_v2 = vld [vmem:[%s4147_s10 + $0x330] sm:$0xff] }
 0x3cc   :  { %v1578_v43 = vld [vmem:[%s4147_s10 + $0x390] sm:$0xff] }
 0x3cd   :  { %2318 = vmatpush1.bf16.msra.mxu1 %v2671_v54  ;;  %v1478_v54 = vld [vmem:[%s4147_s10 + $0x70] sm:$0xff] }
 0x3ce   :  { %2319 = vmatprep.subr.bf16.mxu1 %v2680_v55  ;;  %v2665_v55 = vcombine.low %v1466_v47, %v1470_v48  ;;  %v2674_v56 = vcombine.high %v1474_v53, %v1478_v54  ;;  %v1582_v44 = vld [vmem:[%s4147_s10 + $0x3b0] sm:$0xff] }
 0x3cf   :  { %v1586_v47 = vld [vmem:[%s4147_s10 + $0x3d0] sm:$0xff] }
 0x3d0   :  { %v1590_v48 = vld [vmem:[%s4147_s10 + $0x3f0] sm:$0xff] }
 0x3d1   :  { %2320 = vmatpush1.bf16.msra.mxu1 %v2679_v58  ;;  %v1486_v58 = vld [vmem:[%s4147_s10 + $0xb0] sm:$0xff] }
 0x3d2   :  { %2321 = vmatprep.subr.bf16.mxu1 %v2688_v59  ;;  %v2673_v59 = vcombine.low %v1474_v53, %v1478_v54  ;;  %v2682_v60 = vcombine.high %v1482_v57, %v1486_v58  ;;  %v2785_v53 = vcombine.low %v1586_v47, %v1590_v48  ;;  %v1620_v54 = vsub.s32 6, %v3627_v30 }
 0x3d5   :  { %2322 = vmatpush1.bf16.msra.mxu1 %v2687_v62  ;;  %v1494_v62 = vld [vmem:[%s4147_s10 + $0xf0] sm:$0xff] }
 0x3d6   :  { %2323 = vmatprep.subr.bf16.mxu1 %v2696_v63  ;;  %v2681_v63 = vcombine.low %v1482_v57, %v1486_v58  ;;  %v2690_v0 = vcombine.high %v1490_v61, %v1494_v62 }
 0x3d9   :  { %2324 = vmatpush1.bf16.msra.mxu1 %v2695_v4  ;;  %v2689_v4 = vcombine.low %v1490_v61, %v1494_v62 }
 0x3da   :  { %2325 = vmatprep.subr.bf16.mxu1 %v2704_v6 }
 0x3dd   :  { %2326 = vmatpush1.bf16.msra.mxu1 %v2703_v9 }
 0x3de   :  { %2327 = vmatprep.subr.bf16.mxu1 %v2712_v10  ;;  %v2706_v10 = vcombine.high %v1506_v7, %v1510_v8 }
 0x3e1   :  { %2328 = vmatpush1.bf16.msra.mxu1 %v2711_v13  ;;  %v2705_v13 = vcombine.low %v1506_v7, %v1510_v8 }
 0x3e2   :  { %2329 = vmatprep.subr.bf16.mxu1 %v2720_v14  ;;  %v2714_v14 = vcombine.high %v1514_v11, %v1518_v12 }
 0x3e5   :  { %2330 = vmatpush1.bf16.msra.mxu1 %v2719_v17  ;;  %v2713_v17 = vcombine.low %v1514_v11, %v1518_v12 }
 0x3e6   :  { %2331 = vmatprep.subr.bf16.mxu1 %v2728_v18  ;;  %v2722_v18 = vcombine.high %v1522_v15, %v1526_v16 }
 0x3e9   :  { %2332 = vmatpush1.bf16.msra.mxu1 %v2727_v21  ;;  %v2721_v21 = vcombine.low %v1522_v15, %v1526_v16  ;;  %v1608_v15 = vsub.s32 3, %v3627_v30 }
 0x3ea   :  { %2333 = vmatprep.subr.bf16.mxu1 %v2736_v22  ;;  %v2730_v22 = vcombine.high %v1530_v19, %v1534_v20 }
 0x3ed   :  { %2334 = vmatpush1.bf16.msra.mxu1 %v2735_v25  ;;  %v2729_v25 = vcombine.low %v1530_v19, %v1534_v20 }
 0x3ee   :  { %2335 = vmatprep.subr.bf16.mxu1 %v2744_v26  ;;  %v2738_v26 = vcombine.high %v1538_v23, %v1542_v24 }
 0x3f1   :  { %2336 = vmatpush1.bf16.msra.mxu1 %v2743_v29  ;;  %v2737_v29 = vcombine.low %v1538_v23, %v1542_v24 }
 0x3f2   :  { %2337 = vmatprep.subr.bf16.mxu1 %v2752_v32  ;;  %v2746_v32 = vcombine.high %v1546_v27, %v1550_v28 }
 0x3f5   :  { %2338 = vmatpush1.bf16.msra.mxu1 %v2751_v36  ;;  %v2745_v36 = vcombine.low %v1546_v27, %v1550_v28  ;;  %v1612_v27 = vsub.s32 4, %v3627_v30  ;;  %v1616_v28 = vsub.s32 5, %v3627_v30 }
 0x3f6   :  { %2339 = vmatprep.subr.bf16.mxu1 %v2760_v37  ;;  %v2754_v37 = vcombine.high %v1554_v34, %v1558_v35 }
 0x3f9   :  { %2340 = vmatpush1.bf16.msra.mxu1 %v2759_v3  ;;  %v2753_v3 = vcombine.low %v1554_v34, %v1558_v35 }
 0x3fa   :  { %2341 = vmatprep.subr.bf16.mxu1 %v2768_v5  ;;  %v2762_v5 = vcombine.high %v1562_v38, %v1566_v2 }
 0x3fd   :  { %2342 = vmatpush1.bf16.msra.mxu1 %v2767_v41  ;;  %v2761_v41 = vcombine.low %v1562_v38, %v1566_v2 }
 0x3fe   :  { %2343 = vmatprep.subr.bf16.mxu1 %v2776_v42  ;;  %v2770_v42 = vcombine.high %v1570_v39, %v1574_v40 }
 0x401   :  { %2344 = vmatpush1.bf16.msra.mxu1 %v2775_v45  ;;  %v2769_v45 = vcombine.low %v1570_v39, %v1574_v40 }
 0x402   :  { %2345 = vmatprep.subr.bf16.mxu1 %v2784_v46  ;;  %v2778_v46 = vcombine.high %v1578_v43, %v1582_v44 }
 0x405   :  { %2346 = vmatpush1.bf16.msra.mxu1 %v2783_v51  ;;  %v2777_v51 = vcombine.low %v1578_v43, %v1582_v44 }
 0x406   :  { %2356 = vmatprep.subr.bf16.mxu1 %v2666_v52  ;;  %v2786_v52 = vcombine.high %v1586_v47, %v1590_v48 }
 0x408   :  { %2348 = vmatmul.mubr.bf16.vlgmr.msra.gmra.mrb[16].mxu1 %v3928_v50 }
 0x409   :  { %2357 = vmatpush1.bf16.msra.mxu1 %v2665_v55  ;;  %2388 = vmatprep.mubr.bf16.mxu1 %v3926_v49  ;;  %v1502_v49 = vld [vmem:[%s4147_s10 + $0x130] sm:$0xff]  ;;  %v1592_v55 = vld [vmem:[%s4152_s11] sm:$0xff] }
 0x40a   :  { %2358 = vmatprep.subr.bf16.mxu1 %v2674_v56  ;;  %v2698_v6 = vcombine.high %v1498_v1, %v1502_v49  ;;  %v2697_v9 = vcombine.low %v1498_v1, %v1502_v49  ;;  %v1624_v56 = vsub.s32 7, %v3627_v30  ;;  %v1597_v57 = vrot.slane %v1592_v55, %v3630_v31 }
 0x40b   :  { %v1621_v58 = vrot.slane %v1592_v55, %v1620_v54 }
 0x40d   :  { %2359 = vmatpush1.bf16.msra.mxu1 %v2673_v59  ;;  %v1601_v59 = vrot.slane %v1592_v55, %v3636_v33  ;;  %v1604_v33 = vsub.s32 2, %v3627_v30 }
 0x40e   :  { %2360 = vmatprep.subr.bf16.mxu1 %v2682_v60  ;;  %v1625_v60 = vrot.slane %v1592_v55, %v1624_v56 }
 0x40f   :  { %v1605_v16 = vrot.slane %v1592_v55, %v1604_v33 }
 0x411   :  { %2361 = vmatpush1.bf16.msra.mxu1 %v2681_v63 }
 0x412   :  { %2362 = vmatprep.subr.bf16.mxu1 %v2690_v0 }
 0x415   :  { %2363 = vmatpush1.bf16.msra.mxu1 %v2689_v4 }
 0x416   :  { %2364 = vmatprep.subr.bf16.mxu1 %v2698_v6 }
 0x419   :  { %2365 = vmatpush1.bf16.msra.mxu1 %v2697_v9 }
 0x41a   :  { %2366 = vmatprep.subr.bf16.mxu1 %v2706_v10 }
 0x41d   :  { %2367 = vmatpush1.bf16.msra.mxu1 %v2705_v13 }
 0x41e   :  { %2368 = vmatprep.subr.bf16.mxu1 %v2714_v14 }
 0x421   :  { %2369 = vmatpush1.bf16.msra.mxu1 %v2713_v17  ;;  %v1609_v17 = vrot.slane %v1592_v55, %v1608_v15 }
 0x422   :  { %2370 = vmatprep.subr.bf16.mxu1 %v2722_v18 }
 0x425   :  { %2371 = vmatpush1.bf16.msra.mxu1 %v2721_v21 }
 0x426   :  { %2372 = vmatprep.subr.bf16.mxu1 %v2730_v22 }
 0x429   :  { %2373 = vmatpush1.bf16.msra.mxu1 %v2729_v25 }
 0x42a   :  { %2374 = vmatprep.subr.bf16.mxu1 %v2738_v26 }
 0x42d   :  { %2375 = vmatpush1.bf16.msra.mxu1 %v2737_v29  ;;  %v1613_v29 = vrot.slane %v1592_v55, %v1612_v27 }
 0x42e   :  { %2376 = vmatprep.subr.bf16.mxu1 %v2746_v32  ;;  %v1617_v32 = vrot.slane %v1592_v55, %v1616_v28 }
 0x431   :  { %2377 = vmatpush1.bf16.msra.mxu1 %v2745_v36 }
 0x432   :  { %2378 = vmatprep.subr.bf16.mxu1 %v2754_v37 }
 0x435   :  { %2379 = vmatpush1.bf16.msra.mxu1 %v2753_v3 }
 0x436   :  { %2380 = vmatprep.subr.bf16.mxu1 %v2762_v5 }
 0x439   :  { %2381 = vmatpush1.bf16.msra.mxu1 %v2761_v41 }
 0x43a   :  { %2382 = vmatprep.subr.bf16.mxu1 %v2770_v42 }
 0x43d   :  { %2383 = vmatpush1.bf16.msra.mxu1 %v2769_v45 }
 0x43e   :  { %2384 = vmatprep.subr.bf16.mxu1 %v2778_v46 }
 0x441   :  { %2385 = vmatpush1.bf16.msra.mxu1 %v2777_v51 }
 0x442   :  { %2386 = vmatprep.subr.bf16.mxu1 %v2786_v52 }
 0x445   :  { %2387 = vmatpush1.bf16.msra.mxu1 %v2785_v53 }
 0x448   :  { %2389 = vmatmul.mubr.bf16.vlgmr.msra.gmra.mrb[20].mxu1 %v3928_v50 }
 0x49b   :  { %v2308_v61 = vpop.f32.mrb[12].mxu1  ;;  %v2431_v62 = vpop.f32.mrb[4].mxu0 }
 0x49c   :  { %v2309_v63 = vadd.f32 %v2308_v61, %v1597_v57  ;;  %v2432_v0 = vadd.f32 %v2431_v62, %v1621_v58  ;;  %v2310_v1 = vpop.f32.mrb[13].mxu1  ;;  %v2433_v50 = vpop.f32.mrb[5].mxu0 }
 0x49d   :  { %v2311_v49 = vadd.f32 %v2310_v1, %v1601_v59  ;;  %v2434_v4 = vadd.f32 %v2433_v50, %v1625_v60  ;;  %v2312_v6 = vpop.f32.mrb[14].mxu1  ;;  %v2435_v7 = vpop.f32.mrb[6].mxu0 }
 0x49e   :  { %v2438_v8 = vmax.f32 %v2309_v63, 0.0  ;;  %v2444_v9 = vmax.f32 %v2432_v0, 0.0  ;;  %v2313_v10 = vpop.f32.mrb[15].mxu1  ;;  %v2436_v11 = vpop.f32.mrb[7].mxu0 }
 0x49f   :  { %v2439_v12 = vmax.f32 %v2311_v49, 0.0  ;;  %v2445_v31 = vmax.f32 %v2434_v4, 0.0 }
 0x4a1   :  { %v2793_v13 = vpack.c.bf16 %v2439_v12, %v2438_v8  ;;  %v2796_v14 = vpack.c.bf16 %v2445_v31, %v2444_v9 }
 0x4a3   :  { %2478 = vst [vmem:[%s4153_s12] sm:$0xff] %v2793_v13  ;;  %2481 = vst [vmem:[%s4153_s12 + $0x18] sm:$0xff] %v2796_v14 }
 0x4db   :  { %v2349_v18 = vpop.f32.mrb[16].mxu1 }
 0x4dc   :  { %v2350_v19 = vadd.f32 %v2349_v18, %v1605_v16  ;;  %v2351_v20 = vpop.f32.mrb[17].mxu1 }
 0x4dd   :  { %v2352_v21 = vadd.f32 %v2351_v20, %v1609_v17  ;;  %v2353_v22 = vpop.f32.mrb[18].mxu1 }
 0x4de   :  { %v2440_v23 = vmax.f32 %v2350_v19, 0.0  ;;  %v2354_v24 = vpop.f32.mrb[19].mxu1 }
 0x4df   :  { %v2441_v25 = vmax.f32 %v2352_v21, 0.0 }
 0x4e1   :  { %v2794_v26 = vpack.c.bf16 %v2441_v25, %v2440_v23 }
 0x4e3   :  { %2479 = vst [vmem:[%s4153_s12 + $0x8] sm:$0xff] %v2794_v26 }
 0x51b   :  { %v2390_v34 = vpop.f32.mrb[20].mxu1 }
 0x51c   :  { %v2391_v35 = vadd.f32 %v2390_v34, %v1613_v29  ;;  %v2392_v36 = vpop.f32.mrb[21].mxu1 }
 0x51d   :  { %v2393_v37 = vadd.f32 %v2392_v36, %v1617_v32  ;;  %v2394_v38 = vpop.f32.mrb[22].mxu1 }
 0x51e   :  { %v2442_v2 = vmax.f32 %v2391_v35, 0.0  ;;  %v2395_v3 = vpop.f32.mrb[23].mxu1 }
 0x51f   :  { %v2443_v5 = vmax.f32 %v2393_v37, 0.0 }
 0x521   :  { %v2795_v39 = vpack.c.bf16 %v2443_v5, %v2442_v2 }
 0x523   :  { %2480 = vst [vmem:[%s4153_s12 + $0x10] sm:$0xff] %v2795_v39 }

// kernel: beta_vae_forward.15
= control target key start
LH: loop header
LB: loop body
LE: loop exit
PB: predicated region body
PF: predicated region fallthrough
CT: control target
= control target key end

     0   :  { %vm558_vm0 = vcmask 523264   ;;  %s1733_s1 = inlined_call_operand.vmem [shape: bf16[576,128], index: 1, kind: input, shape index: {}]   ;;  %s1734_s0 = inlined_call_operand.vmem [shape: bf16[128,576], index: 0, kind: input, shape index: {}]   ;;  %s1735_s2 = inlined_call_operand.vmem [shape: f32[1,128], index: 2, kind: input, shape index: {}]   ;;  %s1736_s3 = inlined_call_operand.vmem [shape: bf16[128,128], index: 3, kind: output, shape index: {}]  }
   0x1   :  { %v1310_v0 = vld [vmem:[%s1733_s1 + $0x40] sm:$0xff]   ;;  %v1314_v4 = vld [vmem:[%s1733_s1 + $0x48] sm:$0xff]   ;;  %v1318_v8 = vld [vmem:[%s1733_s1 + $0x50] sm:$0xff]  }
   0x2   :  { %v1311_v1 = vld [vmem:[%s1733_s1 + $0xc0] sm:$0xff]   ;;  %1138 = vmatprep.subr.bf16.mxu0 %v1310_v0  ;;  %v1315_v5 = vld [vmem:[%s1733_s1 + $0xc8] sm:$0xff]   ;;  %v1319_v9 = vld [vmem:[%s1733_s1 + $0xd0] sm:$0xff]  }
   0x3   :  { %v1312_v2 = vld [vmem:[%s1733_s1] sm:$0xff]   ;;  %1202 = vmatprep.subr.bf16.mxu1 %v1311_v1  ;;  %v1316_v6 = vld [vmem:[%s1733_s1 + $0x8] sm:$0xff]   ;;  %v1320_v10 = vld [vmem:[%s1733_s1 + $0x10] sm:$0xff]  }
   0x4   :  { %v1313_v3 = vld [vmem:[%s1733_s1 + $0x80] sm:$0xff]   ;;  %1139 = vmatpush3.bf16.msra.mxu0 %v1312_v2  ;;  %v1317_v7 = vld [vmem:[%s1733_s1 + $0x88] sm:$0xff]   ;;  %v1321_v11 = vld [vmem:[%s1733_s1 + $0x90] sm:$0xff]  }
   0x5   :  { %1203 = vmatpush3.bf16.msra.mxu1 %v1313_v3  ;;  %1140 = vmatprep.subr.bf16.mxu0 %v1314_v4  ;;  %v1322_v12 = vld [vmem:[%s1733_s1 + $0x58] sm:$0xff]   ;;  %v1326_v16 = vld [vmem:[%s1733_s1 + $0x60] sm:$0xff]   ;;  %v1330_v20 = vld [vmem:[%s1733_s1 + $0x68] sm:$0xff]  }
   0x6   :  { %1204 = vmatprep.subr.bf16.mxu1 %v1315_v5  ;;  %v1323_v13 = vld [vmem:[%s1733_s1 + $0xd8] sm:$0xff]   ;;  %v1327_v17 = vld [vmem:[%s1733_s1 + $0xe0] sm:$0xff]   ;;  %v1331_v21 = vld [vmem:[%s1733_s1 + $0xe8] sm:$0xff]  }
   0x7   :  { %v1324_v14 = vld [vmem:[%s1733_s1 + $0x18] sm:$0xff]   ;;  %v1328_v18 = vld [vmem:[%s1733_s1 + $0x20] sm:$0xff]   ;;  %v1332_v22 = vld [vmem:[%s1733_s1 + $0x28] sm:$0xff]  }
   0x8   :  { %1141 = vmatpush3.bf16.msra.mxu0 %v1316_v6  ;;  %v1325_v15 = vld [vmem:[%s1733_s1 + $0x98] sm:$0xff]   ;;  %v1329_v19 = vld [vmem:[%s1733_s1 + $0xa0] sm:$0xff]   ;;  %v1333_v23 = vld [vmem:[%s1733_s1 + $0xa8] sm:$0xff]  }
   0x9   :  { %1205 = vmatpush3.bf16.msra.mxu1 %v1317_v7  ;;  %1142 = vmatprep.subr.bf16.mxu0 %v1318_v8  ;;  %v1334_v24 = vld [vmem:[%s1733_s1 + $0x70] sm:$0xff]   ;;  %v1338_v28 = vld [vmem:[%s1733_s1 + $0x78] sm:$0xff]   ;;  %v1347_v35 = vld [vmem:[%s1734_s0 + $0xc] ss:$20 sps:$4 sm:$0xff]  }
   0xa   :  { %1206 = vmatprep.subr.bf16.mxu1 %v1319_v9  ;;  %v1335_v25 = vld [vmem:[%s1733_s1 + $0xf0] sm:$0xff]   ;;  %v1339_v29 = vld [vmem:[%s1733_s1 + $0xf8] sm:$0xff]   ;;  %v1348_v36 = vld [vmem:[%s1733_s1 + $0x100] sm:$0xff]   ;;  %712 = vmatprep.mubr.bf16.mxu1 %v1347_v35 }
   0xb   :  { %v1336_v26 = vld [vmem:[%s1733_s1 + $0x30] sm:$0xff]   ;;  %v1340_v30 = vld [vmem:[%s1733_s1 + $0x38] sm:$0xff]   ;;  %v1349_v37 = vld [vmem:[%s1734_s0 + $0x2c] ss:$20 sps:$4 sm:$0xff]  }
   0xc   :  { %1143 = vmatpush3.bf16.msra.mxu0 %v1320_v10  ;;  %v1337_v27 = vld [vmem:[%s1733_s1 + $0xb0] sm:$0xff]   ;;  %v1341_v31 = vld [vmem:[%s1733_s1 + $0xb8] sm:$0xff]   ;;  %v1361_v42 = vld [vmem:[%s1733_s1 + $0x108] sm:$0xff]  }
   0xd   :  { %1207 = vmatpush3.bf16.msra.mxu1 %v1321_v11  ;;  %1144 = vmatprep.subr.bf16.mxu0 %v1322_v12  ;;  %v1342_v32 = vld [vmem:[%s1734_s0] ss:$20 sps:$4 sm:$0xff]   ;;  %v1344_v33 = vld [vmem:[%s1734_s0 + $0x4] ss:$20 sps:$4 sm:$0xff]   ;;  %v1345_v34 = vld [vmem:[%s1734_s0 + $0x8] ss:$20 sps:$4 sm:$0xff]  }
   0xe   :  { %1208 = vmatprep.subr.bf16.mxu1 %v1323_v13  ;;  %615 = vmatprep.mubr.bf16.mxu0 %v1344_v33  ;;  %v1351_v38 = vld [vmem:[%s1734_s0 + $0x34] ss:$20 sps:$4 sm:$0xff]   ;;  %v1354_v40 = vld [vmem:[%s1734_s0 + $0x30] ss:$20 sps:$4 sm:$0xff]   ;;  %v1360_v45 = vld [vmem:[%s1734_s0 + $0x58] ss:$20 sps:$4 sm:$0xff]  }
   0xf   :  { %v1353_v39 = vld [vmem:[%s1734_s0 + $0x28] ss:$20 sps:$4 sm:$0xff]   ;;  %v1359_v44 = vld [vmem:[%s1734_s0 + $0x50] ss:$20 sps:$4 sm:$0xff]   ;;  %v1366_v50 = vld [vmem:[%s1734_s0 + $0x78] ss:$20 sps:$4 sm:$0xff]  }
  0x10   :  { %1145 = vmatpush3.bf16.msra.mxu0 %v1324_v14  ;;  %v1355_v41 = vld [vmem:[%s1734_s0 + $0x54] ss:$20 sps:$4 sm:$0xff]   ;;  %v1357_v43 = vld [vmem:[%s1734_s0 + $0x5c] ss:$20 sps:$4 sm:$0xff]   ;;  %v1364_v48 = vld [vmem:[%s1734_s0 + $0x84] ss:$20 sps:$4 sm:$0xff]  }
  0x11   :  { %1209 = vmatpush3.bf16.msra.mxu1 %v1325_v15  ;;  %1146 = vmatprep.subr.bf16.mxu0 %v1326_v16  ;;  %v1374_v46 = vld [vmem:[%s1733_s1 + $0x110] sm:$0xff]   ;;  %v1387_v49 = vld [vmem:[%s1733_s1 + $0x118] sm:$0xff]   ;;  %v1370_v53 = vld [vmem:[%s1734_s0 + $0xac] ss:$20 sps:$4 sm:$0xff]  }
  0x12   :  { %1210 = vmatprep.subr.bf16.mxu1 %v1327_v17  ;;  %v1362_v47 = vld [vmem:[%s1734_s0 + $0x7c] ss:$20 sps:$4 sm:$0xff]   ;;  %v1367_v51 = vld [vmem:[%s1734_s0 + $0x80] ss:$20 sps:$4 sm:$0xff]   ;;  %v1368_v52 = vld [vmem:[%s1734_s0 + $0xa4] ss:$20 sps:$4 sm:$0xff]  }
  0x13   :  { %v1372_v54 = vld [vmem:[%s1734_s0 + $0xa0] ss:$20 sps:$4 sm:$0xff]   ;;  %v1373_v55 = vld [vmem:[%s1734_s0 + $0xa8] ss:$20 sps:$4 sm:$0xff]   ;;  %v1380_v59 = vld [vmem:[%s1734_s0 + $0xd0] ss:$20 sps:$4 sm:$0xff]  }
  0x14   :  { %1147 = vmatpush3.bf16.msra.mxu0 %v1328_v18  ;;  %v1375_v56 = vld [vmem:[%s1734_s0 + $0xcc] ss:$20 sps:$4 sm:$0xff]   ;;  %v1377_v57 = vld [vmem:[%s1734_s0 + $0xd4] ss:$20 sps:$4 sm:$0xff]   ;;  %v1383_v61 = vld [vmem:[%s1734_s0 + $0xfc] ss:$20 sps:$4 sm:$0xff]  }
  0x15   :  { %1211 = vmatpush3.bf16.msra.mxu1 %v1329_v19  ;;  %1148 = vmatprep.subr.bf16.mxu0 %v1330_v20  ;;  %v1379_v58 = vld [vmem:[%s1734_s0 + $0xc8] ss:$20 sps:$4 sm:$0xff]   ;;  %v1385_v62 = vld [vmem:[%s1734_s0 + $0xf0] ss:$20 sps:$4 sm:$0xff]   ;;  %v1386_v63 = vld [vmem:[%s1734_s0 + $0xf8] ss:$20 sps:$4 sm:$0xff]  }
  0x16   :  { %1212 = vmatprep.subr.bf16.mxu1 %v1331_v21  ;;  %v1381_v60 = vld [vmem:[%s1734_s0 + $0xf4] ss:$20 sps:$4 sm:$0xff]   ;;  %v1388_v0 = vld [vmem:[%s1734_s0 + $0x11c] ss:$20 sps:$4 sm:$0xff]   ;;  %v1390_v1 = vld [vmem:[%s1734_s0 + $0x124] ss:$20 sps:$4 sm:$0xff]  }
  0x17   :  { %v1392_v2 = vld [vmem:[%s1734_s0 + $0x118] ss:$20 sps:$4 sm:$0xff]   ;;  %v1393_v3 = vld [vmem:[%s1734_s0 + $0x120] ss:$20 sps:$4 sm:$0xff]   ;;  %v1394_v4 = vld [vmem:[%s1734_s0 + $0x10] ss:$20 sps:$4 sm:$0xff]  }
  0x18   :  { %1149 = vmatpush3.bf16.msra.mxu0 %v1332_v22  ;;  %v1395_v5 = vld [vmem:[%s1734_s0 + $0xb0] ss:$20 sps:$4 sm:$0xff]   ;;  %v1396_v6 = vld [vmem:[%s1734_s0 + $0x38] ss:$20 sps:$4 sm:$0xff]   ;;  %v1398_v8 = vld [vmem:[%s1734_s0 + $0x60] ss:$20 sps:$4 sm:$0xff]  }
  0x19   :  { %1213 = vmatpush3.bf16.msra.mxu1 %v1333_v23  ;;  %1150 = vmatprep.subr.bf16.mxu0 %v1334_v24  ;;  %v1397_v7 = vld [vmem:[%s1734_s0 + $0xd8] ss:$20 sps:$4 sm:$0xff]   ;;  %v1399_v9 = vld [vmem:[%s1734_s0 + $0x100] ss:$20 sps:$4 sm:$0xff]   ;;  %v1400_v10 = vld [vmem:[%s1734_s0 + $0x88] ss:$20 sps:$4 sm:$0xff]  }
  0x1a   :  { %1214 = vmatprep.subr.bf16.mxu1 %v1335_v25  ;;  %v1401_v11 = vld [vmem:[%s1734_s0 + $0x128] ss:$20 sps:$4 sm:$0xff]   ;;  %v1661_v14 = vld [vmem:[%s1735_s2] ss:$0 sm:$0xff] }
  0x1c   :  { %1151 = vmatpush3.bf16.msra.mxu0 %v1336_v26 }
  0x1d   :  { %1215 = vmatpush3.bf16.msra.mxu1 %v1337_v27  ;;  %1152 = vmatprep.subr.bf16.mxu0 %v1338_v28 }
  0x1e   :  { %1216 = vmatprep.subr.bf16.mxu1 %v1339_v29 }
  0x20   :  { %1153 = vmatpush3.bf16.msra.mxu0 %v1340_v30 }
  0x21   :  { %1217 = vmatpush3.bf16.msra.mxu1 %v1341_v31  ;;  %1278 = vmatprep.subr.bf16.mxu0 %v1348_v36 }
  0x22   :  { %1302 = vmatprep.subr.bf16.mxu1 %v1348_v36 }
  0x23   :  { %616 = vmatmul.mubr.bf16.vlgmr.msra.gmra.mrb[0].mxu0 %v1342_v32 }
  0x24   :  { %713 = vmatmul.mubr.bf16.vlgmr.msra.gmra.mrb[0].mxu1 %v1345_v34  ;;  %1279 = vmatpush3.bf16.msra.mxu0 %v1348_v36 }
  0x25   :  { %1306 = vmatpush3.bf16.msra.mxu1 %v1348_v36  ;;  %623 = vmatprep.mubr.bf16.mxu0 %v1349_v37 }
  0x26   :  { %720 = vmatprep.mubr.bf16.mxu1 %v1351_v38  ;;  %1280 = vmatprep.subr.bf16.mxu0 %v1361_v42 }
  0x27   :  { %1303 = vmatprep.subr.bf16.mxu1 %v1361_v42 }
  0x28   :  { %1281 = vmatpush3.bf16.msra.mxu0 %v1361_v42 }
  0x29   :  { %1307 = vmatpush3.bf16.msra.mxu1 %v1361_v42  ;;  %1282 = vmatprep.subr.bf16.mxu0 %v1374_v46 }
  0x2a   :  { %1304 = vmatprep.subr.bf16.mxu1 %v1374_v46 }
  0x2b   :  { %624 = vmatmul.mubr.bf16.gmra.mrb[4].mxu0 %v1353_v39 }
  0x2c   :  { %721 = vmatmul.mubr.bf16.gmra.mrb[4].mxu1 %v1354_v40  ;;  %631 = vmatprep.mubr.bf16.mxu0 %v1355_v41 }
  0x2d   :  { %728 = vmatprep.mubr.bf16.mxu1 %v1357_v43  ;;  %1283 = vmatpush3.bf16.msra.mxu0 %v1374_v46 }
  0x2e   :  { %1308 = vmatpush3.bf16.msra.mxu1 %v1374_v46  ;;  %1284 = vmatprep.subr.bf16.mxu0 %v1387_v49 }
  0x2f   :  { %1305 = vmatprep.subr.bf16.mxu1 %v1387_v49 }
  0x31   :  { %1285 = vmatpush3.bf16.msra.mxu0 %v1387_v49 }
  0x32   :  { %1309 = vmatpush3.bf16.msra.mxu1 %v1387_v49 }
  0x33   :  { %632 = vmatmul.mubr.bf16.gmra.mrb[8].mxu0 %v1359_v44 }
  0x34   :  { %729 = vmatmul.mubr.bf16.gmra.mrb[8].mxu1 %v1360_v45  ;;  %639 = vmatprep.mubr.bf16.mxu0 %v1362_v47 }
  0x35   :  { %736 = vmatprep.mubr.bf16.mxu1 %v1364_v48 }
  0x3b   :  { %640 = vmatmul.mubr.bf16.gmra.mrb[12].mxu0 %v1366_v50 }
  0x3c   :  { %737 = vmatmul.mubr.bf16.gmra.mrb[12].mxu1 %v1367_v51  ;;  %647 = vmatprep.mubr.bf16.mxu0 %v1368_v52 }
  0x3d   :  { %744 = vmatprep.mubr.bf16.mxu1 %v1370_v53 }
  0x43   :  { %648 = vmatmul.mubr.bf16.gmra.mrb[16].mxu0 %v1372_v54 }
  0x44   :  { %745 = vmatmul.mubr.bf16.gmra.mrb[16].mxu1 %v1373_v55  ;;  %655 = vmatprep.mubr.bf16.mxu0 %v1375_v56 }
  0x45   :  { %752 = vmatprep.mubr.bf16.mxu1 %v1377_v57 }
  0x4b   :  { %656 = vmatmul.mubr.bf16.gmra.mrb[20].mxu0 %v1379_v58 }
  0x4c   :  { %753 = vmatmul.mubr.bf16.gmra.mrb[20].mxu1 %v1380_v59  ;;  %663 = vmatprep.mubr.bf16.mxu0 %v1381_v60 }
  0x4d   :  { %760 = vmatprep.mubr.bf16.mxu1 %v1383_v61 }
  0x53   :  { %664 = vmatmul.mubr.bf16.gmra.mrb[24].mxu0 %v1385_v62 }
  0x54   :  { %761 = vmatmul.mubr.bf16.gmra.mrb[24].mxu1 %v1386_v63  ;;  %671 = vmatprep.mubr.bf16.mxu0 %v1388_v0 }
  0x55   :  { %768 = vmatprep.mubr.bf16.mxu1 %v1390_v1 }
  0x5b   :  { %672 = vmatmul.mubr.bf16.gmra.mrb[28].mxu0 %v1392_v2 }
  0x5c   :  { %769 = vmatmul.mubr.bf16.gmra.mrb[28].mxu1 %v1393_v3  ;;  %1286 = vmatprep.mubr.msk.bf16.mxu0 %vm558_vm0, %v1394_v4 }
  0x5d   :  { %1294 = vmatprep.mubr.msk.bf16.mxu1 %vm558_vm0, %v1395_v5 }
  0x63   :  { %1287 = vmatmul.mubr.msk.bf16.vlgmr.msra.gmra.mrb[32].mxu0 %vm558_vm0, %v1396_v6 }
  0x64   :  { %1295 = vmatmul.mubr.msk.bf16.vlgmr.msra.gmra.mrb[32].mxu1 %vm558_vm0, %v1397_v7  ;;  %1290 = vmatprep.mubr.msk.bf16.mxu0 %vm558_vm0, %v1398_v8 }
  0x65   :  { %1298 = vmatprep.mubr.msk.bf16.mxu1 %vm558_vm0, %v1399_v9 }
  0x6b   :  { %1291 = vmatmul.mubr.msk.bf16.gmra.mrb[36].mxu0 %vm558_vm0, %v1400_v10 }
  0x6c   :  { %1299 = vmatmul.mubr.msk.bf16.gmra.mrb[36].mxu1 %vm558_vm0, %v1401_v11 }
  0xf6   :  { %v1154_v12 = vpop.f32.mrb[0].mxu0 }
  0xf7   :  { %v1218_v13 = vpop.f32.mrb[0].mxu1  ;;  %v1155_v15 = vpop.f32.mrb[1].mxu0 }
  0xf8   :  { %v1156_v16 = vadd.f32 %v1155_v15, %v1154_v12  ;;  %v1219_v17 = vpop.f32.mrb[1].mxu1  ;;  %v1157_v18 = vpop.f32.mrb[2].mxu0 }
  0xf9   :  { %v1220_v19 = vadd.f32 %v1219_v17, %v1218_v13  ;;  %v1221_v20 = vpop.f32.mrb[2].mxu1  ;;  %v1158_v21 = vpop.f32.mrb[3].mxu0 }
  0xfa   :  { %v618_v22 = vadd.f32 %v1156_v16, %v1661_v14  ;;  %v1159_v23 = vadd.f32 %v1158_v21, %v1157_v18  ;;  %v1222_v24 = vpop.f32.mrb[3].mxu1 }
  0xfb   :  { %v1223_v25 = vadd.f32 %v1222_v24, %v1221_v20 }
  0xfc   :  { %v621_v26 = vadd.f32 %v1159_v23, %v1661_v14  ;;  %v1665_v27 = vadd.f32 %v1220_v19, %v618_v22 }
  0xfe   :  { %v1160_v28 = vpop.f32.mrb[4].mxu0  ;;  %v1667_v29 = vadd.f32 %v1223_v25, %v621_v26 }
  0xff   :  { %v1224_v30 = vpop.f32.mrb[4].mxu1  ;;  %v1161_v31 = vpop.f32.mrb[5].mxu0 }
 0x100   :  { %v1162_v32 = vadd.f32 %v1161_v31, %v1160_v28  ;;  %v1225_v33 = vpop.f32.mrb[5].mxu1  ;;  %v1163_v34 = vpop.f32.mrb[6].mxu0 }
 0x101   :  { %v1226_v35 = vadd.f32 %v1225_v33, %v1224_v30  ;;  %v1227_v36 = vpop.f32.mrb[6].mxu1  ;;  %v1164_v37 = vpop.f32.mrb[7].mxu0 }
 0x102   :  { %v626_v38 = vadd.f32 %v1162_v32, %v1661_v14  ;;  %v1165_v39 = vadd.f32 %v1164_v37, %v1163_v34  ;;  %v1228_v40 = vpop.f32.mrb[7].mxu1 }
 0x103   :  { %v1229_v41 = vadd.f32 %v1228_v40, %v1227_v36 }
 0x104   :  { %v629_v42 = vadd.f32 %v1165_v39, %v1661_v14  ;;  %v1671_v43 = vadd.f32 %v1226_v35, %v626_v38 }
 0x106   :  { %v1166_v44 = vpop.f32.mrb[8].mxu0  ;;  %v1673_v45 = vadd.f32 %v1229_v41, %v629_v42 }
 0x107   :  { %v1230_v46 = vpop.f32.mrb[8].mxu1  ;;  %v1167_v47 = vpop.f32.mrb[9].mxu0 }
 0x108   :  { %v1168_v48 = vadd.f32 %v1167_v47, %v1166_v44  ;;  %v1231_v49 = vpop.f32.mrb[9].mxu1  ;;  %v1169_v50 = vpop.f32.mrb[10].mxu0 }
 0x109   :  { %v1232_v51 = vadd.f32 %v1231_v49, %v1230_v46  ;;  %v1233_v52 = vpop.f32.mrb[10].mxu1  ;;  %v1170_v53 = vpop.f32.mrb[11].mxu0 }
 0x10a   :  { %v634_v54 = vadd.f32 %v1168_v48, %v1661_v14  ;;  %v1171_v55 = vadd.f32 %v1170_v53, %v1169_v50  ;;  %v1234_v56 = vpop.f32.mrb[11].mxu1 }
 0x10b   :  { %v1235_v57 = vadd.f32 %v1234_v56, %v1233_v52 }
 0x10c   :  { %v637_v58 = vadd.f32 %v1171_v55, %v1661_v14  ;;  %v1677_v59 = vadd.f32 %v1232_v51, %v634_v54 }
 0x10e   :  { %v1172_v60 = vpop.f32.mrb[12].mxu0  ;;  %v1679_v61 = vadd.f32 %v1235_v57, %v637_v58 }
 0x10f   :  { %v1236_v62 = vpop.f32.mrb[12].mxu1  ;;  %v1173_v63 = vpop.f32.mrb[13].mxu0 }
 0x110   :  { %v1174_v0 = vadd.f32 %v1173_v63, %v1172_v60  ;;  %v1237_v1 = vpop.f32.mrb[13].mxu1  ;;  %v1175_v2 = vpop.f32.mrb[14].mxu0 }
 0x111   :  { %v1238_v3 = vadd.f32 %v1237_v1, %v1236_v62  ;;  %v1239_v4 = vpop.f32.mrb[14].mxu1  ;;  %v1176_v5 = vpop.f32.mrb[15].mxu0 }
 0x112   :  { %v642_v6 = vadd.f32 %v1174_v0, %v1661_v14  ;;  %v1177_v7 = vadd.f32 %v1176_v5, %v1175_v2  ;;  %v1240_v8 = vpop.f32.mrb[15].mxu1 }
 0x113   :  { %v1241_v9 = vadd.f32 %v1240_v8, %v1239_v4 }
 0x114   :  { %v645_v10 = vadd.f32 %v1177_v7, %v1661_v14  ;;  %v1683_v11 = vadd.f32 %v1238_v3, %v642_v6 }
 0x116   :  { %v1178_v12 = vpop.f32.mrb[16].mxu0  ;;  %v1685_v13 = vadd.f32 %v1241_v9, %v645_v10 }
 0x117   :  { %v1242_v15 = vpop.f32.mrb[16].mxu1  ;;  %v1179_v16 = vpop.f32.mrb[17].mxu0 }
 0x118   :  { %v1180_v17 = vadd.f32 %v1179_v16, %v1178_v12  ;;  %v1243_v18 = vpop.f32.mrb[17].mxu1  ;;  %v1181_v19 = vpop.f32.mrb[18].mxu0 }
 0x119   :  { %v1244_v20 = vadd.f32 %v1243_v18, %v1242_v15  ;;  %v1245_v21 = vpop.f32.mrb[18].mxu1  ;;  %v1182_v22 = vpop.f32.mrb[19].mxu0 }
 0x11a   :  { %v650_v23 = vadd.f32 %v1180_v17, %v1661_v14  ;;  %v1183_v24 = vadd.f32 %v1182_v22, %v1181_v19  ;;  %v1246_v25 = vpop.f32.mrb[19].mxu1 }
 0x11b   :  { %v1247_v26 = vadd.f32 %v1246_v25, %v1245_v21 }
 0x11c   :  { %v653_v28 = vadd.f32 %v1183_v24, %v1661_v14  ;;  %v747_v30 = vadd.f32 %v1244_v20, %v650_v23 }
 0x11e   :  { %v1184_v31 = vpop.f32.mrb[20].mxu0  ;;  %v1689_v32 = vadd.f32 %v1247_v26, %v653_v28 }
 0x11f   :  { %v1248_v33 = vpop.f32.mrb[20].mxu1  ;;  %v1185_v34 = vpop.f32.mrb[21].mxu0 }
 0x120   :  { %v1186_v35 = vadd.f32 %v1185_v34, %v1184_v31  ;;  %v1249_v36 = vpop.f32.mrb[21].mxu1  ;;  %v1187_v37 = vpop.f32.mrb[22].mxu0 }
 0x121   :  { %v1250_v38 = vadd.f32 %v1249_v36, %v1248_v33  ;;  %v1251_v39 = vpop.f32.mrb[22].mxu1  ;;  %v1188_v40 = vpop.f32.mrb[23].mxu0 }
 0x122   :  { %v658_v41 = vadd.f32 %v1186_v35, %v1661_v14  ;;  %v1189_v42 = vadd.f32 %v1188_v40, %v1187_v37  ;;  %v1252_v44 = vpop.f32.mrb[23].mxu1 }
 0x123   :  { %v1253_v46 = vadd.f32 %v1252_v44, %v1251_v39 }
 0x124   :  { %v661_v47 = vadd.f32 %v1189_v42, %v1661_v14  ;;  %v755_v48 = vadd.f32 %v1250_v38, %v658_v41 }
 0x126   :  { %v1190_v49 = vpop.f32.mrb[24].mxu0  ;;  %v758_v50 = vadd.f32 %v1253_v46, %v661_v47 }
 0x127   :  { %v1254_v51 = vpop.f32.mrb[24].mxu1  ;;  %v1191_v52 = vpop.f32.mrb[25].mxu0 }
 0x128   :  { %v1192_v53 = vadd.f32 %v1191_v52, %v1190_v49  ;;  %v1255_v54 = vpop.f32.mrb[25].mxu1  ;;  %v1193_v55 = vpop.f32.mrb[26].mxu0 }
 0x129   :  { %v1256_v56 = vadd.f32 %v1255_v54, %v1254_v51  ;;  %v1257_v57 = vpop.f32.mrb[26].mxu1  ;;  %v1194_v58 = vpop.f32.mrb[27].mxu0 }
 0x12a   :  { %v666_v60 = vadd.f32 %v1192_v53, %v1661_v14  ;;  %v1195_v62 = vadd.f32 %v1194_v58, %v1193_v55  ;;  %v1258_v63 = vpop.f32.mrb[27].mxu1 }
 0x12b   :  { %v1259_v0 = vadd.f32 %v1258_v63, %v1257_v57 }
 0x12c   :  { %v669_v1 = vadd.f32 %v1195_v62, %v1661_v14  ;;  %v763_v2 = vadd.f32 %v1256_v56, %v666_v60 }
 0x12e   :  { %v1196_v3 = vpop.f32.mrb[28].mxu0  ;;  %v1695_v4 = vadd.f32 %v1259_v0, %v669_v1 }
 0x12f   :  { %v1260_v5 = vpop.f32.mrb[28].mxu1  ;;  %v1197_v6 = vpop.f32.mrb[29].mxu0 }
 0x130   :  { %v1198_v7 = vadd.f32 %v1197_v6, %v1196_v3  ;;  %v1261_v8 = vpop.f32.mrb[29].mxu1  ;;  %v1199_v9 = vpop.f32.mrb[30].mxu0 }
 0x131   :  { %v1262_v10 = vadd.f32 %v1261_v8, %v1260_v5  ;;  %v1263_v12 = vpop.f32.mrb[30].mxu1  ;;  %v1200_v15 = vpop.f32.mrb[31].mxu0 }
 0x132   :  { %v674_v16 = vadd.f32 %v1198_v7, %v1661_v14  ;;  %v1201_v17 = vadd.f32 %v1200_v15, %v1199_v9  ;;  %v1264_v18 = vpop.f32.mrb[31].mxu1 }
 0x133   :  { %v1265_v19 = vadd.f32 %v1264_v18, %v1263_v12 }
 0x134   :  { %v677_v20 = vadd.f32 %v1201_v17, %v1661_v14  ;;  %v771_v21 = vadd.f32 %v1262_v10, %v674_v16 }
 0x136   :  { %v1288_v22 = vpop.f32.mrb[32].mxu0  ;;  %v774_v23 = vadd.f32 %v1265_v19, %v677_v20 }
 0x137   :  { %v820_v24 = vadd.f32 %v1288_v22, %v1671_v43  ;;  %v1296_v25 = vpop.f32.mrb[32].mxu1  ;;  %v811_v26 = vpop.f32.mrb[33].mxu0 }
 0x138   :  { %v852_v28 = vadd.f32 %v1296_v25, %v755_v48  ;;  %v812_v31 = vadd.f32 %v811_v26, %v1665_v27  ;;  %v843_v33 = vpop.f32.mrb[33].mxu1  ;;  %v1289_v34 = vpop.f32.mrb[34].mxu0 }
 0x139   :  { %v844_v35 = vadd.f32 %v843_v33, %v747_v30  ;;  %v823_v36 = vadd.f32 %v1289_v34, %v1673_v45  ;;  %v1297_v37 = vpop.f32.mrb[34].mxu1  ;;  %v814_v38 = vpop.f32.mrb[35].mxu0  ;;  %v876_v41 = vmax.f32 %v820_v24, 0.0 }
 0x13a   :  { %v855_v39 = vadd.f32 %v1297_v37, %v758_v50  ;;  %v815_v14 = vadd.f32 %v814_v38, %v1667_v29  ;;  %v846_v40 = vpop.f32.mrb[35].mxu1  ;;  %v884_v44 = vmax.f32 %v852_v28, 0.0  ;;  %v874_v46 = vmax.f32 %v812_v31, 0.0 }
 0x13b   :  { %v877_v42 = vmax.f32 %v823_v36, 0.0  ;;  %v847_v43 = vadd.f32 %v846_v40, %v1689_v32  ;;  %v882_v27 = vmax.f32 %v844_v35, 0.0 }
 0x13c   :  { %v885_v47 = vmax.f32 %v855_v39, 0.0  ;;  %v875_v48 = vmax.f32 %v815_v14, 0.0 }
 0x13d   :  { %v1099_v49 = vpack.c.bf16 %v877_v42, %v876_v41  ;;  %v883_v51 = vmax.f32 %v847_v43, 0.0 }
 0x13e   :  { %v1119_v30 = vpack.c.bf16 %v885_v47, %v884_v44  ;;  %v1094_v52 = vpack.c.bf16 %v875_v48, %v874_v46  ;;  %v1292_v45 = vpop.f32.mrb[36].mxu0 }
 0x13f   :  { %1131 = vst [vmem:[%s1736_s3 + $0x8] sm:$0xff] %v1099_v49   ;;  %v1114_v29 = vpack.c.bf16 %v883_v51, %v882_v27  ;;  %v836_v50 = vadd.f32 %v1292_v45, %v1683_v11  ;;  %v1300_v53 = vpop.f32.mrb[36].mxu1  ;;  %v827_v54 = vpop.f32.mrb[37].mxu0 }
 0x140   :  { %1135 = vst [vmem:[%s1736_s3 + $0x28] sm:$0xff] %v1119_v30   ;;  %1095 = vst [vmem:[%s1736_s3] sm:$0xff] %v1094_v52   ;;  %v868_v32 = vadd.f32 %v1300_v53, %v771_v21  ;;  %v828_v55 = vadd.f32 %v827_v54, %v1677_v59  ;;  %v859_v56 = vpop.f32.mrb[37].mxu1  ;;  %v1293_v57 = vpop.f32.mrb[38].mxu0 }
 0x141   :  { %1134 = vst [vmem:[%s1736_s3 + $0x20] sm:$0xff] %v1114_v29   ;;  %v860_v11 = vadd.f32 %v859_v56, %v763_v2  ;;  %v839_v58 = vadd.f32 %v1293_v57, %v1685_v13  ;;  %v1301_v60 = vpop.f32.mrb[38].mxu1  ;;  %v830_v62 = vpop.f32.mrb[39].mxu0  ;;  %v880_v3 = vmax.f32 %v836_v50, 0.0 }
 0x142   :  { %v871_v63 = vadd.f32 %v1301_v60, %v774_v23  ;;  %v831_v0 = vadd.f32 %v830_v62, %v1679_v61  ;;  %v862_v1 = vpop.f32.mrb[39].mxu1  ;;  %v888_v59 = vmax.f32 %v868_v32, 0.0  ;;  %v878_v7 = vmax.f32 %v828_v55, 0.0 }
 0x143   :  { %v881_v5 = vmax.f32 %v839_v58, 0.0  ;;  %v863_v6 = vadd.f32 %v862_v1, %v1695_v4  ;;  %v886_v10 = vmax.f32 %v860_v11, 0.0 }
 0x144   :  { %v889_v8 = vmax.f32 %v871_v63, 0.0  ;;  %v879_v9 = vmax.f32 %v831_v0, 0.0 }
 0x145   :  { %v1109_v12 = vpack.c.bf16 %v881_v5, %v880_v3  ;;  %v887_v15 = vmax.f32 %v863_v6, 0.0 }
 0x146   :  { %v1129_v2 = vpack.c.bf16 %v889_v8, %v888_v59  ;;  %v1104_v16 = vpack.c.bf16 %v879_v9, %v878_v7 }
 0x147   :  { %1133 = vst [vmem:[%s1736_s3 + $0x18] sm:$0xff] %v1109_v12   ;;  %v1124_v13 = vpack.c.bf16 %v887_v15, %v886_v10 }
 0x148   :  { %1137 = vst [vmem:[%s1736_s3 + $0x38] sm:$0xff] %v1129_v2   ;;  %1132 = vst [vmem:[%s1736_s3 + $0x10] sm:$0xff] %v1104_v16  }
 0x149   :  { %1136 = vst [vmem:[%s1736_s3 + $0x30] sm:$0xff] %v1124_v13  }

// kernel: beta_vae_forward.16
= control target key start
LH: loop header
LB: loop body
LE: loop exit
PB: predicated region body
PF: predicated region fallthrough
CT: control target
= control target key end

     0   :  { %v2584_v0 = vmov 0   ;;  %vm774_vm0 = vcmask 261120   ;;  %s3302_s1 = inlined_call_operand.vmem [shape: bf16[288,128], index: 1, kind: input, shape index: {}]   ;;  %s3303_s0 = inlined_call_operand.vmem [shape: bf16[512,288], index: 0, kind: input, shape index: {}]   ;;  %s3304_s2 = inlined_call_operand.vmem [shape: f32[1,128], index: 2, kind: input, shape index: {}]   ;;  %s3305_s3 = inlined_call_operand.vmem [shape: bf16[512,128], index: 3, kind: output, shape index: {}]  }
   0x1   :  { %871 = vmatprep.subr.bf16.mxu0 %v2584_v0  ;;  %2405 = vmatprep.subr.bf16.mxu1 %v2584_v0  ;;  %v2438_v1 = vld [vmem:[%s3302_s1] sm:$0xff]   ;;  %v2439_v2 = vld [vmem:[%s3302_s1 + $0x8] sm:$0xff]   ;;  %v2440_v3 = vld [vmem:[%s3302_s1 + $0x10] sm:$0xff]  }
   0x2   :  { %872 = vmatpush1.bf16.msra.mxu0 %v2438_v1  ;;  %2421 = vmatpush1.bf16.msra.mxu1 %v2438_v1  ;;  %v2441_v4 = vld [vmem:[%s3302_s1 + $0x18] sm:$0xff]   ;;  %v2442_v5 = vld [vmem:[%s3302_s1 + $0x20] sm:$0xff]   ;;  %v2443_v7 = vld [vmem:[%s3302_s1 + $0x28] sm:$0xff]  }
   0x3   :  { %873 = vmatprep.subr.bf16.mxu0 %v2584_v0  ;;  %2406 = vmatprep.subr.bf16.mxu1 %v2584_v0  ;;  %v2456_v6 = vld [vmem:[%s3303_s0 + $0x4] ss:$12 sps:$4 sm:$0xff]   ;;  %v2445_v10 = vld [vmem:[%s3302_s1 + $0x38] sm:$0xff]   ;;  %v2447_v12 = vld [vmem:[%s3302_s1 + $0x48] sm:$0xff]  }
   0x4   :  { %v2459_v8 = vld [vmem:[%s3303_s0 + $0x244] ss:$12 sps:$4 sm:$0xff]   ;;  %903 = vmatprep.mubr.bf16.mxu0 %v2456_v6  ;;  %v2449_v14 = vld [vmem:[%s3302_s1 + $0x58] sm:$0xff]   ;;  %v2451_v16 = vld [vmem:[%s3302_s1 + $0x68] sm:$0xff]  }
   0x5   :  { %1095 = vmatprep.mubr.bf16.mxu1 %v2459_v8  ;;  %v2444_v9 = vld [vmem:[%s3302_s1 + $0x30] sm:$0xff]   ;;  %v2446_v11 = vld [vmem:[%s3302_s1 + $0x40] sm:$0xff]   ;;  %v2453_v18 = vld [vmem:[%s3302_s1 + $0x78] sm:$0xff]  }
   0x6   :  { %874 = vmatpush1.bf16.msra.mxu0 %v2439_v2  ;;  %2422 = vmatpush1.bf16.msra.mxu1 %v2439_v2  ;;  %v2448_v13 = vld [vmem:[%s3302_s1 + $0x50] sm:$0xff]   ;;  %v2450_v15 = vld [vmem:[%s3302_s1 + $0x60] sm:$0xff]   ;;  %v2461_v22 = vld [vmem:[%s3303_s0 + $0x1c] ss:$12 sps:$4 sm:$0xff]  }
   0x7   :  { %875 = vmatprep.subr.bf16.mxu0 %v2584_v0  ;;  %2407 = vmatprep.subr.bf16.mxu1 %v2584_v0  ;;  %v2452_v17 = vld [vmem:[%s3302_s1 + $0x70] sm:$0xff]   ;;  %v2460_v19 = vld [vmem:[%s3302_s1 + $0x80] sm:$0xff]   ;;  %v2463_v23 = vld [vmem:[%s3303_s0 + $0x25c] ss:$12 sps:$4 sm:$0xff]  }
   0x8   :  { %v2454_v20 = vld [vmem:[%s3303_s0] ss:$12 sps:$4 sm:$0xff]   ;;  %v2465_v25 = vld [vmem:[%s3303_s0 + $0x18] ss:$12 sps:$4 sm:$0xff]   ;;  %v2471_v29 = vld [vmem:[%s3303_s0 + $0x30] ss:$12 sps:$4 sm:$0xff]  }
   0x9   :  { %v2457_v21 = vld [vmem:[%s3303_s0 + $0x240] ss:$12 sps:$4 sm:$0xff]   ;;  %v2466_v26 = vld [vmem:[%s3303_s0 + $0x258] ss:$12 sps:$4 sm:$0xff]   ;;  %v2472_v30 = vld [vmem:[%s3303_s0 + $0x270] ss:$12 sps:$4 sm:$0xff]  }
   0xa   :  { %876 = vmatpush1.bf16.msra.mxu0 %v2440_v3  ;;  %2423 = vmatpush1.bf16.msra.mxu1 %v2440_v3  ;;  %v2485_v24 = vld [vmem:[%s3302_s1 + $0x88] sm:$0xff]   ;;  %v2467_v27 = vld [vmem:[%s3303_s0 + $0x34] ss:$12 sps:$4 sm:$0xff]   ;;  %v2479_v35 = vld [vmem:[%s3303_s0 + $0x64] ss:$12 sps:$4 sm:$0xff]  }
   0xb   :  { %877 = vmatprep.subr.bf16.mxu0 %v2584_v0  ;;  %2408 = vmatprep.subr.bf16.mxu1 %v2584_v0  ;;  %v2469_v28 = vld [vmem:[%s3303_s0 + $0x274] ss:$12 sps:$4 sm:$0xff]   ;;  %v2473_v31 = vld [vmem:[%s3303_s0 + $0x4c] ss:$12 sps:$4 sm:$0xff]   ;;  %v2481_v36 = vld [vmem:[%s3303_s0 + $0x2a4] ss:$12 sps:$4 sm:$0xff]  }
   0xc   :  { %v2475_v32 = vld [vmem:[%s3303_s0 + $0x28c] ss:$12 sps:$4 sm:$0xff]   ;;  %v2477_v33 = vld [vmem:[%s3303_s0 + $0x48] ss:$12 sps:$4 sm:$0xff]   ;;  %v2496_v45 = vld [vmem:[%s3303_s0 + $0x90] ss:$12 sps:$4 sm:$0xff]  }
   0xd   :  { %v2478_v34 = vld [vmem:[%s3303_s0 + $0x288] ss:$12 sps:$4 sm:$0xff]   ;;  %v2483_v37 = vld [vmem:[%s3303_s0 + $0x60] ss:$12 sps:$4 sm:$0xff]   ;;  %v2490_v41 = vld [vmem:[%s3303_s0 + $0x78] ss:$12 sps:$4 sm:$0xff]  }
   0xe   :  { %878 = vmatpush1.bf16.msra.mxu0 %v2441_v4  ;;  %2424 = vmatpush1.bf16.msra.mxu1 %v2441_v4  ;;  %v2484_v38 = vld [vmem:[%s3303_s0 + $0x2a0] ss:$12 sps:$4 sm:$0xff]   ;;  %v2486_v39 = vld [vmem:[%s3303_s0 + $0x7c] ss:$12 sps:$4 sm:$0xff]   ;;  %v2491_v42 = vld [vmem:[%s3303_s0 + $0x2b8] ss:$12 sps:$4 sm:$0xff]  }
   0xf   :  { %879 = vmatprep.subr.bf16.mxu0 %v2584_v0  ;;  %2409 = vmatprep.subr.bf16.mxu1 %v2584_v0  ;;  %v2488_v40 = vld [vmem:[%s3303_s0 + $0x2bc] ss:$12 sps:$4 sm:$0xff]   ;;  %v2492_v43 = vld [vmem:[%s3303_s0 + $0x94] ss:$12 sps:$4 sm:$0xff]   ;;  %v2498_v47 = vld [vmem:[%s3303_s0 + $0xac] ss:$12 sps:$4 sm:$0xff]  }
  0x10   :  { %v2494_v44 = vld [vmem:[%s3303_s0 + $0x2d4] ss:$12 sps:$4 sm:$0xff]   ;;  %v2497_v46 = vld [vmem:[%s3303_s0 + $0x2d0] ss:$12 sps:$4 sm:$0xff]   ;;  %v2500_v48 = vld [vmem:[%s3303_s0 + $0x2ec] ss:$12 sps:$4 sm:$0xff]  }
  0x11   :  { %v2502_v49 = vld [vmem:[%s3303_s0 + $0xa8] ss:$12 sps:$4 sm:$0xff]   ;;  %v2504_v51 = vld [vmem:[%s3303_s0 + $0xc4] ss:$12 sps:$4 sm:$0xff]   ;;  %v2507_v53 = vld [vmem:[%s3303_s0 + $0xc0] ss:$12 sps:$4 sm:$0xff]  }
  0x12   :  { %880 = vmatpush1.bf16.msra.mxu0 %v2442_v5  ;;  %2425 = vmatpush1.bf16.msra.mxu1 %v2442_v5  ;;  %v2503_v50 = vld [vmem:[%s3303_s0 + $0x2e8] ss:$12 sps:$4 sm:$0xff]   ;;  %v2508_v54 = vld [vmem:[%s3303_s0 + $0x20] ss:$12 sps:$4 sm:$0xff]   ;;  %v2511_v56 = vld [vmem:[%s3303_s0 + $0x38] ss:$12 sps:$4 sm:$0xff]  }
  0x13   :  { %881 = vmatprep.subr.bf16.mxu0 %v2584_v0  ;;  %2410 = vmatprep.subr.bf16.mxu1 %v2584_v0  ;;  %v2506_v52 = vld [vmem:[%s3303_s0 + $0x8] ss:$12 sps:$4 sm:$0xff]   ;;  %v2512_v57 = vld [vmem:[%s3303_s0 + $0xd8] ss:$12 sps:$4 sm:$0xff]   ;;  %v2513_v58 = vld [vmem:[%s3303_s0 + $0x50] ss:$12 sps:$4 sm:$0xff]  }
  0x14   :  { %v2509_v55 = vld [vmem:[%s3303_s0 + $0xdc] ss:$12 sps:$4 sm:$0xff]   ;;  %v2514_v59 = vld [vmem:[%s3303_s0 + $0xf4] ss:$12 sps:$4 sm:$0xff]   ;;  %v2519_v63 = vld [vmem:[%s3303_s0 + $0x10c] ss:$12 sps:$4 sm:$0xff]  }
  0x15   :  { %v2516_v60 = vld [vmem:[%s3303_s0 + $0x68] ss:$12 sps:$4 sm:$0xff]   ;;  %v2517_v61 = vld [vmem:[%s3303_s0 + $0xf0] ss:$12 sps:$4 sm:$0xff]   ;;  %v2518_v62 = vld [vmem:[%s3303_s0 + $0x80] ss:$12 sps:$4 sm:$0xff]  }
  0x16   :  { %882 = vmatpush1.bf16.msra.mxu0 %v2443_v7  ;;  %2426 = vmatpush1.bf16.msra.mxu1 %v2443_v7  ;;  %v2522_v1 = vld [vmem:[%s3303_s0 + $0x108] ss:$12 sps:$4 sm:$0xff]   ;;  %v2523_v2 = vld [vmem:[%s3303_s0 + $0xb0] ss:$12 sps:$4 sm:$0xff]   ;;  %v2527_v5 = vld [vmem:[%s3303_s0 + $0x120] ss:$12 sps:$4 sm:$0xff]  }
  0x17   :  { %883 = vmatprep.subr.bf16.mxu0 %v2584_v0  ;;  %2411 = vmatprep.subr.bf16.mxu1 %v2584_v0  ;;  %v2524_v3 = vld [vmem:[%s3303_s0 + $0x124] ss:$12 sps:$4 sm:$0xff]   ;;  %v2526_v4 = vld [vmem:[%s3303_s0 + $0xc8] ss:$12 sps:$4 sm:$0xff]   ;;  %v2528_v6 = vld [vmem:[%s3303_s0 + $0xe0] ss:$12 sps:$4 sm:$0xff]  }
  0x18   :  { %v2529_v7 = vld [vmem:[%s3303_s0 + $0x13c] ss:$12 sps:$4 sm:$0xff]   ;;  %v2531_v8 = vld [vmem:[%s3303_s0 + $0xf8] ss:$12 sps:$4 sm:$0xff]  }
  0x1a   :  { %884 = vmatpush1.bf16.msra.mxu0 %v2444_v9  ;;  %2427 = vmatpush1.bf16.msra.mxu1 %v2444_v9  ;;  %v2532_v9 = vld [vmem:[%s3303_s0 + $0x138] ss:$12 sps:$4 sm:$0xff]  }
  0x1b   :  { %885 = vmatprep.subr.bf16.mxu0 %v2584_v0  ;;  %2412 = vmatprep.subr.bf16.mxu1 %v2584_v0 }
  0x1e   :  { %886 = vmatpush1.bf16.msra.mxu0 %v2445_v10  ;;  %2428 = vmatpush1.bf16.msra.mxu1 %v2445_v10  ;;  %v2533_v10 = vld [vmem:[%s3303_s0 + $0x110] ss:$12 sps:$4 sm:$0xff]  }
  0x1f   :  { %887 = vmatprep.subr.bf16.mxu0 %v2584_v0  ;;  %2413 = vmatprep.subr.bf16.mxu1 %v2584_v0 }
  0x22   :  { %888 = vmatpush1.bf16.msra.mxu0 %v2446_v11  ;;  %2429 = vmatpush1.bf16.msra.mxu1 %v2446_v11  ;;  %v2534_v11 = vld [vmem:[%s3303_s0 + $0x154] ss:$12 sps:$4 sm:$0xff]  }
  0x23   :  { %889 = vmatprep.subr.bf16.mxu0 %v2584_v0  ;;  %2414 = vmatprep.subr.bf16.mxu1 %v2584_v0 }
  0x26   :  { %890 = vmatpush1.bf16.msra.mxu0 %v2447_v12  ;;  %2430 = vmatpush1.bf16.msra.mxu1 %v2447_v12  ;;  %v2536_v12 = vld [vmem:[%s3303_s0 + $0x128] ss:$12 sps:$4 sm:$0xff]  }
  0x27   :  { %891 = vmatprep.subr.bf16.mxu0 %v2584_v0  ;;  %2415 = vmatprep.subr.bf16.mxu1 %v2584_v0 }
  0x2a   :  { %892 = vmatpush1.bf16.msra.mxu0 %v2448_v13  ;;  %2431 = vmatpush1.bf16.msra.mxu1 %v2448_v13  ;;  %v2537_v13 = vld [vmem:[%s3303_s0 + $0x150] ss:$12 sps:$4 sm:$0xff]  }
  0x2b   :  { %893 = vmatprep.subr.bf16.mxu0 %v2584_v0  ;;  %2416 = vmatprep.subr.bf16.mxu1 %v2584_v0 }
  0x2e   :  { %894 = vmatpush1.bf16.msra.mxu0 %v2449_v14  ;;  %2432 = vmatpush1.bf16.msra.mxu1 %v2449_v14  ;;  %v2538_v14 = vld [vmem:[%s3303_s0 + $0x140] ss:$12 sps:$4 sm:$0xff]  }
  0x2f   :  { %895 = vmatprep.subr.bf16.mxu0 %v2584_v0  ;;  %2417 = vmatprep.subr.bf16.mxu1 %v2584_v0 }
  0x32   :  { %896 = vmatpush1.bf16.msra.mxu0 %v2450_v15  ;;  %2433 = vmatpush1.bf16.msra.mxu1 %v2450_v15  ;;  %v2539_v15 = vld [vmem:[%s3303_s0 + $0x16c] ss:$12 sps:$4 sm:$0xff]  }
  0x33   :  { %897 = vmatprep.subr.bf16.mxu0 %v2584_v0  ;;  %2418 = vmatprep.subr.bf16.mxu1 %v2584_v0 }
  0x36   :  { %898 = vmatpush1.bf16.msra.mxu0 %v2451_v16  ;;  %2434 = vmatpush1.bf16.msra.mxu1 %v2451_v16  ;;  %v2541_v16 = vld [vmem:[%s3303_s0 + $0x158] ss:$12 sps:$4 sm:$0xff]  }
  0x37   :  { %899 = vmatprep.subr.bf16.mxu0 %v2584_v0  ;;  %2419 = vmatprep.subr.bf16.mxu1 %v2584_v0 }
  0x3a   :  { %900 = vmatpush1.bf16.msra.mxu0 %v2452_v17  ;;  %2435 = vmatpush1.bf16.msra.mxu1 %v2452_v17  ;;  %v2542_v17 = vld [vmem:[%s3303_s0 + $0x168] ss:$12 sps:$4 sm:$0xff]  }
  0x3b   :  { %901 = vmatprep.subr.bf16.mxu0 %v2584_v0  ;;  %2420 = vmatprep.subr.bf16.mxu1 %v2584_v0  ;;  %v2521_v0 = vld [vmem:[%s3303_s0 + $0x98] ss:$12 sps:$4 sm:$0xff]  }
  0x3e   :  { %902 = vmatpush1.bf16.msra.mxu0 %v2453_v18  ;;  %2436 = vmatpush1.bf16.msra.mxu1 %v2453_v18  ;;  %v2543_v18 = vld [vmem:[%s3303_s0 + $0x170] ss:$12 sps:$4 sm:$0xff]  }
  0x3f   :  { %2337 = vmatprep.subr.bf16.mxu1 %v2460_v19 }
  0x41   :  { %904 = vmatmul.mubr.bf16.vlgmr.msra.gmra.mrb[0].mxu0 %v2454_v20  ;;  %1096 = vmatmul.mubr.bf16.vlgmr.msra.gmra.mrb[0].mxu1 %v2457_v21  ;;  %v2546_v20 = vld [vmem:[%s3303_s0 + $0x188] ss:$12 sps:$4 sm:$0xff]   ;;  %v2547_v21 = vld [vmem:[%s3303_s0 + $0x180] ss:$12 sps:$4 sm:$0xff]  }
  0x42   :  { %2338 = vmatpush3.bf16.msra.mxu1 %v2460_v19  ;;  %911 = vmatprep.mubr.bf16.mxu0 %v2461_v22  ;;  %v2544_v19 = vld [vmem:[%s3303_s0 + $0x184] ss:$12 sps:$4 sm:$0xff]   ;;  %v2548_v22 = vld [vmem:[%s3303_s0 + $0x1a0] ss:$12 sps:$4 sm:$0xff]  }
  0x43   :  { %1103 = vmatprep.mubr.bf16.mxu1 %v2463_v23  ;;  %2339 = vmatprep.subr.bf16.mxu1 %v2485_v24  ;;  %v2549_v23 = vld [vmem:[%s3303_s0 + $0x19c] ss:$12 sps:$4 sm:$0xff]  }
  0x46   :  { %2340 = vmatpush3.bf16.msra.mxu1 %v2485_v24  ;;  %v2551_v24 = vld [vmem:[%s3303_s0 + $0x1b8] ss:$12 sps:$4 sm:$0xff]  }
  0x49   :  { %912 = vmatmul.mubr.bf16.gmra.mrb[4].mxu0 %v2465_v25  ;;  %1104 = vmatmul.mubr.bf16.gmra.mrb[4].mxu1 %v2466_v26  ;;  %v2552_v25 = vld [vmem:[%s3303_s0 + $0x198] ss:$12 sps:$4 sm:$0xff]   ;;  %v2553_v26 = vld [vmem:[%s3303_s0 + $0x1d0] ss:$12 sps:$4 sm:$0xff]  }
  0x4a   :  { %919 = vmatprep.mubr.bf16.mxu0 %v2467_v27  ;;  %1111 = vmatprep.mubr.bf16.mxu1 %v2469_v28  ;;  %v2554_v27 = vld [vmem:[%s3303_s0 + $0x1b4] ss:$12 sps:$4 sm:$0xff]  }
  0x4b   :  { %v2556_v28 = vld [vmem:[%s3303_s0 + $0x1e8] ss:$12 sps:$4 sm:$0xff]  }
  0x51   :  { %920 = vmatmul.mubr.bf16.gmra.mrb[8].mxu0 %v2471_v29  ;;  %1112 = vmatmul.mubr.bf16.gmra.mrb[8].mxu1 %v2472_v30  ;;  %v2557_v29 = vld [vmem:[%s3303_s0 + $0x1b0] ss:$12 sps:$4 sm:$0xff]   ;;  %v2558_v30 = vld [vmem:[%s3303_s0 + $0x200] ss:$12 sps:$4 sm:$0xff]  }
  0x52   :  { %927 = vmatprep.mubr.bf16.mxu0 %v2473_v31  ;;  %1119 = vmatprep.mubr.bf16.mxu1 %v2475_v32  ;;  %v2559_v31 = vld [vmem:[%s3303_s0 + $0x1cc] ss:$12 sps:$4 sm:$0xff]  }
  0x53   :  { %v2561_v32 = vld [vmem:[%s3303_s0 + $0x218] ss:$12 sps:$4 sm:$0xff]  }
  0x59   :  { %928 = vmatmul.mubr.bf16.gmra.mrb[12].mxu0 %v2477_v33  ;;  %1120 = vmatmul.mubr.bf16.gmra.mrb[12].mxu1 %v2478_v34  ;;  %v2562_v33 = vld [vmem:[%s3303_s0 + $0x1c8] ss:$12 sps:$4 sm:$0xff]   ;;  %v2563_v34 = vld [vmem:[%s3303_s0 + $0x230] ss:$12 sps:$4 sm:$0xff]  }
  0x5a   :  { %935 = vmatprep.mubr.bf16.mxu0 %v2479_v35  ;;  %1127 = vmatprep.mubr.bf16.mxu1 %v2481_v36  ;;  %v2564_v35 = vld [vmem:[%s3303_s0 + $0x1e4] ss:$12 sps:$4 sm:$0xff]   ;;  %v2566_v36 = vld [vmem:[%s3303_s0 + $0x248] ss:$12 sps:$4 sm:$0xff]  }
  0x61   :  { %936 = vmatmul.mubr.bf16.gmra.mrb[16].mxu0 %v2483_v37  ;;  %1128 = vmatmul.mubr.bf16.gmra.mrb[16].mxu1 %v2484_v38  ;;  %v2567_v37 = vld [vmem:[%s3303_s0 + $0x1e0] ss:$12 sps:$4 sm:$0xff]  }
  0x62   :  { %943 = vmatprep.mubr.bf16.mxu0 %v2486_v39  ;;  %1135 = vmatprep.mubr.bf16.mxu1 %v2488_v40  ;;  %v2568_v38 = vld [vmem:[%s3303_s0 + $0x260] ss:$12 sps:$4 sm:$0xff]   ;;  %v2569_v39 = vld [vmem:[%s3303_s0 + $0x1fc] ss:$12 sps:$4 sm:$0xff]   ;;  %v2571_v40 = vld [vmem:[%s3303_s0 + $0x278] ss:$12 sps:$4 sm:$0xff]  }
  0x69   :  { %944 = vmatmul.mubr.bf16.gmra.mrb[20].mxu0 %v2490_v41  ;;  %1136 = vmatmul.mubr.bf16.gmra.mrb[20].mxu1 %v2491_v42  ;;  %v2572_v41 = vld [vmem:[%s3303_s0 + $0x1f8] ss:$12 sps:$4 sm:$0xff]   ;;  %v2573_v42 = vld [vmem:[%s3303_s0 + $0x290] ss:$12 sps:$4 sm:$0xff]  }
  0x6a   :  { %951 = vmatprep.mubr.bf16.mxu0 %v2492_v43  ;;  %1143 = vmatprep.mubr.bf16.mxu1 %v2494_v44  ;;  %v2574_v43 = vld [vmem:[%s3303_s0 + $0x214] ss:$12 sps:$4 sm:$0xff]  }
  0x6b   :  { %v2576_v44 = vld [vmem:[%s3303_s0 + $0x2a8] ss:$12 sps:$4 sm:$0xff]  }
  0x71   :  { %952 = vmatmul.mubr.bf16.gmra.mrb[24].mxu0 %v2496_v45  ;;  %1144 = vmatmul.mubr.bf16.gmra.mrb[24].mxu1 %v2497_v46  ;;  %v2577_v45 = vld [vmem:[%s3303_s0 + $0x210] ss:$12 sps:$4 sm:$0xff]   ;;  %v2578_v46 = vld [vmem:[%s3303_s0 + $0x2c0] ss:$12 sps:$4 sm:$0xff]  }
  0x72   :  { %959 = vmatprep.mubr.bf16.mxu0 %v2498_v47  ;;  %1151 = vmatprep.mubr.bf16.mxu1 %v2500_v48  ;;  %v2579_v47 = vld [vmem:[%s3303_s0 + $0x22c] ss:$12 sps:$4 sm:$0xff]  }
  0x73   :  { %v2581_v48 = vld [vmem:[%s3303_s0 + $0x2d8] ss:$12 sps:$4 sm:$0xff]  }
  0x79   :  { %960 = vmatmul.mubr.bf16.gmra.mrb[28].mxu0 %v2502_v49  ;;  %1152 = vmatmul.mubr.bf16.gmra.mrb[28].mxu1 %v2503_v50  ;;  %v2582_v49 = vld [vmem:[%s3303_s0 + $0x228] ss:$12 sps:$4 sm:$0xff]   ;;  %v2583_v50 = vld [vmem:[%s3303_s0 + $0x2f0] ss:$12 sps:$4 sm:$0xff]  }
  0x7a   :  { %967 = vmatprep.mubr.bf16.mxu0 %v2504_v51  ;;  %2341 = vmatprep.mubr.msk.bf16.mxu1 %vm774_vm0, %v2506_v52 }
  0x81   :  { %968 = vmatmul.mubr.bf16.gmra.mrb[32].mxu0 %v2507_v53  ;;  %2342 = vmatmul.mubr.msk.bf16.vlgmr.msra.gmra.mrb[32].mxu1 %vm774_vm0, %v2508_v54 }
  0x82   :  { %975 = vmatprep.mubr.bf16.mxu0 %v2509_v55  ;;  %2345 = vmatprep.mubr.msk.bf16.mxu1 %vm774_vm0, %v2511_v56 }
  0x89   :  { %976 = vmatmul.mubr.bf16.gmra.mrb[36].mxu0 %v2512_v57  ;;  %2346 = vmatmul.mubr.msk.bf16.gmra.mrb[36].mxu1 %vm774_vm0, %v2513_v58 }
  0x8a   :  { %983 = vmatprep.mubr.bf16.mxu0 %v2514_v59  ;;  %2349 = vmatprep.mubr.msk.bf16.mxu1 %vm774_vm0, %v2516_v60 }
  0x91   :  { %984 = vmatmul.mubr.bf16.gmra.mrb[40].mxu0 %v2517_v61  ;;  %2350 = vmatmul.mubr.msk.bf16.gmra.mrb[40].mxu1 %vm774_vm0, %v2518_v62 }
  0x92   :  { %991 = vmatprep.mubr.bf16.mxu0 %v2519_v63  ;;  %2353 = vmatprep.mubr.msk.bf16.mxu1 %vm774_vm0, %v2521_v0 }
  0x99   :  { %992 = vmatmul.mubr.bf16.gmra.mrb[44].mxu0 %v2522_v1  ;;  %2354 = vmatmul.mubr.msk.bf16.gmra.mrb[44].mxu1 %vm774_vm0, %v2523_v2 }
  0x9a   :  { %999 = vmatprep.mubr.bf16.mxu0 %v2524_v3  ;;  %2357 = vmatprep.mubr.msk.bf16.mxu1 %vm774_vm0, %v2526_v4 }
  0xa1   :  { %1000 = vmatmul.mubr.bf16.gmra.mrb[48].mxu0 %v2527_v5  ;;  %2358 = vmatmul.mubr.msk.bf16.gmra.mrb[48].mxu1 %vm774_vm0, %v2528_v6 }
  0xa2   :  { %1007 = vmatprep.mubr.bf16.mxu0 %v2529_v7  ;;  %2361 = vmatprep.mubr.msk.bf16.mxu1 %vm774_vm0, %v2531_v8 }
  0xa9   :  { %1008 = vmatmul.mubr.bf16.gmra.mrb[52].mxu0 %v2532_v9  ;;  %2362 = vmatmul.mubr.msk.bf16.gmra.mrb[52].mxu1 %vm774_vm0, %v2533_v10 }
  0xaa   :  { %1015 = vmatprep.mubr.bf16.mxu0 %v2534_v11  ;;  %2365 = vmatprep.mubr.msk.bf16.mxu1 %vm774_vm0, %v2536_v12 }
  0xb1   :  { %1016 = vmatmul.mubr.bf16.gmra.mrb[56].mxu0 %v2537_v13  ;;  %2366 = vmatmul.mubr.msk.bf16.gmra.mrb[56].mxu1 %vm774_vm0, %v2538_v14 }
  0xb2   :  { %1023 = vmatprep.mubr.bf16.mxu0 %v2539_v15  ;;  %2369 = vmatprep.mubr.msk.bf16.mxu1 %vm774_vm0, %v2541_v16 }
  0xb9   :  { %1024 = vmatmul.mubr.bf16.gmra.mrb[60].mxu0 %v2542_v17  ;;  %2370 = vmatmul.mubr.msk.bf16.gmra.mrb[60].mxu1 %vm774_vm0, %v2543_v18 }
  0xba   :  { %1031 = vmatprep.mubr.bf16.mxu0 %v2544_v19  ;;  %2373 = vmatprep.mubr.msk.bf16.mxu1 %vm774_vm0, %v2546_v20 }
  0xc1   :  { %1032 = vmatmul.mubr.bf16.gmra.mrb[64].mxu0 %v2547_v21  ;;  %2374 = vmatmul.mubr.msk.bf16.gmra.mrb[64].mxu1 %vm774_vm0, %v2548_v22 }
  0xc2   :  { %1039 = vmatprep.mubr.bf16.mxu0 %v2549_v23  ;;  %2377 = vmatprep.mubr.msk.bf16.mxu1 %vm774_vm0, %v2551_v24 }
  0xc9   :  { %1040 = vmatmul.mubr.bf16.gmra.mrb[68].mxu0 %v2552_v25  ;;  %2378 = vmatmul.mubr.msk.bf16.gmra.mrb[68].mxu1 %vm774_vm0, %v2553_v26 }
  0xca   :  { %1047 = vmatprep.mubr.bf16.mxu0 %v2554_v27  ;;  %2381 = vmatprep.mubr.msk.bf16.mxu1 %vm774_vm0, %v2556_v28 }
  0xd1   :  { %1048 = vmatmul.mubr.bf16.gmra.mrb[72].mxu0 %v2557_v29  ;;  %2382 = vmatmul.mubr.msk.bf16.gmra.mrb[72].mxu1 %vm774_vm0, %v2558_v30 }
  0xd2   :  { %1055 = vmatprep.mubr.bf16.mxu0 %v2559_v31  ;;  %2385 = vmatprep.mubr.msk.bf16.mxu1 %vm774_vm0, %v2561_v32 }
  0xd9   :  { %1056 = vmatmul.mubr.bf16.gmra.mrb[76].mxu0 %v2562_v33  ;;  %2386 = vmatmul.mubr.msk.bf16.gmra.mrb[76].mxu1 %vm774_vm0, %v2563_v34 }
  0xda   :  { %1063 = vmatprep.mubr.bf16.mxu0 %v2564_v35  ;;  %2389 = vmatprep.mubr.msk.bf16.mxu1 %vm774_vm0, %v2566_v36 }
  0xe1   :  { %1064 = vmatmul.mubr.bf16.gmra.mrb[80].mxu0 %v2567_v37  ;;  %2390 = vmatmul.mubr.msk.bf16.gmra.mrb[80].mxu1 %vm774_vm0, %v2568_v38 }
  0xe2   :  { %1071 = vmatprep.mubr.bf16.mxu0 %v2569_v39  ;;  %2393 = vmatprep.mubr.msk.bf16.mxu1 %vm774_vm0, %v2571_v40 }
  0xe9   :  { %1072 = vmatmul.mubr.bf16.gmra.mrb[84].mxu0 %v2572_v41  ;;  %2394 = vmatmul.mubr.msk.bf16.gmra.mrb[84].mxu1 %vm774_vm0, %v2573_v42 }
  0xea   :  { %1079 = vmatprep.mubr.bf16.mxu0 %v2574_v43  ;;  %2397 = vmatprep.mubr.msk.bf16.mxu1 %vm774_vm0, %v2576_v44 }
  0xf1   :  { %1080 = vmatmul.mubr.bf16.gmra.mrb[88].mxu0 %v2577_v45  ;;  %2398 = vmatmul.mubr.msk.bf16.gmra.mrb[88].mxu1 %vm774_vm0, %v2578_v46 }
  0xf2   :  { %1087 = vmatprep.mubr.bf16.mxu0 %v2579_v47  ;;  %2401 = vmatprep.mubr.msk.bf16.mxu1 %vm774_vm0, %v2581_v48 }
  0xf9   :  { %1088 = vmatmul.mubr.bf16.gmra.mrb[92].mxu0 %v2582_v49  ;;  %2402 = vmatmul.mubr.msk.bf16.gmra.mrb[92].mxu1 %vm774_vm0, %v2583_v50 }
 0x114   :  { %v3011_v51 = vpop.f32.mrb[0].mxu0  ;;  %v3013_v52 = vpop.f32.mrb[0].mxu1 }
 0x115   :  { %v907_v53 = vpop.f32.mrb[1].mxu0  ;;  %v1099_v54 = vpop.f32.mrb[1].mxu1 }
 0x116   :  { %v3015_v55 = vpop.f32.mrb[2].mxu0  ;;  %v3017_v56 = vpop.f32.mrb[2].mxu1  ;;  %v3074_v53 = vld [vmem:[%s3304_s2] ss:$0 sm:$0xff] }
 0x117   :  { %v910_v57 = vpop.f32.mrb[3].mxu0  ;;  %v1102_v58 = vpop.f32.mrb[3].mxu1 }
 0x118   :  { %v906_v57 = vadd.f32 %v3074_v53, %v3011_v51 }
 0x11c   :  { %v913_v59 = vpop.f32.mrb[4].mxu0  ;;  %v3019_v60 = vpop.f32.mrb[4].mxu1 }
 0x11d   :  { %v915_v61 = vpop.f32.mrb[5].mxu0  ;;  %v1107_v62 = vpop.f32.mrb[5].mxu1  ;;  %v914_v54 = vadd.f32 %v3074_v53, %v913_v59 }
 0x11e   :  { %v916_v63 = vpop.f32.mrb[6].mxu0  ;;  %v3021_v0 = vpop.f32.mrb[6].mxu1 }
 0x11f   :  { %v918_v1 = vpop.f32.mrb[7].mxu0  ;;  %v1110_v2 = vpop.f32.mrb[7].mxu1  ;;  %v917_v62 = vadd.f32 %v3074_v53, %v916_v63 }
 0x124   :  { %v3023_v3 = vpop.f32.mrb[8].mxu0  ;;  %v3025_v4 = vpop.f32.mrb[8].mxu1 }
 0x125   :  { %v923_v5 = vpop.f32.mrb[9].mxu0  ;;  %v1115_v6 = vpop.f32.mrb[9].mxu1 }
 0x126   :  { %v3027_v7 = vpop.f32.mrb[10].mxu0  ;;  %v3029_v8 = vpop.f32.mrb[10].mxu1  ;;  %v909_v6 = vadd.f32 %v3074_v53, %v3015_v55 }
 0x127   :  { %v926_v9 = vpop.f32.mrb[11].mxu0  ;;  %v1118_v10 = vpop.f32.mrb[11].mxu1 }
 0x12c   :  { %v3031_v11 = vpop.f32.mrb[12].mxu0  ;;  %v3033_v12 = vpop.f32.mrb[12].mxu1 }
 0x12d   :  { %v931_v13 = vpop.f32.mrb[13].mxu0  ;;  %v1123_v14 = vpop.f32.mrb[13].mxu1  ;;  %v930_v63 = vadd.f32 %v3074_v53, %v3031_v11  ;;  %v925_v11 = vadd.f32 %v3074_v53, %v3027_v7 }
 0x12e   :  { %v3035_v15 = vpop.f32.mrb[14].mxu0  ;;  %v3037_v16 = vpop.f32.mrb[14].mxu1 }
 0x12f   :  { %v934_v17 = vpop.f32.mrb[15].mxu0  ;;  %v1126_v18 = vpop.f32.mrb[15].mxu1 }
 0x134   :  { %v3039_v19 = vpop.f32.mrb[16].mxu0  ;;  %v3041_v20 = vpop.f32.mrb[16].mxu1 }
 0x135   :  { %v939_v21 = vpop.f32.mrb[17].mxu0  ;;  %v1131_v22 = vpop.f32.mrb[17].mxu1 }
 0x136   :  { %v3043_v23 = vpop.f32.mrb[18].mxu0  ;;  %v3045_v24 = vpop.f32.mrb[18].mxu1 }
 0x137   :  { %v942_v25 = vpop.f32.mrb[19].mxu0  ;;  %v1134_v26 = vpop.f32.mrb[19].mxu1 }
 0x13c   :  { %v3047_v27 = vpop.f32.mrb[20].mxu0  ;;  %v3049_v28 = vpop.f32.mrb[20].mxu1 }
 0x13d   :  { %v947_v29 = vpop.f32.mrb[21].mxu0  ;;  %v1139_v30 = vpop.f32.mrb[21].mxu1 }
 0x13e   :  { %v3051_v31 = vpop.f32.mrb[22].mxu0  ;;  %v3053_v32 = vpop.f32.mrb[22].mxu1  ;;  %v922_v29 = vadd.f32 %v3074_v53, %v3023_v3 }
 0x13f   :  { %v950_v33 = vpop.f32.mrb[23].mxu0  ;;  %v1142_v34 = vpop.f32.mrb[23].mxu1 }
 0x140   :  { %v933_v34 = vadd.f32 %v3074_v53, %v3035_v15 }
 0x144   :  { %v3055_v35 = vpop.f32.mrb[24].mxu0  ;;  %v3057_v36 = vpop.f32.mrb[24].mxu1 }
 0x145   :  { %v955_v37 = vpop.f32.mrb[25].mxu0  ;;  %v1147_v38 = vpop.f32.mrb[25].mxu1 }
 0x146   :  { %v3059_v39 = vpop.f32.mrb[26].mxu0  ;;  %v3061_v40 = vpop.f32.mrb[26].mxu1 }
 0x147   :  { %v958_v41 = vpop.f32.mrb[27].mxu0  ;;  %v1150_v42 = vpop.f32.mrb[27].mxu1 }
 0x14c   :  { %v3063_v43 = vpop.f32.mrb[28].mxu0  ;;  %v3065_v44 = vpop.f32.mrb[28].mxu1 }
 0x14d   :  { %v963_v45 = vpop.f32.mrb[29].mxu0  ;;  %v1155_v46 = vpop.f32.mrb[29].mxu1 }
 0x14e   :  { %v3067_v47 = vpop.f32.mrb[30].mxu0  ;;  %v3069_v48 = vpop.f32.mrb[30].mxu1 }
 0x14f   :  { %v966_v49 = vpop.f32.mrb[31].mxu0  ;;  %v1158_v50 = vpop.f32.mrb[31].mxu1 }
 0x154   :  { %v3079_v58 = vpop.f32.mrb[32].mxu0  ;;  %v2343_v61 = vpop.f32.mrb[32].mxu1 }
 0x155   :  { %v1203_v1 = vadd.f32 %v2343_v61, %v914_v54  ;;  %v971_v2 = vpop.f32.mrb[33].mxu0  ;;  %v1194_v5 = vpop.f32.mrb[33].mxu1 }
 0x156   :  { %v1195_v9 = vadd.f32 %v1194_v5, %v906_v57  ;;  %v3084_v10 = vpop.f32.mrb[34].mxu0  ;;  %v2344_v13 = vpop.f32.mrb[34].mxu1  ;;  %v938_v2 = vadd.f32 %v3074_v53, %v3039_v19 }
 0x157   :  { %v1206_v14 = vadd.f32 %v2344_v13, %v917_v62  ;;  %v974_v59 = vpop.f32.mrb[35].mxu0  ;;  %v1197_v17 = vpop.f32.mrb[35].mxu1  ;;  %v1451_v51 = vmax.f32 %v1203_v1, 0.0  ;;  %v946_v1 = vadd.f32 %v3074_v53, %v3047_v27  ;;  %v949_v13 = vadd.f32 %v3074_v53, %v3051_v31 }
 0x158   :  { %v1198_v18 = vadd.f32 %v1197_v17, %v909_v6  ;;  %v1449_v22 = vmax.f32 %v1195_v9, 0.0  ;;  %v941_v27 = vadd.f32 %v3074_v53, %v3043_v23 }
 0x159   :  { %v1452_v21 = vmax.f32 %v1206_v14, 0.0 }
 0x15a   :  { %v1450_v25 = vmax.f32 %v1198_v18, 0.0 }
 0x15b   :  { %v2120_v26 = vpack.c.bf16 %v1452_v21, %v1451_v51 }
 0x15c   :  { %v2115_v55 = vpack.c.bf16 %v1450_v25, %v1449_v22  ;;  %v3090_v30 = vpop.f32.mrb[36].mxu0  ;;  %v2347_v33 = vpop.f32.mrb[36].mxu1 }
 0x15d   :  { %2272 = vst [vmem:[%s3305_s3 + $0x8] sm:$0xff] %v2120_v26   ;;  %v1219_v37 = vadd.f32 %v2347_v33, %v930_v63  ;;  %v979_v38 = vpop.f32.mrb[37].mxu0  ;;  %v1210_v41 = vpop.f32.mrb[37].mxu1  ;;  %v962_v33 = vadd.f32 %v3074_v53, %v3063_v43  ;;  %v957_v43 = vadd.f32 %v3074_v53, %v3059_v39  ;;  %v970_v39 = vadd.f32 %v3074_v53, %v3079_v58 }
 0x15e   :  { %2116 = vst [vmem:[%s3305_s3] sm:$0xff] %v2115_v55   ;;  %v1211_v3 = vadd.f32 %v1210_v41, %v922_v29  ;;  %v3102_v42 = vpop.f32.mrb[38].mxu0  ;;  %v2348_v45 = vpop.f32.mrb[38].mxu1 }
 0x15f   :  { %v1222_v46 = vadd.f32 %v2348_v45, %v933_v34  ;;  %v982_v15 = vpop.f32.mrb[39].mxu0  ;;  %v1213_v49 = vpop.f32.mrb[39].mxu1  ;;  %v1455_v54 = vmax.f32 %v1219_v37, 0.0  ;;  %v954_v34 = vadd.f32 %v3074_v53, %v3055_v35 }
 0x160   :  { %v1214_v50 = vadd.f32 %v1213_v49, %v925_v11  ;;  %v1453_v61 = vmax.f32 %v1211_v3, 0.0  ;;  %v965_v11 = vadd.f32 %v3074_v53, %v3067_v47 }
 0x161   :  { %v1456_v57 = vmax.f32 %v1222_v46, 0.0 }
 0x162   :  { %v1454_v62 = vmax.f32 %v1214_v50, 0.0 }
 0x163   :  { %v2130_v7 = vpack.c.bf16 %v1456_v57, %v1455_v54 }
 0x164   :  { %v2125_v5 = vpack.c.bf16 %v1454_v62, %v1453_v61  ;;  %v3108_v6 = vpop.f32.mrb[40].mxu0  ;;  %v2351_v9 = vpop.f32.mrb[40].mxu1 }
 0x165   :  { %2274 = vst [vmem:[%s3305_s3 + $0x18] sm:$0xff] %v2130_v7   ;;  %v1235_v14 = vadd.f32 %v2351_v9, %v946_v1  ;;  %v987_v59 = vpop.f32.mrb[41].mxu0  ;;  %v1226_v17 = vpop.f32.mrb[41].mxu1 }
 0x166   :  { %2273 = vst [vmem:[%s3305_s3 + $0x10] sm:$0xff] %v2125_v5   ;;  %v1227_v19 = vadd.f32 %v1226_v17, %v938_v2  ;;  %v3120_v18 = vpop.f32.mrb[42].mxu0  ;;  %v2352_v51 = vpop.f32.mrb[42].mxu1  ;;  %v978_v2 = vadd.f32 %v3074_v53, %v3090_v30  ;;  %v981_v59 = vadd.f32 %v3074_v53, %v3102_v42  ;;  %v973_v30 = vadd.f32 %v3074_v53, %v3084_v10 }
 0x167   :  { %v1238_v21 = vadd.f32 %v2352_v51, %v949_v13  ;;  %v990_v31 = vpop.f32.mrb[43].mxu0  ;;  %v1229_v22 = vpop.f32.mrb[43].mxu1  ;;  %v1459_v63 = vmax.f32 %v1235_v14, 0.0  ;;  %v986_v10 = vadd.f32 %v3074_v53, %v3108_v6 }
 0x168   :  { %v1230_v25 = vadd.f32 %v1229_v22, %v941_v27  ;;  %v1457_v29 = vmax.f32 %v1227_v19, 0.0 }
 0x169   :  { %v1460_v26 = vmax.f32 %v1238_v21, 0.0 }
 0x16a   :  { %v1458_v55 = vmax.f32 %v1230_v25, 0.0 }
 0x16b   :  { %v2140_v23 = vpack.c.bf16 %v1460_v26, %v1459_v63 }
 0x16c   :  { %v2135_v37 = vpack.c.bf16 %v1458_v55, %v1457_v29  ;;  %v993_v38 = vpop.f32.mrb[44].mxu0  ;;  %v2355_v41 = vpop.f32.mrb[44].mxu1 }
 0x16d   :  { %2276 = vst [vmem:[%s3305_s3 + $0x28] sm:$0xff] %v2140_v23   ;;  %v1251_v3 = vadd.f32 %v2355_v41, %v962_v33  ;;  %v995_v45 = vpop.f32.mrb[45].mxu0  ;;  %v1242_v46 = vpop.f32.mrb[45].mxu1  ;;  %v994_v33 = vadd.f32 %v3074_v53, %v993_v38 }
 0x16e   :  { %2275 = vst [vmem:[%s3305_s3 + $0x20] sm:$0xff] %v2135_v37   ;;  %v1243_v35 = vadd.f32 %v1242_v46, %v954_v34  ;;  %v996_v15 = vpop.f32.mrb[46].mxu0  ;;  %v2356_v49 = vpop.f32.mrb[46].mxu1 }
 0x16f   :  { %v1254_v50 = vadd.f32 %v2356_v49, %v965_v11  ;;  %v998_v54 = vpop.f32.mrb[47].mxu0  ;;  %v1245_v47 = vpop.f32.mrb[47].mxu1  ;;  %v1463_v61 = vmax.f32 %v1251_v3, 0.0  ;;  %v997_v11 = vadd.f32 %v3074_v53, %v996_v15 }
 0x170   :  { %v1246_v57 = vadd.f32 %v1245_v47, %v957_v43  ;;  %v1461_v1 = vmax.f32 %v1243_v35, 0.0  ;;  %v989_v43 = vadd.f32 %v3074_v53, %v3120_v18 }
 0x171   :  { %v1464_v62 = vmax.f32 %v1254_v50, 0.0 }
 0x172   :  { %v1462_v7 = vmax.f32 %v1246_v57, 0.0 }
 0x173   :  { %v2150_v5 = vpack.c.bf16 %v1464_v62, %v1463_v61 }
 0x174   :  { %v2145_v9 = vpack.c.bf16 %v1462_v7, %v1461_v1  ;;  %v1001_v13 = vpop.f32.mrb[48].mxu0  ;;  %v2359_v14 = vpop.f32.mrb[48].mxu1 }
 0x175   :  { %2278 = vst [vmem:[%s3305_s3 + $0x38] sm:$0xff] %v2150_v5   ;;  %v1267_v17 = vadd.f32 %v2359_v14, %v978_v2  ;;  %v1003_v27 = vpop.f32.mrb[49].mxu0  ;;  %v1258_v19 = vpop.f32.mrb[49].mxu1  ;;  %v1002_v18 = vadd.f32 %v3074_v53, %v1001_v13 }
 0x176   :  { %2277 = vst [vmem:[%s3305_s3 + $0x30] sm:$0xff] %v2145_v9   ;;  %v1259_v58 = vadd.f32 %v1258_v19, %v970_v39  ;;  %v1004_v51 = vpop.f32.mrb[50].mxu0  ;;  %v2360_v21 = vpop.f32.mrb[50].mxu1 }
 0x177   :  { %v1270_v31 = vadd.f32 %v2360_v21, %v981_v59  ;;  %v1006_v22 = vpop.f32.mrb[51].mxu0  ;;  %v1261_v42 = vpop.f32.mrb[51].mxu1  ;;  %v1467_v63 = vmax.f32 %v1267_v17, 0.0  ;;  %v1005_v27 = vadd.f32 %v3074_v53, %v1004_v51 }
 0x178   :  { %v1262_v25 = vadd.f32 %v1261_v42, %v973_v30  ;;  %v1465_v29 = vmax.f32 %v1259_v58, 0.0 }
 0x179   :  { %v1468_v26 = vmax.f32 %v1270_v31, 0.0 }
 0x17a   :  { %v1466_v55 = vmax.f32 %v1262_v25, 0.0 }
 0x17b   :  { %v2160_v23 = vpack.c.bf16 %v1468_v26, %v1467_v63 }
 0x17c   :  { %v2155_v34 = vpack.c.bf16 %v1466_v55, %v1465_v29  ;;  %v1009_v37 = vpop.f32.mrb[52].mxu0  ;;  %v2363_v41 = vpop.f32.mrb[52].mxu1 }
 0x17d   :  { %2280 = vst [vmem:[%s3305_s3 + $0x48] sm:$0xff] %v2160_v23   ;;  %v1283_v3 = vadd.f32 %v2363_v41, %v994_v33  ;;  %v1011_v45 = vpop.f32.mrb[53].mxu0  ;;  %v1274_v46 = vpop.f32.mrb[53].mxu1  ;;  %v1010_v1 = vadd.f32 %v3074_v53, %v1009_v37 }
 0x17e   :  { %2279 = vst [vmem:[%s3305_s3 + $0x40] sm:$0xff] %v2155_v34   ;;  %v1275_v6 = vadd.f32 %v1274_v46, %v986_v10  ;;  %v1012_v38 = vpop.f32.mrb[54].mxu0  ;;  %v2364_v35 = vpop.f32.mrb[54].mxu1 }
 0x17f   :  { %v1286_v49 = vadd.f32 %v2364_v35, %v997_v11  ;;  %v1014_v50 = vpop.f32.mrb[55].mxu0  ;;  %v1277_v15 = vpop.f32.mrb[55].mxu1  ;;  %v1471_v47 = vmax.f32 %v1283_v3, 0.0  ;;  %v1013_v9 = vadd.f32 %v3074_v53, %v1012_v38 }
 0x180   :  { %v1278_v54 = vadd.f32 %v1277_v15, %v989_v43  ;;  %v1469_v61 = vmax.f32 %v1275_v6, 0.0 }
 0x181   :  { %v1472_v57 = vmax.f32 %v1286_v49, 0.0 }
 0x182   :  { %v1470_v62 = vmax.f32 %v1278_v54, 0.0 }
 0x183   :  { %v2170_v7 = vpack.c.bf16 %v1472_v57, %v1471_v47 }
 0x184   :  { %v2165_v2 = vpack.c.bf16 %v1470_v62, %v1469_v61  ;;  %v1017_v5 = vpop.f32.mrb[56].mxu0  ;;  %v2367_v39 = vpop.f32.mrb[56].mxu1 }
 0x185   :  { %2282 = vst [vmem:[%s3305_s3 + $0x58] sm:$0xff] %v2170_v7   ;;  %v1299_v14 = vadd.f32 %v2367_v39, %v1010_v1  ;;  %v1019_v59 = vpop.f32.mrb[57].mxu0  ;;  %v1290_v17 = vpop.f32.mrb[57].mxu1  ;;  %v1018_v55 = vadd.f32 %v3074_v53, %v1017_v5 }
 0x186   :  { %2281 = vst [vmem:[%s3305_s3 + $0x50] sm:$0xff] %v2165_v2   ;;  %v1291_v19 = vadd.f32 %v1290_v17, %v1002_v18  ;;  %v1020_v13 = vpop.f32.mrb[58].mxu0  ;;  %v2368_v30 = vpop.f32.mrb[58].mxu1 }
 0x187   :  { %v1302_v58 = vadd.f32 %v2368_v30, %v1013_v9  ;;  %v1022_v21 = vpop.f32.mrb[59].mxu0  ;;  %v1293_v31 = vpop.f32.mrb[59].mxu1  ;;  %v1475_v42 = vmax.f32 %v1299_v14, 0.0  ;;  %v1021_v41 = vadd.f32 %v3074_v53, %v1020_v13 }
 0x188   :  { %v1294_v22 = vadd.f32 %v1293_v31, %v1005_v27  ;;  %v1473_v63 = vmax.f32 %v1291_v19, 0.0 }
 0x189   :  { %v1476_v25 = vmax.f32 %v1302_v58, 0.0 }
 0x18a   :  { %v1474_v26 = vmax.f32 %v1294_v22, 0.0 }
 0x18b   :  { %v2180_v29 = vpack.c.bf16 %v1476_v25, %v1475_v42 }
 0x18c   :  { %v2175_v33 = vpack.c.bf16 %v1474_v26, %v1473_v63  ;;  %v1025_v51 = vpop.f32.mrb[60].mxu0  ;;  %v2371_v23 = vpop.f32.mrb[60].mxu1 }
 0x18d   :  { %2284 = vst [vmem:[%s3305_s3 + $0x68] sm:$0xff] %v2180_v29   ;;  %v1026_v10 = vadd.f32 %v3074_v53, %v1025_v51  ;;  %v1027_v34 = vpop.f32.mrb[61].mxu0  ;;  %v1306_v37 = vpop.f32.mrb[61].mxu1 }
 0x18e   :  { %2283 = vst [vmem:[%s3305_s3 + $0x60] sm:$0xff] %v2175_v33   ;;  %v1307_v11 = vadd.f32 %v1306_v37, %v1018_v55  ;;  %v1028_v3 = vpop.f32.mrb[62].mxu0  ;;  %v2372_v45 = vpop.f32.mrb[62].mxu1 }
 0x18f   :  { %v1315_v46 = vadd.f32 %v2371_v23, %v1026_v10  ;;  %v1029_v43 = vadd.f32 %v3074_v53, %v1028_v3  ;;  %v1030_v6 = vpop.f32.mrb[63].mxu0  ;;  %v1309_v38 = vpop.f32.mrb[63].mxu1 }
 0x190   :  { %v1310_v35 = vadd.f32 %v1309_v38, %v1021_v41  ;;  %v1477_v50 = vmax.f32 %v1307_v11, 0.0 }
 0x191   :  { %v1318_v49 = vadd.f32 %v2372_v45, %v1029_v43  ;;  %v1479_v54 = vmax.f32 %v1315_v46, 0.0 }
 0x192   :  { %v1478_v15 = vmax.f32 %v1310_v35, 0.0 }
 0x193   :  { %v1480_v47 = vmax.f32 %v1318_v49, 0.0 }
 0x194   :  { %v2185_v57 = vpack.c.bf16 %v1478_v15, %v1477_v50  ;;  %v1033_v61 = vpop.f32.mrb[64].mxu0  ;;  %v2375_v62 = vpop.f32.mrb[64].mxu1 }
 0x195   :  { %v2190_v1 = vpack.c.bf16 %v1480_v47, %v1479_v54  ;;  %v1034_v7 = vadd.f32 %v3074_v53, %v1033_v61  ;;  %v1035_v18 = vpop.f32.mrb[65].mxu0  ;;  %v1322_v2 = vpop.f32.mrb[65].mxu1 }
 0x196   :  { %2285 = vst [vmem:[%s3305_s3 + $0x70] sm:$0xff] %v2185_v57   ;;  %v1036_v5 = vpop.f32.mrb[66].mxu0  ;;  %v2376_v39 = vpop.f32.mrb[66].mxu1 }
 0x197   :  { %2286 = vst [vmem:[%s3305_s3 + $0x78] sm:$0xff] %v2190_v1   ;;  %v1323_v9 = vadd.f32 %v1322_v2, %v1034_v7  ;;  %v1037_v14 = vadd.f32 %v3074_v53, %v1036_v5  ;;  %v1038_v59 = vpop.f32.mrb[67].mxu0  ;;  %v1325_v17 = vpop.f32.mrb[67].mxu1 }
 0x199   :  { %v1326_v27 = vadd.f32 %v1325_v17, %v1037_v14  ;;  %v1481_v19 = vmax.f32 %v1323_v9, 0.0  ;;  %v1106_v17 = vadd.f32 %v3074_v53, %v3019_v60 }
 0x19b   :  { %v1482_v13 = vmax.f32 %v1326_v27, 0.0 }
 0x19c   :  { %v1041_v30 = vpop.f32.mrb[68].mxu0  ;;  %v2379_v58 = vpop.f32.mrb[68].mxu1 }
 0x19d   :  { %v2195_v21 = vpack.c.bf16 %v1482_v13, %v1481_v19  ;;  %v1042_v31 = vadd.f32 %v3074_v53, %v1041_v30  ;;  %v1043_v22 = vpop.f32.mrb[69].mxu0  ;;  %v1338_v42 = vpop.f32.mrb[69].mxu1  ;;  %v1098_v13 = vadd.f32 %v3074_v53, %v3013_v52 }
 0x19e   :  { %v1044_v25 = vpop.f32.mrb[70].mxu0  ;;  %v2380_v63 = vpop.f32.mrb[70].mxu1 }
 0x19f   :  { %2287 = vst [vmem:[%s3305_s3 + $0x80] sm:$0xff] %v2195_v21   ;;  %v1331_v26 = vadd.f32 %v2375_v62, %v1042_v31  ;;  %v1045_v29 = vadd.f32 %v3074_v53, %v1044_v25  ;;  %v1046_v55 = vpop.f32.mrb[71].mxu0  ;;  %v1341_v33 = vpop.f32.mrb[71].mxu1  ;;  %v1109_v31 = vadd.f32 %v3074_v53, %v3021_v0 }
 0x1a1   :  { %v1334_v51 = vadd.f32 %v2376_v39, %v1045_v29  ;;  %v1483_v23 = vmax.f32 %v1331_v26, 0.0 }
 0x1a3   :  { %v1484_v10 = vmax.f32 %v1334_v51, 0.0 }
 0x1a4   :  { %v1049_v34 = vpop.f32.mrb[72].mxu0  ;;  %v3195_v37 = vpop.f32.mrb[72].mxu1 }
 0x1a5   :  { %v2200_v41 = vpack.c.bf16 %v1484_v10, %v1483_v23  ;;  %v1050_v11 = vadd.f32 %v3074_v53, %v1049_v34  ;;  %v1051_v3 = vpop.f32.mrb[73].mxu0  ;;  %v1354_v45 = vpop.f32.mrb[73].mxu1 }
 0x1a6   :  { %v1052_v46 = vpop.f32.mrb[74].mxu0  ;;  %v3198_v43 = vpop.f32.mrb[74].mxu1 }
 0x1a7   :  { %2288 = vst [vmem:[%s3305_s3 + $0x88] sm:$0xff] %v2200_v41   ;;  %v1339_v6 = vadd.f32 %v1338_v42, %v1050_v11  ;;  %v1053_v38 = vadd.f32 %v3074_v53, %v1052_v46  ;;  %v1054_v35 = vpop.f32.mrb[75].mxu0  ;;  %v1357_v49 = vpop.f32.mrb[75].mxu1 }
 0x1a9   :  { %v1342_v50 = vadd.f32 %v1341_v33, %v1053_v38  ;;  %v1485_v15 = vmax.f32 %v1339_v6, 0.0 }
 0x1ab   :  { %v1486_v54 = vmax.f32 %v1342_v50, 0.0 }
 0x1ac   :  { %v1057_v47 = vpop.f32.mrb[76].mxu0  ;;  %v3204_v57 = vpop.f32.mrb[76].mxu1 }
 0x1ad   :  { %v2205_v61 = vpack.c.bf16 %v1486_v54, %v1485_v15  ;;  %v1058_v62 = vadd.f32 %v3074_v53, %v1057_v47  ;;  %v1059_v1 = vpop.f32.mrb[77].mxu0  ;;  %v3207_v7 = vpop.f32.mrb[77].mxu1  ;;  %v1125_v47 = vadd.f32 %v3074_v53, %v3037_v16 }
 0x1ae   :  { %v1060_v18 = vpop.f32.mrb[78].mxu0  ;;  %v3209_v2 = vpop.f32.mrb[78].mxu1 }
 0x1af   :  { %2289 = vst [vmem:[%s3305_s3 + $0x90] sm:$0xff] %v2205_v61   ;;  %v1347_v5 = vadd.f32 %v2379_v58, %v1058_v62  ;;  %v1061_v39 = vadd.f32 %v3074_v53, %v1060_v18  ;;  %v1062_v9 = vpop.f32.mrb[79].mxu0  ;;  %v3215_v14 = vpop.f32.mrb[79].mxu1  ;;  %v1117_v18 = vadd.f32 %v3074_v53, %v3029_v8 }
 0x1b1   :  { %v1350_v59 = vadd.f32 %v2380_v63, %v1061_v39  ;;  %v1487_v27 = vmax.f32 %v1347_v5, 0.0  ;;  %v1101_v63 = vadd.f32 %v3074_v53, %v3017_v56  ;;  %v1122_v56 = vadd.f32 %v3074_v53, %v3033_v12 }
 0x1b3   :  { %v1488_v19 = vmax.f32 %v1350_v59, 0.0 }
 0x1b4   :  { %v1065_v30 = vpop.f32.mrb[80].mxu0  ;;  %v2391_v21 = vpop.f32.mrb[80].mxu1 }
 0x1b5   :  { %v2210_v58 = vpack.c.bf16 %v1488_v19, %v1487_v27  ;;  %v1066_v22 = vadd.f32 %v3074_v53, %v1065_v30  ;;  %v1395_v42 = vadd.f32 %v2391_v21, %v1106_v17  ;;  %v1067_v25 = vpop.f32.mrb[81].mxu0  ;;  %v1386_v26 = vpop.f32.mrb[81].mxu1 }
 0x1b6   :  { %v1387_v60 = vadd.f32 %v1386_v26, %v1098_v13  ;;  %v1068_v29 = vpop.f32.mrb[82].mxu0  ;;  %v2392_v55 = vpop.f32.mrb[82].mxu1 }
 0x1b7   :  { %2290 = vst [vmem:[%s3305_s3 + $0x98] sm:$0xff] %v2210_v58   ;;  %v1355_v52 = vadd.f32 %v1354_v45, %v1066_v22  ;;  %v1069_v33 = vadd.f32 %v3074_v53, %v1068_v29  ;;  %v1398_v0 = vadd.f32 %v2392_v55, %v1109_v31  ;;  %v1070_v51 = vpop.f32.mrb[83].mxu0  ;;  %v1389_v23 = vpop.f32.mrb[83].mxu1  ;;  %v1499_v34 = vmax.f32 %v1395_v42, 0.0 }
 0x1b8   :  { %v1390_v10 = vadd.f32 %v1389_v23, %v1101_v63  ;;  %v1497_v3 = vmax.f32 %v1387_v60, 0.0  ;;  %v1114_v45 = vadd.f32 %v3074_v53, %v3025_v4  ;;  %v1138_v58 = vadd.f32 %v3074_v53, %v3049_v28 }
 0x1b9   :  { %v1358_v41 = vadd.f32 %v1357_v49, %v1069_v33  ;;  %v1500_v11 = vmax.f32 %v1398_v0, 0.0  ;;  %v1489_v6 = vmax.f32 %v1355_v52, 0.0  ;;  %v1141_v29 = vadd.f32 %v3074_v53, %v3053_v32 }
 0x1ba   :  { %v1498_v46 = vmax.f32 %v1390_v10, 0.0  ;;  %v1133_v0 = vadd.f32 %v3074_v53, %v3045_v24 }
 0x1bb   :  { %v1490_v38 = vmax.f32 %v1358_v41, 0.0  ;;  %v2240_v35 = vpack.c.bf16 %v1500_v11, %v1499_v34 }
 0x1bc   :  { %v2235_v50 = vpack.c.bf16 %v1498_v46, %v1497_v3  ;;  %v1073_v15 = vpop.f32.mrb[84].mxu0  ;;  %v2395_v54 = vpop.f32.mrb[84].mxu1 }
 0x1bd   :  { %v2215_v61 = vpack.c.bf16 %v1490_v38, %v1489_v6  ;;  %2296 = vst [vmem:[%s3305_s3 + $0xc8] sm:$0xff] %v2240_v35   ;;  %v1074_v49 = vadd.f32 %v3074_v53, %v1073_v15  ;;  %v1411_v12 = vadd.f32 %v2395_v54, %v1122_v56  ;;  %v1075_v62 = vpop.f32.mrb[85].mxu0  ;;  %v1402_v1 = vpop.f32.mrb[85].mxu1  ;;  %v1154_v35 = vadd.f32 %v3074_v53, %v3065_v44 }
 0x1be   :  { %2295 = vst [vmem:[%s3305_s3 + $0xc0] sm:$0xff] %v2235_v50   ;;  %v1403_v4 = vadd.f32 %v1402_v1, %v1114_v45  ;;  %v1076_v5 = vpop.f32.mrb[86].mxu0  ;;  %v2396_v16 = vpop.f32.mrb[86].mxu1 }
 0x1bf   :  { %2291 = vst [vmem:[%s3305_s3 + $0xa0] sm:$0xff] %v2215_v61   ;;  %v1363_v39 = vadd.f32 %v3195_v37, %v1074_v49  ;;  %v1077_v9 = vadd.f32 %v3074_v53, %v1076_v5  ;;  %v1414_v59 = vadd.f32 %v2396_v16, %v1125_v47  ;;  %v1078_v17 = vpop.f32.mrb[87].mxu0  ;;  %v1405_v27 = vpop.f32.mrb[87].mxu1  ;;  %v1503_v8 = vmax.f32 %v1411_v12, 0.0 }
 0x1c0   :  { %v1406_v19 = vadd.f32 %v1405_v27, %v1117_v18  ;;  %v1501_v21 = vmax.f32 %v1403_v4, 0.0  ;;  %v1130_v37 = vadd.f32 %v3074_v53, %v3041_v20  ;;  %v1157_v49 = vadd.f32 %v3074_v53, %v3069_v48 }
 0x1c1   :  { %v1366_v13 = vadd.f32 %v3198_v43, %v1077_v9  ;;  %v1504_v30 = vmax.f32 %v1414_v59, 0.0  ;;  %v1491_v22 = vmax.f32 %v1363_v39, 0.0  ;;  %v1149_v18 = vadd.f32 %v3074_v53, %v3061_v40 }
 0x1c2   :  { %v1502_v31 = vmax.f32 %v1406_v19, 0.0 }
 0x1c3   :  { %v1492_v42 = vmax.f32 %v1366_v13, 0.0  ;;  %v2250_v25 = vpack.c.bf16 %v1504_v30, %v1503_v8 }
 0x1c4   :  { %v2245_v26 = vpack.c.bf16 %v1502_v31, %v1501_v21  ;;  %v1081_v63 = vpop.f32.mrb[88].mxu0  ;;  %v2399_v60 = vpop.f32.mrb[88].mxu1 }
 0x1c5   :  { %v2220_v55 = vpack.c.bf16 %v1492_v42, %v1491_v22  ;;  %2298 = vst [vmem:[%s3305_s3 + $0xd8] sm:$0xff] %v2250_v25   ;;  %v1082_v43 = vadd.f32 %v3074_v53, %v1081_v63  ;;  %v1427_v28 = vadd.f32 %v2399_v60, %v1138_v58  ;;  %v1083_v52 = vpop.f32.mrb[89].mxu0  ;;  %v1418_v33 = vpop.f32.mrb[89].mxu1 }
 0x1c6   :  { %2297 = vst [vmem:[%s3305_s3 + $0xd0] sm:$0xff] %v2245_v26   ;;  %v1419_v20 = vadd.f32 %v1418_v33, %v1130_v37  ;;  %v1084_v51 = vpop.f32.mrb[90].mxu0  ;;  %v2400_v32 = vpop.f32.mrb[90].mxu1 }
 0x1c7   :  { %2292 = vst [vmem:[%s3305_s3 + $0xa8] sm:$0xff] %v2220_v55   ;;  %v1371_v23 = vadd.f32 %v3207_v7, %v1082_v43  ;;  %v1085_v10 = vadd.f32 %v3074_v53, %v1084_v51  ;;  %v1430_v34 = vadd.f32 %v2400_v32, %v1141_v29  ;;  %v1086_v41 = vpop.f32.mrb[91].mxu0  ;;  %v1421_v11 = vpop.f32.mrb[91].mxu1  ;;  %v1507_v24 = vmax.f32 %v1427_v28, 0.0 }
 0x1c8   :  { %v1422_v3 = vadd.f32 %v1421_v11, %v1133_v0  ;;  %v1505_v6 = vmax.f32 %v1419_v20, 0.0  ;;  %v1146_v7 = vadd.f32 %v3074_v53, %v3057_v36 }
 0x1c9   :  { %v1374_v46 = vadd.f32 %v3215_v14, %v1085_v10  ;;  %v1508_v56 = vmax.f32 %v1430_v34, 0.0  ;;  %v1493_v45 = vmax.f32 %v1371_v23, 0.0 }
 0x1ca   :  { %v1506_v38 = vmax.f32 %v1422_v3, 0.0 }
 0x1cb   :  { %v1494_v50 = vmax.f32 %v1374_v46, 0.0  ;;  %v2260_v15 = vpack.c.bf16 %v1508_v56, %v1507_v24 }
 0x1cc   :  { %v2255_v54 = vpack.c.bf16 %v1506_v38, %v1505_v6  ;;  %v1089_v47 = vpop.f32.mrb[92].mxu0  ;;  %v2403_v61 = vpop.f32.mrb[92].mxu1 }
 0x1cd   :  { %v2225_v12 = vpack.c.bf16 %v1494_v50, %v1493_v45  ;;  %2300 = vst [vmem:[%s3305_s3 + $0xe8] sm:$0xff] %v2260_v15   ;;  %v1090_v14 = vadd.f32 %v3074_v53, %v1089_v47  ;;  %v1443_v44 = vadd.f32 %v2403_v61, %v1154_v35  ;;  %v1091_v62 = vpop.f32.mrb[93].mxu0  ;;  %v1434_v1 = vpop.f32.mrb[93].mxu1 }
 0x1ce   :  { %2299 = vst [vmem:[%s3305_s3 + $0xe0] sm:$0xff] %v2255_v54   ;;  %v1435_v36 = vadd.f32 %v1434_v1, %v1146_v7  ;;  %v1092_v4 = vpop.f32.mrb[94].mxu0  ;;  %v2404_v48 = vpop.f32.mrb[94].mxu1 }
 0x1cf   :  { %2293 = vst [vmem:[%s3305_s3 + $0xb0] sm:$0xff] %v2225_v12   ;;  %v1379_v5 = vadd.f32 %v3204_v57, %v1090_v14  ;;  %v1093_v16 = vadd.f32 %v3074_v53, %v1092_v4  ;;  %v1446_v39 = vadd.f32 %v2404_v48, %v1157_v49  ;;  %v1094_v9 = vpop.f32.mrb[95].mxu0  ;;  %v1437_v59 = vpop.f32.mrb[95].mxu1  ;;  %v1511_v40 = vmax.f32 %v1443_v44, 0.0 }
 0x1d0   :  { %v1438_v17 = vadd.f32 %v1437_v59, %v1149_v18  ;;  %v1509_v8 = vmax.f32 %v1435_v36, 0.0 }
 0x1d1   :  { %v1382_v27 = vadd.f32 %v3209_v2, %v1093_v16  ;;  %v1512_v19 = vmax.f32 %v1446_v39, 0.0  ;;  %v1495_v30 = vmax.f32 %v1379_v5, 0.0 }
 0x1d2   :  { %v1510_v13 = vmax.f32 %v1438_v17, 0.0 }
 0x1d3   :  { %v1496_v21 = vmax.f32 %v1382_v27, 0.0  ;;  %v2270_v31 = vpack.c.bf16 %v1512_v19, %v1511_v40 }
 0x1d4   :  { %v2265_v58 = vpack.c.bf16 %v1510_v13, %v1509_v8 }
 0x1d5   :  { %v2230_v22 = vpack.c.bf16 %v1496_v21, %v1495_v30  ;;  %2302 = vst [vmem:[%s3305_s3 + $0xf8] sm:$0xff] %v2270_v31  }
 0x1d6   :  { %2301 = vst [vmem:[%s3305_s3 + $0xf0] sm:$0xff] %v2265_v58  }
 0x1d7   :  { %2294 = vst [vmem:[%s3305_s3 + $0xb8] sm:$0xff] %v2230_v22  }

// kernel: beta_vae_forward.17
= control target key start
LH: loop header
LB: loop body
LE: loop exit
PB: predicated region body
PF: predicated region fallthrough
CT: control target
= control target key end

     0   :  { %s2915_s12 = smov 0   ;;  %s3512_s0 = inlined_call_operand.vmem [shape: bf16[2048,288], index: 0, kind: input, shape index: {}]   ;;  %s3513_s1 = inlined_call_operand.vmem [shape: bf16[288,12], index: 1, kind: input, shape index: {}]   ;;  %s3514_s2 = inlined_call_operand.vmem [shape: f32[1,12], index: 2, kind: input, shape index: {}]   ;;  %s3515_s3 = inlined_call_operand.vmem [shape: f32[2048,12], index: 3, kind: output, shape index: {}]  }
   0x1 LB: > { %s2117_s13 = sadd.s32 4294967295, %s2892_s12   ;;  %p2121_p0 = scmp.ge.s32.totalorder %s2892_s12, 1  ;;  %s2892_s12 = sphi %s2915_s12, %s13_s12  }
   0x2   : > { %p139_p1 = scmp.lt.s32.totalorder %s2892_s12, 5 }
   0x4   : > { %p140_p2 = pnand %p2121_p0, %p139_p1 }
   0x5   : > { %v2483_v0 = vld [vmem:[%s3513_s1] sm:$0xff] (!%p140_p2)   ;;  %v2894_v1 = vmov (!%p140_p2), 0   ;;  %s2122_s16 = sshll.u32 (!%p140_p2), %s2117_s13, 6  ;;  %v2484_v2 = vld [vmem:[%s3513_s1 + $0x8] sm:$0xff] (!%p140_p2)   ;;  %v2485_v3 = vld [vmem:[%s3513_s1 + $0x10] sm:$0xff] (!%p140_p2)   ;;  %vm937_vm0 = vcmask (!%p140_p2), 261120  }
   0x6   : > { %143 = sbr.rel (%p140_p2) target bundleno = 514 (0x202), region = 32  ;;  %1034 = vmatprep.subr.bf16.mxu0 (!%p140_p2), %v2894_v1  ;;  %2441 = vmatprep.subr.bf16.mxu1 (!%p140_p2), %v2894_v1  ;;  %p165_p3 = scmp.lt.s32.totalorder (!%p140_p2), %s2122_s16, 255  ;;  %v2486_v4 = vld [vmem:[%s3513_s1 + $0x18] sm:$0xff] (!%p140_p2)   ;;  %v2487_v5 = vld [vmem:[%s3513_s1 + $0x20] sm:$0xff] (!%p140_p2)   ;;  %v2488_v7 = vld [vmem:[%s3513_s1 + $0x28] sm:$0xff] (!%p140_p2)   ;;  %vm1996_vm1 = vcmask (!%p140_p2), 97280  }
   0x7   : > { %1035 = vmatpush1.bf16.msra.mxu0 (!%p140_p2), %v2483_v0  ;;  %2457 = vmatpush1.bf16.msra.mxu1 (!%p140_p2), %v2483_v0  ;;  %v2489_v9 = vld [vmem:[%s3513_s1 + $0x30] sm:$0xff] (!%p140_p2)   ;;  %v2490_v10 = vld [vmem:[%s3513_s1 + $0x38] sm:$0xff] (!%p140_p2)   ;;  %v2491_v11 = vld [vmem:[%s3513_s1 + $0x40] sm:$0xff] (!%p140_p2)  }
   0x8   : > { %1036 = vmatprep.subr.bf16.mxu0 (!%p140_p2), %v2894_v1  ;;  %2442 = vmatprep.subr.bf16.mxu1 (!%p140_p2), %v2894_v1  ;;  %v2492_v12 = vld [vmem:[%s3513_s1 + $0x48] sm:$0xff] (!%p140_p2)   ;;  %v2493_v13 = vld [vmem:[%s3513_s1 + $0x50] sm:$0xff] (!%p140_p2)   ;;  %v2494_v14 = vld [vmem:[%s3513_s1 + $0x58] sm:$0xff] (!%p140_p2)  }
   0x9   : > { %v2495_v15 = vld [vmem:[%s3513_s1 + $0x60] sm:$0xff] (!%p140_p2)   ;;  %v2496_v16 = vld [vmem:[%s3513_s1 + $0x68] sm:$0xff] (!%p140_p2)   ;;  %v2497_v17 = vld [vmem:[%s3513_s1 + $0x70] sm:$0xff] (!%p140_p2)  }
   0xa   : > { %v2498_v18 = vld [vmem:[%s3513_s1 + $0x78] sm:$0xff] (!%p140_p2)   ;;  %v2505_v19 = vld [vmem:[%s3513_s1 + $0x80] sm:$0xff] (!%p140_p2)   ;;  %v2530_v24 = vld [vmem:[%s3513_s1 + $0x88] sm:$0xff] (!%p140_p2)  }
   0xb   : > { %1037 = vmatpush1.bf16.msra.mxu0 (!%p140_p2), %v2484_v2  ;;  %2458 = vmatpush1.bf16.msra.mxu1 (!%p140_p2), %v2484_v2 }
   0xc   : > { %1038 = vmatprep.subr.bf16.mxu0 (!%p140_p2), %v2894_v1  ;;  %2443 = vmatprep.subr.bf16.mxu1 (!%p140_p2), %v2894_v1 }
   0xd   : > { %s3517_s16 = smov (!%p165_p3, %s2122_s16), 255 }
   0xe   : > { %s2473_s23 = smul.u32 12, %s3517_s16  ;;  %s2125_s5 = sshll.u32 %s3517_s16, 3 }
   0xf   : > { %1039 = vmatpush1.bf16.msra.mxu0 %v2485_v3  ;;  %2459 = vmatpush1.bf16.msra.mxu1 %v2485_v3  ;;  %s3258_s7 = scalar_lea.vmem %s3515_s3, %s2125_s5 }
  0x10   : > { %1040 = vmatprep.subr.bf16.mxu0 %v2894_v1  ;;  %2444 = vmatprep.subr.bf16.mxu1 %v2894_v1  ;;  %s2952_s28 = scalar_lea.vmem %s3512_s0, %s2473_s23 }
  0x11   : > { %v2501_v6 = vld [vmem:[%s2952_s28 + $0x4] ss:$12 sps:$4 sm:$0xff]   ;;  %v2499_v20 = vld [vmem:[%s2952_s28] ss:$12 sps:$4 sm:$0xff]   ;;  %v2506_v22 = vld [vmem:[%s2952_s28 + $0x1c] ss:$12 sps:$4 sm:$0xff]  }
  0x12   : > { %v2504_v8 = vld [vmem:[%s2952_s28 + $0x244] ss:$12 sps:$4 sm:$0xff]   ;;  %1066 = vmatprep.mubr.bf16.mxu0 %v2501_v6  ;;  %v2502_v21 = vld [vmem:[%s2952_s28 + $0x240] ss:$12 sps:$4 sm:$0xff]   ;;  %v2508_v23 = vld [vmem:[%s2952_s28 + $0x25c] ss:$12 sps:$4 sm:$0xff]  }
  0x13   : > { %1041 = vmatpush1.bf16.msra.mxu0 %v2486_v4  ;;  %2460 = vmatpush1.bf16.msra.mxu1 %v2486_v4  ;;  %v2510_v25 = vld [vmem:[%s2952_s28 + $0x18] ss:$12 sps:$4 sm:$0xff]   ;;  %v2512_v27 = vld [vmem:[%s2952_s28 + $0x34] ss:$12 sps:$4 sm:$0xff]   ;;  %v2516_v29 = vld [vmem:[%s2952_s28 + $0x30] ss:$12 sps:$4 sm:$0xff]  }
  0x14   : > { %1042 = vmatprep.subr.bf16.mxu0 %v2894_v1  ;;  %2445 = vmatprep.subr.bf16.mxu1 %v2894_v1  ;;  %v2511_v26 = vld [vmem:[%s2952_s28 + $0x258] ss:$12 sps:$4 sm:$0xff]   ;;  %v2514_v28 = vld [vmem:[%s2952_s28 + $0x274] ss:$12 sps:$4 sm:$0xff]   ;;  %v2517_v30 = vld [vmem:[%s2952_s28 + $0x270] ss:$12 sps:$4 sm:$0xff]  }
  0x15   : > { %1258 = vmatprep.mubr.bf16.mxu1 %v2504_v8  ;;  %v2518_v31 = vld [vmem:[%s2952_s28 + $0x4c] ss:$12 sps:$4 sm:$0xff]   ;;  %v2522_v33 = vld [vmem:[%s2952_s28 + $0x48] ss:$12 sps:$4 sm:$0xff]   ;;  %v2524_v35 = vld [vmem:[%s2952_s28 + $0x64] ss:$12 sps:$4 sm:$0xff]  }
  0x16   : > { %v2520_v32 = vld [vmem:[%s2952_s28 + $0x28c] ss:$12 sps:$4 sm:$0xff]   ;;  %v2523_v34 = vld [vmem:[%s2952_s28 + $0x288] ss:$12 sps:$4 sm:$0xff]   ;;  %v2526_v36 = vld [vmem:[%s2952_s28 + $0x2a4] ss:$12 sps:$4 sm:$0xff]  }
  0x17   : > { %1043 = vmatpush1.bf16.msra.mxu0 %v2487_v5  ;;  %2461 = vmatpush1.bf16.msra.mxu1 %v2487_v5  ;;  %v2528_v37 = vld [vmem:[%s2952_s28 + $0x60] ss:$12 sps:$4 sm:$0xff]   ;;  %v2531_v39 = vld [vmem:[%s2952_s28 + $0x7c] ss:$12 sps:$4 sm:$0xff]   ;;  %v2535_v41 = vld [vmem:[%s2952_s28 + $0x78] ss:$12 sps:$4 sm:$0xff]  }
  0x18   : > { %1044 = vmatprep.subr.bf16.mxu0 %v2894_v1  ;;  %2446 = vmatprep.subr.bf16.mxu1 %v2894_v1  ;;  %v2529_v38 = vld [vmem:[%s2952_s28 + $0x2a0] ss:$12 sps:$4 sm:$0xff]   ;;  %v2533_v40 = vld [vmem:[%s2952_s28 + $0x2bc] ss:$12 sps:$4 sm:$0xff]   ;;  %v2536_v42 = vld [vmem:[%s2952_s28 + $0x2b8] ss:$12 sps:$4 sm:$0xff]  }
  0x19   : > { %v2537_v43 = vld [vmem:[%s2952_s28 + $0x94] ss:$12 sps:$4 sm:$0xff]   ;;  %v2541_v45 = vld [vmem:[%s2952_s28 + $0x90] ss:$12 sps:$4 sm:$0xff]   ;;  %v2543_v47 = vld [vmem:[%s2952_s28 + $0xac] ss:$12 sps:$4 sm:$0xff]  }
  0x1a   : > { %v2539_v44 = vld [vmem:[%s2952_s28 + $0x2d4] ss:$12 sps:$4 sm:$0xff]   ;;  %v2542_v46 = vld [vmem:[%s2952_s28 + $0x2d0] ss:$12 sps:$4 sm:$0xff]   ;;  %v2545_v48 = vld [vmem:[%s2952_s28 + $0x2ec] ss:$12 sps:$4 sm:$0xff]  }
  0x1b   : > { %1045 = vmatpush1.bf16.msra.mxu0 %v2488_v7  ;;  %2462 = vmatpush1.bf16.msra.mxu1 %v2488_v7  ;;  %v2547_v49 = vld [vmem:[%s2952_s28 + $0xa8] ss:$12 sps:$4 sm:$0xff]   ;;  %v2549_v51 = vld [vmem:[%s2952_s28 + $0xc4] ss:$12 sps:$4 sm:$0xff]   ;;  %v2552_v53 = vld [vmem:[%s2952_s28 + $0xc0] ss:$12 sps:$4 sm:$0xff]  }
  0x1c   : > { %1046 = vmatprep.subr.bf16.mxu0 %v2894_v1  ;;  %2447 = vmatprep.subr.bf16.mxu1 %v2894_v1  ;;  %v2548_v50 = vld [vmem:[%s2952_s28 + $0x2e8] ss:$12 sps:$4 sm:$0xff]   ;;  %v2553_v54 = vld [vmem:[%s2952_s28 + $0x20] ss:$12 sps:$4 sm:$0xff]   ;;  %v2556_v56 = vld [vmem:[%s2952_s28 + $0x38] ss:$12 sps:$4 sm:$0xff]  }
  0x1d   : > { %v2551_v52 = vld [vmem:[%s2952_s28 + $0x8] ss:$12 sps:$4 sm:$0xff]   ;;  %v2557_v57 = vld [vmem:[%s2952_s28 + $0xd8] ss:$12 sps:$4 sm:$0xff]   ;;  %v2558_v58 = vld [vmem:[%s2952_s28 + $0x50] ss:$12 sps:$4 sm:$0xff]  }
  0x1e   : > { %v2554_v55 = vld [vmem:[%s2952_s28 + $0xdc] ss:$12 sps:$4 sm:$0xff]   ;;  %v2559_v59 = vld [vmem:[%s2952_s28 + $0xf4] ss:$12 sps:$4 sm:$0xff]   ;;  %v2564_v63 = vld [vmem:[%s2952_s28 + $0x10c] ss:$12 sps:$4 sm:$0xff]  }
  0x1f   : > { %1047 = vmatpush1.bf16.msra.mxu0 %v2489_v9  ;;  %2463 = vmatpush1.bf16.msra.mxu1 %v2489_v9  ;;  %v2561_v60 = vld [vmem:[%s2952_s28 + $0x68] ss:$12 sps:$4 sm:$0xff]   ;;  %v2562_v61 = vld [vmem:[%s2952_s28 + $0xf0] ss:$12 sps:$4 sm:$0xff]   ;;  %v2563_v62 = vld [vmem:[%s2952_s28 + $0x80] ss:$12 sps:$4 sm:$0xff]  }
  0x20   : > { %1048 = vmatprep.subr.bf16.mxu0 %v2894_v1  ;;  %2448 = vmatprep.subr.bf16.mxu1 %v2894_v1  ;;  %v2566_v0 = vld [vmem:[%s2952_s28 + $0x98] ss:$12 sps:$4 sm:$0xff]   ;;  %v2568_v2 = vld [vmem:[%s2952_s28 + $0xb0] ss:$12 sps:$4 sm:$0xff]   ;;  %v2571_v4 = vld [vmem:[%s2952_s28 + $0xc8] ss:$12 sps:$4 sm:$0xff]  }
  0x21   : > { %v2569_v3 = vld [vmem:[%s2952_s28 + $0x124] ss:$12 sps:$4 sm:$0xff]   ;;  %v2572_v5 = vld [vmem:[%s2952_s28 + $0x120] ss:$12 sps:$4 sm:$0xff]   ;;  %v2574_v7 = vld [vmem:[%s2952_s28 + $0x13c] ss:$12 sps:$4 sm:$0xff]  }
  0x22   : > { %v2573_v6 = vld [vmem:[%s2952_s28 + $0xe0] ss:$12 sps:$4 sm:$0xff]   ;;  %v2576_v8 = vld [vmem:[%s2952_s28 + $0xf8] ss:$12 sps:$4 sm:$0xff]  }
  0x23   : > { %1049 = vmatpush1.bf16.msra.mxu0 %v2490_v10  ;;  %2464 = vmatpush1.bf16.msra.mxu1 %v2490_v10  ;;  %v2577_v9 = vld [vmem:[%s2952_s28 + $0x138] ss:$12 sps:$4 sm:$0xff]   ;;  %v2578_v10 = vld [vmem:[%s2952_s28 + $0x110] ss:$12 sps:$4 sm:$0xff]  }
  0x24   : > { %1050 = vmatprep.subr.bf16.mxu0 %v2894_v1  ;;  %2449 = vmatprep.subr.bf16.mxu1 %v2894_v1 }
  0x27   : > { %1051 = vmatpush1.bf16.msra.mxu0 %v2491_v11  ;;  %2465 = vmatpush1.bf16.msra.mxu1 %v2491_v11  ;;  %v2579_v11 = vld [vmem:[%s2952_s28 + $0x154] ss:$12 sps:$4 sm:$0xff]  }
  0x28   : > { %1052 = vmatprep.subr.bf16.mxu0 %v2894_v1  ;;  %2450 = vmatprep.subr.bf16.mxu1 %v2894_v1 }
  0x2b   : > { %1053 = vmatpush1.bf16.msra.mxu0 %v2492_v12  ;;  %2466 = vmatpush1.bf16.msra.mxu1 %v2492_v12  ;;  %v2581_v12 = vld [vmem:[%s2952_s28 + $0x128] ss:$12 sps:$4 sm:$0xff]  }
  0x2c   : > { %1054 = vmatprep.subr.bf16.mxu0 %v2894_v1  ;;  %2451 = vmatprep.subr.bf16.mxu1 %v2894_v1 }
  0x2f   : > { %1055 = vmatpush1.bf16.msra.mxu0 %v2493_v13  ;;  %2467 = vmatpush1.bf16.msra.mxu1 %v2493_v13  ;;  %v2582_v13 = vld [vmem:[%s2952_s28 + $0x150] ss:$12 sps:$4 sm:$0xff]  }
  0x30   : > { %1056 = vmatprep.subr.bf16.mxu0 %v2894_v1  ;;  %2452 = vmatprep.subr.bf16.mxu1 %v2894_v1 }
  0x33   : > { %1057 = vmatpush1.bf16.msra.mxu0 %v2494_v14  ;;  %2468 = vmatpush1.bf16.msra.mxu1 %v2494_v14  ;;  %v2583_v14 = vld [vmem:[%s2952_s28 + $0x140] ss:$12 sps:$4 sm:$0xff]  }
  0x34   : > { %1058 = vmatprep.subr.bf16.mxu0 %v2894_v1  ;;  %2453 = vmatprep.subr.bf16.mxu1 %v2894_v1 }
  0x37   : > { %1059 = vmatpush1.bf16.msra.mxu0 %v2495_v15  ;;  %2469 = vmatpush1.bf16.msra.mxu1 %v2495_v15  ;;  %v2584_v15 = vld [vmem:[%s2952_s28 + $0x16c] ss:$12 sps:$4 sm:$0xff]  }
  0x38   : > { %1060 = vmatprep.subr.bf16.mxu0 %v2894_v1  ;;  %2454 = vmatprep.subr.bf16.mxu1 %v2894_v1 }
  0x3b   : > { %1061 = vmatpush1.bf16.msra.mxu0 %v2496_v16  ;;  %2470 = vmatpush1.bf16.msra.mxu1 %v2496_v16  ;;  %v2586_v16 = vld [vmem:[%s2952_s28 + $0x158] ss:$12 sps:$4 sm:$0xff]  }
  0x3c   : > { %1062 = vmatprep.subr.bf16.mxu0 %v2894_v1  ;;  %2455 = vmatprep.subr.bf16.mxu1 %v2894_v1 }
  0x3f   : > { %1063 = vmatpush1.bf16.msra.mxu0 %v2497_v17  ;;  %2471 = vmatpush1.bf16.msra.mxu1 %v2497_v17  ;;  %v2587_v17 = vld [vmem:[%s2952_s28 + $0x168] ss:$12 sps:$4 sm:$0xff]  }
  0x40   : > { %1064 = vmatprep.subr.bf16.mxu0 %v2894_v1  ;;  %2456 = vmatprep.subr.bf16.mxu1 %v2894_v1  ;;  %v2567_v1 = vld [vmem:[%s2952_s28 + $0x108] ss:$12 sps:$4 sm:$0xff]  }
  0x43   : > { %1065 = vmatpush1.bf16.msra.mxu0 %v2498_v18  ;;  %2472 = vmatpush1.bf16.msra.mxu1 %v2498_v18  ;;  %v2588_v18 = vld [vmem:[%s2952_s28 + $0x170] ss:$12 sps:$4 sm:$0xff]  }
  0x44   : > { %2373 = vmatprep.subr.bf16.mxu1 %v2505_v19 }
  0x46   : > { %1067 = vmatmul.mubr.bf16.vlgmr.msra.gmra.mrb[0].mxu0 %v2499_v20  ;;  %1259 = vmatmul.mubr.bf16.vlgmr.msra.gmra.mrb[0].mxu1 %v2502_v21  ;;  %v2591_v20 = vld [vmem:[%s2952_s28 + $0x188] ss:$12 sps:$4 sm:$0xff]   ;;  %v2592_v21 = vld [vmem:[%s2952_s28 + $0x180] ss:$12 sps:$4 sm:$0xff]  }
  0x47   : > { %2374 = vmatpush3.bf16.msra.mxu1 %v2505_v19  ;;  %1074 = vmatprep.mubr.bf16.mxu0 %v2506_v22  ;;  %v2589_v19 = vld [vmem:[%s2952_s28 + $0x184] ss:$12 sps:$4 sm:$0xff]   ;;  %v2593_v22 = vld [vmem:[%s2952_s28 + $0x1a0] ss:$12 sps:$4 sm:$0xff]  }
  0x48   : > { %1266 = vmatprep.mubr.bf16.mxu1 %v2508_v23  ;;  %2375 = vmatprep.subr.bf16.mxu1 %v2530_v24  ;;  %v2594_v23 = vld [vmem:[%s2952_s28 + $0x19c] ss:$12 sps:$4 sm:$0xff]  }
  0x4b   : > { %2376 = vmatpush3.bf16.msra.mxu1 %v2530_v24  ;;  %v2596_v24 = vld [vmem:[%s2952_s28 + $0x1b8] ss:$12 sps:$4 sm:$0xff]  }
  0x4e   : > { %1075 = vmatmul.mubr.bf16.gmra.mrb[4].mxu0 %v2510_v25  ;;  %1267 = vmatmul.mubr.bf16.gmra.mrb[4].mxu1 %v2511_v26  ;;  %v2597_v25 = vld [vmem:[%s2952_s28 + $0x198] ss:$12 sps:$4 sm:$0xff]   ;;  %v2598_v26 = vld [vmem:[%s2952_s28 + $0x1d0] ss:$12 sps:$4 sm:$0xff]  }
  0x4f   : > { %1082 = vmatprep.mubr.bf16.mxu0 %v2512_v27  ;;  %1274 = vmatprep.mubr.bf16.mxu1 %v2514_v28  ;;  %v2599_v27 = vld [vmem:[%s2952_s28 + $0x1b4] ss:$12 sps:$4 sm:$0xff]  }
  0x50   : > { %v2601_v28 = vld [vmem:[%s2952_s28 + $0x1e8] ss:$12 sps:$4 sm:$0xff]  }
  0x56   : > { %1083 = vmatmul.mubr.bf16.gmra.mrb[8].mxu0 %v2516_v29  ;;  %1275 = vmatmul.mubr.bf16.gmra.mrb[8].mxu1 %v2517_v30  ;;  %v2602_v29 = vld [vmem:[%s2952_s28 + $0x1b0] ss:$12 sps:$4 sm:$0xff]   ;;  %v2603_v30 = vld [vmem:[%s2952_s28 + $0x200] ss:$12 sps:$4 sm:$0xff]  }
  0x57   : > { %1090 = vmatprep.mubr.bf16.mxu0 %v2518_v31  ;;  %1282 = vmatprep.mubr.bf16.mxu1 %v2520_v32  ;;  %v2604_v31 = vld [vmem:[%s2952_s28 + $0x1cc] ss:$12 sps:$4 sm:$0xff]  }
  0x58   : > { %v2606_v32 = vld [vmem:[%s2952_s28 + $0x218] ss:$12 sps:$4 sm:$0xff]  }
  0x5e   : > { %1091 = vmatmul.mubr.bf16.gmra.mrb[12].mxu0 %v2522_v33  ;;  %1283 = vmatmul.mubr.bf16.gmra.mrb[12].mxu1 %v2523_v34  ;;  %v2607_v33 = vld [vmem:[%s2952_s28 + $0x1c8] ss:$12 sps:$4 sm:$0xff]   ;;  %v2608_v34 = vld [vmem:[%s2952_s28 + $0x230] ss:$12 sps:$4 sm:$0xff]  }
  0x5f   : > { %1098 = vmatprep.mubr.bf16.mxu0 %v2524_v35  ;;  %1290 = vmatprep.mubr.bf16.mxu1 %v2526_v36  ;;  %v2609_v35 = vld [vmem:[%s2952_s28 + $0x1e4] ss:$12 sps:$4 sm:$0xff]   ;;  %v2611_v36 = vld [vmem:[%s2952_s28 + $0x248] ss:$12 sps:$4 sm:$0xff]  }
  0x66   : > { %1099 = vmatmul.mubr.bf16.gmra.mrb[16].mxu0 %v2528_v37  ;;  %1291 = vmatmul.mubr.bf16.gmra.mrb[16].mxu1 %v2529_v38  ;;  %v2612_v37 = vld [vmem:[%s2952_s28 + $0x1e0] ss:$12 sps:$4 sm:$0xff]  }
  0x67   : > { %1106 = vmatprep.mubr.bf16.mxu0 %v2531_v39  ;;  %1298 = vmatprep.mubr.bf16.mxu1 %v2533_v40  ;;  %v2613_v38 = vld [vmem:[%s2952_s28 + $0x260] ss:$12 sps:$4 sm:$0xff]   ;;  %v2614_v39 = vld [vmem:[%s2952_s28 + $0x1fc] ss:$12 sps:$4 sm:$0xff]   ;;  %v2616_v40 = vld [vmem:[%s2952_s28 + $0x278] ss:$12 sps:$4 sm:$0xff]  }
  0x6e   : > { %1107 = vmatmul.mubr.bf16.gmra.mrb[20].mxu0 %v2535_v41  ;;  %1299 = vmatmul.mubr.bf16.gmra.mrb[20].mxu1 %v2536_v42  ;;  %v2617_v41 = vld [vmem:[%s2952_s28 + $0x1f8] ss:$12 sps:$4 sm:$0xff]   ;;  %v2618_v42 = vld [vmem:[%s2952_s28 + $0x290] ss:$12 sps:$4 sm:$0xff]  }
  0x6f   : > { %1114 = vmatprep.mubr.bf16.mxu0 %v2537_v43  ;;  %1306 = vmatprep.mubr.bf16.mxu1 %v2539_v44  ;;  %v2619_v43 = vld [vmem:[%s2952_s28 + $0x214] ss:$12 sps:$4 sm:$0xff]  }
  0x70   : > { %v2621_v44 = vld [vmem:[%s2952_s28 + $0x2a8] ss:$12 sps:$4 sm:$0xff]  }
  0x76   : > { %1115 = vmatmul.mubr.bf16.gmra.mrb[24].mxu0 %v2541_v45  ;;  %1307 = vmatmul.mubr.bf16.gmra.mrb[24].mxu1 %v2542_v46  ;;  %v2622_v45 = vld [vmem:[%s2952_s28 + $0x210] ss:$12 sps:$4 sm:$0xff]   ;;  %v2623_v46 = vld [vmem:[%s2952_s28 + $0x2c0] ss:$12 sps:$4 sm:$0xff]  }
  0x77   : > { %1122 = vmatprep.mubr.bf16.mxu0 %v2543_v47  ;;  %1314 = vmatprep.mubr.bf16.mxu1 %v2545_v48  ;;  %v2624_v47 = vld [vmem:[%s2952_s28 + $0x22c] ss:$12 sps:$4 sm:$0xff]  }
  0x78   : > { %v2626_v48 = vld [vmem:[%s2952_s28 + $0x2d8] ss:$12 sps:$4 sm:$0xff]  }
  0x7e   : > { %1123 = vmatmul.mubr.bf16.gmra.mrb[28].mxu0 %v2547_v49  ;;  %1315 = vmatmul.mubr.bf16.gmra.mrb[28].mxu1 %v2548_v50  ;;  %v2627_v49 = vld [vmem:[%s2952_s28 + $0x228] ss:$12 sps:$4 sm:$0xff]   ;;  %v2628_v50 = vld [vmem:[%s2952_s28 + $0x2f0] ss:$12 sps:$4 sm:$0xff]  }
  0x7f   : > { %1130 = vmatprep.mubr.bf16.mxu0 %v2549_v51  ;;  %2377 = vmatprep.mubr.msk.bf16.mxu1 %vm937_vm0, %v2551_v52 }
  0x86   : > { %1131 = vmatmul.mubr.bf16.gmra.mrb[32].mxu0 %v2552_v53  ;;  %2378 = vmatmul.mubr.msk.bf16.vlgmr.msra.gmra.mrb[32].mxu1 %vm937_vm0, %v2553_v54 }
  0x87   : > { %1138 = vmatprep.mubr.bf16.mxu0 %v2554_v55  ;;  %2381 = vmatprep.mubr.msk.bf16.mxu1 %vm937_vm0, %v2556_v56 }
  0x8e   : > { %1139 = vmatmul.mubr.bf16.gmra.mrb[36].mxu0 %v2557_v57  ;;  %2382 = vmatmul.mubr.msk.bf16.gmra.mrb[36].mxu1 %vm937_vm0, %v2558_v58 }
  0x8f   : > { %1146 = vmatprep.mubr.bf16.mxu0 %v2559_v59  ;;  %2385 = vmatprep.mubr.msk.bf16.mxu1 %vm937_vm0, %v2561_v60 }
  0x96   : > { %1147 = vmatmul.mubr.bf16.gmra.mrb[40].mxu0 %v2562_v61  ;;  %2386 = vmatmul.mubr.msk.bf16.gmra.mrb[40].mxu1 %vm937_vm0, %v2563_v62 }
  0x97   : > { %1154 = vmatprep.mubr.bf16.mxu0 %v2564_v63  ;;  %2389 = vmatprep.mubr.msk.bf16.mxu1 %vm937_vm0, %v2566_v0 }
  0x9e   : > { %1155 = vmatmul.mubr.bf16.gmra.mrb[44].mxu0 %v2567_v1  ;;  %2390 = vmatmul.mubr.msk.bf16.gmra.mrb[44].mxu1 %vm937_vm0, %v2568_v2 }
  0x9f   : > { %1162 = vmatprep.mubr.bf16.mxu0 %v2569_v3  ;;  %2393 = vmatprep.mubr.msk.bf16.mxu1 %vm937_vm0, %v2571_v4 }
  0xa6   : > { %1163 = vmatmul.mubr.bf16.gmra.mrb[48].mxu0 %v2572_v5  ;;  %2394 = vmatmul.mubr.msk.bf16.gmra.mrb[48].mxu1 %vm937_vm0, %v2573_v6 }
  0xa7   : > { %1170 = vmatprep.mubr.bf16.mxu0 %v2574_v7  ;;  %2397 = vmatprep.mubr.msk.bf16.mxu1 %vm937_vm0, %v2576_v8 }
  0xae   : > { %1171 = vmatmul.mubr.bf16.gmra.mrb[52].mxu0 %v2577_v9  ;;  %2398 = vmatmul.mubr.msk.bf16.gmra.mrb[52].mxu1 %vm937_vm0, %v2578_v10 }
  0xaf   : > { %1178 = vmatprep.mubr.bf16.mxu0 %v2579_v11  ;;  %2401 = vmatprep.mubr.msk.bf16.mxu1 %vm937_vm0, %v2581_v12 }
  0xb6   : > { %1179 = vmatmul.mubr.bf16.gmra.mrb[56].mxu0 %v2582_v13  ;;  %2402 = vmatmul.mubr.msk.bf16.gmra.mrb[56].mxu1 %vm937_vm0, %v2583_v14 }
  0xb7   : > { %1186 = vmatprep.mubr.bf16.mxu0 %v2584_v15  ;;  %2405 = vmatprep.mubr.msk.bf16.mxu1 %vm937_vm0, %v2586_v16 }
  0xbe   : > { %1187 = vmatmul.mubr.bf16.gmra.mrb[60].mxu0 %v2587_v17  ;;  %2406 = vmatmul.mubr.msk.bf16.gmra.mrb[60].mxu1 %vm937_vm0, %v2588_v18 }
  0xbf   : > { %1194 = vmatprep.mubr.bf16.mxu0 %v2589_v19  ;;  %2409 = vmatprep.mubr.msk.bf16.mxu1 %vm937_vm0, %v2591_v20 }
  0xc6   : > { %1195 = vmatmul.mubr.bf16.gmra.mrb[64].mxu0 %v2592_v21  ;;  %2410 = vmatmul.mubr.msk.bf16.gmra.mrb[64].mxu1 %vm937_vm0, %v2593_v22 }
  0xc7   : > { %1202 = vmatprep.mubr.bf16.mxu0 %v2594_v23  ;;  %2413 = vmatprep.mubr.msk.bf16.mxu1 %vm937_vm0, %v2596_v24 }
  0xce   : > { %1203 = vmatmul.mubr.bf16.gmra.mrb[68].mxu0 %v2597_v25  ;;  %2414 = vmatmul.mubr.msk.bf16.gmra.mrb[68].mxu1 %vm937_vm0, %v2598_v26 }
  0xcf   : > { %1210 = vmatprep.mubr.bf16.mxu0 %v2599_v27  ;;  %2417 = vmatprep.mubr.msk.bf16.mxu1 %vm937_vm0, %v2601_v28 }
  0xd6   : > { %1211 = vmatmul.mubr.bf16.gmra.mrb[72].mxu0 %v2602_v29  ;;  %2418 = vmatmul.mubr.msk.bf16.gmra.mrb[72].mxu1 %vm937_vm0, %v2603_v30 }
  0xd7   : > { %1218 = vmatprep.mubr.bf16.mxu0 %v2604_v31  ;;  %2421 = vmatprep.mubr.msk.bf16.mxu1 %vm937_vm0, %v2606_v32 }
  0xde   : > { %1219 = vmatmul.mubr.bf16.gmra.mrb[76].mxu0 %v2607_v33  ;;  %2422 = vmatmul.mubr.msk.bf16.gmra.mrb[76].mxu1 %vm937_vm0, %v2608_v34 }
  0xdf   : > { %1226 = vmatprep.mubr.bf16.mxu0 %v2609_v35  ;;  %2425 = vmatprep.mubr.msk.bf16.mxu1 %vm937_vm0, %v2611_v36 }
  0xe6   : > { %1227 = vmatmul.mubr.bf16.gmra.mrb[80].mxu0 %v2612_v37  ;;  %2426 = vmatmul.mubr.msk.bf16.gmra.mrb[80].mxu1 %vm937_vm0, %v2613_v38 }
  0xe7   : > { %1234 = vmatprep.mubr.bf16.mxu0 %v2614_v39  ;;  %2429 = vmatprep.mubr.msk.bf16.mxu1 %vm937_vm0, %v2616_v40 }
  0xee   : > { %1235 = vmatmul.mubr.bf16.gmra.mrb[84].mxu0 %v2617_v41  ;;  %2430 = vmatmul.mubr.msk.bf16.gmra.mrb[84].mxu1 %vm937_vm0, %v2618_v42 }
  0xef   : > { %1242 = vmatprep.mubr.bf16.mxu0 %v2619_v43  ;;  %2433 = vmatprep.mubr.msk.bf16.mxu1 %vm937_vm0, %v2621_v44 }
  0xf6   : > { %1243 = vmatmul.mubr.bf16.gmra.mrb[88].mxu0 %v2622_v45  ;;  %2434 = vmatmul.mubr.msk.bf16.gmra.mrb[88].mxu1 %vm937_vm0, %v2623_v46 }
  0xf7   : > { %1250 = vmatprep.mubr.bf16.mxu0 %v2624_v47  ;;  %2437 = vmatprep.mubr.msk.bf16.mxu1 %vm937_vm0, %v2626_v48 }
  0xfe   : > { %1251 = vmatmul.mubr.bf16.gmra.mrb[92].mxu0 %v2627_v49  ;;  %2438 = vmatmul.mubr.msk.bf16.gmra.mrb[92].mxu1 %vm937_vm0, %v2628_v50 }
 0x119   : > { %v3145_v51 = vpop.f32.mrb[0].mxu0  ;;  %v3147_v52 = vpop.f32.mrb[0].mxu1 }
 0x11a   : > { %v1070_v53 = vpop.f32.mrb[1].mxu0  ;;  %v1262_v54 = vpop.f32.mrb[1].mxu1 }
 0x11b   : > { %v3149_v55 = vpop.f32.mrb[2].mxu0  ;;  %v3151_v56 = vpop.f32.mrb[2].mxu1  ;;  %v3208_v53 = vld [vmem:[%s3514_s2] ss:$0 sm:$0xff] }
 0x11c   : > { %v1073_v57 = vpop.f32.mrb[3].mxu0  ;;  %v1265_v58 = vpop.f32.mrb[3].mxu1 }
 0x11d   : > { %v1069_v57 = vadd.f32 %v3208_v53, %v3145_v51 }
 0x121   : > { %v1076_v59 = vpop.f32.mrb[4].mxu0  ;;  %v3153_v60 = vpop.f32.mrb[4].mxu1 }
 0x122   : > { %v1078_v61 = vpop.f32.mrb[5].mxu0  ;;  %v1270_v62 = vpop.f32.mrb[5].mxu1  ;;  %v1077_v54 = vadd.f32 %v3208_v53, %v1076_v59 }
 0x123   : > { %v1079_v63 = vpop.f32.mrb[6].mxu0  ;;  %v3155_v0 = vpop.f32.mrb[6].mxu1 }
 0x124   : > { %v1081_v1 = vpop.f32.mrb[7].mxu0  ;;  %v1273_v2 = vpop.f32.mrb[7].mxu1  ;;  %v1080_v62 = vadd.f32 %v3208_v53, %v1079_v63 }
 0x129   : > { %v3157_v3 = vpop.f32.mrb[8].mxu0  ;;  %v3159_v4 = vpop.f32.mrb[8].mxu1 }
 0x12a   : > { %v1086_v5 = vpop.f32.mrb[9].mxu0  ;;  %v1278_v6 = vpop.f32.mrb[9].mxu1 }
 0x12b   : > { %v3161_v7 = vpop.f32.mrb[10].mxu0  ;;  %v3163_v8 = vpop.f32.mrb[10].mxu1  ;;  %v1072_v6 = vadd.f32 %v3208_v53, %v3149_v55  ;;  %v1085_v55 = vadd.f32 %v3208_v53, %v3157_v3 }
 0x12c   : > { %v1089_v9 = vpop.f32.mrb[11].mxu0  ;;  %v1281_v10 = vpop.f32.mrb[11].mxu1 }
 0x131   : > { %v3165_v11 = vpop.f32.mrb[12].mxu0  ;;  %v3167_v12 = vpop.f32.mrb[12].mxu1 }
 0x132   : > { %v1094_v13 = vpop.f32.mrb[13].mxu0  ;;  %v1286_v14 = vpop.f32.mrb[13].mxu1 }
 0x133   : > { %v3169_v15 = vpop.f32.mrb[14].mxu0  ;;  %v3171_v16 = vpop.f32.mrb[14].mxu1 }
 0x134   : > { %v1097_v17 = vpop.f32.mrb[15].mxu0  ;;  %v1289_v18 = vpop.f32.mrb[15].mxu1 }
 0x139   : > { %v3173_v19 = vpop.f32.mrb[16].mxu0  ;;  %v3175_v20 = vpop.f32.mrb[16].mxu1 }
 0x13a   : > { %v1102_v21 = vpop.f32.mrb[17].mxu0  ;;  %v1294_v22 = vpop.f32.mrb[17].mxu1 }
 0x13b   : > { %v3177_v23 = vpop.f32.mrb[18].mxu0  ;;  %v3179_v24 = vpop.f32.mrb[18].mxu1 }
 0x13c   : > { %v1105_v25 = vpop.f32.mrb[19].mxu0  ;;  %v1297_v26 = vpop.f32.mrb[19].mxu1 }
 0x13d   : > { %v1093_v25 = vadd.f32 %v3208_v53, %v3165_v11 }
 0x141   : > { %v3181_v27 = vpop.f32.mrb[20].mxu0  ;;  %v3183_v28 = vpop.f32.mrb[20].mxu1 }
 0x142   : > { %v1110_v29 = vpop.f32.mrb[21].mxu0  ;;  %v1302_v30 = vpop.f32.mrb[21].mxu1 }
 0x143   : > { %v3185_v31 = vpop.f32.mrb[22].mxu0  ;;  %v3187_v32 = vpop.f32.mrb[22].mxu1  ;;  %v1096_v30 = vadd.f32 %v3208_v53, %v3169_v15 }
 0x144   : > { %v1113_v33 = vpop.f32.mrb[23].mxu0  ;;  %v1305_v34 = vpop.f32.mrb[23].mxu1 }
 0x149   : > { %v3189_v35 = vpop.f32.mrb[24].mxu0  ;;  %v3191_v36 = vpop.f32.mrb[24].mxu1 }
 0x14a   : > { %v1118_v37 = vpop.f32.mrb[25].mxu0  ;;  %v1310_v38 = vpop.f32.mrb[25].mxu1 }
 0x14b   : > { %v3193_v39 = vpop.f32.mrb[26].mxu0  ;;  %v3195_v40 = vpop.f32.mrb[26].mxu1  ;;  %v1088_v38 = vadd.f32 %v3208_v53, %v3161_v7 }
 0x14c   : > { %v1121_v41 = vpop.f32.mrb[27].mxu0  ;;  %v1313_v42 = vpop.f32.mrb[27].mxu1 }
 0x151   : > { %v3197_v43 = vpop.f32.mrb[28].mxu0  ;;  %v3199_v44 = vpop.f32.mrb[28].mxu1 }
 0x152   : > { %v1126_v45 = vpop.f32.mrb[29].mxu0  ;;  %v1318_v46 = vpop.f32.mrb[29].mxu1 }
 0x153   : > { %v3201_v47 = vpop.f32.mrb[30].mxu0  ;;  %v3203_v48 = vpop.f32.mrb[30].mxu1 }
 0x154   : > { %v1129_v49 = vpop.f32.mrb[31].mxu0  ;;  %v1321_v50 = vpop.f32.mrb[31].mxu1 }
 0x159   : > { %v3213_v58 = vpop.f32.mrb[32].mxu0  ;;  %v2379_v61 = vpop.f32.mrb[32].mxu1 }
 0x15a   : > { %v1366_v1 = vadd.f32 %v2379_v61, %v1077_v54  ;;  %v1134_v2 = vpop.f32.mrb[33].mxu0  ;;  %v1357_v5 = vpop.f32.mrb[33].mxu1 }
 0x15b   : > { %v1358_v9 = vadd.f32 %v1357_v5, %v1069_v57  ;;  %v3218_v10 = vpop.f32.mrb[34].mxu0  ;;  %v2380_v13 = vpop.f32.mrb[34].mxu1 }
 0x15c   : > { %v2275_v14 = vmul.f32 -1.442695, %v1366_v1  ;;  %v1369_v59 = vadd.f32 %v2380_v13, %v1080_v62  ;;  %v1137_v17 = vpop.f32.mrb[35].mxu0  ;;  %v1360_v18 = vpop.f32.mrb[35].mxu1  ;;  %v1109_v62 = vadd.f32 %v3208_v53, %v3181_v27  ;;  %v1101_v1 = vadd.f32 %v3208_v53, %v3173_v19 }
 0x15d   : > { %v2273_v51 = vmul.f32 -1.442695, %v1358_v9  ;;  %v1361_v21 = vadd.f32 %v1360_v18, %v1072_v6  ;;  %v1104_v13 = vadd.f32 %v3208_v53, %v3177_v23  ;;  %v1112_v27 = vadd.f32 %v3208_v53, %v3185_v31 }
 0x15e   : > { %2629 = vpow2.f32 %v2275_v14  ;;  %v2276_v22 = vmul.f32 -1.442695, %v1369_v59 }
 0x15f   : > { %2631 = vpow2.f32 %v2273_v51  ;;  %v2274_v63 = vmul.f32 -1.442695, %v1361_v21 }
 0x160   : > { %2633 = vpow2.f32 %v2276_v22 }
 0x161   : > { %2635 = vpow2.f32 %v2274_v63  ;;  %v3224_v26 = vpop.f32.mrb[36].mxu0  ;;  %v2383_v29 = vpop.f32.mrb[36].mxu1 }
 0x162   : > { %v1382_v33 = vadd.f32 %v2383_v29, %v1093_v25  ;;  %v1142_v34 = vpop.f32.mrb[37].mxu0  ;;  %v1373_v37 = vpop.f32.mrb[37].mxu1 }
 0x163   : > { %v1374_v41 = vadd.f32 %v1373_v37, %v1085_v55  ;;  %v3230_v42 = vpop.f32.mrb[38].mxu0  ;;  %v2384_v11 = vpop.f32.mrb[38].mxu1 }
 0x164   : > { %v2279_v45 = vmul.f32 -1.442695, %v1382_v33  ;;  %v1385_v46 = vadd.f32 %v2384_v11, %v1096_v30  ;;  %v1145_v3 = vpop.f32.mrb[39].mxu0  ;;  %v1376_v49 = vpop.f32.mrb[39].mxu1 }
 0x165   : > { %v2277_v50 = vmul.f32 -1.442695, %v1374_v41  ;;  %v1377_v54 = vadd.f32 %v1376_v49, %v1088_v38  ;;  %v1125_v41 = vadd.f32 %v3208_v53, %v3197_v43 }
 0x166   : > { %2637 = vpow2.f32 %v2279_v45  ;;  %v2280_v57 = vmul.f32 -1.442695, %v1385_v46  ;;  %v1117_v45 = vadd.f32 %v3208_v53, %v3189_v35 }
 0x167   : > { %2639 = vpow2.f32 %v2277_v50  ;;  %v2278_v15 = vmul.f32 -1.442695, %v1377_v54  ;;  %v1120_v54 = vadd.f32 %v3208_v53, %v3193_v39 }
 0x168   : > { %v2630_v61 = vpop.eup %2629  ;;  %2641 = vpow2.f32 %v2280_v57 }
 0x169   : > { %v2632_v7 = vpop.eup %2631  ;;  %v1806_v2 = vadd.f32 1.0, %v2630_v61  ;;  %2643 = vpow2.f32 %v2278_v15  ;;  %v3236_v5 = vpop.f32.mrb[40].mxu0 }
 0x16a   : > { %v2387_v6 = vpop.f32.mrb[40].mxu1  ;;  %v2634_v9 = vpop.eup %2633  ;;  %v1804_v14 = vadd.f32 1.0, %v2632_v7  ;;  %v1128_v7 = vadd.f32 %v3208_v53, %v3201_v47 }
 0x16b   : > { %v1398_v59 = vadd.f32 %v2387_v6, %v1109_v62  ;;  %v1150_v17 = vpop.f32.mrb[41].mxu0  ;;  %v1389_v18 = vpop.f32.mrb[41].mxu1  ;;  %2645 = vrcp.f32 %v1806_v2  ;;  %v1807_v21 = vadd.f32 1.0, %v2634_v9 }
 0x16c   : > { %v2636_v51 = vpop.eup %2635  ;;  %v1390_v19 = vadd.f32 %v1389_v18, %v1101_v1  ;;  %v3242_v22 = vpop.f32.mrb[42].mxu0  ;;  %2647 = vrcp.f32 %v1804_v14 }
 0x16d   : > { %v2388_v63 = vpop.f32.mrb[42].mxu1  ;;  %v1805_v25 = vadd.f32 1.0, %v2636_v51  ;;  %v2283_v55 = vmul.f32 -1.442695, %v1398_v59  ;;  %v1153_v29 = vpop.f32.mrb[43].mxu0  ;;  %2649 = vrcp.f32 %v1807_v21 }
 0x16e   : > { %v1392_v23 = vpop.f32.mrb[43].mxu1  ;;  %v2281_v30 = vmul.f32 -1.442695, %v1390_v19  ;;  %v1401_v33 = vadd.f32 %v2388_v63, %v1112_v27  ;;  %v1133_v29 = vadd.f32 %v3208_v53, %v3213_v58 }
 0x16f   : > { %v1393_v34 = vadd.f32 %v1392_v23, %v1104_v13  ;;  %2651 = vrcp.f32 %v1805_v25  ;;  %v1141_v25 = vadd.f32 %v3208_v53, %v3224_v26  ;;  %v1144_v26 = vadd.f32 %v3208_v53, %v3230_v42 }
 0x170   : > { %2653 = vpow2.f32 %v2283_v55  ;;  %v2284_v37 = vmul.f32 -1.442695, %v1401_v33  ;;  %v2638_v38 = vpop.eup %2637 }
 0x171   : > { %v2282_v31 = vmul.f32 -1.442695, %v1393_v34  ;;  %2655 = vpow2.f32 %v2281_v30  ;;  %v2640_v11 = vpop.eup %2639  ;;  %v1810_v46 = vadd.f32 1.0, %v2638_v38  ;;  %v3249_v3 = vpop.f32.mrb[44].mxu0 }
 0x172   : > { %2657 = vpow2.f32 %v2284_v37  ;;  %v2391_v49 = vpop.f32.mrb[44].mxu1  ;;  %v2642_v50 = vpop.eup %2641  ;;  %v1808_v57 = vadd.f32 1.0, %v2640_v11 }
 0x173   : > { %2659 = vpow2.f32 %v2282_v31  ;;  %v1414_v15 = vadd.f32 %v2391_v49, %v1125_v41  ;;  %v1158_v43 = vpop.f32.mrb[45].mxu0  ;;  %v1405_v61 = vpop.f32.mrb[45].mxu1  ;;  %v1811_v35 = vadd.f32 1.0, %v2642_v50  ;;  %v1136_v50 = vadd.f32 %v3208_v53, %v3218_v10 }
 0x174   : > { %v2644_v62 = vpop.eup %2643  ;;  %2661 = vrcp.f32 %v1810_v46  ;;  %v1406_v1 = vadd.f32 %v1405_v61, %v1117_v45  ;;  %v3260_v2 = vpop.f32.mrb[46].mxu0 }
 0x175   : > { %v2392_v39 = vpop.f32.mrb[46].mxu1  ;;  %2663 = vrcp.f32 %v1808_v57  ;;  %v1809_v6 = vadd.f32 1.0, %v2644_v62  ;;  %v2287_v9 = vmul.f32 -1.442695, %v1414_v15  ;;  %v1161_v13 = vpop.f32.mrb[47].mxu0 }
 0x176   : > { %v1408_v14 = vpop.f32.mrb[47].mxu1  ;;  %v2646_v47 = vpop.eup %2645  ;;  %2665 = vrcp.f32 %v1811_v35  ;;  %v2285_v59 = vmul.f32 -1.442695, %v1406_v1  ;;  %v1417_v17 = vadd.f32 %v2392_v39, %v1128_v7 }
 0x177   : > { %v1409_v18 = vadd.f32 %v1408_v14, %v1120_v54  ;;  %v2648_v51 = vpop.eup %2647  ;;  %1999 = vst.msk [vmem:[%s3258_s7 + $0x10] sm:$0xff] %vm1996_vm1, %v2646_v47  ;;  %2667 = vrcp.f32 %v1809_v6  ;;  %v1149_v47 = vadd.f32 %v3208_v53, %v3236_v5 }
 0x178   : > { %v2650_v27 = vpop.eup %2649  ;;  %1997 = vst.msk [vmem:[%s3258_s7] sm:$0xff] %vm1996_vm1, %v2648_v51  ;;  %2669 = vpow2.f32 %v2287_v9  ;;  %v2288_v21 = vmul.f32 -1.442695, %v1417_v17  ;;  %v1157_v9 = vadd.f32 %v3208_v53, %v3249_v3  ;;  %v1160_v3 = vadd.f32 %v3208_v53, %v3260_v2 }
 0x179   : > { %v2286_v19 = vmul.f32 -1.442695, %v1409_v18  ;;  %v2652_v63 = vpop.eup %2651  ;;  %2000 = vst.msk [vmem:[%s3258_s7 + $0x18] sm:$0xff] %vm1996_vm1, %v2650_v27  ;;  %2671 = vpow2.f32 %v2285_v59  ;;  %v3274_v23 = vpop.f32.mrb[48].mxu0 }
 0x17a   : > { %v2654_v55 = vpop.eup %2653  ;;  %1998 = vst.msk [vmem:[%s3258_s7 + $0x8] sm:$0xff] %vm1996_vm1, %v2652_v63  ;;  %2673 = vpow2.f32 %v2288_v21  ;;  %v2395_v30 = vpop.f32.mrb[48].mxu1 }
 0x17b   : > { %v2656_v33 = vpop.eup %2655  ;;  %v1814_v34 = vadd.f32 1.0, %v2654_v55  ;;  %2675 = vpow2.f32 %v2286_v19  ;;  %v1430_v37 = vadd.f32 %v2395_v30, %v1141_v25  ;;  %v1166_v31 = vpop.f32.mrb[49].mxu0 }
 0x17c   : > { %v1421_v38 = vpop.f32.mrb[49].mxu1  ;;  %v2658_v41 = vpop.eup %2657  ;;  %v1812_v11 = vadd.f32 1.0, %v2656_v33  ;;  %v1152_v33 = vadd.f32 %v3208_v53, %v3242_v22 }
 0x17d   : > { %v1422_v45 = vadd.f32 %v1421_v38, %v1133_v29  ;;  %v3278_v58 = vpop.f32.mrb[50].mxu0  ;;  %v2396_v46 = vpop.f32.mrb[50].mxu1  ;;  %2677 = vrcp.f32 %v1814_v34  ;;  %v1815_v54 = vadd.f32 1.0, %v2658_v41  ;;  %v2291_v57 = vmul.f32 -1.442695, %v1430_v37 }
 0x17e   : > { %v2660_v49 = vpop.eup %2659  ;;  %v1169_v15 = vpop.f32.mrb[51].mxu0  ;;  %2679 = vrcp.f32 %v1812_v11  ;;  %v1433_v7 = vadd.f32 %v2396_v46, %v1144_v26 }
 0x17f   : > { %v1424_v43 = vpop.f32.mrb[51].mxu1  ;;  %v2662_v61 = vpop.eup %2661  ;;  %v1813_v42 = vadd.f32 1.0, %v2660_v49  ;;  %v2289_v62 = vmul.f32 -1.442695, %v1422_v45  ;;  %2681 = vrcp.f32 %v1815_v54  ;;  %v1165_v15 = vadd.f32 %v3208_v53, %v3274_v23 }
 0x180   : > { %v2664_v35 = vpop.eup %2663  ;;  %2003 = vst.msk [vmem:[%s3258_s7 + $0x30] sm:$0xff] %vm1996_vm1, %v2662_v61  ;;  %v1425_v1 = vadd.f32 %v1424_v43, %v1136_v50  ;;  %v2292_v10 = vmul.f32 -1.442695, %v1433_v7 }
 0x181   : > { %v2666_v39 = vpop.eup %2665  ;;  %2001 = vst.msk [vmem:[%s3258_s7 + $0x20] sm:$0xff] %vm1996_vm1, %v2664_v35  ;;  %2683 = vrcp.f32 %v1813_v42  ;;  %v1172_v59 = vpop.f32.mrb[52].mxu0 }
 0x182   : > { %v2668_v6 = vpop.eup %2667  ;;  %2004 = vst.msk [vmem:[%s3258_s7 + $0x38] sm:$0xff] %vm1996_vm1, %v2666_v39  ;;  %2685 = vpow2.f32 %v2291_v57  ;;  %v2290_v13 = vmul.f32 -1.442695, %v1425_v1  ;;  %v2399_v17 = vpop.f32.mrb[52].mxu1  ;;  %v1173_v50 = vadd.f32 %v3208_v53, %v1172_v59 }
 0x183   : > { %v2670_v14 = vpop.eup %2669  ;;  %2002 = vst.msk [vmem:[%s3258_s7 + $0x28] sm:$0xff] %vm1996_vm1, %v2668_v6  ;;  %2687 = vpow2.f32 %v2289_v62  ;;  %v1446_v27 = vadd.f32 %v2399_v17, %v1157_v9  ;;  %v1174_v21 = vpop.f32.mrb[53].mxu0  ;;  %v1168_v6 = vadd.f32 %v3208_v53, %v3278_v58 }
 0x184   : > { %v2672_v18 = vpop.eup %2671  ;;  %v1818_v51 = vadd.f32 1.0, %v2670_v14  ;;  %2689 = vpow2.f32 %v2292_v10  ;;  %v1437_v19 = vpop.f32.mrb[53].mxu1 }
 0x185   : > { %v2674_v63 = vpop.eup %2673  ;;  %v1816_v25 = vadd.f32 1.0, %v2672_v18  ;;  %2691 = vpow2.f32 %v2290_v13  ;;  %v1438_v55 = vadd.f32 %v1437_v19, %v1149_v47  ;;  %v1175_v29 = vpop.f32.mrb[54].mxu0  ;;  %v2295_v37 = vmul.f32 -1.442695, %v1446_v27 }
 0x186   : > { %v2400_v30 = vpop.f32.mrb[54].mxu1  ;;  %v2676_v5 = vpop.eup %2675  ;;  %2693 = vrcp.f32 %v1818_v51  ;;  %v1819_v34 = vadd.f32 1.0, %v2674_v63  ;;  %v1176_v62 = vadd.f32 %v3208_v53, %v1175_v29 }
 0x187   : > { %v1177_v31 = vpop.f32.mrb[55].mxu0  ;;  %v1440_v38 = vpop.f32.mrb[55].mxu1  ;;  %2695 = vrcp.f32 %v1816_v25  ;;  %v1817_v41 = vadd.f32 1.0, %v2676_v5  ;;  %v2293_v26 = vmul.f32 -1.442695, %v1438_v55  ;;  %v1449_v2 = vadd.f32 %v2400_v30, %v1160_v3 }
 0x188   : > { %v2678_v11 = vpop.eup %2677  ;;  %2697 = vrcp.f32 %v1819_v34  ;;  %v1441_v45 = vadd.f32 %v1440_v38, %v1152_v33 }
 0x189   : > { %v2680_v46 = vpop.eup %2679  ;;  %2007 = vst.msk [vmem:[%s3258_s7 + $0x50] sm:$0xff] %vm1996_vm1, %v2678_v11  ;;  %2699 = vrcp.f32 %v1817_v41  ;;  %v2296_v22 = vmul.f32 -1.442695, %v1449_v2  ;;  %v1180_v43 = vpop.f32.mrb[56].mxu0 }
 0x18a   : > { %v2682_v49 = vpop.eup %2681  ;;  %2005 = vst.msk [vmem:[%s3258_s7 + $0x40] sm:$0xff] %vm1996_vm1, %v2680_v46  ;;  %2701 = vpow2.f32 %v2295_v37  ;;  %v2294_v54 = vmul.f32 -1.442695, %v1441_v45  ;;  %v2403_v61 = vpop.f32.mrb[56].mxu1  ;;  %v1181_v33 = vadd.f32 %v3208_v53, %v1180_v43 }
 0x18b   : > { %v2684_v57 = vpop.eup %2683  ;;  %2008 = vst.msk [vmem:[%s3258_s7 + $0x58] sm:$0xff] %vm1996_vm1, %v2682_v49  ;;  %2703 = vpow2.f32 %v2293_v26  ;;  %v1462_v7 = vadd.f32 %v2403_v61, %v1173_v50  ;;  %v1182_v35 = vpop.f32.mrb[57].mxu0 }
 0x18c   : > { %v2686_v42 = vpop.eup %2685  ;;  %2006 = vst.msk [vmem:[%s3258_s7 + $0x48] sm:$0xff] %vm1996_vm1, %v2684_v57  ;;  %2705 = vpow2.f32 %v2296_v22  ;;  %v1453_v1 = vpop.f32.mrb[57].mxu1 }
 0x18d   : > { %v2688_v39 = vpop.eup %2687  ;;  %v1822_v10 = vadd.f32 1.0, %v2686_v42  ;;  %2707 = vpow2.f32 %v2294_v54  ;;  %v1454_v9 = vadd.f32 %v1453_v1, %v1165_v15  ;;  %v1183_v23 = vpop.f32.mrb[58].mxu0  ;;  %v2299_v21 = vmul.f32 -1.442695, %v1462_v7 }
 0x18e   : > { %v2404_v13 = vpop.f32.mrb[58].mxu1  ;;  %v2690_v14 = vpop.eup %2689  ;;  %v1820_v47 = vadd.f32 1.0, %v2688_v39  ;;  %v1184_v45 = vadd.f32 %v3208_v53, %v1183_v23 }
 0x18f   : > { %v1465_v59 = vadd.f32 %v2404_v13, %v1176_v62  ;;  %v1185_v17 = vpop.f32.mrb[59].mxu0  ;;  %v1456_v18 = vpop.f32.mrb[59].mxu1  ;;  %2709 = vrcp.f32 %v1822_v10  ;;  %v1823_v27 = vadd.f32 1.0, %v2690_v14  ;;  %v2297_v25 = vmul.f32 -1.442695, %v1454_v9 }
 0x190   : > { %v2692_v51 = vpop.eup %2691  ;;  %v1457_v19 = vadd.f32 %v1456_v18, %v1168_v6  ;;  %2711 = vrcp.f32 %v1820_v47 }
 0x191   : > { %v2694_v63 = vpop.eup %2693  ;;  %v1821_v58 = vadd.f32 1.0, %v2692_v51  ;;  %2713 = vrcp.f32 %v1823_v27  ;;  %v2300_v55 = vmul.f32 -1.442695, %v1465_v59  ;;  %v1188_v34 = vpop.f32.mrb[60].mxu0 }
 0x192   : > { %v2696_v3 = vpop.eup %2695  ;;  %2011 = vst.msk [vmem:[%s3258_s7 + $0x70] sm:$0xff] %vm1996_vm1, %v2694_v63  ;;  %v2298_v30 = vmul.f32 -1.442695, %v1457_v19  ;;  %v2407_v37 = vpop.f32.mrb[60].mxu1  ;;  %v1189_v38 = vadd.f32 %v3208_v53, %v1188_v34 }
 0x193   : > { %v2698_v29 = vpop.eup %2697  ;;  %2009 = vst.msk [vmem:[%s3258_s7 + $0x60] sm:$0xff] %vm1996_vm1, %v2696_v3  ;;  %2715 = vrcp.f32 %v1821_v58  ;;  %v1190_v41 = vpop.f32.mrb[61].mxu0 }
 0x194   : > { %v2700_v5 = vpop.eup %2699  ;;  %2012 = vst.msk [vmem:[%s3258_s7 + $0x78] sm:$0xff] %vm1996_vm1, %v2698_v29  ;;  %2717 = vpow2.f32 %v2299_v21  ;;  %v1469_v26 = vpop.f32.mrb[61].mxu1  ;;  %v1478_v57 = vadd.f32 %v2407_v37, %v1189_v38 }
 0x195   : > { %v2702_v31 = vpop.eup %2701  ;;  %2010 = vst.msk [vmem:[%s3258_s7 + $0x68] sm:$0xff] %vm1996_vm1, %v2700_v5  ;;  %2719 = vpow2.f32 %v2297_v25  ;;  %v1470_v46 = vadd.f32 %v1469_v26, %v1181_v33  ;;  %v1191_v22 = vpop.f32.mrb[62].mxu0 }
 0x196   : > { %v2704_v2 = vpop.eup %2703  ;;  %v1826_v11 = vadd.f32 1.0, %v2702_v31  ;;  %2721 = vpow2.f32 %v2300_v55  ;;  %v2408_v49 = vpop.f32.mrb[62].mxu1  ;;  %v1192_v15 = vadd.f32 %v3208_v53, %v1191_v22  ;;  %v2303_v39 = vmul.f32 -1.442695, %v1478_v57 }
 0x197   : > { %v2706_v50 = vpop.eup %2705  ;;  %v1824_v54 = vadd.f32 1.0, %v2704_v2  ;;  %2723 = vpow2.f32 %v2298_v30  ;;  %v1193_v43 = vpop.f32.mrb[63].mxu0  ;;  %v2301_v7 = vmul.f32 -1.442695, %v1470_v46 }
 0x198   : > { %v1472_v61 = vpop.f32.mrb[63].mxu1  ;;  %v2708_v42 = vpop.eup %2707  ;;  %2725 = vrcp.f32 %v1826_v11  ;;  %v1827_v62 = vadd.f32 1.0, %v2706_v50  ;;  %v1481_v10 = vadd.f32 %v2408_v49, %v1192_v15 }
 0x199   : > { %v1473_v35 = vadd.f32 %v1472_v61, %v1184_v45  ;;  %2727 = vrcp.f32 %v1824_v54  ;;  %v1825_v1 = vadd.f32 1.0, %v2708_v42  ;;  %v2710_v6 = vpop.eup %2709  ;;  %v1196_v47 = vpop.f32.mrb[64].mxu0 }
 0x19a   : > { %2729 = vrcp.f32 %v1827_v62  ;;  %v2712_v9 = vpop.eup %2711  ;;  %2015 = vst.msk [vmem:[%s3258_s7 + $0x90] sm:$0xff] %vm1996_vm1, %v2710_v6  ;;  %v2304_v23 = vmul.f32 -1.442695, %v1481_v10  ;;  %v2411_v59 = vpop.f32.mrb[64].mxu1  ;;  %v1197_v18 = vadd.f32 %v3208_v53, %v1196_v47 }
 0x19b   : > { %2731 = vrcp.f32 %v1825_v1  ;;  %v2302_v13 = vmul.f32 -1.442695, %v1473_v35  ;;  %v2714_v14 = vpop.eup %2713  ;;  %2013 = vst.msk [vmem:[%s3258_s7 + $0x80] sm:$0xff] %vm1996_vm1, %v2712_v9  ;;  %v1198_v51 = vpop.f32.mrb[65].mxu0 }
 0x19c   : > { %2733 = vpow2.f32 %v2303_v39  ;;  %2016 = vst.msk [vmem:[%s3258_s7 + $0x98] sm:$0xff] %vm1996_vm1, %v2714_v14  ;;  %v1485_v27 = vpop.f32.mrb[65].mxu1  ;;  %v1199_v19 = vpop.f32.mrb[66].mxu0 }
 0x19d   : > { %v2716_v17 = vpop.eup %2715  ;;  %2735 = vpow2.f32 %v2301_v7  ;;  %v2412_v63 = vpop.f32.mrb[66].mxu1  ;;  %v1486_v3 = vadd.f32 %v1485_v27, %v1197_v18  ;;  %v1200_v55 = vadd.f32 %v3208_v53, %v1199_v19 }
 0x19e   : > { %v2718_v21 = vpop.eup %2717  ;;  %2014 = vst.msk [vmem:[%s3258_s7 + $0x88] sm:$0xff] %vm1996_vm1, %v2716_v17  ;;  %2737 = vpow2.f32 %v2304_v23  ;;  %v1201_v29 = vpop.f32.mrb[67].mxu0 }
 0x19f   : > { %v2720_v58 = vpop.eup %2719  ;;  %v1830_v25 = vadd.f32 1.0, %v2718_v21  ;;  %2739 = vpow2.f32 %v2302_v13  ;;  %v1488_v30 = vpop.f32.mrb[67].mxu1  ;;  %v2305_v31 = vmul.f32 -1.442695, %v1486_v3 }
 0x1a0   : > { %v2722_v5 = vpop.eup %2721  ;;  %v1828_v33 = vadd.f32 1.0, %v2720_v58  ;;  %v1489_v38 = vadd.f32 %v1488_v30, %v1200_v55 }
 0x1a1   : > { %v2724_v34 = vpop.eup %2723  ;;  %2741 = vrcp.f32 %v1830_v25  ;;  %v1831_v37 = vadd.f32 1.0, %v2722_v5  ;;  %v1204_v46 = vpop.f32.mrb[68].mxu0 }
 0x1a2   : > { %v2726_v41 = vpop.eup %2725  ;;  %2743 = vrcp.f32 %v1828_v33  ;;  %v1829_v26 = vadd.f32 1.0, %v2724_v34  ;;  %v2306_v11 = vmul.f32 -1.442695, %v1489_v38  ;;  %v3338_v22 = vpop.f32.mrb[68].mxu1  ;;  %v1205_v50 = vadd.f32 %v3208_v53, %v1204_v46 }
 0x1a3   : > { %v2728_v2 = vpop.eup %2727  ;;  %2019 = vst.msk [vmem:[%s3258_s7 + $0xb0] sm:$0xff] %vm1996_vm1, %v2726_v41  ;;  %2745 = vrcp.f32 %v1831_v37  ;;  %v1206_v54 = vpop.f32.mrb[69].mxu0 }
 0x1a4   : > { %v2730_v45 = vpop.eup %2729  ;;  %2017 = vst.msk [vmem:[%s3258_s7 + $0xa0] sm:$0xff] %vm1996_vm1, %v2728_v2  ;;  %2747 = vrcp.f32 %v1829_v26  ;;  %v1501_v57 = vpop.f32.mrb[69].mxu1  ;;  %v1494_v7 = vadd.f32 %v2411_v59, %v1205_v50 }
 0x1a5   : > { %v2732_v49 = vpop.eup %2731  ;;  %2020 = vst.msk [vmem:[%s3258_s7 + $0xb8] sm:$0xff] %vm1996_vm1, %v2730_v45  ;;  %2749 = vpow2.f32 %v2305_v31  ;;  %v1207_v43 = vpop.f32.mrb[70].mxu0 }
 0x1a6   : > { %v2734_v15 = vpop.eup %2733  ;;  %2018 = vst.msk [vmem:[%s3258_s7 + $0xa8] sm:$0xff] %vm1996_vm1, %v2732_v49  ;;  %2751 = vpow2.f32 %v2306_v11  ;;  %v3345_v61 = vpop.f32.mrb[70].mxu1  ;;  %v1208_v35 = vadd.f32 %v3208_v53, %v1207_v43  ;;  %v2307_v13 = vmul.f32 -1.442695, %v1494_v7 }
 0x1a7   : > { %v2736_v42 = vpop.eup %2735  ;;  %v1834_v62 = vadd.f32 1.0, %v2734_v15  ;;  %v1209_v1 = vpop.f32.mrb[71].mxu0 }
 0x1a8   : > { %v1504_v39 = vpop.f32.mrb[71].mxu1  ;;  %v2738_v10 = vpop.eup %2737  ;;  %v1832_v6 = vadd.f32 1.0, %v2736_v42  ;;  %v1497_v14 = vadd.f32 %v2412_v63, %v1208_v35 }
 0x1a9   : > { %v2740_v9 = vpop.eup %2739  ;;  %2753 = vrcp.f32 %v1834_v62  ;;  %v1835_v23 = vadd.f32 1.0, %v2738_v10  ;;  %v1212_v51 = vpop.f32.mrb[72].mxu0 }
 0x1aa   : > { %2755 = vrcp.f32 %v1832_v6  ;;  %v1833_v47 = vadd.f32 1.0, %v2740_v9  ;;  %v2308_v18 = vmul.f32 -1.442695, %v1497_v14  ;;  %v3350_v27 = vpop.f32.mrb[72].mxu1  ;;  %v1213_v19 = vadd.f32 %v3208_v53, %v1212_v51  ;;  %v1214_v63 = vpop.f32.mrb[73].mxu0 }
 0x1ab   : > { %v2742_v17 = vpop.eup %2741  ;;  %2757 = vrcp.f32 %v1835_v23  ;;  %v3355_v58 = vpop.f32.mrb[73].mxu1 }
 0x1ac   : > { %v2744_v59 = vpop.eup %2743  ;;  %2023 = vst.msk [vmem:[%s3258_s7 + $0xd0] sm:$0xff] %vm1996_vm1, %v2742_v17  ;;  %2759 = vrcp.f32 %v1833_v47  ;;  %v1215_v3 = vpop.f32.mrb[74].mxu0  ;;  %v1502_v30 = vadd.f32 %v1501_v57, %v1213_v19  ;;  %v1269_v47 = vadd.f32 %v3208_v53, %v3153_v60 }
 0x1ad   : > { %v2746_v21 = vpop.eup %2745  ;;  %2021 = vst.msk [vmem:[%s3258_s7 + $0xc0] sm:$0xff] %vm1996_vm1, %v2744_v59  ;;  %2761 = vpow2.f32 %v2307_v13  ;;  %v3359_v55 = vpop.f32.mrb[74].mxu1  ;;  %v1216_v5 = vadd.f32 %v3208_v53, %v1215_v3  ;;  %v1264_v3 = vadd.f32 %v3208_v53, %v3151_v56 }
 0x1ae   : > { %v2748_v25 = vpop.eup %2747  ;;  %2024 = vst.msk [vmem:[%s3258_s7 + $0xd8] sm:$0xff] %vm1996_vm1, %v2746_v21  ;;  %2763 = vpow2.f32 %v2308_v18  ;;  %v1217_v33 = vpop.f32.mrb[75].mxu0  ;;  %v2309_v41 = vmul.f32 -1.442695, %v1502_v30  ;;  %v1261_v18 = vadd.f32 %v3208_v53, %v3147_v52 }
 0x1af   : > { %v2750_v29 = vpop.eup %2749  ;;  %2022 = vst.msk [vmem:[%s3258_s7 + $0xc8] sm:$0xff] %vm1996_vm1, %v2748_v25  ;;  %v3364_v34 = vpop.f32.mrb[75].mxu1  ;;  %v1505_v26 = vadd.f32 %v1504_v39, %v1216_v5 }
 0x1b0   : > { %v2752_v37 = vpop.eup %2751  ;;  %v1836_v31 = vadd.f32 1.0, %v2750_v29  ;;  %v1272_v29 = vadd.f32 %v3208_v53, %v3155_v0 }
 0x1b1   : > { %v1837_v38 = vadd.f32 1.0, %v2752_v37  ;;  %v2310_v11 = vmul.f32 -1.442695, %v1505_v26  ;;  %v1220_v46 = vpop.f32.mrb[76].mxu0  ;;  %v3368_v49 = vpop.f32.mrb[76].mxu1 }
 0x1b2   : > { %2765 = vrcp.f32 %v1836_v31  ;;  %v1221_v54 = vadd.f32 %v3208_v53, %v1220_v46  ;;  %v1222_v57 = vpop.f32.mrb[77].mxu0  ;;  %v3373_v15 = vpop.f32.mrb[77].mxu1 }
 0x1b3   : > { %v2754_v2 = vpop.eup %2753  ;;  %2767 = vrcp.f32 %v1837_v38  ;;  %v1223_v42 = vpop.f32.mrb[78].mxu0 }
 0x1b4   : > { %v2756_v45 = vpop.eup %2755  ;;  %2027 = vst.msk [vmem:[%s3258_s7 + $0xf0] sm:$0xff] %vm1996_vm1, %v2754_v2  ;;  %2769 = vpow2.f32 %v2309_v41  ;;  %v3377_v62 = vpop.f32.mrb[78].mxu1  ;;  %v1510_v35 = vadd.f32 %v3338_v22, %v1221_v54  ;;  %v1224_v1 = vadd.f32 %v3208_v53, %v1223_v42  ;;  %v1285_v54 = vadd.f32 %v3208_v53, %v3167_v12 }
 0x1b5   : > { %v2758_v50 = vpop.eup %2757  ;;  %2025 = vst.msk [vmem:[%s3258_s7 + $0xe0] sm:$0xff] %vm1996_vm1, %v2756_v45  ;;  %2771 = vpow2.f32 %v2310_v11  ;;  %v1225_v39 = vpop.f32.mrb[79].mxu0  ;;  %v1277_v42 = vadd.f32 %v3208_v53, %v3159_v4  ;;  %v1288_v4 = vadd.f32 %v3208_v53, %v3171_v16 }
 0x1b6   : > { %v2760_v43 = vpop.eup %2759  ;;  %2028 = vst.msk [vmem:[%s3258_s7 + $0xf8] sm:$0xff] %vm1996_vm1, %v2758_v50  ;;  %v3383_v10 = vpop.f32.mrb[79].mxu1  ;;  %v2311_v13 = vmul.f32 -1.442695, %v1510_v35  ;;  %v1513_v14 = vadd.f32 %v3345_v61, %v1224_v1 }
 0x1b7   : > { %v2762_v7 = vpop.eup %2761  ;;  %2026 = vst.msk [vmem:[%s3258_s7 + $0xe8] sm:$0xff] %vm1996_vm1, %v2760_v43 }
 0x1b8   : > { %v2764_v6 = vpop.eup %2763  ;;  %v1838_v9 = vadd.f32 1.0, %v2762_v7  ;;  %v2312_v17 = vmul.f32 -1.442695, %v1513_v14 }
 0x1b9   : > { %v1839_v23 = vadd.f32 1.0, %v2764_v6  ;;  %v1228_v59 = vpop.f32.mrb[80].mxu0  ;;  %v2427_v51 = vpop.f32.mrb[80].mxu1 }
 0x1ba   : > { %2773 = vrcp.f32 %v1838_v9  ;;  %v1229_v61 = vadd.f32 %v3208_v53, %v1228_v59  ;;  %v1558_v19 = vadd.f32 %v2427_v51, %v1269_v47  ;;  %v1230_v63 = vpop.f32.mrb[81].mxu0  ;;  %v1549_v25 = vpop.f32.mrb[81].mxu1 }
 0x1bb   : > { %2775 = vrcp.f32 %v1839_v23  ;;  %v1550_v52 = vadd.f32 %v1549_v25, %v1261_v18  ;;  %v1231_v30 = vpop.f32.mrb[82].mxu0  ;;  %v2428_v5 = vpop.f32.mrb[82].mxu1 }
 0x1bc   : > { %v2766_v22 = vpop.eup %2765  ;;  %2777 = vpow2.f32 %v2311_v13  ;;  %v1518_v31 = vadd.f32 %v3355_v58, %v1229_v61  ;;  %v1232_v38 = vadd.f32 %v3208_v53, %v1231_v30  ;;  %v1233_v41 = vpop.f32.mrb[83].mxu0  ;;  %v2323_v11 = vmul.f32 -1.442695, %v1558_v19 }
 0x1bd   : > { %v2768_v21 = vpop.eup %2767  ;;  %2029 = vst.msk [vmem:[%s3258_s7 + $0x100] sm:$0xff] %vm1996_vm1, %v2766_v22  ;;  %2779 = vpow2.f32 %v2312_v17  ;;  %v1552_v26 = vpop.f32.mrb[83].mxu1  ;;  %v1561_v45 = vadd.f32 %v2428_v5, %v1272_v29  ;;  %v2321_v46 = vmul.f32 -1.442695, %v1550_v52  ;;  %v1280_v13 = vadd.f32 %v3208_v53, %v3163_v8  ;;  %v3423_v5 = vld [vmem:[%s3514_s2] ss:$0 sm:$0xff] }
 0x1be   : > { %v2770_v60 = vpop.eup %2769  ;;  %2030 = vst.msk [vmem:[%s3258_s7 + $0x108] sm:$0xff] %vm1996_vm1, %v2768_v21  ;;  %v1553_v56 = vadd.f32 %v1552_v26, %v1264_v3  ;;  %v2313_v0 = vmul.f32 -1.442695, %v1518_v31  ;;  %v1521_v50 = vadd.f32 %v3364_v34, %v1232_v38 }
 0x1bf   : > { %v2772_v33 = vpop.eup %2771  ;;  %v1840_v37 = vadd.f32 1.0, %v2770_v60  ;;  %v2324_v57 = vmul.f32 -1.442695, %v1561_v45 }
 0x1c0   : > { %v1841_v2 = vadd.f32 1.0, %v2772_v33  ;;  %v2314_v58 = vmul.f32 -1.442695, %v1521_v50  ;;  %v2322_v7 = vmul.f32 -1.442695, %v1553_v56  ;;  %v1293_v33 = vadd.f32 %v3423_v5, %v3175_v20 }
 0x1c1   : > { %2781 = vrcp.f32 %v1840_v37  ;;  %v1236_v35 = vpop.f32.mrb[84].mxu0  ;;  %v2431_v1 = vpop.f32.mrb[84].mxu1 }
 0x1c2   : > { %2783 = vrcp.f32 %v1841_v2  ;;  %v1237_v34 = vadd.f32 %v3208_v53, %v1236_v35  ;;  %v1574_v6 = vadd.f32 %v2431_v1, %v1285_v54  ;;  %v1238_v12 = vpop.f32.mrb[85].mxu0  ;;  %v1565_v9 = vpop.f32.mrb[85].mxu1 }
 0x1c3   : > { %2785 = vpow2.f32 %v2313_v0  ;;  %v1566_v14 = vadd.f32 %v1565_v9, %v1277_v42  ;;  %v1239_v47 = vpop.f32.mrb[86].mxu0  ;;  %v2432_v17 = vpop.f32.mrb[86].mxu1  ;;  %v1296_v42 = vadd.f32 %v3423_v5, %v3179_v24  ;;  %v1317_v24 = vadd.f32 %v3423_v5, %v3199_v44 }
 0x1c4   : > { %v2774_v43 = vpop.eup %2773  ;;  %2787 = vpow2.f32 %v2323_v11  ;;  %v1526_v59 = vadd.f32 %v3350_v27, %v1237_v34  ;;  %v2327_v51 = vmul.f32 -1.442695, %v1574_v6  ;;  %v1241_v21 = vpop.f32.mrb[87].mxu0  ;;  %v1240_v16 = vadd.f32 %v3208_v53, %v1239_v47 }
 0x1c5   : > { %v2776_v39 = vpop.eup %2775  ;;  %2031 = vst.msk [vmem:[%s3258_s7 + $0x110] sm:$0xff] %vm1996_vm1, %v2774_v43  ;;  %2789 = vpow2.f32 %v2321_v46  ;;  %v1568_v61 = vpop.f32.mrb[87].mxu1  ;;  %v2325_v8 = vmul.f32 -1.442695, %v1566_v14  ;;  %v1577_v25 = vadd.f32 %v2432_v17, %v1288_v4  ;;  %v1301_v27 = vadd.f32 %v3208_v53, %v3183_v28 }
 0x1c6   : > { %v2778_v23 = vpop.eup %2777  ;;  %2032 = vst.msk [vmem:[%s3258_s7 + $0x118] sm:$0xff] %vm1996_vm1, %v2776_v39  ;;  %2791 = vpow2.f32 %v2314_v58  ;;  %v2315_v63 = vmul.f32 -1.442695, %v1526_v59  ;;  %v1569_v60 = vadd.f32 %v1568_v61, %v1280_v13  ;;  %v1529_v3 = vadd.f32 %v3359_v55, %v1240_v16 }
 0x1c7   : > { %v2780_v22 = vpop.eup %2779  ;;  %v1842_v18 = vadd.f32 1.0, %v2778_v23  ;;  %2793 = vpow2.f32 %v2324_v57  ;;  %v2328_v52 = vmul.f32 -1.442695, %v1577_v25  ;;  %v1304_v46 = vadd.f32 %v3423_v5, %v3187_v32 }
 0x1c8   : > { %v1843_v19 = vadd.f32 1.0, %v2780_v22  ;;  %2795 = vpow2.f32 %v2322_v7  ;;  %v2316_v37 = vmul.f32 -1.442695, %v1529_v3  ;;  %v2326_v34 = vmul.f32 -1.442695, %v1569_v60 }
 0x1c9   : > { %2797 = vrcp.f32 %v1842_v18  ;;  %v1244_v55 = vpop.f32.mrb[88].mxu0  ;;  %v2435_v31 = vpop.f32.mrb[88].mxu1  ;;  %v1309_v47 = vadd.f32 %v3423_v5, %v3191_v36  ;;  %v1312_v61 = vadd.f32 %v3423_v5, %v3195_v40  ;;  %v1320_v25 = vadd.f32 %v3423_v5, %v3203_v48 }
 0x1ca   : > { %2799 = vrcp.f32 %v1843_v19  ;;  %v1245_v28 = vadd.f32 %v3423_v5, %v1244_v55  ;;  %v3432_v53 = vadd.f32 %v2435_v31, %v1301_v27  ;;  %v1246_v41 = vpop.f32.mrb[89].mxu0  ;;  %v1581_v26 = vpop.f32.mrb[89].mxu1 }
 0x1cb   : > { %v2782_v29 = vpop.eup %2781  ;;  %2801 = vpow2.f32 %v2315_v63  ;;  %v3434_v20 = vadd.f32 %v1581_v26, %v1293_v33  ;;  %v1247_v45 = vpop.f32.mrb[90].mxu0 }
 0x1cc   : > { %v2784_v30 = vpop.eup %2783  ;;  %2033 = vst.msk [vmem:[%s3258_s7 + $0x120] sm:$0xff] %vm1996_vm1, %v2782_v29  ;;  %2803 = vpow2.f32 %v2327_v51  ;;  %v2436_v56 = vpop.f32.mrb[90].mxu1  ;;  %v1534_v54 = vadd.f32 %v3373_v15, %v1245_v28  ;;  %v1248_v35 = vadd.f32 %v3423_v5, %v1247_v45  ;;  %v2331_v40 = vmul.f32 -1.442695, %v3432_v53 }
 0x1cd   : > { %v2786_v38 = vpop.eup %2785  ;;  %2034 = vst.msk [vmem:[%s3258_s7 + $0x128] sm:$0xff] %vm1996_vm1, %v2784_v30  ;;  %2805 = vpow2.f32 %v2325_v8  ;;  %v1249_v58 = vpop.f32.mrb[91].mxu0  ;;  %v1593_v32 = vadd.f32 %v2436_v56, %v1304_v46  ;;  %v2329_v48 = vmul.f32 -1.442695, %v3434_v20 }
 0x1ce   : > { %v2788_v2 = vpop.eup %2787  ;;  %v1844_v11 = vadd.f32 1.0, %v2786_v38  ;;  %2807 = vpow2.f32 %v2316_v37  ;;  %v1584_v57 = vpop.f32.mrb[91].mxu1  ;;  %v1537_v12 = vadd.f32 %v3383_v10, %v1248_v35  ;;  %v2317_v4 = vmul.f32 -1.442695, %v1534_v54 }
 0x1cf   : > { %v2790_v0 = vpop.eup %2789  ;;  %v1854_v50 = vadd.f32 1.0, %v2788_v2  ;;  %2809 = vpow2.f32 %v2328_v52  ;;  %v1585_v9 = vadd.f32 %v1584_v57, %v1296_v42  ;;  %v2332_v2 = vmul.f32 -1.442695, %v1593_v32 }
 0x1d0   : > { %v2792_v43 = vpop.eup %2791  ;;  %2811 = vrcp.f32 %v1844_v11  ;;  %v1852_v7 = vadd.f32 1.0, %v2790_v0 }
 0x1d1   : > { %v2794_v1 = vpop.eup %2793  ;;  %2813 = vrcp.f32 %v1854_v50  ;;  %v1845_v39 = vadd.f32 1.0, %v2792_v43  ;;  %v1252_v17 = vpop.f32.mrb[92].mxu0  ;;  %v2330_v20 = vmul.f32 -1.442695, %v1585_v9 }
 0x1d2   : > { %v2796_v6 = vpop.eup %2795  ;;  %2815 = vrcp.f32 %v1852_v7  ;;  %v1855_v15 = vadd.f32 1.0, %v2794_v1  ;;  %v2439_v22 = vpop.f32.mrb[92].mxu1  ;;  %v1253_v10 = vadd.f32 %v3423_v5, %v1252_v17 }
 0x1d3   : > { %v2798_v23 = vpop.eup %2797  ;;  %2817 = vrcp.f32 %v1845_v39  ;;  %v1853_v13 = vadd.f32 1.0, %v2796_v6  ;;  %v1606_v59 = vadd.f32 %v2439_v22, %v1317_v24  ;;  %v1254_v44 = vpop.f32.mrb[93].mxu0 }
 0x1d4   : > { %v2800_v14 = vpop.eup %2799  ;;  %2035 = vst.msk [vmem:[%s3258_s7 + $0x130] sm:$0xff] %vm1996_vm1, %v2798_v23  ;;  %2819 = vrcp.f32 %v1855_v15  ;;  %v1597_v51 = vpop.f32.mrb[93].mxu1  ;;  %v1542_v3 = vadd.f32 %v3368_v49, %v1253_v10 }
 0x1d5   : > { %v2802_v18 = vpop.eup %2801  ;;  %2036 = vst.msk [vmem:[%s3258_s7 + $0x138] sm:$0xff] %vm1996_vm1, %v2800_v14  ;;  %2821 = vrcp.f32 %v1853_v13  ;;  %v1598_v36 = vadd.f32 %v1597_v51, %v1309_v47  ;;  %v1255_v8 = vpop.f32.mrb[94].mxu0  ;;  %v2335_v54 = vmul.f32 -1.442695, %v1606_v59 }
 0x1d6   : > { %v2804_v21 = vpop.eup %2803  ;;  %v1846_v19 = vadd.f32 1.0, %v2802_v18  ;;  %2823 = vpow2.f32 %v2326_v34  ;;  %v2440_v16 = vpop.f32.mrb[94].mxu1  ;;  %v1256_v33 = vadd.f32 %v3423_v5, %v1255_v8  ;;  %v2318_v5 = vmul.f32 -1.442695, %v1537_v12 }
 0x1d7   : > { %v2806_v63 = vpop.eup %2805  ;;  %v1858_v60 = vadd.f32 1.0, %v2804_v21  ;;  %2825 = vpow2.f32 %v2317_v4  ;;  %v1257_v29 = vpop.f32.mrb[95].mxu0  ;;  %v1609_v31 = vadd.f32 %v2440_v16, %v1320_v25  ;;  %v2333_v43 = vmul.f32 -1.442695, %v1598_v36 }
 0x1d8   : > { %v1600_v27 = vpop.f32.mrb[95].mxu1  ;;  %v2808_v52 = vpop.eup %2807  ;;  %2827 = vrcp.f32 %v1846_v19  ;;  %v1856_v30 = vadd.f32 1.0, %v2806_v63  ;;  %v1545_v28 = vadd.f32 %v3377_v62, %v1256_v33  ;;  %v2319_v62 = vmul.f32 -1.442695, %v1542_v3 }
 0x1d9   : > { %v2810_v37 = vpop.eup %2809  ;;  %2829 = vrcp.f32 %v1858_v60  ;;  %v1847_v55 = vadd.f32 1.0, %v2808_v52  ;;  %v1601_v41 = vadd.f32 %v1600_v27, %v1312_v61  ;;  %v2336_v1 = vmul.f32 -1.442695, %v1609_v31 }
 0x1da   : > { %v2812_v38 = vpop.eup %2811  ;;  %2831 = vrcp.f32 %v1856_v30  ;;  %v1859_v49 = vadd.f32 1.0, %v2810_v37  ;;  %v2320_v7 = vmul.f32 -1.442695, %v1545_v28 }
 0x1db   : > { %v2814_v26 = vpop.eup %2813  ;;  %2037 = vst.msk [vmem:[%s3258_s7 + $0x140] sm:$0xff] %vm1996_vm1, %v2812_v38  ;;  %2833 = vrcp.f32 %v1847_v55  ;;  %v2334_v34 = vmul.f32 -1.442695, %v1601_v41 }
 0x1dc   : > { %v2816_v53 = vpop.eup %2815  ;;  %2047 = vst.msk [vmem:[%s3258_s7 + $0x190] sm:$0xff] %vm1996_vm1, %v2814_v26  ;;  %2835 = vrcp.f32 %v1859_v49 }
 0x1dd   : > { %v2818_v11 = vpop.eup %2817  ;;  %2045 = vst.msk [vmem:[%s3258_s7 + $0x180] sm:$0xff] %vm1996_vm1, %v2816_v53  ;;  %2837 = vpow2.f32 %v2331_v40 }
 0x1de   : > { %v2820_v45 = vpop.eup %2819  ;;  %2038 = vst.msk [vmem:[%s3258_s7 + $0x148] sm:$0xff] %vm1996_vm1, %v2818_v11  ;;  %2839 = vpow2.f32 %v2329_v48 }
 0x1df   : > { %v2822_v56 = vpop.eup %2821  ;;  %2048 = vst.msk [vmem:[%s3258_s7 + $0x198] sm:$0xff] %vm1996_vm1, %v2820_v45  ;;  %2841 = vpow2.f32 %v2318_v5 }
 0x1e0   : > { %v2824_v0 = vpop.eup %2823  ;;  %2046 = vst.msk [vmem:[%s3258_s7 + $0x188] sm:$0xff] %vm1996_vm1, %v2822_v56  ;;  %2843 = vpow2.f32 %v2332_v2 }
 0x1e1   : > { %v2826_v46 = vpop.eup %2825  ;;  %v1857_v50 = vadd.f32 1.0, %v2824_v0  ;;  %2845 = vpow2.f32 %v2330_v20 }
 0x1e2   : > { %v2828_v58 = vpop.eup %2827  ;;  %v1848_v57 = vadd.f32 1.0, %v2826_v46  ;;  %2847 = vpow2.f32 %v2319_v62 }
 0x1e3   : > { %v2830_v42 = vpop.eup %2829  ;;  %2039 = vst.msk [vmem:[%s3258_s7 + $0x150] sm:$0xff] %vm1996_vm1, %v2828_v58  ;;  %2849 = vrcp.f32 %v1857_v50 }
 0x1e4   : > { %v2832_v35 = vpop.eup %2831  ;;  %2051 = vst.msk [vmem:[%s3258_s7 + $0x1b0] sm:$0xff] %vm1996_vm1, %v2830_v42  ;;  %2851 = vrcp.f32 %v1848_v57 }
 0x1e5   : > { %v2834_v39 = vpop.eup %2833  ;;  %2049 = vst.msk [vmem:[%s3258_s7 + $0x1a0] sm:$0xff] %vm1996_vm1, %v2832_v35  ;;  %2853 = vpow2.f32 %v2335_v54 }
 0x1e6   : > { %v2836_v32 = vpop.eup %2835  ;;  %2040 = vst.msk [vmem:[%s3258_s7 + $0x158] sm:$0xff] %vm1996_vm1, %v2834_v39  ;;  %2855 = vpow2.f32 %v2333_v43 }
 0x1e7   : > { %v2838_v6 = vpop.eup %2837  ;;  %2052 = vst.msk [vmem:[%s3258_s7 + $0x1b8] sm:$0xff] %vm1996_vm1, %v2836_v32  ;;  %2857 = vpow2.f32 %v2320_v7 }
 0x1e8   : > { %v2840_v15 = vpop.eup %2839  ;;  %v1862_v12 = vadd.f32 1.0, %v2838_v6  ;;  %2859 = vpow2.f32 %v2336_v1 }
 0x1e9   : > { %v2842_v9 = vpop.eup %2841  ;;  %v1860_v23 = vadd.f32 1.0, %v2840_v15  ;;  %2861 = vpow2.f32 %v2334_v34 }
 0x1ea   : > { %v2844_v24 = vpop.eup %2843  ;;  %2863 = vrcp.f32 %v1862_v12  ;;  %v1849_v13 = vadd.f32 1.0, %v2842_v9 }
 0x1eb   : > { %v2846_v4 = vpop.eup %2845  ;;  %2865 = vrcp.f32 %v1860_v23  ;;  %v1863_v14 = vadd.f32 1.0, %v2844_v24 }
 0x1ec   : > { %v2848_v47 = vpop.eup %2847  ;;  %2867 = vrcp.f32 %v1849_v13  ;;  %v1861_v17 = vadd.f32 1.0, %v2846_v4 }
 0x1ed   : > { %v2850_v22 = vpop.eup %2849  ;;  %2869 = vrcp.f32 %v1863_v14  ;;  %v1850_v18 = vadd.f32 1.0, %v2848_v47 }
 0x1ee   : > { %v2852_v10 = vpop.eup %2851  ;;  %2050 = vst.msk [vmem:[%s3258_s7 + $0x1a8] sm:$0xff] %vm1996_vm1, %v2850_v22  ;;  %2871 = vrcp.f32 %v1861_v17 }
 0x1ef   : > { %v2854_v59 = vpop.eup %2853  ;;  %2041 = vst.msk [vmem:[%s3258_s7 + $0x160] sm:$0xff] %vm1996_vm1, %v2852_v10  ;;  %2873 = vrcp.f32 %v1850_v18 }
 0x1f0   : > { %v2856_v44 = vpop.eup %2855  ;;  %v1866_v51 = vadd.f32 1.0, %v2854_v59 }
 0x1f1   : > { %v2858_v21 = vpop.eup %2857  ;;  %v1864_v61 = vadd.f32 1.0, %v2856_v44 }
 0x1f2   : > { %v2860_v19 = vpop.eup %2859  ;;  %2875 = vrcp.f32 %v1866_v51  ;;  %v1851_v36 = vadd.f32 1.0, %v2858_v21 }
 0x1f3   : > { %v2862_v8 = vpop.eup %2861  ;;  %2877 = vrcp.f32 %v1864_v61  ;;  %v1867_v16 = vadd.f32 1.0, %v2860_v19 }
 0x1f4   : > { %v2864_v63 = vpop.eup %2863  ;;  %2879 = vrcp.f32 %v1851_v36  ;;  %v1865_v25 = vadd.f32 1.0, %v2862_v8 }
 0x1f5   : > { %v2866_v60 = vpop.eup %2865  ;;  %2055 = vst.msk [vmem:[%s3258_s7 + $0x1d0] sm:$0xff] %vm1996_vm1, %v2864_v63  ;;  %2881 = vrcp.f32 %v1867_v16 }
 0x1f6   : > { %v2868_v3 = vpop.eup %2867  ;;  %2053 = vst.msk [vmem:[%s3258_s7 + $0x1c0] sm:$0xff] %vm1996_vm1, %v2866_v60  ;;  %2883 = vrcp.f32 %v1865_v25 }
 0x1f7   : > { %v2870_v29 = vpop.eup %2869  ;;  %2042 = vst.msk [vmem:[%s3258_s7 + $0x168] sm:$0xff] %vm1996_vm1, %v2868_v3 }
 0x1f8   : > { %v2872_v27 = vpop.eup %2871  ;;  %2056 = vst.msk [vmem:[%s3258_s7 + $0x1d8] sm:$0xff] %vm1996_vm1, %v2870_v29 }
 0x1f9   : > { %v2874_v52 = vpop.eup %2873  ;;  %2054 = vst.msk [vmem:[%s3258_s7 + $0x1c8] sm:$0xff] %vm1996_vm1, %v2872_v27 }
 0x1fa   : > { %2043 = vst.msk [vmem:[%s3258_s7 + $0x170] sm:$0xff] %vm1996_vm1, %v2874_v52 }
 0x1fc   : > { %v2876_v30 = vpop.eup %2875 }
 0x1fd   : > { %v2878_v40 = vpop.eup %2877  ;;  %2059 = vst.msk [vmem:[%s3258_s7 + $0x1f0] sm:$0xff] %vm1996_vm1, %v2876_v30 }
 0x1fe   : > { %v2880_v33 = vpop.eup %2879  ;;  %2057 = vst.msk [vmem:[%s3258_s7 + $0x1e0] sm:$0xff] %vm1996_vm1, %v2878_v40 }
 0x1ff   : > { %v2882_v37 = vpop.eup %2881  ;;  %2044 = vst.msk [vmem:[%s3258_s7 + $0x178] sm:$0xff] %vm1996_vm1, %v2880_v33 }
 0x200   : > { %v2884_v55 = vpop.eup %2883  ;;  %2060 = vst.msk [vmem:[%s3258_s7 + $0x1f8] sm:$0xff] %vm1996_vm1, %v2882_v37 }
 0x201   : > { %2058 = vst.msk [vmem:[%s3258_s7 + $0x1e8] sm:$0xff] %vm1996_vm1, %v2884_v55 }
 0x202 PF: > { %s13_s12 = sadd.s32 1, %s2892_s12  }
 0x203   : > { %p10_p4 = scmp.ge.s32.totalorder %s13_s12, 6  }
 0x205   :  { %12 = sbr.rel (!%p10_p4) target bundleno = 1 (0x1), region = 62 }

</bundles_post_ra>
